<compile_context>
chip_gen: v7x
topology: tpu7x:2x2x1
jax: 0.10.0
libtpu: 0.0.40
codegen_flags: <defaults>
</compile_context>

<pallas_src>
import jax
import jax.numpy as jnp
from jax import lax
from jax.experimental import pallas as pl
from jax.experimental.pallas import tpu as pltpu

# ---- model config (TPU-lane friendly; big enough to occupy MXU rows) --------
SEQ = 256              # prefill sequence length
TQ = 128               # query rows per grid step (power of two, multiple of 8)
HIDDEN = 256           # hidden_size
NUM_HEADS = 2          # num_attention_heads
NUM_KV_HEADS = 1       # num_key_value_heads (GQA)
HEAD_DIM = HIDDEN // NUM_HEADS            # 128
HEADS_PER_KV = NUM_HEADS // NUM_KV_HEADS  # 2
INTER = 512            # intermediate_size
EPS = 1e-6             # rms_norm_eps
Q_SIZE = NUM_HEADS * HEAD_DIM             # 256
KV_SIZE = NUM_KV_HEADS * HEAD_DIM         # 128
SCALING = HEAD_DIM ** (-0.5)
NEG_INF = -1e30


def _rmsnorm(x, w):
    # keep all elementwise math in f32 (v5e VPU/EUP have no bf16 support)
    var = jnp.mean(x * x, axis=-1, keepdims=True)
    return x * lax.rsqrt(var + EPS) * w


def _bf16(x):
    return x.astype(jnp.bfloat16)


def decoder_layer_kernel(x_ref, cos_ref, ssin_ref, ln1_ref, ln2_ref,
                         wqkv_ref, wo_ref, wgu_ref, wdn_ref, out_ref):
    i = pl.program_id(0)
    qstart = pl.multiple_of(i * TQ, TQ)

    x_full = x_ref[...]                                 # (SEQ, HIDDEN) f32
    x_q = x_ref[pl.ds(qstart, TQ), :]                   # (TQ, HIDDEN) residual
    cos_k = cos_ref[...]                                # (SEQ, HEAD_DIM)
    ssin_k = ssin_ref[...]                              # rotate_half sign pre-folded
    cos_q = cos_ref[pl.ds(qstart, TQ), :]
    ssin_q = ssin_ref[pl.ds(qstart, TQ), :]
    ln1 = ln1_ref[...]

    # ---- input RMSNorm (f32) ----
    xn_q = _rmsnorm(x_q, ln1)
    # TODO(synk): K/V are recomputed for every query tile; a long-prefill
    # version would stream K/V via a flash-style kv grid axis instead.
    xn_full = _rmsnorm(x_full, ln1)

    # ---- qkv projection: bf16 operands, f32 accumulation on the MXU ----
    wqkv = wqkv_ref[...]                                # bf16 (HIDDEN, Q+2KV)
    q = jnp.dot(_bf16(xn_q), wqkv[:, :Q_SIZE],
                preferred_element_type=jnp.float32)     # (TQ, Q_SIZE)
    kv = jnp.dot(_bf16(xn_full), wqkv[:, Q_SIZE:],
                 preferred_element_type=jnp.float32)    # (SEQ, 2*KV_SIZE)

    # causal mask for head-stacked queries: stacked row r -> token qstart + r%TQ
    row = lax.broadcasted_iota(jnp.int32, (HEADS_PER_KV * TQ, SEQ), 0)
    col = lax.broadcasted_iota(jnp.int32, (HEADS_PER_KV * TQ, SEQ), 1)
    tok_q = qstart + jnp.bitwise_and(row, TQ - 1)       # row % TQ (TQ pow-of-2)
    causal = tok_q >= col

    wo = wo_ref[...]                                    # bf16 (Q_SIZE, HIDDEN)
    attn_out = jnp.zeros((TQ, HIDDEN), jnp.float32)

    for g in range(NUM_KV_HEADS):
        # ---- K/V of this KV head; RoPE on K applied ONCE per KV head ----
        k_g = kv[:, g * HEAD_DIM:(g + 1) * HEAD_DIM]
        v_g = kv[:, KV_SIZE + g * HEAD_DIM:KV_SIZE + (g + 1) * HEAD_DIM]
        k_g = k_g * cos_k + pltpu.roll(k_g, shift=HEAD_DIM // 2, axis=1) * ssin_k

        # ---- RoPE per Q head, then stack the group's heads along rows ----
        q_heads = []
        for hh in range(HEADS_PER_KV):
            h = g * HEADS_PER_KV + hh
            q_h = q[:, h * HEAD_DIM:(h + 1) * HEAD_DIM]
            q_h = q_h * cos_q + pltpu.roll(q_h, shift=HEAD_DIM // 2, axis=1) * ssin_q
            q_heads.append(q_h)
        q_stack = jnp.concatenate(q_heads, axis=0) * SCALING   # (hpk*TQ, D)

        # ---- one scores matmul + one P@V matmul for the whole group ----
        s = lax.dot_general(_bf16(q_stack), _bf16(k_g),
                            (((1,), (1,)), ((), ())),
                            preferred_element_type=jnp.float32)  # (hpk*TQ, SEQ)
        s = jnp.where(causal, s, NEG_INF)
        m = jnp.max(s, axis=-1, keepdims=True)
        p = jnp.exp(s - m)                                       # f32
        denom = jnp.sum(p, axis=-1, keepdims=True)
        pv = jnp.dot(_bf16(p), _bf16(v_g),
                     preferred_element_type=jnp.float32)         # (hpk*TQ, D)
        pv = pv * pl.reciprocal(denom, approx=True)              # EUP slot

        # ---- fused o_proj: accumulate per-head partials (no concat copy) ----
        for hh in range(HEADS_PER_KV):
            h = g * HEADS_PER_KV + hh
            attn_out = attn_out + jnp.dot(
                _bf16(pv[hh * TQ:(hh + 1) * TQ, :]),
                wo[h * HEAD_DIM:(h + 1) * HEAD_DIM, :],
                preferred_element_type=jnp.float32)

    h1 = x_q + attn_out

    # ---- post-attention RMSNorm + MLP ----
    h1n = _rmsnorm(h1, ln2_ref[...])
    gu = jnp.dot(_bf16(h1n), wgu_ref[...],
                 preferred_element_type=jnp.float32)    # (TQ, 2*INTER)
    gate = gu[:, :INTER]
    up = gu[:, INTER:]
    act = gate * jax.nn.sigmoid(gate) * up              # SiLU(gate)*up in f32
    mlp_out = jnp.dot(_bf16(act), wdn_ref[...],
                      preferred_element_type=jnp.float32)

    out_ref[...] = h1 + mlp_out


@jax.jit
def llama_decoder_layer(x, cos, ssin, ln1, ln2, wqkv, wo, wgu, wdn):
    # constant index_map -> array stays resident in VMEM across grid steps
    resident = lambda shape: pl.BlockSpec(shape, lambda i: (0,) * len(shape))
    return pl.pallas_call(
        decoder_layer_kernel,
        out_shape=jax.ShapeDtypeStruct((SEQ, HIDDEN), jnp.float32),
        grid_spec=pltpu.PrefetchScalarGridSpec(
            num_scalar_prefetch=0,
            grid=(SEQ // TQ,),
            in_specs=[
                resident((SEQ, HIDDEN)),                   # x (f32)
                resident((SEQ, HEAD_DIM)),                 # cos
                resident((SEQ, HEAD_DIM)),                 # signed sin
                resident((1, HIDDEN)),                     # input_layernorm
                resident((1, HIDDEN)),                     # post_attn layernorm
                resident((HIDDEN, Q_SIZE + 2 * KV_SIZE)),  # qkv_proj (bf16)
                resident((Q_SIZE, HIDDEN)),                # o_proj (bf16)
                resident((HIDDEN, 2 * INTER)),             # gate_up_proj (bf16)
                resident((INTER, HIDDEN)),                 # down_proj (bf16)
            ],
            out_specs=pl.BlockSpec((TQ, HIDDEN), lambda i: (i, 0)),
        ),
        compiler_params=pltpu.CompilerParams(
            # "parallel" query-tile axis -> shards across the 2 TCs on v7x
            dimension_semantics=("parallel",),
            vmem_limit_bytes=32 * 1024 * 1024),
    )(x, cos, ssin, ln1, ln2, wqkv, wo, wgu, wdn)


# ---- pure-JAX reference (mirrors kernel math incl. bf16 matmul operands) ----
def reference(x, cos, ssin, ln1, ln2, wqkv, wo, wgu, wdn):
    bf = lambda a: a.astype(jnp.bfloat16)

    def rope(t):
        return t * cos + jnp.roll(t, HEAD_DIM // 2, axis=1) * ssin

    xn = _rmsnorm(x, ln1)
    qkv = jnp.dot(bf(xn), wqkv, preferred_element_type=jnp.float32)
    causal = jnp.arange(SEQ)[:, None] >= jnp.arange(SEQ)[None, :]
    outs = []
    for h in range(NUM_HEADS):
        g = h // HEADS_PER_KV
        q_h = rope(qkv[:, h * HEAD_DIM:(h + 1) * HEAD_DIM]) * SCALING
        k_h = rope(qkv[:, Q_SIZE + g * HEAD_DIM:Q_SIZE + (g + 1) * HEAD_DIM])
        v_h = qkv[:, Q_SIZE + KV_SIZE + g * HEAD_DIM:
                  Q_SIZE + KV_SIZE + (g + 1) * HEAD_DIM]
        s = jnp.dot(bf(q_h), bf(k_h).T, preferred_element_type=jnp.float32)
        s = jnp.where(causal, s, NEG_INF)
        m = jnp.max(s, axis=-1, keepdims=True)
        p = jnp.exp(s - m)
        o = jnp.dot(bf(p), bf(v_h), preferred_element_type=jnp.float32)
        outs.append(o / jnp.sum(p, axis=-1, keepdims=True))
    attn = jnp.concatenate(outs, axis=-1)
    h1 = x + jnp.dot(bf(attn), wo, preferred_element_type=jnp.float32)
    h1n = _rmsnorm(h1, ln2)
    gu = jnp.dot(bf(h1n), wgu, preferred_element_type=jnp.float32)
    gate, up = gu[:, :INTER], gu[:, INTER:]
    act = gate * jax.nn.sigmoid(gate) * up
    return h1 + jnp.dot(bf(act), wdn, preferred_element_type=jnp.float32)


if __name__ == "__main__":
    key = jax.random.PRNGKey(0)
    ks = jax.random.split(key, 6)

    # deterministic synthetic parameters (weights stored in bf16 in HBM)
    x = jax.random.normal(ks[0], (SEQ, HIDDEN), jnp.float32)
    wqkv = (jax.random.normal(ks[1], (HIDDEN, Q_SIZE + 2 * KV_SIZE),
                              jnp.float32) * 0.02).astype(jnp.bfloat16)
    wo = (jax.random.normal(ks[2], (Q_SIZE, HIDDEN),
                            jnp.float32) * 0.02).astype(jnp.bfloat16)
    wgu = (jax.random.normal(ks[3], (HIDDEN, 2 * INTER),
                             jnp.float32) * 0.02).astype(jnp.bfloat16)
    wdn = (jax.random.normal(ks[4], (INTER, HIDDEN),
                             jnp.float32) * 0.02).astype(jnp.bfloat16)
    ln1 = jnp.ones((1, HIDDEN), jnp.float32) + 0.01 * jax.random.normal(
        ks[5], (1, HIDDEN), jnp.float32)
    ln2 = jnp.ones((1, HIDDEN), jnp.float32)

    # positions + neox-style RoPE tables; rotate_half sign folded into sin
    positions = jnp.arange(SEQ, dtype=jnp.float32)
    inv_freq = 1.0 / (10000.0 ** (jnp.arange(0, HEAD_DIM, 2, dtype=jnp.float32)
                                  / HEAD_DIM))
    freqs = positions[:, None] * inv_freq[None, :]
    cos = jnp.concatenate([jnp.cos(freqs), jnp.cos(freqs)], axis=-1)
    sin = jnp.concatenate([jnp.sin(freqs), jnp.sin(freqs)], axis=-1)
    sign = jnp.where(jnp.arange(HEAD_DIM) < HEAD_DIM // 2, -1.0, 1.0)
    ssin = sin * sign[None, :]

    out = llama_decoder_layer(x, cos, ssin, ln1, ln2, wqkv, wo, wgu, wdn)
    out = jax.block_until_ready(out)

    ref = reference(x, cos, ssin, ln1, ln2, wqkv, wo, wgu, wdn)
    assert out.shape == (SEQ, HIDDEN) and out.dtype == jnp.float32
    max_err = float(jnp.max(jnp.abs(out - ref)))
    assert jnp.allclose(out, ref, atol=2e-2, rtol=2e-2), max_err

    print("KERNEL_OK")
</pallas_src>

<mosaic_0001>
module attributes {stable_mosaic.version = 11 : i64} {
  func.func @decoder_layer_kernel(%arg0: i32, %arg1: memref<256x256xf32, #tpu.memory_space<vmem>>, %arg2: memref<256x128xf32, #tpu.memory_space<vmem>>, %arg3: memref<256x128xf32, #tpu.memory_space<vmem>>, %arg4: memref<1x256xf32, #tpu.memory_space<vmem>>, %arg5: memref<1x256xf32, #tpu.memory_space<vmem>>, %arg6: memref<256x512xbf16, #tpu.memory_space<vmem>>, %arg7: memref<256x256xbf16, #tpu.memory_space<vmem>>, %arg8: memref<256x1024xbf16, #tpu.memory_space<vmem>>, %arg9: memref<512x256xbf16, #tpu.memory_space<vmem>>, %arg10: memref<128x256xf32, #tpu.memory_space<vmem>>) attributes {dimension_semantics = [#tpu.dimension_semantics<parallel>], iteration_bounds = array<i64: 2>, scalar_prefetch = 0 : i64, scratch_operands = 0 : i64, tpu.core_type = #tpu.core_type<tc>, window_params = [{pipeline_mode = #tpu.pipeline_mode<synchronous>, transform_indices = @transform_0, window_bounds = array<i64: 256, 256>}, {pipeline_mode = #tpu.pipeline_mode<synchronous>, transform_indices = @transform_1, window_bounds = array<i64: 256, 128>}, {pipeline_mode = #tpu.pipeline_mode<synchronous>, transform_indices = @transform_2, window_bounds = array<i64: 256, 128>}, {pipeline_mode = #tpu.pipeline_mode<synchronous>, transform_indices = @transform_3, window_bounds = array<i64: 1, 256>}, {pipeline_mode = #tpu.pipeline_mode<synchronous>, transform_indices = @transform_4, window_bounds = array<i64: 1, 256>}, {pipeline_mode = #tpu.pipeline_mode<synchronous>, transform_indices = @transform_5, window_bounds = array<i64: 256, 512>}, {pipeline_mode = #tpu.pipeline_mode<synchronous>, transform_indices = @transform_6, window_bounds = array<i64: 256, 256>}, {pipeline_mode = #tpu.pipeline_mode<synchronous>, transform_indices = @transform_7, window_bounds = array<i64: 256, 1024>}, {pipeline_mode = #tpu.pipeline_mode<synchronous>, transform_indices = @transform_8, window_bounds = array<i64: 512, 256>}, {transform_indices = @transform_9, window_bounds = array<i64: 128, 256>}]} {
    %c128_i32 = arith.constant 128 : i32
    %0 = arith.muli %arg0, %c128_i32 : i32
    %1 = tpu.assume_multiple %0, 128 : i32
    %c0 = arith.constant 0 : index
    %c0_0 = arith.constant 0 : index
    %2 = vector.load %arg1[%c0, %c0_0] : memref<256x256xf32, #tpu.memory_space<vmem>>, vector<256x256xf32>
    %3 = arith.index_cast %1 : i32 to index
    %c0_1 = arith.constant 0 : index
    %4 = vector.load %arg1[%3, %c0_1] : memref<256x256xf32, #tpu.memory_space<vmem>>, vector<128x256xf32>
    %c0_2 = arith.constant 0 : index
    %c0_3 = arith.constant 0 : index
    %5 = vector.load %arg2[%c0_2, %c0_3] : memref<256x128xf32, #tpu.memory_space<vmem>>, vector<256x128xf32>
    %c0_4 = arith.constant 0 : index
    %c0_5 = arith.constant 0 : index
    %6 = vector.load %arg3[%c0_4, %c0_5] : memref<256x128xf32, #tpu.memory_space<vmem>>, vector<256x128xf32>
    %7 = arith.index_cast %1 : i32 to index
    %c0_6 = arith.constant 0 : index
    %8 = vector.load %arg2[%7, %c0_6] : memref<256x128xf32, #tpu.memory_space<vmem>>, vector<128x128xf32>
    %9 = arith.index_cast %1 : i32 to index
    %c0_7 = arith.constant 0 : index
    %10 = vector.load %arg3[%9, %c0_7] : memref<256x128xf32, #tpu.memory_space<vmem>>, vector<128x128xf32>
    %c0_8 = arith.constant 0 : index
    %c0_9 = arith.constant 0 : index
    %11 = vector.load %arg4[%c0_8, %c0_9] : memref<1x256xf32, #tpu.memory_space<vmem>>, vector<1x256xf32>
    %12 = arith.mulf %4, %4 : vector<128x256xf32>
    %cst = arith.constant dense<0.000000e+00> : vector<128xf32>
    %13 = vector.multi_reduction <add>, %12, %cst [1] : vector<128x256xf32> to vector<128xf32>
    %14 = vector.shape_cast %13 : vector<128xf32> to vector<128x1xf32>
    %cst_10 = arith.constant 2.560000e+02 : f32
    %15 = vector.broadcast %cst_10 : f32 to vector<128x1xf32>
    %16 = arith.divf %14, %15 : vector<128x1xf32>
    %cst_11 = arith.constant 9.99999997E-7 : f32
    %17 = vector.broadcast %cst_11 : f32 to vector<128x1xf32>
    %18 = arith.addf %16, %17 : vector<128x1xf32>
    %19 = math.rsqrt %18 : vector<128x1xf32>
    %20 = vector.broadcast %19 : vector<128x1xf32> to vector<128x256xf32>
    %21 = arith.mulf %4, %20 : vector<128x256xf32>
    %22 = vector.broadcast %11 : vector<1x256xf32> to vector<128x256xf32>
    %23 = arith.mulf %21, %22 : vector<128x256xf32>
    %24 = arith.mulf %2, %2 : vector<256x256xf32>
    %cst_12 = arith.constant dense<0.000000e+00> : vector<256xf32>
    %25 = vector.multi_reduction <add>, %24, %cst_12 [1] : vector<256x256xf32> to vector<256xf32>
    %26 = vector.shape_cast %25 : vector<256xf32> to vector<256x1xf32>
    %cst_13 = arith.constant 2.560000e+02 : f32
    %27 = vector.broadcast %cst_13 : f32 to vector<256x1xf32>
    %28 = arith.divf %26, %27 : vector<256x1xf32>
    %cst_14 = arith.constant 9.99999997E-7 : f32
    %29 = vector.broadcast %cst_14 : f32 to vector<256x1xf32>
    %30 = arith.addf %28, %29 : vector<256x1xf32>
    %31 = math.rsqrt %30 : vector<256x1xf32>
    %32 = vector.broadcast %31 : vector<256x1xf32> to vector<256x256xf32>
    %33 = arith.mulf %2, %32 : vector<256x256xf32>
    %34 = vector.broadcast %11 : vector<1x256xf32> to vector<256x256xf32>
    %35 = arith.mulf %33, %34 : vector<256x256xf32>
    %c0_15 = arith.constant 0 : index
    %c0_16 = arith.constant 0 : index
    %36 = vector.load %arg6[%c0_15, %c0_16] : memref<256x512xbf16, #tpu.memory_space<vmem>>, vector<256x512xbf16>
    %37 = arith.truncf %23 : vector<128x256xf32> to vector<128x256xbf16>
    %38 = vector.extract_strided_slice %36 {offsets = [0, 0], sizes = [256, 256], strides = [1, 1]} : vector<256x512xbf16> to vector<256x256xbf16>
    %cst_17 = arith.constant dense<0.000000e+00> : vector<128x256xf32>
    %39 = tpu.matmul %37, %38, %cst_17 {dimension_numbers = #tpu.dot_dimension_numbers<[1], [0], [0], [1], [0, 0, 1, 1], [], []>} : vector<128x256xbf16>, vector<256x256xbf16>, vector<128x256xf32> -> vector<128x256xf32>
    %40 = arith.truncf %35 : vector<256x256xf32> to vector<256x256xbf16>
    %41 = vector.extract_strided_slice %36 {offsets = [0, 256], sizes = [256, 256], strides = [1, 1]} : vector<256x512xbf16> to vector<256x256xbf16>
    %cst_18 = arith.constant dense<0.000000e+00> : vector<256x256xf32>
    %42 = tpu.matmul %40, %41, %cst_18 {dimension_numbers = #tpu.dot_dimension_numbers<[1], [0], [0], [1], [0, 0, 1, 1], [], []>} : vector<256x256xbf16>, vector<256x256xbf16>, vector<256x256xf32> -> vector<256x256xf32>
    %43 = tpu.iota {dimensions = array<i32: 0>} : vector<256x256xi32>
    %44 = tpu.iota {dimensions = array<i32: 1>} : vector<256x256xi32>
    %c127_i32 = arith.constant 127 : i32
    %45 = vector.broadcast %c127_i32 : i32 to vector<256x256xi32>
    %46 = arith.andi %43, %45 : vector<256x256xi32>
    %47 = vector.broadcast %1 : i32 to vector<256x256xi32>
    %48 = arith.addi %47, %46 : vector<256x256xi32>
    %49 = arith.cmpi sge, %48, %44 : vector<256x256xi32>
    %c0_19 = arith.constant 0 : index
    %c0_20 = arith.constant 0 : index
    %50 = vector.load %arg7[%c0_19, %c0_20] : memref<256x256xbf16, #tpu.memory_space<vmem>>, vector<256x256xbf16>
    %cst_21 = arith.constant 0.000000e+00 : f32
    %51 = vector.broadcast %cst_21 : f32 to vector<128x256xf32>
    %52 = vector.extract_strided_slice %42 {offsets = [0, 0], sizes = [256, 128], strides = [1, 1]} : vector<256x256xf32> to vector<256x128xf32>
    %53 = vector.extract_strided_slice %42 {offsets = [0, 128], sizes = [256, 128], strides = [1, 1]} : vector<256x256xf32> to vector<256x128xf32>
    %54 = arith.mulf %52, %5 : vector<256x128xf32>
    %c64_i32 = arith.constant 64 : i32
    %55 = tpu.dynamic_rotate %52 by %c64_i32 dim 1 : vector<256x128xf32>, i32 -> vector<256x128xf32>
    %56 = arith.mulf %55, %6 : vector<256x128xf32>
    %57 = arith.addf %54, %56 : vector<256x128xf32>
    %58 = vector.extract_strided_slice %39 {offsets = [0, 0], sizes = [128, 128], strides = [1, 1]} : vector<128x256xf32> to vector<128x128xf32>
    %59 = arith.mulf %58, %8 : vector<128x128xf32>
    %c64_i32_22 = arith.constant 64 : i32
    %60 = tpu.dynamic_rotate %58 by %c64_i32_22 dim 1 : vector<128x128xf32>, i32 -> vector<128x128xf32>
    %61 = arith.mulf %60, %10 : vector<128x128xf32>
    %62 = arith.addf %59, %61 : vector<128x128xf32>
    %63 = vector.extract_strided_slice %39 {offsets = [0, 128], sizes = [128, 128], strides = [1, 1]} : vector<128x256xf32> to vector<128x128xf32>
    %64 = arith.mulf %63, %8 : vector<128x128xf32>
    %c64_i32_23 = arith.constant 64 : i32
    %65 = tpu.dynamic_rotate %63 by %c64_i32_23 dim 1 : vector<128x128xf32>, i32 -> vector<128x128xf32>
    %66 = arith.mulf %65, %10 : vector<128x128xf32>
    %67 = arith.addf %64, %66 : vector<128x128xf32>
    %68 = tpu.concatenate %62, %67 in 0 : vector<128x128xf32>, vector<128x128xf32> -> vector<256x128xf32>
    %cst_24 = arith.constant 0.0883883461 : f32
    %69 = vector.broadcast %cst_24 : f32 to vector<256x128xf32>
    %70 = arith.mulf %68, %69 : vector<256x128xf32>
    %71 = arith.truncf %70 : vector<256x128xf32> to vector<256x128xbf16>
    %72 = arith.truncf %57 : vector<256x128xf32> to vector<256x128xbf16>
    %cst_25 = arith.constant dense<0.000000e+00> : vector<256x256xf32>
    %73 = tpu.matmul %71, %72, %cst_25 {dimension_numbers = #tpu.dot_dimension_numbers<[1], [1], [0], [0], [0, 0, 1, 0], [], []>} : vector<256x128xbf16>, vector<256x128xbf16>, vector<256x256xf32> -> vector<256x256xf32>
    %cst_26 = arith.constant -1.000000e+30 : f32
    %74 = vector.broadcast %cst_26 : f32 to vector<256x256xf32>
    %75 = arith.select %49, %73, %74 : vector<256x256xi1>, vector<256x256xf32>
    %cst_27 = arith.constant dense<0xFF800000> : vector<256xf32>
    %76 = vector.multi_reduction <maximumf>, %75, %cst_27 [1] : vector<256x256xf32> to vector<256xf32>
    %77 = vector.shape_cast %76 : vector<256xf32> to vector<256x1xf32>
    %78 = vector.broadcast %77 : vector<256x1xf32> to vector<256x256xf32>
    %79 = arith.subf %75, %78 : vector<256x256xf32>
    %80 = math.exp %79 : vector<256x256xf32>
    %cst_28 = arith.constant dense<0.000000e+00> : vector<256xf32>
    %81 = vector.multi_reduction <add>, %80, %cst_28 [1] : vector<256x256xf32> to vector<256xf32>
    %82 = vector.shape_cast %81 : vector<256xf32> to vector<256x1xf32>
    %83 = arith.truncf %80 : vector<256x256xf32> to vector<256x256xbf16>
    %84 = arith.truncf %53 : vector<256x128xf32> to vector<256x128xbf16>
    %cst_29 = arith.constant dense<0.000000e+00> : vector<256x128xf32>
    %85 = tpu.matmul %83, %84, %cst_29 {dimension_numbers = #tpu.dot_dimension_numbers<[1], [0], [0], [1], [0, 0, 1, 1], [], []>} : vector<256x256xbf16>, vector<256x128xbf16>, vector<256x128xf32> -> vector<256x128xf32>
    %86 = tpu.reciprocal %82 {approx = true} : vector<256x1xf32> -> vector<256x1xf32>
    %87 = vector.broadcast %86 : vector<256x1xf32> to vector<256x128xf32>
    %88 = arith.mulf %85, %87 : vector<256x128xf32>
    %89 = vector.extract_strided_slice %88 {offsets = [0, 0], sizes = [128, 128], strides = [1, 1]} : vector<256x128xf32> to vector<128x128xf32>
    %90 = arith.truncf %89 : vector<128x128xf32> to vector<128x128xbf16>
    %91 = vector.extract_strided_slice %50 {offsets = [0, 0], sizes = [128, 256], strides = [1, 1]} : vector<256x256xbf16> to vector<128x256xbf16>
    %cst_30 = arith.constant dense<0.000000e+00> : vector<128x256xf32>
    %92 = tpu.matmul %90, %91, %cst_30 {dimension_numbers = #tpu.dot_dimension_numbers<[1], [0], [0], [1], [0, 0, 1, 1], [], []>} : vector<128x128xbf16>, vector<128x256xbf16>, vector<128x256xf32> -> vector<128x256xf32>
    %93 = arith.addf %51, %92 : vector<128x256xf32>
    %94 = vector.extract_strided_slice %88 {offsets = [128, 0], sizes = [128, 128], strides = [1, 1]} : vector<256x128xf32> to vector<128x128xf32>
    %95 = arith.truncf %94 : vector<128x128xf32> to vector<128x128xbf16>
    %96 = vector.extract_strided_slice %50 {offsets = [128, 0], sizes = [128, 256], strides = [1, 1]} : vector<256x256xbf16> to vector<128x256xbf16>
    %cst_31 = arith.constant dense<0.000000e+00> : vector<128x256xf32>
    %97 = tpu.matmul %95, %96, %cst_31 {dimension_numbers = #tpu.dot_dimension_numbers<[1], [0], [0], [1], [0, 0, 1, 1], [], []>} : vector<128x128xbf16>, vector<128x256xbf16>, vector<128x256xf32> -> vector<128x256xf32>
    %98 = arith.addf %93, %97 : vector<128x256xf32>
    %99 = arith.addf %4, %98 : vector<128x256xf32>
    %c0_32 = arith.constant 0 : index
    %c0_33 = arith.constant 0 : index
    %100 = vector.load %arg5[%c0_32, %c0_33] : memref<1x256xf32, #tpu.memory_space<vmem>>, vector<1x256xf32>
    %101 = arith.mulf %99, %99 : vector<128x256xf32>
    %cst_34 = arith.constant dense<0.000000e+00> : vector<128xf32>
    %102 = vector.multi_reduction <add>, %101, %cst_34 [1] : vector<128x256xf32> to vector<128xf32>
    %103 = vector.shape_cast %102 : vector<128xf32> to vector<128x1xf32>
    %cst_35 = arith.constant 2.560000e+02 : f32
    %104 = vector.broadcast %cst_35 : f32 to vector<128x1xf32>
    %105 = arith.divf %103, %104 : vector<128x1xf32>
    %cst_36 = arith.constant 9.99999997E-7 : f32
    %106 = vector.broadcast %cst_36 : f32 to vector<128x1xf32>
    %107 = arith.addf %105, %106 : vector<128x1xf32>
    %108 = math.rsqrt %107 : vector<128x1xf32>
    %109 = vector.broadcast %108 : vector<128x1xf32> to vector<128x256xf32>
    %110 = arith.mulf %99, %109 : vector<128x256xf32>
    %111 = vector.broadcast %100 : vector<1x256xf32> to vector<128x256xf32>
    %112 = arith.mulf %110, %111 : vector<128x256xf32>
    %113 = arith.truncf %112 : vector<128x256xf32> to vector<128x256xbf16>
    %c0_37 = arith.constant 0 : index
    %c0_38 = arith.constant 0 : index
    %114 = vector.load %arg8[%c0_37, %c0_38] : memref<256x1024xbf16, #tpu.memory_space<vmem>>, vector<256x1024xbf16>
    %cst_39 = arith.constant dense<0.000000e+00> : vector<128x1024xf32>
    %115 = tpu.matmul %113, %114, %cst_39 {dimension_numbers = #tpu.dot_dimension_numbers<[1], [0], [0], [1], [0, 0, 1, 1], [], []>} : vector<128x256xbf16>, vector<256x1024xbf16>, vector<128x1024xf32> -> vector<128x1024xf32>
    %116 = vector.extract_strided_slice %115 {offsets = [0, 0], sizes = [128, 512], strides = [1, 1]} : vector<128x1024xf32> to vector<128x512xf32>
    %117 = vector.extract_strided_slice %115 {offsets = [0, 512], sizes = [128, 512], strides = [1, 1]} : vector<128x1024xf32> to vector<128x512xf32>
    %118 = arith.negf %116 : vector<128x512xf32>
    %119 = math.exp %118 : vector<128x512xf32>
    %cst_40 = arith.constant 1.000000e+00 : f32
    %120 = vector.broadcast %cst_40 : f32 to vector<128x512xf32>
    %121 = arith.addf %120, %119 : vector<128x512xf32>
    %122 = arith.divf %120, %121 : vector<128x512xf32>
    %123 = arith.mulf %116, %122 : vector<128x512xf32>
    %124 = arith.mulf %123, %117 : vector<128x512xf32>
    %125 = arith.truncf %124 : vector<128x512xf32> to vector<128x512xbf16>
    %c0_41 = arith.constant 0 : index
    %c0_42 = arith.constant 0 : index
    %126 = vector.load %arg9[%c0_41, %c0_42] : memref<512x256xbf16, #tpu.memory_space<vmem>>, vector<512x256xbf16>
    %cst_43 = arith.constant dense<0.000000e+00> : vector<128x256xf32>
    %127 = tpu.matmul %125, %126, %cst_43 {dimension_numbers = #tpu.dot_dimension_numbers<[1], [0], [0], [1], [0, 0, 1, 1], [], []>} : vector<128x512xbf16>, vector<512x256xbf16>, vector<128x256xf32> -> vector<128x256xf32>
    %128 = arith.addf %99, %127 : vector<128x256xf32>
    %c0_44 = arith.constant 0 : index
    %c0_45 = arith.constant 0 : index
    %129 = vector.load %arg10[%c0_44, %c0_45] : memref<128x256xf32, #tpu.memory_space<vmem>>, vector<128x256xf32>
    tpu.vector_store %arg10[%c0_44, %c0_45], %128 {strides = array<i32>} : memref<128x256xf32, #tpu.memory_space<vmem>>, vector<128x256xf32>,
    return
  }
  func.func @transform_0(%arg0: i32) -> (i32, i32) {
    %c0_i32 = arith.constant 0 : i32
    %c0_i32_0 = arith.constant 0 : i32
    %c0_i32_1 = arith.constant 0 : i32
    return %c0_i32, %c0_i32_0 : i32, i32
  }
  func.func @transform_1(%arg0: i32) -> (i32, i32) {
    %c0_i32 = arith.constant 0 : i32
    %c0_i32_0 = arith.constant 0 : i32
    %c0_i32_1 = arith.constant 0 : i32
    return %c0_i32, %c0_i32_0 : i32, i32
  }
  func.func @transform_2(%arg0: i32) -> (i32, i32) {
    %c0_i32 = arith.constant 0 : i32
    %c0_i32_0 = arith.constant 0 : i32
    %c0_i32_1 = arith.constant 0 : i32
    return %c0_i32, %c0_i32_0 : i32, i32
  }
  func.func @transform_3(%arg0: i32) -> (i32, i32) {
    %c0_i32 = arith.constant 0 : i32
    %c0_i32_0 = arith.constant 0 : i32
    %c0_i32_1 = arith.constant 0 : i32
    return %c0_i32, %c0_i32_0 : i32, i32
  }
  func.func @transform_4(%arg0: i32) -> (i32, i32) {
    %c0_i32 = arith.constant 0 : i32
    %c0_i32_0 = arith.constant 0 : i32
    %c0_i32_1 = arith.constant 0 : i32
    return %c0_i32, %c0_i32_0 : i32, i32
  }
  func.func @transform_5(%arg0: i32) -> (i32, i32) {
    %c0_i32 = arith.constant 0 : i32
    %c0_i32_0 = arith.constant 0 : i32
    %c0_i32_1 = arith.constant 0 : i32
    return %c0_i32, %c0_i32_0 : i32, i32
  }
  func.func @transform_6(%arg0: i32) -> (i32, i32) {
    %c0_i32 = arith.constant 0 : i32
    %c0_i32_0 = arith.constant 0 : i32
    %c0_i32_1 = arith.constant 0 : i32
    return %c0_i32, %c0_i32_0 : i32, i32
  }
  func.func @transform_7(%arg0: i32) -> (i32, i32) {
    %c0_i32 = arith.constant 0 : i32
    %c0_i32_0 = arith.constant 0 : i32
    %c0_i32_1 = arith.constant 0 : i32
    return %c0_i32, %c0_i32_0 : i32, i32
  }
  func.func @transform_8(%arg0: i32) -> (i32, i32) {
    %c0_i32 = arith.constant 0 : i32
    %c0_i32_0 = arith.constant 0 : i32
    %c0_i32_1 = arith.constant 0 : i32
    return %c0_i32, %c0_i32_0 : i32, i32
  }
  func.func @transform_9(%arg0: i32) -> (i32, i32) {
    %c0_i32 = arith.constant 0 : i32
    %c0_i32_0 = arith.constant 0 : i32
    return %arg0, %c0_i32 : i32, i32
  }
}

</mosaic_0001>

<bundles_post_ra>
// kernel: llama_decoder_layer.1
= control target key start
LH: loop header
LB: loop body
LE: loop exit
PB: predicated region body
PF: predicated region fallthrough
CT: control target
= control target key end

     0   :  { %s11486_s0 = inlined_call_operand.hbm [shape: f32[256,256], index: 0, kind: input, shape index: {}]   ;;  %s11487_s1 = inlined_call_operand.hbm [shape: f32[256,128], index: 1, kind: input, shape index: {}]   ;;  %s11488_s2 = inlined_call_operand.hbm [shape: f32[256,128], index: 2, kind: input, shape index: {}]   ;;  %s11489_s3 = inlined_call_operand.vmem [shape: f32[1,256], index: 3, kind: input, shape index: {}]   ;;  %s11490_s4 = inlined_call_operand.vmem [shape: f32[1,256], index: 4, kind: input, shape index: {}]   ;;  %s11491_s5 = inlined_call_operand.hbm [shape: bf16[256,512], index: 5, kind: input, shape index: {}]   ;;  %s11492_s6 = inlined_call_operand.hbm [shape: bf16[256,256], index: 6, kind: input, shape index: {}]   ;;  %s11493_s7 = inlined_call_operand.hbm [shape: bf16[256,1024], index: 7, kind: input, shape index: {}]   ;;  %s11494_s8 = inlined_call_operand.hbm [shape: bf16[512,256], index: 8, kind: input, shape index: {}]   ;;  %s11495_s9 = inlined_call_operand.hbm [shape: f32[256,256], index: 9, kind: output, shape index: {}]  }
   0x1   :  { %11653 = sst [smem:[#allocation101_spill]] %s11487_s1 }
   0x2   :  { %14 = vsyncpa [#allocation3], 0 }
   0x3   :  { %15 = vsyncpa [#allocation6], 0 }
   0x4   :  { %16 = vsyncpa [#allocation9], 0 }
   0x5   :  { %17 = vsyncpa [#allocation12], 0 }
   0x6   :  { %18 = vsyncpa [#allocation4], 0 }
   0x7   :  { %20 = vsyncpa [#allocation4 + $0x1], 0  ;;  %s8699_s30 = smov 0   ;;  %s8701_s10 = smov 0  }
   0x8   :  { %s8703_s11 = smov 0   ;;  %s8705_s12 = smov 0  }
   0x9 LB: > { %11654 = sst [smem:[#allocation20_spill]] %s8617_s30  ;;  %s8720_s13 = sadd.s32 4294967295, %s8629_s12   ;;  %s8629_s12 = sphi %s8705_s12, %s11998_s12   ;;  %s8625_s11 = sphi %s8703_s11, %s12000_s11   ;;  %s8621_s10 = sphi %s8701_s10, %s12002_s10   ;;  %s8617_s30 = sphi %s8699_s30, %s12001_s30  }
   0xa   : > { %11655 = sst [smem:[#allocation21_spill]] %s8625_s11  ;;  %s6669_s14 = sadd.s32 4294967294, %s8629_s12  }
   0xb   : > { %11656 = sst [smem:[#allocation22_spill]] %s8629_s12  ;;  %s8724_s15 = sadd.s32 1, %s8629_s12  }
   0xc   : > { %11657 = sst [smem:[#allocation23_spill]] %s8724_s15  ;;  %s222_s16 = sadd.s32 1, %s8625_s11 }
   0xd   : > { %s219_s17 = ssub.s32 %s8629_s12, %s8724_s15  ;;  %p232_p0 = scmp.ne.s32.totalorder %s8625_s11, %s8621_s10 }
   0xe   : > { %p220_p1 = scmp.eq.s32.totalorder %s219_s17, 0  ;;  %p233_p2 = scmp.eq.s32.totalorder %s8720_s13, 1 }
   0xf   : > { %p238_p3 = scmp.ne.s32.totalorder %s8621_s10, %s8617_s30  ;;  %p239_p4 = scmp.eq.s32.totalorder %s6669_s14, 1 }
  0x10   : > { %s8735_s18 = scalar_select %p220_p1, %s8625_s11, %s222_s16  }
  0x11   : > { %p8737_p5 = por %p233_p2, %p232_p0  ;;  %p8741_p6 = por %p239_p4, %p238_p3 }
  0x12   : > { %11658 = sst [smem:[#allocation24_spill]] %s8735_s18  ;;  %p6670_p7 = scmp.ge.s32.totalorder %s8629_s12, 1 }
  0x13   : > { %s11659_s19 = scalar_select %p8737_p5, 1, 0 }
  0x14   : > { %s11660_s20 = scalar_select %p8741_p6, 1, 0 }
  0x15   : > { %p246_p8 = scmp.lt.s32.totalorder %s8629_s12, 3  ;;  %p11496_p9 = scmp.eq.s32.totalorder %s8720_s13, 0 }
  0x16   : > { %11661 = sst [smem:[#allocation25_spill]] %s11660_s20  ;;  %s8631_s22 = smov [#allocation5]  }
  0x17   : > { %p8748_p10 = pnand %p6670_p7, %p246_p8  ;;  %s271_s23 = sshll.u32 %s8631_s22, 4  ;;  %s272_s23 = int_to_ptr.vmem [resolvable:$true] %s271_s23 }
  0x18   : > { %s8632_s25 = smov [#allocation8]   ;;  %s11664_s1 = sld [smem:[#allocation101_spill]] }
  0x19   : > { %s11662_s21 = scalar_select %p8748_p10, 1, 0 }
  0x1a   : > { %p7321_p11 = pneg %p8748_p10  ;;  %s303_s26 = sshll.u32 %s8632_s25, 4  ;;  %s304_s26 = int_to_ptr.vmem [resolvable:$true] %s303_s26 }
  0x1c   : > { %p8756_p12 = pnand %p11496_p9, %p7321_p11 }
  0x1e   : > { %s8355_s29 = scalar_lea.hbm %s11664_s1, 4096  ;;  %p8768_p0 = pneg %p8756_p12 }
  0x1f   : > { %p8356_p13 = scmp.ne.s32.totalorder %s11664_s1, %s8355_s29  ;;  %p8362_p3 = scmp.lt.u32.totalorder %s8355_s29, %s11664_s1 }
  0x21   : > { %p8358_p1 = pnand %p8768_p0, %p8356_p13 }
  0x23   : > { %p8359_p2 = pneg %p8358_p1 }
  0x25   : > { %p8364_p4 = pnand %p8362_p3, %p8359_p2 }
  0x27   : > { %8367 = shalt.err (!%p8364_p4)
}
  0x28   : > { %s8368_s25 = scalar_lea.vmem %s272_s23, 4096  ;;  %p8376_p9 = scmp.lt.s32.totalorder %s272_s23, %s272_s23 }
  0x29   : > { %p8369_p7 = scmp.ne.s32.totalorder %s272_s23, %s8368_s25  ;;  %p8377_p6 = scmp.lt.s32.totalorder %s8368_s25, %s8368_s25 }
  0x2b   : > { %p8371_p8 = pnand %p8369_p7, %p8768_p0  ;;  %p8378_p5 = por %p8377_p6, %p8376_p9 }
  0x2d   : > { %p8372_p11 = pneg %p8371_p8 }
  0x2f   : > { %p8379_p10 = pnand %p8378_p5, %p8372_p11 }
  0x31   : > { %8382 = shalt.err (!%p8379_p10)
}
  0x32   : > { %s11505_s27 = smov 128   ;;  %s11507_s28 = smov 8  }
  0x33   : > { %7327 = dma.hbm_to_vmem [thread:$0]  (!%p8756_p12), %s11664_s1, 4096, %s272_s23, [#allocation6], %s11505_s27, %s11505_s27, %s11507_s28  }
  0x34   : > { %s8635_s14 = smov [#allocation11]   ;;  %s8383_s11 = scalar_lea.hbm %s11491_s5, 8192 }
  0x35   : > { %s329_s16 = sshll.u32 %s8635_s14, 4  ;;  %p8384_p5 = scmp.ne.s32.totalorder %s11491_s5, %s8383_s11  ;;  %s330_s16 = int_to_ptr.vmem [resolvable:$true] %s329_s16 }
  0x36   : > { %p8390_p10 = scmp.lt.u32.totalorder %s8383_s11, %s11491_s5 }
  0x37   : > { %p8386_p6 = pnand %p8384_p5, %p8768_p0 }
  0x39   : > { %p8387_p9 = pneg %p8386_p6 }
  0x3b   : > { %p8392_p13 = pnand %p8390_p10, %p8387_p9 }
  0x3d   : > { %8395 = shalt.err (!%p8392_p13)
}
  0x3e   : > { %s8396_s23 = scalar_lea.vmem %s304_s26, 8192  ;;  %p8404_p4 = scmp.lt.s32.totalorder %s304_s26, %s304_s26 }
  0x3f   : > { %p8397_p1 = scmp.ne.s32.totalorder %s304_s26, %s8396_s23  ;;  %p8405_p7 = scmp.lt.s32.totalorder %s8396_s23, %s8396_s23 }
  0x41   : > { %p8399_p2 = pnand %p8397_p1, %p8768_p0  ;;  %p8406_p8 = por %p8405_p7, %p8404_p4 }
  0x43   : > { %p8400_p3 = pneg %p8399_p2 }
  0x45   : > { %p8407_p11 = pnand %p8406_p8, %p8400_p3 }
  0x47   : > { %8410 = shalt.err (!%p8407_p11)
}
  0x48   : > { %s11509_s15 = smov 256   ;;  %s11510_s20 = smov 16  }
  0x49   : > { %7333 = dma.hbm_to_vmem [thread:$0]  (!%p8756_p12), %s11491_s5, 8192, %s304_s26, [#allocation9], %s11509_s15, %s11509_s15, %s11510_s20  }
  0x4a   : > { %s8411_s29 = scalar_lea.hbm %s11493_s7, 16384 }
  0x4b   : > { %p8412_p5 = scmp.ne.s32.totalorder %s11493_s7, %s8411_s29  ;;  %p8418_p10 = scmp.lt.u32.totalorder %s8411_s29, %s11493_s7 }
  0x4d   : > { %p8414_p6 = pnand %p8412_p5, %p8768_p0 }
  0x4f   : > { %p8415_p9 = pneg %p8414_p6 }
  0x51   : > { %p8420_p13 = pnand %p8418_p10, %p8415_p9 }
  0x53   : > { %8423 = shalt.err (!%p8420_p13)
}
  0x54   : > { %s8424_s30 = scalar_lea.vmem %s330_s16, 16384  ;;  %p8432_p4 = scmp.lt.s32.totalorder %s330_s16, %s330_s16 }
  0x55   : > { %p8425_p1 = scmp.ne.s32.totalorder %s330_s16, %s8424_s30  ;;  %p8433_p7 = scmp.lt.s32.totalorder %s8424_s30, %s8424_s30 }
  0x57   : > { %p8427_p2 = pnand %p8425_p1, %p8768_p0  ;;  %p8434_p8 = por %p8433_p7, %p8432_p4 }
  0x59   : > { %p8428_p3 = pneg %p8427_p2 }
  0x5b   : > { %p8435_p11 = pnand %p8434_p8, %p8428_p3 }
  0x5d   : > { %8438 = shalt.err (!%p8435_p11)
}
  0x5e   : > { %s8638_s26 = smov 512   ;;  %s8639_s11 = smov 32  }
  0x5f   : > { %7339 = dma.hbm_to_vmem [thread:$0]  (!%p8756_p12), %s11493_s7, 16384, %s330_s16, [#allocation12], %s8638_s26, %s8638_s26, %s8639_s11  }
  0x60   : > { %s8640_s29 = smov [#allocation2]   ;;  %s8641_s22 = smov [#allocation7]  }
  0x61   : > { %s258_s14 = sshll.u32 %s8640_s29, 4  ;;  %s284_s25 = sshll.u32 %s8641_s22, 4  ;;  %s259_s14 = int_to_ptr.vmem [resolvable:$true] %s258_s14  ;;  %s285_s25 = int_to_ptr.vmem [resolvable:$true] %s284_s25 }
  0x62   : > { %s8439_s30 = scalar_lea.hbm %s11486_s0, 8192 }
  0x63   : > { %p8440_p5 = scmp.ne.s32.totalorder %s11486_s0, %s8439_s30  ;;  %p8446_p10 = scmp.lt.u32.totalorder %s8439_s30, %s11486_s0 }
  0x65   : > { %p8442_p6 = pnand %p8440_p5, %p8768_p0 }
  0x67   : > { %p8443_p9 = pneg %p8442_p6 }
  0x69   : > { %p8448_p13 = pnand %p8446_p10, %p8443_p9 }
  0x6b   : > { %8451 = shalt.err (!%p8448_p13)
}
  0x6c   : > { %s8452_s16 = scalar_lea.vmem %s259_s14, 8192  ;;  %p8460_p4 = scmp.lt.s32.totalorder %s259_s14, %s259_s14 }
  0x6d   : > { %p8453_p1 = scmp.ne.s32.totalorder %s259_s14, %s8452_s16  ;;  %p8461_p7 = scmp.lt.s32.totalorder %s8452_s16, %s8452_s16 }
  0x6f   : > { %p8455_p2 = pnand %p8453_p1, %p8768_p0  ;;  %p8462_p8 = por %p8461_p7, %p8460_p4 }
  0x71   : > { %p8456_p3 = pneg %p8455_p2 }
  0x73   : > { %p8463_p11 = pnand %p8462_p8, %p8456_p3 }
  0x75   : > { %8466 = shalt.err (!%p8463_p11)
}
  0x76   : > { %s11666_s27 = smov 16   ;;  %s11667_s28 = smov 256  }
  0x77   : > { %7324 = dma.hbm_to_vmem [thread:$0]  (!%p8756_p12), %s11486_s0, 8192, %s259_s14, [#allocation3], %s11667_s28, %s11667_s28, %s11666_s27  }
  0x78   : > { %s8467_s11 = scalar_lea.hbm %s11488_s2, 4096 }
  0x79   : > { %p8468_p5 = scmp.ne.s32.totalorder %s11488_s2, %s8467_s11  ;;  %p8474_p10 = scmp.lt.u32.totalorder %s8467_s11, %s11488_s2 }
  0x7b   : > { %p8470_p6 = pnand %p8468_p5, %p8768_p0 }
  0x7d   : > { %p8471_p9 = pneg %p8470_p6 }
  0x7f   : > { %p8476_p13 = pnand %p8474_p10, %p8471_p9 }
  0x81   : > { %8479 = shalt.err (!%p8476_p13)
}
  0x82   : > { %s8480_s23 = scalar_lea.vmem %s285_s25, 4096  ;;  %p8488_p4 = scmp.lt.s32.totalorder %s285_s25, %s285_s25 }
  0x83   : > { %p8481_p1 = scmp.ne.s32.totalorder %s285_s25, %s8480_s23  ;;  %p8489_p7 = scmp.lt.s32.totalorder %s8480_s23, %s8480_s23 }
  0x85   : > { %p8483_p2 = pnand %p8481_p1, %p8768_p0  ;;  %p8490_p8 = por %p8489_p7, %p8488_p4 }
  0x87   : > { %p8484_p3 = pneg %p8483_p2 }
  0x89   : > { %p8491_p11 = pnand %p8490_p8, %p8484_p3 }
  0x8b   : > { %8494 = shalt.err (!%p8491_p11)
}
  0x8c   : > { %s11668_s14 = smov 8   ;;  %s11669_s30 = smov 128  }
  0x8d   : > { %7330 = dma.hbm_to_vmem [thread:$0]  (!%p8756_p12), %s11488_s2, 4096, %s285_s25, [#allocation6], %s11669_s30, %s11669_s30, %s11668_s14  }
  0x8e   : > { %s8642_s28 = smov [#allocation10]   ;;  %s8643_s15 = smov [#allocation13]  }
  0x8f   : > { %s316_s1 = sshll.u32 %s8642_s28, 4  ;;  %s342_s20 = sshll.u32 %s8643_s15, 4  ;;  %s317_s1 = int_to_ptr.vmem [resolvable:$true] %s316_s1  ;;  %s343_s20 = int_to_ptr.vmem [resolvable:$true] %s342_s20 }
  0x90   : > { %s8495_s12 = scalar_lea.hbm %s11492_s6, 4096 }
  0x91   : > { %p8496_p5 = scmp.ne.s32.totalorder %s11492_s6, %s8495_s12  ;;  %p8502_p10 = scmp.lt.u32.totalorder %s8495_s12, %s11492_s6 }
  0x93   : > { %p8498_p6 = pnand %p8496_p5, %p8768_p0 }
  0x95   : > { %p8499_p9 = pneg %p8498_p6 }
  0x97   : > { %p8504_p13 = pnand %p8502_p10, %p8499_p9 }
  0x99   : > { %8507 = shalt.err (!%p8504_p13)
}
  0x9a   : > { %s8508_s25 = scalar_lea.vmem %s317_s1, 4096  ;;  %p8516_p4 = scmp.lt.s32.totalorder %s317_s1, %s317_s1 }
  0x9b   : > { %p8509_p1 = scmp.ne.s32.totalorder %s317_s1, %s8508_s25  ;;  %p8517_p7 = scmp.lt.s32.totalorder %s8508_s25, %s8508_s25 }
  0x9d   : > { %p8511_p2 = pnand %p8509_p1, %p8768_p0  ;;  %p8518_p8 = por %p8517_p7, %p8516_p4 }
  0x9f   : > { %p8512_p3 = pneg %p8511_p2 }
  0xa1   : > { %p8519_p11 = pnand %p8518_p8, %p8512_p3 }
  0xa3   : > { %8522 = shalt.err (!%p8519_p11)
}
  0xa4   : > { %7336 = dma.hbm_to_vmem [thread:$0]  (!%p8756_p12), %s11492_s6, 4096, %s317_s1, [#allocation9], %s11669_s30, %s11669_s30, %s11668_s14  }
  0xa5   : > { %s8523_s26 = scalar_lea.hbm %s11494_s8, 8192 }
  0xa6   : > { %p8524_p5 = scmp.ne.s32.totalorder %s11494_s8, %s8523_s26  ;;  %p8530_p10 = scmp.lt.u32.totalorder %s8523_s26, %s11494_s8 }
  0xa8   : > { %p8526_p6 = pnand %p8524_p5, %p8768_p0 }
  0xaa   : > { %p8527_p9 = pneg %p8526_p6 }
  0xac   : > { %p8532_p13 = pnand %p8530_p10, %p8527_p9 }
  0xae   : > { %8535 = shalt.err (!%p8532_p13)
}
  0xaf   : > { %s8536_s22 = scalar_lea.vmem %s343_s20, 8192  ;;  %p8544_p4 = scmp.lt.s32.totalorder %s343_s20, %s343_s20 }
  0xb0   : > { %p8537_p1 = scmp.ne.s32.totalorder %s343_s20, %s8536_s22  ;;  %p8545_p7 = scmp.lt.s32.totalorder %s8536_s22, %s8536_s22 }
  0xb2   : > { %p8539_p2 = pnand %p8537_p1, %p8768_p0  ;;  %p8546_p8 = por %p8545_p7, %p8544_p4 }
  0xb4   : > { %p8540_p3 = pneg %p8539_p2 }
  0xb6   : > { %p8547_p11 = pnand %p8546_p8, %p8540_p3 }
  0xb8   : > { %8550 = shalt.err (!%p8547_p11)
}
  0xb9   : > { %7342 = dma.hbm_to_vmem [thread:$0]  (!%p8756_p12), %s11494_s8, 8192, %s343_s20, [#allocation12], %s11669_s30, %s11669_s30, %s11668_s14  }
  0xba   : > { %p11670_p5 = scmp.ne.s32.totalorder %s11662_s21, 0 }
  0xbc   : > { %358 = sbr.rel (%p11670_p5) target bundleno = 2620 (0xa3c), region = 56 }
  0xc3   : > { %p11671_p0 = scmp.eq.s32.totalorder %s8720_s13, 0 }
  0xc5   : > { %8596 = dma.done.wait (%p11671_p0), [#allocation3], 8192   ;;  %p11672_p6 = pmov %p11671_p0 }
  0xc6   : > { %p11673_p9 = pmov %p11671_p0 }
  0xc7   : > { %8598 = vsyncadd (%p11672_p6), [#allocation3], 4294959104 }
  0xc8   : > { %8600 = dma.done.wait (%p11673_p9), [#allocation6], 8192   ;;  %p11674_p10 = pmov %p11671_p0 }
  0xc9   : > { %p11675_p13 = pmov %p11671_p0 }
  0xca   : > { %8602 = vsyncadd (%p11674_p10), [#allocation6], 4294959104 }
  0xcb   : > { %8604 = dma.done.wait (%p11675_p13), [#allocation9], 12288   ;;  %p11676_p12 = pmov %p11671_p0 }
  0xcc   : > { %p11677_p1 = pmov %p11671_p0 }
  0xcd   : > { %8606 = vsyncadd (%p11676_p12), [#allocation9], 4294955008 }
  0xce   : > { %8608 = dma.done.wait (%p11677_p1), [#allocation12], 24576   ;;  %p11678_p2 = pmov %p11671_p0 }
  0xcf   : > { %v416_v0 = vld [vmem:[#allocation2] sm:$0xff]  ;;  %v417_v1 = vld [vmem:[#allocation2 + $0x8] sm:$0xff]  ;;  %v418_v7 = vld [vmem:[#allocation2 + $0x10] sm:$0xff]  ;;  %s8929_s21 = sshll.u32 %s8720_s13, 7  ;;  %s8644_s25 = smov 64  }
  0xd0   : > { %8610 = vsyncadd (%p11678_p2), [#allocation12], 4294942720  ;;  %v420_v2 = vld [vmem:[#allocation2 + $0x20] sm:$0xff]  ;;  %v820_v3 = vmul.f32 %v416_v0, %v416_v0  ;;  %v821_v4 = vmul.f32 %v417_v1, %v417_v1  ;;  %v421_v5 = vld [vmem:[#allocation2 + $0x28] sm:$0xff]  ;;  %v822_v10 = vmul.f32 %v418_v7, %v418_v7  ;;  %s480_s24 = sshra.s32 %s8929_s21, 3  ;;  %s9307_s16 = scalar_lea.vmem [#allocation5], %s8929_s21 }
  0xd1   : > { %v824_v6 = vmul.f32 %v420_v2, %v420_v2  ;;  %v419_v8 = vld [vmem:[#allocation2 + $0x18] sm:$0xff]  ;;  %v825_v9 = vmul.f32 %v421_v5, %v421_v5  ;;  %v422_v12 = vld [vmem:[#allocation2 + $0x30] sm:$0xff]  ;;  %v424_v19 = vld [vmem:[#allocation2 + $0x40] sm:$0xff]  ;;  %s7048_s17 = sshll.u32 %s480_s24, 4  ;;  %s9641_s27 = scalar_lea.vmem [#allocation7], %s8929_s21 }
  0xd2   : > { %v823_v11 = vmul.f32 %v419_v8, %v419_v8  ;;  %v423_v13 = vld [vmem:[#allocation2 + $0x38] sm:$0xff]  ;;  %v426_v14 = vld [vmem:[#allocation2 + $0x50] sm:$0xff]  ;;  %v884_v15 = vadd.f32 %v821_v4, %v820_v3  ;;  %v826_v16 = vmul.f32 %v422_v12, %v422_v12  ;;  %v425_v20 = vld [vmem:[#allocation2 + $0x48] sm:$0xff]  ;;  %v828_v23 = vmul.f32 %v424_v19, %v424_v19  ;;  %s8932_s14 = scalar_lea.vmem [#allocation2], %s7048_s17  ;;  %s410_s26 = sand.u32 1, %s8621_s10  }
  0xd3   : > { %v827_v17 = vmul.f32 %v423_v13, %v423_v13  ;;  %v427_v18 = vld [vmem:[#allocation2 + $0x58] sm:$0xff]  ;;  %v890_v21 = vadd.f32 %v825_v9, %v824_v6  ;;  %v829_v24 = vmul.f32 %v425_v20, %v425_v20  ;;  %v830_v26 = vmul.f32 %v426_v14, %v426_v14  ;;  %v428_v28 = vld [vmem:[#allocation2 + $0x60] sm:$0xff]  ;;  %v429_v29 = vld [vmem:[#allocation2 + $0x68] sm:$0xff]  ;;  %s6686_s11 = sshll.u32 %s410_s26, 8  ;;  %s7050_s18 = sshll.u32 %s8720_s13, 12 }
  0xd4   : > { %885 = vadd.xlane.f32.xlu0 %v884_v15  ;;  %v887_v22 = vadd.f32 %v823_v11, %v822_v10  ;;  %v831_v27 = vmul.f32 %v427_v18, %v427_v18  ;;  %v430_v30 = vld [vmem:[#allocation2 + $0x70] sm:$0xff]  ;;  %v431_v31 = vld [vmem:[#allocation2 + $0x78] sm:$0xff]  ;;  %v832_v33 = vmul.f32 %v428_v28, %v428_v28  ;;  %v833_v34 = vmul.f32 %v429_v29, %v429_v29  ;;  %v432_v38 = vld [vmem:[#allocation2 + $0x80] sm:$0xff]  ;;  %s11370_s12 = scalar_lea.vmem [#allocation14], %s6686_s11  ;;  %s11435_s23 = scalar_lea.hbm %s11495_s9, %s7050_s18 }
  0xd5   : > { %891 = vadd.xlane.f32.xlu1 %v890_v21  ;;  %v893_v25 = vadd.f32 %v827_v17, %v826_v16  ;;  %v896_v32 = vadd.f32 %v829_v24, %v828_v23  ;;  %v834_v36 = vmul.f32 %v430_v30, %v430_v30  ;;  %v835_v37 = vmul.f32 %v431_v31, %v431_v31  ;;  %v433_v39 = vld [vmem:[#allocation2 + $0x88] sm:$0xff]  ;;  %v434_v40 = vld [vmem:[#allocation2 + $0x90] sm:$0xff]  ;;  %v435_v41 = vld [vmem:[#allocation2 + $0x98] sm:$0xff]  ;;  %s6544_s29 = sshll.u32 %s11370_s12, 4  ;;  %s11445_s13 = scalar_lea.sflag [#allocation4], %s410_s26  ;;  %s11437_s29 = int_to_ptr.vmem [resolvable:$true] %s6544_s29 }
  0xd6   : > { %v899_v35 = vadd.f32 %v831_v27, %v830_v26  ;;  %v902_v42 = vadd.f32 %v833_v34, %v832_v33  ;;  %v836_v43 = vmul.f32 %v432_v38, %v432_v38  ;;  %v837_v44 = vmul.f32 %v433_v39, %v433_v39  ;;  %v436_v48 = vld [vmem:[#allocation2 + $0xa0] sm:$0xff]  ;;  %v437_v49 = vld [vmem:[#allocation2 + $0xa8] sm:$0xff]  ;;  %v438_v50 = vld [vmem:[#allocation2 + $0xb0] sm:$0xff]  ;;  %p11993_p4 = scmp.ne.s32.totalorder %s11659_s19, 0  ;;  %s8646_s24 = smov [#allocation14]  }
  0xd7   : > { %v905_v45 = vadd.f32 %v835_v37, %v834_v36  ;;  %v838_v46 = vmul.f32 %v434_v40, %v434_v40  ;;  %v839_v47 = vmul.f32 %v435_v41, %v435_v41  ;;  %v439_v51 = vld [vmem:[#allocation2 + $0xb8] sm:$0xff]  ;;  %v840_v53 = vmul.f32 %v436_v48, %v436_v48  ;;  %v440_v58 = vld [vmem:[#allocation2 + $0xc0] sm:$0xff]  ;;  %v441_v59 = vld [vmem:[#allocation2 + $0xc8] sm:$0xff]  ;;  %s8555_s17 = sshll.u32 %s8646_s24, 4  ;;  %s8556_s17 = int_to_ptr.vmem [resolvable:$false] %s8555_s17 }
  0xd8   : > { %888 = vadd.xlane.f32.xlu0 %v887_v22  ;;  %v908_v52 = vadd.f32 %v837_v44, %v836_v43  ;;  %v841_v54 = vmul.f32 %v437_v49, %v437_v49  ;;  %v842_v56 = vmul.f32 %v438_v50, %v438_v50  ;;  %v843_v57 = vmul.f32 %v439_v51, %v439_v51  ;;  %v442_v60 = vld [vmem:[#allocation2 + $0xd0] sm:$0xff]  ;;  %v443_v61 = vld [vmem:[#allocation2 + $0xd8] sm:$0xff]  ;;  %v444_v4 = vld [vmem:[#allocation2 + $0xe0] sm:$0xff]  ;;  %p8558_p11 = scmp.lt.s32.totalorder %s11437_s29, %s8556_s17 }
  0xd9   : > { %894 = vadd.xlane.f32.xlu1 %v893_v25  ;;  %v911_v55 = vadd.f32 %v839_v47, %v838_v46  ;;  %v844_v63 = vmul.f32 %v440_v58, %v440_v58  ;;  %v845_v0 = vmul.f32 %v441_v59, %v441_v59  ;;  %v846_v2 = vmul.f32 %v442_v60, %v442_v60  ;;  %v445_v5 = vld [vmem:[#allocation2 + $0xe8] sm:$0xff]  ;;  %v446_v7 = vld [vmem:[#allocation2 + $0xf0] sm:$0xff]  ;;  %v447_v8 = vld [vmem:[#allocation2 + $0xf8] sm:$0xff] }
  0xda   : > { %v914_v62 = vadd.f32 %v841_v54, %v840_v53  ;;  %v917_v1 = vadd.f32 %v843_v57, %v842_v56  ;;  %v847_v3 = vmul.f32 %v443_v61, %v443_v61  ;;  %v7411_v6 = vld [vmem:[#allocation8 + $0xc] ss:$16 sps:$4 sm:$0xff]   ;;  %v7413_v9 = vld [vmem:[#allocation8 + $0x8] ss:$16 sps:$4 sm:$0xff]   ;;  %v848_v12 = vmul.f32 %v444_v4, %v444_v4  ;;  %v448_v17 = vld [vmem:[#allocation2 + $0x100] sm:$0xff] }
  0xdb   : > { %1749 = vmatprep.subr.bf16.mxu1 %v7411_v6  ;;  %v7414_v10 = vld [vmem:[#allocation8 + $0x2c] ss:$16 sps:$4 sm:$0xff]   ;;  %v920_v11 = vadd.f32 %v845_v0, %v844_v63  ;;  %v849_v13 = vmul.f32 %v445_v5, %v445_v5  ;;  %v850_v15 = vmul.f32 %v446_v7, %v446_v7  ;;  %v851_v16 = vmul.f32 %v447_v8, %v447_v8  ;;  %v7416_v19 = vld [vmem:[#allocation8 + $0x28] ss:$16 sps:$4 sm:$0xff]   ;;  %v450_v20 = vld [vmem:[#allocation2 + $0x110] sm:$0xff] }
  0xdc   : > { %897 = vadd.xlane.f32.xlu0 %v896_v32  ;;  %v923_v14 = vadd.f32 %v847_v3, %v846_v2  ;;  %v449_v18 = vld [vmem:[#allocation2 + $0x108] sm:$0xff]  ;;  %1750 = vmatpush1.bf16.msra.mxu1 %v7413_v9  ;;  %v451_v21 = vld [vmem:[#allocation2 + $0x118] sm:$0xff]  ;;  %v852_v24 = vmul.f32 %v448_v17, %v448_v17  ;;  %v854_v27 = vmul.f32 %v450_v20, %v450_v20  ;;  %v452_v29 = vld [vmem:[#allocation2 + $0x120] sm:$0xff] }
  0xdd   : > { %900 = vadd.xlane.f32.xlu1 %v899_v35  ;;  %1751 = vmatprep.subr.bf16.mxu1 %v7414_v10  ;;  %v7417_v22 = vld [vmem:[#allocation8 + $0x4c] ss:$16 sps:$4 sm:$0xff]   ;;  %v926_v23 = vadd.f32 %v849_v13, %v848_v12  ;;  %v853_v25 = vmul.f32 %v449_v18, %v449_v18  ;;  %v929_v26 = vadd.f32 %v851_v16, %v850_v15  ;;  %v7419_v31 = vld [vmem:[#allocation8 + $0x48] ss:$16 sps:$4 sm:$0xff]   ;;  %v454_v32 = vld [vmem:[#allocation2 + $0x130] sm:$0xff] }
  0xde   : > { %v855_v28 = vmul.f32 %v451_v21, %v451_v21  ;;  %v453_v30 = vld [vmem:[#allocation2 + $0x128] sm:$0xff]  ;;  %v455_v33 = vld [vmem:[#allocation2 + $0x138] sm:$0xff]  ;;  %v856_v36 = vmul.f32 %v452_v29, %v452_v29  ;;  %v858_v39 = vmul.f32 %v454_v32, %v454_v32  ;;  %v456_v41 = vld [vmem:[#allocation2 + $0x140] sm:$0xff] }
  0xdf   : > { %v7420_v34 = vld [vmem:[#allocation8 + $0x6c] ss:$16 sps:$4 sm:$0xff]   ;;  %v932_v35 = vadd.f32 %v853_v25, %v852_v24  ;;  %v857_v37 = vmul.f32 %v453_v30, %v453_v30  ;;  %v859_v40 = vmul.f32 %v455_v33, %v455_v33  ;;  %v7422_v43 = vld [vmem:[#allocation8 + $0x68] ss:$16 sps:$4 sm:$0xff]   ;;  %v458_v44 = vld [vmem:[#allocation2 + $0x150] sm:$0xff]  ;;  %v860_v48 = vmul.f32 %v456_v41, %v456_v41 }
  0xe0   : > { %903 = vadd.xlane.f32.xlu0 %v902_v42  ;;  %1752 = vmatpush1.bf16.msra.mxu1 %v7416_v19  ;;  %v935_v38 = vadd.f32 %v855_v28, %v854_v27  ;;  %v457_v42 = vld [vmem:[#allocation2 + $0x148] sm:$0xff]  ;;  %v862_v51 = vmul.f32 %v458_v44, %v458_v44  ;;  %v460_v53 = vld [vmem:[#allocation2 + $0x160] sm:$0xff]  ;;  %v462_v56 = vld [vmem:[#allocation2 + $0x170] sm:$0xff] }
  0xe1   : > { %906 = vadd.xlane.f32.xlu1 %v905_v45  ;;  %1753 = vmatprep.subr.bf16.mxu1 %v7417_v22  ;;  %v459_v45 = vld [vmem:[#allocation2 + $0x158] sm:$0xff]  ;;  %v938_v47 = vadd.f32 %v857_v37, %v856_v36  ;;  %v861_v49 = vmul.f32 %v457_v42, %v457_v42  ;;  %v941_v50 = vadd.f32 %v859_v40, %v858_v39  ;;  %v461_v54 = vld [vmem:[#allocation2 + $0x168] sm:$0xff]  ;;  %v466_v4 = vld [vmem:[#allocation2 + $0x190] sm:$0xff] }
  0xe2   : > { %v7423_v46 = vld [vmem:[#allocation8 + $0x8c] ss:$16 sps:$4 sm:$0xff]   ;;  %v864_v60 = vmul.f32 %v460_v53, %v460_v53  ;;  %v865_v61 = vmul.f32 %v461_v54, %v461_v54  ;;  %v866_v63 = vmul.f32 %v462_v56, %v462_v56  ;;  %v7428_v3 = vld [vmem:[#allocation8 + $0xa8] ss:$16 sps:$4 sm:$0xff]   ;;  %v468_v13 = vld [vmem:[#allocation2 + $0x1a0] sm:$0xff] }
  0xe3   : > { %v463_v57 = vld [vmem:[#allocation2 + $0x178] sm:$0xff]  ;;  %v944_v59 = vadd.f32 %v861_v49, %v860_v48  ;;  %v465_v2 = vld [vmem:[#allocation2 + $0x188] sm:$0xff]  ;;  %v470_v16 = vld [vmem:[#allocation2 + $0x1b0] sm:$0xff]  ;;  %v872_v20 = vmul.f32 %v468_v13, %v468_v13 }
  0xe4   : > { %909 = vadd.xlane.f32.xlu0 %v908_v52  ;;  %1754 = vmatpush1.bf16.msra.mxu1 %v7419_v31  ;;  %v863_v52 = vmul.f32 %v459_v45, %v459_v45  ;;  %v7426_v58 = vld [vmem:[#allocation8 + $0xac] ss:$16 sps:$4 sm:$0xff]   ;;  %v867_v0 = vmul.f32 %v463_v57, %v463_v57  ;;  %v950_v7 = vadd.f32 %v865_v61, %v864_v60  ;;  %v7431_v15 = vld [vmem:[#allocation8 + $0xc8] ss:$16 sps:$4 sm:$0xff]   ;;  %v472_v25 = vld [vmem:[#allocation2 + $0x1c0] sm:$0xff] }
  0xe5   : > { %912 = vadd.xlane.f32.xlu1 %v911_v55  ;;  %1755 = vmatprep.subr.bf16.mxu1 %v7420_v34  ;;  %v7425_v55 = vld [vmem:[#allocation8 + $0x88] ss:$16 sps:$4 sm:$0xff]   ;;  %v7429_v6 = vld [vmem:[#allocation8 + $0xcc] ss:$16 sps:$4 sm:$0xff]   ;;  %v869_v9 = vmul.f32 %v465_v2, %v465_v2  ;;  %v474_v28 = vld [vmem:[#allocation2 + $0x1d0] sm:$0xff]  ;;  %v876_v34 = vmul.f32 %v472_v25, %v472_v25 }
  0xe6   : > { %v467_v5 = vld [vmem:[#allocation2 + $0x198] sm:$0xff]  ;;  %v953_v10 = vadd.f32 %v867_v0, %v866_v63  ;;  %v476_v31 = vld [vmem:[#allocation2 + $0x1e0] sm:$0xff]  ;;  %v477_v32 = vld [vmem:[#allocation2 + $0x1e8] sm:$0xff]  ;;  %v878_v41 = vmul.f32 %v474_v28, %v474_v28 }
  0xe7   : > { %v871_v12 = vmul.f32 %v467_v5, %v467_v5  ;;  %v471_v17 = vld [vmem:[#allocation2 + $0x1b8] sm:$0xff]  ;;  %v478_v36 = vld [vmem:[#allocation2 + $0x1f0] sm:$0xff]  ;;  %v486_v44 = vld [vmem:[%s8932_s14 + $0x8] sm:$0xff]  ;;  %v881_v48 = vmul.f32 %v477_v32, %v477_v32 }
  0xe8   : > { %915 = vadd.xlane.f32.xlu0 %v914_v62  ;;  %1756 = vmatpush1.bf16.msra.mxu1 %v7422_v43  ;;  %v947_v62 = vadd.f32 %v863_v52, %v862_v51  ;;  %v7432_v18 = vld [vmem:[#allocation8 + $0xec] ss:$16 sps:$4 sm:$0xff]   ;;  %v875_v24 = vmul.f32 %v471_v17, %v471_v17  ;;  %v7434_v27 = vld [vmem:[#allocation8 + $0xe8] ss:$16 sps:$4 sm:$0xff]   ;;  %v485_v43 = vld [vmem:[%s8932_s14] sm:$0xff]  ;;  %v882_v53 = vmul.f32 %v478_v36, %v478_v36 }
  0xe9   : > { %918 = vadd.xlane.f32.xlu1 %v917_v1  ;;  %1757 = vmatprep.subr.bf16.mxu1 %v7423_v46  ;;  %v464_v1 = vld [vmem:[#allocation2 + $0x180] sm:$0xff]  ;;  %v475_v29 = vld [vmem:[#allocation2 + $0x1d8] sm:$0xff]  ;;  %v487_v49 = vld [vmem:[%s8932_s14 + $0x10] sm:$0xff]  ;;  %v617_v60 = vmul.f32 %v486_v44, %v486_v44 }
  0xea   : > { %v868_v8 = vmul.f32 %v464_v1, %v464_v1  ;;  %v7435_v30 = vld [vmem:[#allocation8 + $0x10c] ss:$16 sps:$4 sm:$0xff]   ;;  %v879_v42 = vmul.f32 %v475_v29, %v475_v29  ;;  %v7440_v45 = vld [vmem:[#allocation8 + $0x128] ss:$16 sps:$4 sm:$0xff]   ;;  %v491_v61 = vld [vmem:[%s8932_s14 + $0x30] sm:$0xff]  ;;  %v618_v1 = vmul.f32 %v487_v49, %v487_v49 }
  0xeb   : > { %v479_v37 = vld [vmem:[#allocation2 + $0x1f8] sm:$0xff]  ;;  %v490_v56 = vld [vmem:[%s8932_s14 + $0x28] sm:$0xff]  ;;  %v622_v13 = vmul.f32 %v491_v61, %v491_v61  ;;  %v7461_v49 = vld [vmem:[#allocation8] ss:$16 sps:$4 sm:$0xff]  }
  0xec   : > { %921 = vadd.xlane.f32.xlu0 %v920_v11  ;;  %1758 = vmatpush1.bf16.msra.mxu1 %v7425_v55  ;;  %v870_v11 = vmul.f32 %v466_v4, %v466_v4  ;;  %v956_v19 = vadd.f32 %v869_v9, %v868_v8  ;;  %v7438_v39 = vld [vmem:[#allocation8 + $0x12c] ss:$16 sps:$4 sm:$0xff]   ;;  %v971_v52 = vadd.f32 %v879_v42, %v878_v41  ;;  %v489_v55 = vld [vmem:[%s8932_s14 + $0x20] sm:$0xff]  ;;  %v7443_v57 = vld [vmem:[#allocation8 + $0x148] ss:$16 sps:$4 sm:$0xff]  }
  0xed   : > { %924 = vadd.xlane.f32.xlu1 %v923_v14  ;;  %1759 = vmatprep.subr.bf16.mxu1 %v7426_v58  ;;  %v469_v14 = vld [vmem:[#allocation2 + $0x1a8] sm:$0xff]  ;;  %v883_v54 = vmul.f32 %v479_v37, %v479_v37  ;;  %v621_v8 = vmul.f32 %v490_v56, %v490_v56  ;;  %v495_v9 = vld [vmem:[%s8932_s14 + $0x50] sm:$0xff]  ;;  %v512_v61 = vld [vmem:[%s8932_s14 + $0xd8] sm:$0xff] }
  0xee   : > { %v873_v21 = vmul.f32 %v469_v14, %v469_v14  ;;  %v959_v22 = vadd.f32 %v871_v12, %v870_v11  ;;  %v7441_v51 = vld [vmem:[#allocation8 + $0x14c] ss:$16 sps:$4 sm:$0xff]   ;;  %v7446_v5 = vld [vmem:[#allocation8 + $0x168] ss:$16 sps:$4 sm:$0xff]   ;;  %v626_v25 = vmul.f32 %v495_v9, %v495_v9  ;;  %v7465_v9 = vld [vmem:[#allocation8 + $0x44] ss:$16 sps:$4 sm:$0xff]  }
  0xef   : > { %v7444_v63 = vld [vmem:[#allocation8 + $0x16c] ss:$16 sps:$4 sm:$0xff]   ;;  %v977_v0 = vadd.f32 %v883_v54, %v882_v53  ;;  %v7449_v17 = vld [vmem:[#allocation8 + $0x188] ss:$16 sps:$4 sm:$0xff]   ;;  %v7462_v53 = vld [vmem:[#allocation8 + $0x24] ss:$16 sps:$4 sm:$0xff]  }
  0xf0   : > { %927 = vadd.xlane.f32.xlu0 %v926_v23  ;;  %1760 = vmatpush1.bf16.msra.mxu1 %v7428_v3  ;;  %v874_v23 = vmul.f32 %v470_v16, %v470_v16  ;;  %v962_v33 = vadd.f32 %v873_v21, %v872_v20  ;;  %v493_v3 = vld [vmem:[%s8932_s14 + $0x40] sm:$0xff]  ;;  %v494_v4 = vld [vmem:[%s8932_s14 + $0x48] sm:$0xff]  ;;  %v499_v21 = vld [vmem:[%s8932_s14 + $0x70] sm:$0xff] }
  0xf1   : > { %930 = vadd.xlane.f32.xlu1 %v929_v26  ;;  %1761 = vmatprep.subr.bf16.mxu1 %v7429_v6  ;;  %v473_v26 = vld [vmem:[#allocation2 + $0x1c8] sm:$0xff]  ;;  %v625_v20 = vmul.f32 %v494_v4, %v494_v4  ;;  %v630_v37 = vmul.f32 %v499_v21, %v499_v21  ;;  %v509_v54 = vld [vmem:[%s8932_s14 + $0xc0] sm:$0xff] }
  0xf2   : > { %v965_v40 = vadd.f32 %v875_v24, %v874_v23  ;;  %v7447_v11 = vld [vmem:[#allocation8 + $0x18c] ss:$16 sps:$4 sm:$0xff]   ;;  %v7452_v29 = vld [vmem:[#allocation8 + $0x1a8] ss:$16 sps:$4 sm:$0xff]   ;;  %v7470_v21 = vld [vmem:[#allocation8 + $0x60] ss:$16 sps:$4 sm:$0xff]  }
  0xf3   : > { %v498_v16 = vld [vmem:[%s8932_s14 + $0x68] sm:$0xff] }
  0xf4   : > { %933 = vadd.xlane.f32.xlu0 %v932_v35  ;;  %1762 = vmatpush1.bf16.msra.mxu1 %v7431_v15  ;;  %v877_v35 = vmul.f32 %v473_v26, %v473_v26  ;;  %v497_v15 = vld [vmem:[%s8932_s14 + $0x60] sm:$0xff]  ;;  %v7450_v23 = vld [vmem:[#allocation8 + $0x1ac] ss:$16 sps:$4 sm:$0xff]   ;;  %v629_v32 = vmul.f32 %v498_v16, %v498_v16  ;;  %v7455_v41 = vld [vmem:[#allocation8 + $0x1c8] ss:$16 sps:$4 sm:$0xff]  }
  0xf5   : > { %936 = vadd.xlane.f32.xlu1 %v935_v38  ;;  %1763 = vmatprep.subr.bf16.mxu1 %v7432_v18  ;;  %v7437_v38 = vld [vmem:[#allocation8 + $0x108] ss:$16 sps:$4 sm:$0xff]  }
  0xf6   : > { %v968_v46 = vadd.f32 %v877_v35, %v876_v34  ;;  %v502_v28 = vld [vmem:[%s8932_s14 + $0x88] sm:$0xff]  ;;  %v504_v34 = vld [vmem:[%s8932_s14 + $0x98] sm:$0xff] }
  0xf7   : > { %v7453_v35 = vld [vmem:[#allocation8 + $0x1cc] ss:$16 sps:$4 sm:$0xff]   ;;  %v633_v44 = vmul.f32 %v502_v28, %v502_v28  ;;  %v7458_v56 = vld [vmem:[#allocation8 + $0x1e8] ss:$16 sps:$4 sm:$0xff]   ;;  %v7477_v28 = vld [vmem:[#allocation8 + $0xc4] ss:$16 sps:$4 sm:$0xff]  }
  0xf8   : > { %939 = vadd.xlane.f32.xlu0 %v938_v47  ;;  %1764 = vmatpush1.bf16.msra.mxu1 %v7434_v27  ;;  %v880_v47 = vmul.f32 %v476_v31, %v476_v31  ;;  %v501_v27 = vld [vmem:[%s8932_s14 + $0x80] sm:$0xff]  ;;  %v628_v31 = vmul.f32 %v497_v15, %v497_v15 }
  0xf9   : > { %942 = vadd.xlane.f32.xlu1 %v941_v50  ;;  %1765 = vmatprep.subr.bf16.mxu1 %v7435_v30  ;;  %v488_v50 = vld [vmem:[%s8932_s14 + $0x18] sm:$0xff] }
  0xfa   : > { %v974_v58 = vadd.f32 %v881_v48, %v880_v47  ;;  %v619_v2 = vmul.f32 %v488_v50, %v488_v50  ;;  %v666_v42 = vadd.f32 %v629_v32, %v628_v31  ;;  %v7456_v47 = vld [vmem:[#allocation8 + $0x1ec] ss:$16 sps:$4 sm:$0xff]   ;;  %v7459_v48 = vld [vmem:[#allocation8 + $0x4] ss:$16 sps:$4 sm:$0xff]   ;;  %v7482_v31 = vld [vmem:[#allocation8 + $0xe0] ss:$16 sps:$4 sm:$0xff]  }
  0xfb   : > { %1444 = vmatprep.subr.bf16.mxu0 %v7459_v48  ;;  %v7483_v32 = vld [vmem:[#allocation8 + $0x104] ss:$16 sps:$4 sm:$0xff]  }
  0xfc   : > { %945 = vadd.xlane.f32.xlu0 %v944_v59  ;;  %1766 = vmatpush1.bf16.msra.mxu1 %v7437_v38  ;;  %v616_v59 = vmul.f32 %v485_v43, %v485_v43  ;;  %v651_v12 = vadd.f32 %v619_v2, %v618_v1  ;;  %v632_v43 = vmul.f32 %v501_v27, %v501_v27  ;;  %v513_v1 = vld [vmem:[%s8932_s14 + $0xe0] sm:$0xff]  ;;  %v514_v2 = vld [vmem:[%s8932_s14 + $0xe8] sm:$0xff] }
  0xfd   : > { %948 = vadd.xlane.f32.xlu1 %v947_v62  ;;  %1767 = vmatprep.subr.bf16.mxu1 %v7438_v39  ;;  %v492_v62 = vld [vmem:[%s8932_s14 + $0x38] sm:$0xff]  ;;  %v505_v39 = vld [vmem:[%s8932_s14 + $0xa0] sm:$0xff]  ;;  %v644_v16 = vmul.f32 %v513_v1, %v513_v1 }
  0xfe   : > { %v648_v6 = vadd.f32 %v617_v60, %v616_v59  ;;  %v623_v14 = vmul.f32 %v492_v62, %v492_v62  ;;  %1445 = vmatpush1.bf16.msra.mxu0 %v7461_v49  ;;  %v511_v60 = vld [vmem:[%s8932_s14 + $0xd0] sm:$0xff] }
  0xff   : > { %1446 = vmatprep.subr.bf16.mxu0 %v7462_v53  ;;  %v7476_v27 = vld [vmem:[#allocation8 + $0xa0] ss:$16 sps:$4 sm:$0xff]  }
 0x100   : > { %951 = vadd.xlane.f32.xlu0 %v950_v7  ;;  %1768 = vmatpush1.bf16.msra.mxu1 %v7440_v45  ;;  %v620_v7 = vmul.f32 %v489_v55, %v489_v55  ;;  %v657_v24 = vadd.f32 %v623_v14, %v622_v13  ;;  %v507_v45 = vld [vmem:[%s8932_s14 + $0xb0] sm:$0xff]  ;;  %v510_v55 = vld [vmem:[%s8932_s14 + $0xc8] sm:$0xff]  ;;  %v643_v13 = vmul.f32 %v512_v61, %v512_v61 }
 0x101   : > { %954 = vadd.xlane.f32.xlu1 %v953_v10  ;;  %1769 = vmatprep.subr.bf16.mxu1 %v7441_v51  ;;  %v496_v10 = vld [vmem:[%s8932_s14 + $0x58] sm:$0xff]  ;;  %v7468_v14 = vld [vmem:[#allocation8 + $0x64] ss:$16 sps:$4 sm:$0xff]  }
 0x102   : > { %v654_v18 = vadd.f32 %v621_v8, %v620_v7  ;;  %v627_v26 = vmul.f32 %v496_v10, %v496_v10  ;;  %v515_v7 = vld [vmem:[%s8932_s14 + $0xf0] sm:$0xff]  ;;  %v516_v8 = vld [vmem:[%s8932_s14 + $0xf8] sm:$0xff] }
 0x103   : > { %v7467_v10 = vld [vmem:[#allocation8 + $0x40] ss:$16 sps:$4 sm:$0xff]  }
 0x104   : > { %957 = vadd.xlane.f32.xlu0 %v956_v19  ;;  %1770 = vmatpush1.bf16.msra.mxu1 %v7443_v57  ;;  %v624_v19 = vmul.f32 %v493_v3, %v493_v3  ;;  %v663_v36 = vadd.f32 %v627_v26, %v626_v25  ;;  %v672_v57 = vadd.f32 %v633_v44, %v632_v43  ;;  %v7464_v3 = vld [vmem:[#allocation8 + $0x20] ss:$16 sps:$4 sm:$0xff]   ;;  %v7474_v26 = vld [vmem:[#allocation8 + $0xa4] ss:$16 sps:$4 sm:$0xff]  }
 0x105   : > { %960 = vadd.xlane.f32.xlu1 %v959_v22  ;;  %1771 = vmatprep.subr.bf16.mxu1 %v7444_v63  ;;  %v500_v22 = vld [vmem:[%s8932_s14 + $0x78] sm:$0xff]  ;;  %v638_v63 = vmul.f32 %v507_v45, %v507_v45  ;;  %v7500_v43 = vld [vmem:[#allocation8 + $0x1a0] ss:$16 sps:$4 sm:$0xff]   ;;  %v7501_v44 = vld [vmem:[#allocation8 + $0x1c4] ss:$16 sps:$4 sm:$0xff]  }
 0x106   : > { %v660_v30 = vadd.f32 %v625_v20, %v624_v19  ;;  %v631_v38 = vmul.f32 %v500_v22, %v500_v22  ;;  %1447 = vmatpush1.bf16.msra.mxu0 %v7464_v3  ;;  %v646_v19 = vmul.f32 %v515_v7, %v515_v7  ;;  %v647_v20 = vmul.f32 %v516_v8, %v516_v8  ;;  %v7503_v45 = vld [vmem:[#allocation8 + $0x1c0] ss:$16 sps:$4 sm:$0xff]  }
 0x107   : > { %1448 = vmatprep.subr.bf16.mxu0 %v7465_v9  ;;  %v615_v8 = vld [vmem:[%s11489_s3] sm:$0x3] }
 0x108   : > { %963 = vadd.xlane.f32.xlu0 %v962_v33  ;;  %1772 = vmatpush1.bf16.msra.mxu1 %v7446_v5  ;;  %v503_v33 = vld [vmem:[%s8932_s14 + $0x90] sm:$0xff]  ;;  %v669_v50 = vadd.f32 %v631_v38, %v630_v37  ;;  %v640_v5 = vmul.f32 %v509_v54, %v509_v54  ;;  %v693_v25 = vadd.f32 %v647_v20, %v646_v19  ;;  %v8228_v19 = vld [vmem:[#allocation2 + $0x28] sm:$0xff] }
 0x109   : > { %966 = vadd.xlane.f32.xlu1 %v965_v40  ;;  %1773 = vmatprep.subr.bf16.mxu1 %v7447_v11  ;;  %v506_v40 = vld [vmem:[%s8932_s14 + $0xa8] sm:$0xff]  ;;  %v634_v51 = vmul.f32 %v503_v33, %v503_v33  ;;  %v7485_v33 = vld [vmem:[#allocation8 + $0x100] ss:$16 sps:$4 sm:$0xff]   ;;  %v7492_v38 = vld [vmem:[#allocation8 + $0x164] ss:$16 sps:$4 sm:$0xff]  }
 0x10a   : > { %v637_v59 = vmul.f32 %v506_v40, %v506_v40  ;;  %1449 = vmatpush1.bf16.msra.mxu0 %v7467_v10  ;;  %v7491_v37 = vld [vmem:[#allocation8 + $0x140] ss:$16 sps:$4 sm:$0xff]   ;;  %v7495_v40 = vld [vmem:[#allocation8 + $0x184] ss:$16 sps:$4 sm:$0xff]  }
 0x10b   : > { %1450 = vmatprep.subr.bf16.mxu0 %v7468_v14 }
 0x10c   : > { %969 = vadd.xlane.f32.xlu0 %v968_v46  ;;  %1774 = vmatpush1.bf16.msra.mxu1 %v7449_v17  ;;  %v508_v46 = vld [vmem:[%s8932_s14 + $0xb8] sm:$0xff]  ;;  %v645_v17 = vmul.f32 %v514_v2, %v514_v2 }
 0x10d   : > { %972 = vadd.xlane.f32.xlu1 %v971_v52  ;;  %1775 = vmatprep.subr.bf16.mxu1 %v7450_v23  ;;  %v635_v52 = vmul.f32 %v504_v34, %v504_v34  ;;  %v7471_v23 = vld [vmem:[#allocation8 + $0x84] ss:$16 sps:$4 sm:$0xff]  }
 0x10e   : > { %v690_v22 = vadd.f32 %v645_v17, %v644_v16  ;;  %1451 = vmatpush1.bf16.msra.mxu0 %v7470_v21  ;;  %v7486_v34 = vld [vmem:[#allocation8 + $0x124] ss:$16 sps:$4 sm:$0xff]   ;;  %v8227_v17 = vld [vmem:[#allocation2 + $0x8] sm:$0xff] }
 0x10f   : > { %v675_v62 = vadd.f32 %v635_v52, %v634_v51  ;;  %1452 = vmatprep.subr.bf16.mxu0 %v7471_v23  ;;  %v8229_v23 = vld [vmem:[#allocation2] sm:$0xff] }
 0x110   : > { %975 = vadd.xlane.f32.xlu0 %v974_v58  ;;  %1776 = vmatpush1.bf16.msra.mxu1 %v7452_v29  ;;  %v636_v58 = vmul.f32 %v505_v39, %v505_v39  ;;  %v7479_v29 = vld [vmem:[#allocation8 + $0xc0] ss:$16 sps:$4 sm:$0xff]  }
 0x111   : > { %978 = vadd.xlane.f32.xlu1 %v977_v0  ;;  %1777 = vmatprep.subr.bf16.mxu1 %v7453_v35  ;;  %v639_v0 = vmul.f32 %v508_v46, %v508_v46  ;;  %v7488_v35 = vld [vmem:[#allocation8 + $0x120] ss:$16 sps:$4 sm:$0xff]   ;;  %v7504_v46 = vld [vmem:[#allocation8 + $0x1e4] ss:$16 sps:$4 sm:$0xff]  }
 0x112   : > { %v678_v4 = vadd.f32 %v637_v59, %v636_v58  ;;  %v7494_v39 = vld [vmem:[#allocation8 + $0x160] ss:$16 sps:$4 sm:$0xff]  }
 0x113   : > { %v681_v11 = vadd.f32 %v639_v0, %v638_v63 }
 0x114   : > { %649 = vadd.xlane.f32.xlu0 %v648_v6  ;;  %1778 = vmatpush1.bf16.msra.mxu1 %v7455_v41  ;;  %v641_v6 = vmul.f32 %v510_v55, %v510_v55  ;;  %v7497_v41 = vld [vmem:[#allocation8 + $0x180] ss:$16 sps:$4 sm:$0xff]  }
 0x115   : > { %652 = vadd.xlane.f32.xlu1 %v651_v12  ;;  %1779 = vmatprep.subr.bf16.mxu1 %v7456_v47  ;;  %v642_v12 = vmul.f32 %v511_v60, %v511_v60  ;;  %v7506_v47 = vld [vmem:[#allocation8 + $0x1e0] ss:$16 sps:$4 sm:$0xff]  }
 0x116   : > { %v684_v15 = vadd.f32 %v641_v6, %v640_v5 }
 0x118   : > { %655 = vadd.xlane.f32.xlu0 %v654_v18  ;;  %1780 = vmatpush1.bf16.msra.mxu1 %v7458_v56  ;;  %v687_v18 = vadd.f32 %v643_v13, %v642_v12 }
 0x119   : > { %658 = vadd.xlane.f32.xlu1 %v657_v24  ;;  %v7473_v24 = vld [vmem:[#allocation8 + $0x80] ss:$16 sps:$4 sm:$0xff]  }
 0x11a   : > { %1453 = vmatpush1.bf16.msra.mxu0 %v7473_v24 }
 0x11b   : > { %1454 = vmatprep.subr.bf16.mxu0 %v7474_v26 }
 0x11c   : > { %661 = vadd.xlane.f32.xlu0 %v660_v30  ;;  %v7480_v30 = vld [vmem:[#allocation8 + $0xe4] ss:$16 sps:$4 sm:$0xff]  }
 0x11d   : > { %664 = vadd.xlane.f32.xlu1 %v663_v36  ;;  %v7489_v36 = vld [vmem:[#allocation8 + $0x144] ss:$16 sps:$4 sm:$0xff]  }
 0x11e   : > { %1455 = vmatpush1.bf16.msra.mxu0 %v7476_v27 }
 0x11f   : > { %1456 = vmatprep.subr.bf16.mxu0 %v7477_v28 }
 0x120   : > { %667 = vadd.xlane.f32.xlu0 %v666_v42  ;;  %v7498_v42 = vld [vmem:[#allocation8 + $0x1a4] ss:$16 sps:$4 sm:$0xff]  }
 0x121   : > { %670 = vadd.xlane.f32.xlu1 %v669_v50 }
 0x122   : > { %1457 = vmatpush1.bf16.msra.mxu0 %v7479_v29  ;;  %v8230_v29 = vld [vmem:[#allocation2 + $0x18] sm:$0xff] }
 0x123   : > { %1458 = vmatprep.subr.bf16.mxu0 %v7480_v30 }
 0x124   : > { %673 = vadd.xlane.f32.xlu0 %v672_v57  ;;  %v11513_v57 = vlaneseq }
 0x125   : > { %676 = vadd.xlane.f32.xlu1 %v675_v62 }
 0x126   : > { %1459 = vmatpush1.bf16.msra.mxu0 %v7482_v31  ;;  %v8967_v0 = vshrl.u32 %v11513_v57, 7  ;;  %v8231_v31 = vld [vmem:[#allocation2 + $0x10] sm:$0xff]  ;;  %v9386_v57 = vld [vmem:[%s9307_s16 + $0x40] sm:$0xff] }
 0x127   : > { %1460 = vmatprep.subr.bf16.mxu0 %v7483_v32  ;;  %11708 = vst [vmem:[#allocation55_spill] sm:$0xff] %v9386_v57 }
 0x128   : > { %679 = vadd.xlane.f32.xlu0 %v678_v4  ;;  %11679 = vst [vmem:[#allocation26_spill] sm:$0xff] %v8967_v0  ;;  %v11511_v5 = vsub.s32 1, %v8967_v0  ;;  %v11512_v9 = vsub.s32 0, %v8967_v0 }
 0x129   : > { %682 = vadd.xlane.f32.xlu1 %v681_v11 }
 0x12a   : > { %1461 = vmatpush1.bf16.msra.mxu0 %v7485_v33  ;;  %v8976_v16 = vrot.slane %v615_v8, %v11511_v5 }
 0x12b   : > { %1462 = vmatprep.subr.bf16.mxu0 %v7486_v34 }
 0x12c   : > { %685 = vadd.xlane.f32.xlu0 %v684_v15 }
 0x12d   : > { %688 = vadd.xlane.f32.xlu1 %v687_v18 }
 0x12e   : > { %1463 = vmatpush1.bf16.msra.mxu0 %v7488_v35  ;;  %v8232_v35 = vld [vmem:[#allocation2 + $0x38] sm:$0xff] }
 0x12f   : > { %1464 = vmatprep.subr.bf16.mxu0 %v7489_v36 }
 0x130   : > { %691 = vadd.xlane.f32.xlu0 %v690_v22  ;;  %v8980_v22 = vrot.slane %v615_v8, %v11512_v9 }
 0x131   : > { %694 = vadd.xlane.f32.xlu1 %v693_v25 }
 0x132   : > { %1465 = vmatpush1.bf16.msra.mxu0 %v7491_v37 }
 0x133   : > { %1466 = vmatprep.subr.bf16.mxu0 %v7492_v38 }
 0x136   : > { %1467 = vmatpush1.bf16.msra.mxu0 %v7494_v39 }
 0x137   : > { %1468 = vmatprep.subr.bf16.mxu0 %v7495_v40 }
 0x13a   : > { %1469 = vmatpush1.bf16.msra.mxu0 %v7497_v41 }
 0x13b   : > { %1470 = vmatprep.subr.bf16.mxu0 %v7498_v42 }
 0x13e   : > { %1471 = vmatpush1.bf16.msra.mxu0 %v7500_v43 }
 0x13f   : > { %1472 = vmatprep.subr.bf16.mxu0 %v7501_v44 }
 0x142   : > { %1473 = vmatpush1.bf16.msra.mxu0 %v7503_v45 }
 0x143   : > { %1474 = vmatprep.subr.bf16.mxu0 %v7504_v46 }
 0x146   : > { %1475 = vmatpush1.bf16.msra.mxu0 %v7506_v47 }
 0x161   : > { %v886_v48 = vpop.xlane.xlu0 %885 }
 0x162   : > { %v980_v49 = vmul.f32 0.00390625, %v886_v48  ;;  %v892_v50 = vpop.xlane.xlu1 %891 }
 0x163   : > { %v982_v51 = vmul.f32 0.00390625, %v892_v50 }
 0x164   : > { %v1012_v52 = vadd.f32 1e-06, %v980_v49  ;;  %v8233_v49 = vld [vmem:[#allocation2 + $0x48] sm:$0xff] }
 0x165   : > { %v1014_v53 = vadd.f32 1e-06, %v982_v51  ;;  %v889_v54 = vpop.xlane.xlu0 %888 }
 0x166   : > { %7651 = vrsqrt.f32 %v1012_v52  ;;  %v981_v55 = vmul.f32 0.00390625, %v889_v54  ;;  %v895_v56 = vpop.xlane.xlu1 %894 }
 0x167   : > { %7653 = vrsqrt.f32 %v1014_v53  ;;  %v983_v58 = vmul.f32 0.00390625, %v895_v56  ;;  %v8234_v53 = vld [vmem:[#allocation2 + $0x20] sm:$0xff] }
 0x168   : > { %v1013_v59 = vadd.f32 1e-06, %v981_v55  ;;  %v8235_v55 = vld [vmem:[#allocation2 + $0x30] sm:$0xff] }
 0x169   : > { %v1015_v60 = vadd.f32 1e-06, %v983_v58  ;;  %v898_v61 = vpop.xlane.xlu0 %897  ;;  %v8236_v58 = vld [vmem:[#allocation2 + $0x58] sm:$0xff] }
 0x16a   : > { %7655 = vrsqrt.f32 %v1013_v59  ;;  %v901_v62 = vpop.xlane.xlu1 %900  ;;  %v984_v63 = vmul.f32 0.00390625, %v898_v61 }
 0x16b   : > { %7657 = vrsqrt.f32 %v1015_v60  ;;  %v985_v1 = vmul.f32 0.00390625, %v901_v62 }
 0x16c   : > { %v1016_v2 = vadd.f32 1e-06, %v984_v63 }
 0x16d   : > { %v1017_v3 = vadd.f32 1e-06, %v985_v1  ;;  %v904_v4 = vpop.xlane.xlu0 %903 }
 0x16e   : > { %7659 = vrsqrt.f32 %v1016_v2  ;;  %v907_v6 = vpop.xlane.xlu1 %906  ;;  %v986_v7 = vmul.f32 0.00390625, %v904_v4 }
 0x16f   : > { %7661 = vrsqrt.f32 %v1017_v3  ;;  %v987_v10 = vmul.f32 0.00390625, %v907_v6 }
 0x170   : > { %v7652_v11 = vpop.eup %7651  ;;  %v1018_v12 = vadd.f32 1e-06, %v986_v7 }
 0x171   : > { %v7654_v13 = vpop.eup %7653  ;;  %v1019_v14 = vadd.f32 1e-06, %v987_v10  ;;  %v910_v15 = vpop.xlane.xlu0 %909  ;;  %v1077_v18 = vmul.f32 %v8227_v17, %v7652_v11  ;;  %v1076_v24 = vmul.f32 %v8229_v23, %v7652_v11  ;;  %v8237_v11 = vld [vmem:[#allocation2 + $0x40] sm:$0xff] }
 0x172   : > { %v1081_v20 = vmul.f32 %v8228_v19, %v7654_v13  ;;  %v913_v21 = vpop.xlane.xlu1 %912  ;;  %7663 = vrsqrt.f32 %v1018_v12  ;;  %v988_v25 = vmul.f32 0.00390625, %v910_v15  ;;  %v1080_v54 = vmul.f32 %v8234_v53, %v7654_v13  ;;  %v8238_v13 = vld [vmem:[#allocation2 + $0x50] sm:$0xff] }
 0x173   : > { %7665 = vrsqrt.f32 %v1019_v14  ;;  %v989_v27 = vmul.f32 0.00390625, %v913_v21  ;;  %v1141_v34 = vmul.f32 %v1077_v18, %v8976_v16  ;;  %v1140_v40 = vmul.f32 %v1076_v24, %v8980_v22  ;;  %v8239_v18 = vld [vmem:[#allocation2 + $0x68] sm:$0xff] }
 0x174   : > { %v7656_v26 = vpop.eup %7655  ;;  %v1145_v37 = vmul.f32 %v1081_v20, %v8976_v16  ;;  %v1020_v42 = vadd.f32 1e-06, %v988_v25  ;;  %v1144_v6 = vmul.f32 %v1080_v54, %v8980_v22  ;;  %v8240_v20 = vld [vmem:[#allocation2 + $0x78] sm:$0xff] }
 0x175   : > { %v7658_v28 = vpop.eup %7657  ;;  %v1079_v30 = vmul.f32 %v8230_v29, %v7656_v26  ;;  %v1078_v32 = vmul.f32 %v8231_v31, %v7656_v26  ;;  %v916_v33 = vpop.xlane.xlu0 %915  ;;  %v1021_v45 = vadd.f32 1e-06, %v989_v27 }
 0x176   : > { %v1083_v36 = vmul.f32 %v8232_v35, %v7658_v28  ;;  %v919_v38 = vpop.xlane.xlu1 %918  ;;  %v1082_v56 = vmul.f32 %v8235_v55, %v7658_v28  ;;  %7667 = vrsqrt.f32 %v1020_v42  ;;  %v990_v61 = vmul.f32 0.00390625, %v916_v33 }
 0x177   : > { %v1143_v39 = vmul.f32 %v1079_v30, %v8976_v16  ;;  %v1142_v41 = vmul.f32 %v1078_v32, %v8980_v22  ;;  %7669 = vrsqrt.f32 %v1021_v45  ;;  %v991_v62 = vmul.f32 0.00390625, %v919_v38  ;;  %v8241_v38 = vld [vmem:[#allocation2 + $0x60] sm:$0xff] }
 0x178   : > { %v7660_v43 = vpop.eup %7659  ;;  %v1147_v44 = vmul.f32 %v1083_v36, %v8976_v16  ;;  %v1146_v7 = vmul.f32 %v1082_v56, %v8980_v22  ;;  %v1022_v10 = vadd.f32 1e-06, %v990_v61 }
 0x179   : > { %v7662_v46 = vpop.eup %7661  ;;  %v1558_v47 = vpack.c.bf16 %v1143_v39, %v1141_v34  ;;  %v1557_v48 = vpack.c.bf16 %v1142_v41, %v1140_v40  ;;  %v1085_v50 = vmul.f32 %v8233_v49, %v7660_v43  ;;  %v922_v51 = vpop.xlane.xlu0 %921  ;;  %v1084_v12 = vmul.f32 %v8237_v11, %v7660_v43  ;;  %v8242_v40 = vld [vmem:[#allocation2 + $0x70] sm:$0xff] }
 0x17a   : > { %v1560_v52 = vpack.c.bf16 %v1147_v44, %v1145_v37  ;;  %v1087_v59 = vmul.f32 %v8236_v58, %v7662_v46  ;;  %v925_v60 = vpop.xlane.xlu1 %924  ;;  %v1086_v14 = vmul.f32 %v8238_v13, %v7662_v46  ;;  %v1023_v15 = vadd.f32 1e-06, %v991_v62  ;;  %v8243_v44 = vld [vmem:[#allocation2 + $0x88] sm:$0xff]  ;;  %v8244_v46 = vld [vmem:[#allocation2 + $0x98] sm:$0xff] }
 0x17b   : > { %1781 = vmatprep.mubr.bf16.mxu1 %v1558_v47  ;;  %v1149_v1 = vmul.f32 %v1085_v50, %v8976_v16  ;;  %v1559_v24 = vpack.c.bf16 %v1146_v7, %v1144_v6  ;;  %7671 = vrsqrt.f32 %v1022_v10  ;;  %v993_v26 = vmul.f32 0.00390625, %v925_v60  ;;  %v8248_v10 = vld [vmem:[#allocation2 + $0xb8] sm:$0xff] }
 0x17c   : > { %1782 = vmatmul.mubr.bf16.vlgmr.msra.gmra.mrb[0].mxu1 %v1557_v48  ;;  %v7664_v63 = vpop.eup %7663  ;;  %v1151_v2 = vmul.f32 %v1087_v59, %v8976_v16  ;;  %v1148_v27 = vmul.f32 %v1084_v12, %v8980_v22  ;;  %v1150_v28 = vmul.f32 %v1086_v14, %v8980_v22  ;;  %7673 = vrsqrt.f32 %v1023_v15 }
 0x17d   : > { %1791 = vmatprep.mubr.bf16.mxu1 %v1560_v52  ;;  %v928_v3 = vpop.xlane.xlu0 %927  ;;  %v7666_v4 = vpop.eup %7665  ;;  %v1089_v19 = vmul.f32 %v8239_v18, %v7664_v63  ;;  %v992_v29 = vmul.f32 0.00390625, %v922_v51  ;;  %v1025_v36 = vadd.f32 1e-06, %v993_v26  ;;  %v1088_v39 = vmul.f32 %v8241_v38, %v7664_v63  ;;  %v8245_v63 = vld [vmem:[#allocation2 + $0x80] sm:$0xff]  ;;  %v8251_v38 = vld [vmem:[#allocation2 + $0xc8] sm:$0xff] }
 0x17e   : > { %v931_v8 = vpop.xlane.xlu1 %930  ;;  %v1562_v17 = vpack.c.bf16 %v1151_v2, %v1149_v1  ;;  %v1091_v21 = vmul.f32 %v8240_v20, %v7666_v4  ;;  %v1561_v37 = vpack.c.bf16 %v1150_v28, %v1148_v27  ;;  %v1090_v41 = vmul.f32 %v8242_v40, %v7666_v4  ;;  %v8246_v2 = vld [vmem:[#allocation2 + $0x90] sm:$0xff]  ;;  %v8252_v40 = vld [vmem:[#allocation2 + $0xd8] sm:$0xff] }
 0x17f   : > { %v1153_v31 = vmul.f32 %v1089_v19, %v8976_v16  ;;  %v1024_v42 = vadd.f32 1e-06, %v992_v29  ;;  %7675 = vrsqrt.f32 %v1025_v36  ;;  %v995_v50 = vmul.f32 0.00390625, %v931_v8  ;;  %v8247_v8 = vld [vmem:[#allocation2 + $0xa8] sm:$0xff] }
 0x180   : > { %v7668_v30 = vpop.eup %7667  ;;  %v1155_v32 = vmul.f32 %v1091_v21, %v8976_v16  ;;  %v1152_v51 = vmul.f32 %v1088_v39, %v8980_v22  ;;  %v1154_v52 = vmul.f32 %v1090_v41, %v8980_v22  ;;  %v994_v53 = vmul.f32 0.00390625, %v928_v3 }
 0x181   : > { %v934_v23 = vpop.xlane.xlu0 %933  ;;  %v7670_v34 = vpop.eup %7669  ;;  %v1093_v45 = vmul.f32 %v8243_v44, %v7668_v30  ;;  %7677 = vrsqrt.f32 %v1024_v42  ;;  %v1027_v61 = vadd.f32 1e-06, %v995_v50  ;;  %v1092_v1 = vmul.f32 %v8245_v63, %v7668_v30 }
 0x182   : > { %v937_v25 = vpop.xlane.xlu1 %936  ;;  %v1564_v43 = vpack.c.bf16 %v1155_v32, %v1153_v31  ;;  %v1095_v47 = vmul.f32 %v8244_v46, %v7670_v34  ;;  %v1563_v62 = vpack.c.bf16 %v1154_v52, %v1152_v51  ;;  %v1094_v4 = vmul.f32 %v8246_v2, %v7670_v34  ;;  %v8255_v2 = vld [vmem:[#allocation2 + $0xf8] sm:$0xff] }
 0x183   : > { %v1157_v55 = vmul.f32 %v1093_v45, %v8976_v16  ;;  %v1026_v6 = vadd.f32 1e-06, %v994_v53  ;;  %v997_v13 = vmul.f32 0.00390625, %v937_v25  ;;  %7679 = vrsqrt.f32 %v1027_v61  ;;  %v8249_v25 = vld [vmem:[#allocation2 + $0xa0] sm:$0xff]  ;;  %v8254_v61 = vld [vmem:[#allocation2 + $0xd0] sm:$0xff] }
 0x184   : > { %1792 = vmatmul.mubr.bf16.gmra.mrb[4].mxu1 %v1559_v24  ;;  %v1159_v56 = vmul.f32 %v1095_v47, %v8976_v16  ;;  %v996_v15 = vmul.f32 0.00390625, %v934_v23  ;;  %v1158_v18 = vmul.f32 %v1094_v4, %v8980_v22  ;;  %v8250_v23 = vld [vmem:[#allocation2 + $0xb0] sm:$0xff] }
 0x185   : > { %1801 = vmatprep.mubr.bf16.mxu1 %v1562_v17  ;;  %v8996_v33 = vpop.xlane.xlu0 %939  ;;  %v7672_v54 = vpop.eup %7671  ;;  %v1156_v17 = vmul.f32 %v1092_v1, %v8980_v22  ;;  %7681 = vrsqrt.f32 %v1026_v6  ;;  %v1029_v28 = vadd.f32 1e-06, %v997_v13 }
 0x186   : > { %v943_v35 = vpop.xlane.xlu1 %942  ;;  %v7674_v59 = vpop.eup %7673  ;;  %v1566_v7 = vpack.c.bf16 %v1159_v56, %v1157_v55  ;;  %v1097_v3 = vmul.f32 %v8247_v8, %v7672_v54  ;;  %v1096_v27 = vmul.f32 %v8249_v25, %v7672_v54  ;;  %v1028_v31 = vadd.f32 1e-06, %v996_v15  ;;  %v8253_v56 = vld [vmem:[#allocation2 + $0xc0] sm:$0xff] }
 0x187   : > { %v1099_v11 = vmul.f32 %v8248_v10, %v7674_v59  ;;  %v1098_v30 = vmul.f32 %v8250_v23, %v7674_v59  ;;  %v999_v32 = vmul.f32 0.00390625, %v943_v35  ;;  %v1565_v34 = vpack.c.bf16 %v1158_v18, %v1156_v17  ;;  %v8257_v18 = vld [vmem:[#allocation2 + $0xe0] sm:$0xff] }
 0x188   : > { %v1161_v20 = vmul.f32 %v1097_v3, %v8976_v16  ;;  %v998_v36 = vmul.f32 0.00390625, %v8996_v33  ;;  %7683 = vrsqrt.f32 %v1029_v28 }
 0x189   : > { %v8998_v48 = vpop.xlane.xlu0 %945  ;;  %v7676_v19 = vpop.eup %7675  ;;  %v1163_v21 = vmul.f32 %v1099_v11, %v8976_v16  ;;  %v1162_v45 = vmul.f32 %v1098_v30, %v8980_v22  ;;  %7685 = vrsqrt.f32 %v1028_v31  ;;  %v1031_v46 = vadd.f32 1e-06, %v999_v32 }
 0x18a   : > { %v9000_v49 = vpop.xlane.xlu1 %948  ;;  %v1103_v41 = vmul.f32 %v8252_v40, %v7676_v19  ;;  %v1030_v33 = vadd.f32 1e-06, %v998_v36  ;;  %v1000_v47 = vmul.f32 0.00390625, %v8998_v48 }
 0x18b   : > { %v7678_v26 = vpop.eup %7677  ;;  %v1001_v35 = vmul.f32 0.00390625, %v9000_v49  ;;  %7687 = vrsqrt.f32 %v1031_v46 }
 0x18c   : > { %1802 = vmatmul.mubr.bf16.gmra.mrb[8].mxu1 %v1561_v37  ;;  %v1568_v37 = vpack.c.bf16 %v1163_v21, %v1161_v20  ;;  %v1101_v39 = vmul.f32 %v8251_v38, %v7678_v26  ;;  %v1167_v52 = vmul.f32 %v1103_v41, %v8976_v16  ;;  %v1100_v59 = vmul.f32 %v8253_v56, %v7678_v26  ;;  %v8258_v20 = vld [vmem:[#allocation2 + $0xf0] sm:$0xff] }
 0x18d   : > { %1811 = vmatprep.mubr.bf16.mxu1 %v1564_v43  ;;  %v952_v58 = vpop.xlane.xlu0 %951  ;;  %v1160_v43 = vmul.f32 %v1096_v27, %v8980_v22  ;;  %v7680_v50 = vpop.eup %7679  ;;  %v1033_v1 = vadd.f32 1e-06, %v1001_v35  ;;  %7689 = vrsqrt.f32 %v1030_v33  ;;  %v1032_v48 = vadd.f32 1e-06, %v1000_v47  ;;  %v8260_v35 = vld [vmem:[#allocation2 + $0x118] sm:$0xff]  ;;  %v8261_v56 = vld [vmem:[#allocation2 + $0x110] sm:$0xff] }
 0x18e   : > { %v9006_v60 = vpop.xlane.xlu1 %954  ;;  %v1165_v51 = vmul.f32 %v1101_v39, %v8976_v16  ;;  %v1002_v53 = vmul.f32 0.00390625, %v952_v58  ;;  %v1107_v4 = vmul.f32 %v8255_v2, %v7680_v50  ;;  %v8256_v58 = vld [vmem:[#allocation2 + $0xe8] sm:$0xff]  ;;  %v1164_v11 = vmul.f32 %v1100_v59, %v8980_v22 }
 0x18f   : > { %v7682_v55 = vpop.eup %7681  ;;  %v1567_v49 = vpack.c.bf16 %v1162_v45, %v1160_v43  ;;  %v1003_v6 = vmul.f32 0.00390625, %v9006_v60  ;;  %7691 = vrsqrt.f32 %v1033_v1  ;;  %v1106_v21 = vmul.f32 %v8258_v20, %v7680_v50  ;;  %v8259_v45 = vld [vmem:[#allocation2 + $0x108] sm:$0xff] }
 0x190   : > { %v1105_v8 = vmul.f32 %v8256_v58, %v7682_v55  ;;  %v1034_v3 = vadd.f32 1e-06, %v1002_v53  ;;  %7693 = vrsqrt.f32 %v1032_v48  ;;  %v1171_v60 = vmul.f32 %v1107_v4, %v8976_v16 }
 0x191   : > { %v9008_v12 = vpop.xlane.xlu0 %957  ;;  %v1035_v27 = vadd.f32 1e-06, %v1003_v6  ;;  %v9045_v40 = vmul.f32 %v1106_v21, %v8980_v22  ;;  %v8263_v6 = vld [vmem:[#allocation2 + $0x138] sm:$0xff] }
 0x192   : > { %v9010_v14 = vpop.xlane.xlu1 %960  ;;  %v7684_v25 = vpop.eup %7683  ;;  %v1169_v30 = vmul.f32 %v1105_v8, %v8976_v16  ;;  %7695 = vrsqrt.f32 %v1034_v3  ;;  %v1004_v43 = vmul.f32 0.00390625, %v9008_v12 }
 0x193   : > { %v7686_v23 = vpop.eup %7685  ;;  %v1005_v31 = vmul.f32 0.00390625, %v9010_v14  ;;  %v1111_v14 = vmul.f32 %v8260_v35, %v7684_v25  ;;  %v1110_v59 = vmul.f32 %v8261_v56, %v7684_v25 }
 0x194   : > { %1812 = vmatmul.mubr.bf16.gmra.mrb[12].mxu1 %v1563_v62  ;;  %v1102_v62 = vmul.f32 %v8254_v61, %v7676_v19  ;;  %v1104_v19 = vmul.f32 %v8257_v18, %v7682_v55  ;;  %v1109_v46 = vmul.f32 %v8259_v45, %v7686_v23  ;;  %v1572_v50 = vpack.c.bf16 %v1171_v60, %v1169_v30  ;;  %v8265_v30 = vld [vmem:[#allocation2 + $0x120] sm:$0xff] }
 0x195   : > { %1821 = vmatprep.mubr.bf16.mxu1 %v1566_v7  ;;  %v9016_v24 = vpop.xlane.xlu0 %963  ;;  %v1570_v7 = vpack.c.bf16 %v1167_v52, %v1165_v51  ;;  %v9048_v47 = vpop.eup %7687  ;;  %v1037_v51 = vadd.f32 1e-06, %v1005_v31  ;;  %v1175_v4 = vmul.f32 %v1111_v14, %v8976_v16  ;;  %v9057_v3 = vadd.f32 1e-06, %v1004_v43  ;;  %v8268_v43 = vld [vmem:[%s8932_s14 + $0x18] sm:$0xff] }
 0x196   : > { %v9018_v29 = vpop.xlane.xlu1 %966  ;;  %v1166_v13 = vmul.f32 %v1102_v62, %v8980_v22  ;;  %v9042_v39 = vmul.f32 %v1104_v19, %v8980_v22  ;;  %v1173_v2 = vmul.f32 %v1109_v46, %v8976_v16  ;;  %v9062_v18 = vmul.f32 %v1110_v59, %v8980_v22  ;;  %v8269_v46 = vld [vmem:[%s8932_s14 + $0x10] sm:$0xff] }
 0x197   : > { %v7690_v55 = vpop.eup %7689  ;;  %v9065_v19 = vmul.f32 0.00390625, %v9018_v29  ;;  %v9073_v60 = vmul.f32 0.00390625, %v9016_v24  ;;  %v8270_v59 = vld [vmem:[#allocation2 + $0x130] sm:$0xff] }
 0x198   : > { %v1569_v36 = vpack.c.bf16 %v1166_v13, %v1164_v11  ;;  %v1571_v12 = vpack.c.bf16 %v9045_v40, %v9042_v39  ;;  %v1574_v29 = vpack.c.bf16 %v1175_v4, %v1173_v2  ;;  %v9078_v31 = vmul.f32 %v8265_v30, %v7690_v55  ;;  %v8272_v4 = vld [vmem:[%s8932_s14 + $0x20] sm:$0xff] }
 0x199   : > { %v9021_v42 = vpop.xlane.xlu0 %969  ;;  %v9055_v8 = vpop.eup %7691 }
 0x19a   : > { %v9024_v44 = vpop.xlane.xlu1 %972 }
 0x19c   : > { %1822 = vmatmul.mubr.bf16.gmra.mrb[16].mxu1 %v1565_v34 }
 0x19d   : > { %1831 = vmatprep.mubr.bf16.mxu1 %v1568_v37  ;;  %v9031_v54 = vpop.xlane.xlu0 %975 }
 0x19e   : > { %v9033_v63 = vpop.xlane.xlu1 %978 }
 0x1a1   : > { %v650_v10 = vpop.xlane.xlu0 %649 }
 0x1a2   : > { %v653_v15 = vpop.xlane.xlu1 %652  ;;  %v697_v17 = vmul.f32 0.00390625, %v650_v10  ;;  %v8264_v10 = vld [vmem:[#allocation2 + $0x128] sm:$0xff] }
 0x1a3   : > { %v698_v26 = vmul.f32 0.00390625, %v653_v15  ;;  %v1113_v11 = vmul.f32 %v8264_v10, %v7690_v55 }
 0x1a4   : > { %1832 = vmatmul.mubr.bf16.gmra.mrb[20].mxu1 %v1567_v49  ;;  %v713_v28 = vadd.f32 1e-06, %v697_v17  ;;  %v8262_v49 = vld [vmem:[#allocation2 + $0x100] sm:$0xff]  ;;  %v9059_v17 = vpop.eup %7693 }
 0x1a5   : > { %1841 = vmatprep.mubr.bf16.mxu1 %v1570_v7  ;;  %v714_v32 = vadd.f32 1e-06, %v698_v26  ;;  %v656_v34 = vpop.xlane.xlu0 %655  ;;  %v1108_v1 = vmul.f32 %v8262_v49, %v7686_v23  ;;  %v1115_v7 = vmul.f32 %v8263_v6, %v9048_v47  ;;  %v9067_v26 = vpop.eup %7695 }
 0x1a6   : > { %7697 = vrsqrt.f32 %v713_v28  ;;  %v659_v37 = vpop.xlane.xlu1 %658  ;;  %v699_v38 = vmul.f32 0.00390625, %v656_v34 }
 0x1a7   : > { %7699 = vrsqrt.f32 %v714_v32  ;;  %v700_v41 = vmul.f32 0.00390625, %v659_v37  ;;  %v9070_v25 = vmul.f32 %v1108_v1, %v8980_v22  ;;  %v9076_v23 = vmul.f32 %v1115_v7, %v8976_v16  ;;  %v8266_v37 = vld [vmem:[%s8932_s14 + $0x8] sm:$0xff] }
 0x1a8   : > { %v715_v33 = vadd.f32 1e-06, %v699_v38  ;;  %7701 = vrsqrt.f32 %v1035_v27  ;;  %v8267_v38 = vld [vmem:[%s8932_s14] sm:$0xff] }
 0x1a9   : > { %v716_v52 = vadd.f32 1e-06, %v700_v41  ;;  %v662_v53 = vpop.xlane.xlu0 %661  ;;  %v1573_v56 = vpack.c.bf16 %v9062_v18, %v9070_v25 }
 0x1aa   : > { %7703 = vrsqrt.f32 %v715_v33  ;;  %v665_v61 = vpop.xlane.xlu1 %664  ;;  %v701_v62 = vmul.f32 0.00390625, %v662_v53 }
 0x1ab   : > { %7705 = vrsqrt.f32 %v716_v52  ;;  %v702_v48 = vmul.f32 0.00390625, %v665_v61  ;;  %v1114_v61 = vmul.f32 %v8270_v59, %v9048_v47 }
 0x1ac   : > { %1842 = vmatmul.mubr.bf16.gmra.mrb[24].mxu1 %v1569_v36  ;;  %v717_v58 = vadd.f32 1e-06, %v701_v62  ;;  %7707 = vrsqrt.f32 %v1037_v51  ;;  %v9081_v36 = vmul.f32 %v1113_v11, %v8976_v16  ;;  %v8273_v11 = vld [vmem:[%s8932_s14 + $0x38] sm:$0xff] }
 0x1ad   : > { %1851 = vmatprep.mubr.bf16.mxu1 %v1572_v50  ;;  %v718_v13 = vadd.f32 1e-06, %v702_v48  ;;  %v668_v15 = vpop.xlane.xlu0 %667  ;;  %v8271_v48 = vld [vmem:[%s8932_s14 + $0x28] sm:$0xff] }
 0x1ae   : > { %7709 = vrsqrt.f32 %v717_v58  ;;  %v671_v20 = vpop.xlane.xlu1 %670  ;;  %v703_v21 = vmul.f32 0.00390625, %v668_v15  ;;  %v8274_v15 = vld [vmem:[%s8932_s14 + $0x30] sm:$0xff]  ;;  %v1576_v25 = vpack.c.bf16 %v9076_v23, %v9081_v36  ;;  %v8277_v36 = vld [vmem:[%s8932_s14 + $0x48] sm:$0xff] }
 0x1af   : > { %7711 = vrsqrt.f32 %v718_v13  ;;  %v704_v27 = vmul.f32 0.00390625, %v671_v20 }
 0x1b0   : > { %v7698_v28 = vpop.eup %7697  ;;  %v719_v32 = vadd.f32 1e-06, %v703_v21 }
 0x1b1   : > { %v7700_v34 = vpop.eup %7699  ;;  %v746_v24 = vmul.f32 %v8266_v37, %v7698_v28  ;;  %v745_v39 = vmul.f32 %v8267_v38, %v7698_v28  ;;  %v720_v40 = vadd.f32 1e-06, %v704_v27  ;;  %v674_v41 = vpop.xlane.xlu0 %673  ;;  %v8275_v27 = vld [vmem:[#allocation2 + $0x148] sm:$0xff] }
 0x1b2   : > { %v748_v45 = vmul.f32 %v8268_v43, %v7700_v34  ;;  %v747_v35 = vmul.f32 %v8269_v46, %v7700_v34  ;;  %7713 = vrsqrt.f32 %v719_v32  ;;  %v677_v14 = vpop.xlane.xlu1 %676  ;;  %v705_v33 = vmul.f32 0.00390625, %v674_v41  ;;  %v9087_v50 = vpop.eup %7701  ;;  %v8278_v46 = vld [vmem:[%s8932_s14 + $0x58] sm:$0xff] }
 0x1b3   : > { %v789_v51 = vmul.f32 %v8976_v16, %v746_v24  ;;  %v788_v52 = vmul.f32 %v8980_v22, %v745_v39  ;;  %7715 = vrsqrt.f32 %v720_v40  ;;  %v706_v53 = vmul.f32 0.00390625, %v677_v14 }
 0x1b4   : > { %v7704_v55 = vpop.eup %7703  ;;  %1852 = vmatmul.mubr.bf16.gmra.mrb[28].mxu1 %v1571_v12  ;;  %v791_v62 = vmul.f32 %v8976_v16, %v748_v45  ;;  %v790_v49 = vmul.f32 %v8980_v22, %v747_v35  ;;  %v721_v12 = vadd.f32 1e-06, %v705_v33  ;;  %v1117_v28 = vmul.f32 %v8275_v27, %v9059_v17 }
 0x1b5   : > { %v7706_v1 = vpop.eup %7705  ;;  %1861 = vmatprep.mubr.bf16.mxu1 %v1574_v29  ;;  %v750_v2 = vmul.f32 %v8271_v48, %v7704_v55  ;;  %v749_v6 = vmul.f32 %v8272_v4, %v7704_v55  ;;  %v722_v7 = vadd.f32 1e-06, %v706_v53  ;;  %v680_v47 = vpop.xlane.xlu0 %679  ;;  %v8276_v29 = vld [vmem:[#allocation2 + $0x158] sm:$0xff]  ;;  %v1039_v43 = vadd.f32 1e-06, %v9065_v19 }
 0x1b6   : > { %v1269_v58 = vpack.c.bf16 %v791_v62, %v789_v51  ;;  %v1268_v10 = vpack.c.bf16 %v790_v49, %v788_v52  ;;  %v752_v13 = vmul.f32 %v8273_v11, %v7706_v1  ;;  %v751_v18 = vmul.f32 %v8274_v15, %v7706_v1  ;;  %v683_v20 = vpop.xlane.xlu1 %682  ;;  %v9100_v21 = vpop.eup %7707 }
 0x1b7   : > { %v1119_v30 = vmul.f32 %v8276_v29, %v9055_v8  ;;  %v793_v32 = vmul.f32 %v8976_v16, %v750_v2  ;;  %v792_v24 = vmul.f32 %v8980_v22, %v749_v6  ;;  %7717 = vrsqrt.f32 %v722_v7  ;;  %v8281_v6 = vld [vmem:[%s8932_s14 + $0x68] sm:$0xff] }
 0x1b8   : > { %v7710_v34 = vpop.eup %7709  ;;  %1476 = vmatprep.mubr.bf16.mxu0 %v1269_v58  ;;  %v795_v37 = vmul.f32 %v8976_v16, %v752_v13  ;;  %v708_v38 = vmul.f32 0.00390625, %v683_v20  ;;  %v794_v23 = vmul.f32 %v8980_v22, %v751_v18  ;;  %7719 = vrsqrt.f32 %v721_v12  ;;  %v8282_v12 = vld [vmem:[%s8932_s14 + $0x78] sm:$0xff]  ;;  %v8283_v13 = vld [vmem:[#allocation2 + $0x140] sm:$0xff]  ;;  %v8284_v18 = vld [vmem:[#allocation2 + $0x150] sm:$0xff] }
 0x1b9   : > { %v7712_v39 = vpop.eup %7711  ;;  %1477 = vmatmul.mubr.bf16.vlgmr.msra.gmra.mrb[0].mxu0 %v1268_v10  ;;  %v754_v40 = vmul.f32 %v8277_v36, %v7710_v34  ;;  %v707_v41 = vmul.f32 0.00390625, %v680_v47  ;;  %7721 = vrsqrt.f32 %v9057_v3  ;;  %v1038_v14 = vadd.f32 1e-06, %v9073_v60  ;;  %v686_v10 = vpop.xlane.xlu0 %685  ;;  %v8285_v47 = vld [vmem:[#allocation2 + $0x168] sm:$0xff] }
 0x1ba   : > { %v1271_v45 = vpack.c.bf16 %v795_v37, %v793_v32  ;;  %v756_v35 = vmul.f32 %v8278_v46, %v7712_v39  ;;  %v1176_v33 = vmul.f32 %v9078_v31, %v8980_v22  ;;  %v1178_v51 = vmul.f32 %v1114_v61, %v8980_v22  ;;  %v8279_v31 = vld [vmem:[%s8932_s14 + $0x40] sm:$0xff]  ;;  %v8280_v61 = vld [vmem:[%s8932_s14 + $0x50] sm:$0xff]  ;;  %v689_v2 = vpop.xlane.xlu1 %688 }
 0x1bb   : > { %v797_v52 = vmul.f32 %v8976_v16, %v754_v40  ;;  %v1181_v3 = vmul.f32 %v1117_v28, %v8976_v16  ;;  %v1183_v19 = vmul.f32 %v1119_v30, %v8976_v16  ;;  %v724_v60 = vadd.f32 1e-06, %v708_v38  ;;  %v8286_v28 = vld [vmem:[#allocation2 + $0x178] sm:$0xff]  ;;  %v8287_v46 = vld [vmem:[%s8932_s14 + $0x60] sm:$0xff] }
 0x1bc   : > { %v7714_v53 = vpop.eup %7713  ;;  %1862 = vmatmul.mubr.bf16.gmra.mrb[32].mxu1 %v1573_v56  ;;  %1486 = vmatprep.mubr.bf16.mxu0 %v1271_v45  ;;  %v799_v55 = vmul.f32 %v8976_v16, %v756_v35  ;;  %v1270_v62 = vpack.c.bf16 %v794_v23, %v792_v24  ;;  %v753_v49 = vmul.f32 %v8279_v31, %v7710_v34  ;;  %v723_v48 = vadd.f32 1e-06, %v707_v41 }
 0x1bd   : > { %v7716_v59 = vpop.eup %7715  ;;  %1871 = vmatprep.mubr.bf16.mxu1 %v1576_v25  ;;  %v755_v1 = vmul.f32 %v8280_v61, %v7712_v39  ;;  %v1008_v56 = vmul.f32 0.00390625, %v9021_v42  ;;  %v758_v7 = vmul.f32 %v8281_v6, %v7714_v53  ;;  %v1575_v11 = vpack.c.bf16 %v1178_v51, %v1176_v33  ;;  %v8294_v6 = vld [vmem:[#allocation2 + $0x198] sm:$0xff] }
 0x1be   : > { %v1273_v4 = vpack.c.bf16 %v799_v55, %v797_v52  ;;  %v760_v58 = vmul.f32 %v8282_v12, %v7716_v59  ;;  %v1116_v15 = vmul.f32 %v8283_v13, %v9059_v17  ;;  %v1118_v20 = vmul.f32 %v8284_v18, %v9055_v8  ;;  %v695_v52 = vpop.xlane.xlu1 %694  ;;  %v8289_v55 = vld [vmem:[%s8932_s14 + $0x88] sm:$0xff] }
 0x1bf   : > { %v1121_v25 = vmul.f32 %v8285_v47, %v9067_v26  ;;  %v1578_v27 = vpack.c.bf16 %v1183_v19, %v1181_v3  ;;  %v1123_v42 = vmul.f32 %v8286_v28, %v9087_v50  ;;  %7723 = vrsqrt.f32 %v724_v60 }
 0x1c0   : > { %v710_v29 = vmul.f32 0.00390625, %v689_v2  ;;  %v796_v30 = vmul.f32 %v8980_v22, %v753_v49  ;;  %v798_v32 = vmul.f32 %v8980_v22, %v755_v1  ;;  %7725 = vrsqrt.f32 %v723_v48  ;;  %v692_v49 = vpop.xlane.xlu0 %691  ;;  %v8291_v1 = vld [vmem:[#allocation2 + $0x160] sm:$0xff]  ;;  %v8292_v2 = vld [vmem:[#allocation2 + $0x170] sm:$0xff] }
 0x1c1   : > { %1487 = vmatmul.mubr.bf16.gmra.mrb[4].mxu0 %v1270_v62  ;;  %v709_v34 = vmul.f32 0.00390625, %v686_v10  ;;  %v9133_v17 = vpop.eup %7717  ;;  %7727 = vrsqrt.f32 %v1039_v43  ;;  %v1009_v8 = vmul.f32 0.00390625, %v9024_v44  ;;  %v801_v37 = vmul.f32 %v8976_v16, %v758_v7  ;;  %v8290_v62 = vld [vmem:[%s8932_s14 + $0x98] sm:$0xff] }
 0x1c2   : > { %1496 = vmatprep.mubr.bf16.mxu0 %v1273_v4  ;;  %v803_v24 = vmul.f32 %v8976_v16, %v760_v58  ;;  %v7720_v38 = vpop.eup %7719  ;;  %7729 = vrsqrt.f32 %v1038_v14  ;;  %v1180_v39 = vmul.f32 %v1116_v15, %v8980_v22  ;;  %v1182_v23 = vmul.f32 %v1118_v20, %v8980_v22  ;;  %v8288_v14 = vld [vmem:[%s8932_s14 + $0x70] sm:$0xff] }
 0x1c3   : > { %v9140_v36 = vpop.eup %7721  ;;  %v1040_v40 = vadd.f32 1e-06, %v1008_v56  ;;  %v1185_v44 = vmul.f32 %v1121_v25, %v8976_v16  ;;  %v1187_v41 = vmul.f32 %v1123_v42, %v8976_v16  ;;  %v726_v43 = vadd.f32 1e-06, %v710_v29 }
 0x1c4   : > { %1872 = vmatmul.mubr.bf16.gmra.mrb[36].mxu1 %v1575_v11  ;;  %v1272_v45 = vpack.c.bf16 %v798_v32, %v796_v30  ;;  %v757_v35 = vmul.f32 %v8287_v46, %v7714_v53  ;;  %v759_v33 = vmul.f32 %v8288_v14, %v7716_v59  ;;  %v725_v51 = vadd.f32 1e-06, %v709_v34  ;;  %v8293_v53 = vld [vmem:[#allocation2 + $0x188] sm:$0xff]  ;;  %v8295_v32 = vld [vmem:[%s8932_s14 + $0x80] sm:$0xff]  ;;  %v8296_v34 = vld [vmem:[%s8932_s14 + $0x90] sm:$0xff] }
 0x1c5   : > { %1881 = vmatprep.mubr.bf16.mxu1 %v1578_v27  ;;  %v1041_v3 = vadd.f32 1e-06, %v1009_v8  ;;  %v1275_v19 = vpack.c.bf16 %v803_v24, %v801_v37  ;;  %v762_v60 = vmul.f32 %v8289_v55, %v7720_v38  ;;  %v764_v31 = vmul.f32 %v8290_v62, %v9133_v17  ;;  %v8299_v46 = vld [vmem:[#allocation2 + $0x180] sm:$0xff] }
 0x1c6   : > { %v1577_v61 = vpack.c.bf16 %v1182_v23, %v1180_v39  ;;  %v1120_v48 = vmul.f32 %v8291_v1, %v9067_v26  ;;  %v1122_v56 = vmul.f32 %v8292_v2, %v9087_v50  ;;  %v1125_v59 = vmul.f32 %v8293_v53, %v9140_v36  ;;  %v8297_v39 = vld [vmem:[%s8932_s14 + $0xa8] sm:$0xff] }
 0x1c7   : > { %v1580_v4 = vpack.c.bf16 %v1187_v41, %v1185_v44  ;;  %v1127_v7 = vmul.f32 %v8294_v6, %v9100_v21  ;;  %7731 = vrsqrt.f32 %v726_v43  ;;  %v712_v12 = vmul.f32 0.00390625, %v695_v52 }
 0x1c8   : > { %v800_v58 = vmul.f32 %v8980_v22, %v757_v35  ;;  %v802_v10 = vmul.f32 %v8980_v22, %v759_v33  ;;  %7733 = vrsqrt.f32 %v725_v51  ;;  %v711_v11 = vmul.f32 0.00390625, %v692_v49  ;;  %v8300_v33 = vld [vmem:[#allocation2 + $0x190] sm:$0xff]  ;;  %v8301_v51 = vld [vmem:[#allocation2 + $0x1a8] sm:$0xff] }
 0x1c9   : > { %1497 = vmatmul.mubr.bf16.gmra.mrb[8].mxu0 %v1272_v45  ;;  %v9155_v26 = vpop.eup %7723  ;;  %7735 = vrsqrt.f32 %v1040_v40  ;;  %v805_v50 = vmul.f32 %v8976_v16, %v762_v60  ;;  %v807_v13 = vmul.f32 %v8976_v16, %v764_v31  ;;  %v1011_v18 = vmul.f32 0.00390625, %v9033_v63  ;;  %v8298_v40 = vld [vmem:[%s8932_s14 + $0xb8] sm:$0xff] }
 0x1ca   : > { %1506 = vmatprep.mubr.bf16.mxu0 %v1275_v19  ;;  %v7726_v15 = vpop.eup %7725  ;;  %v1010_v20 = vmul.f32 0.00390625, %v9031_v54  ;;  %v1184_v47 = vmul.f32 %v1120_v48, %v8980_v22  ;;  %v1186_v25 = vmul.f32 %v1122_v56, %v8980_v22  ;;  %7737 = vrsqrt.f32 %v1041_v3  ;;  %v8303_v56 = vld [vmem:[%s8932_s14 + $0xa0] sm:$0xff] }
 0x1cb   : > { %v9163_v27 = vpop.eup %7727  ;;  %v1189_v28 = vmul.f32 %v1125_v59, %v8976_v16  ;;  %v1191_v42 = vmul.f32 %v1127_v7, %v8976_v16  ;;  %v728_v29 = vadd.f32 1e-06, %v712_v12  ;;  %v1274_v63 = vpack.c.bf16 %v802_v10, %v800_v58  ;;  %v8304_v59 = vld [vmem:[%s8932_s14 + $0xb0] sm:$0xff]  ;;  %v8305_v12 = vld [vmem:[%s8932_s14 + $0xc8] sm:$0xff]  ;;  %v8306_v10 = vld [vmem:[%s8932_s14 + $0xd8] sm:$0xff] }
 0x1cc   : > { %1882 = vmatmul.mubr.bf16.gmra.mrb[40].mxu1 %v1577_v61  ;;  %v7730_v30 = vpop.eup %7729  ;;  %v761_v54 = vmul.f32 %v8295_v32, %v7720_v38  ;;  %v763_v8 = vmul.f32 %v8296_v34, %v9133_v17  ;;  %v727_v37 = vadd.f32 1e-06, %v711_v11  ;;  %v1277_v24 = vpack.c.bf16 %v807_v13, %v805_v50  ;;  %v8302_v17 = vld [vmem:[#allocation2 + $0x1b8] sm:$0xff]  ;;  %v8307_v13 = vld [vmem:[#allocation2 + $0x1a0] sm:$0xff] }
 0x1cd   : > { %1891 = vmatprep.mubr.bf16.mxu1 %v1580_v4  ;;  %v766_v23 = vmul.f32 %v8297_v39, %v7726_v15  ;;  %v768_v44 = vmul.f32 %v8298_v40, %v9155_v26  ;;  %v1043_v41 = vadd.f32 1e-06, %v1011_v18  ;;  %v1042_v43 = vadd.f32 1e-06, %v1010_v20  ;;  %v8308_v20 = vld [vmem:[#allocation2 + $0x1b0] sm:$0xff]  ;;  %v8311_v40 = vld [vmem:[%s8932_s14 + $0xc0] sm:$0xff] }
 0x1ce   : > { %v1579_v45 = vpack.c.bf16 %v1186_v25, %v1184_v47  ;;  %v1124_v35 = vmul.f32 %v8299_v46, %v9140_v36  ;;  %v1582_v14 = vpack.c.bf16 %v1191_v42, %v1189_v28  ;;  %v1126_v38 = vmul.f32 %v8300_v33, %v9100_v21  ;;  %v8309_v25 = vld [vmem:[#allocation2 + $0x1c8] sm:$0xff]  ;;  %v8314_v33 = vld [vmem:[%s8932_s14 + $0xf8] sm:$0xff] }
 0x1cf   : > { %v1129_v52 = vmul.f32 %v8301_v51, %v7730_v30  ;;  %7739 = vrsqrt.f32 %v728_v29  ;;  %v1131_v3 = vmul.f32 %v8302_v17, %v9163_v27  ;;  %v804_v19 = vmul.f32 %v8980_v22, %v761_v54  ;;  %v8310_v29 = vld [vmem:[#allocation2 + $0x1d8] sm:$0xff] }
 0x1d0   : > { %v806_v55 = vmul.f32 %v8980_v22, %v763_v8  ;;  %7741 = vrsqrt.f32 %v727_v37  ;;  %v809_v36 = vmul.f32 %v8976_v16, %v766_v23  ;;  %v811_v21 = vmul.f32 %v8976_v16, %v768_v44 }
 0x1d1   : > { %1507 = vmatmul.mubr.bf16.gmra.mrb[12].mxu0 %v1274_v63  ;;  %v7732_v60 = vpop.eup %7731  ;;  %7743 = vrsqrt.f32 %v1042_v43  ;;  %v1188_v49 = vmul.f32 %v1124_v35, %v8980_v22  ;;  %v1190_v61 = vmul.f32 %v1126_v38, %v8980_v22  ;;  %v1193_v1 = vmul.f32 %v1129_v52, %v8976_v16  ;;  %v8313_v35 = vld [vmem:[%s8932_s14 + $0xe8] sm:$0xff]  ;;  %v8315_v52 = vld [vmem:[#allocation2 + $0x1c0] sm:$0xff] }
 0x1d2   : > { %1516 = vmatprep.mubr.bf16.mxu0 %v1277_v24  ;;  %v7734_v62 = vpop.eup %7733  ;;  %7745 = vrsqrt.f32 %v1043_v41  ;;  %v1195_v48 = vmul.f32 %v1131_v3, %v8976_v16  ;;  %v1276_v2 = vpack.c.bf16 %v806_v55, %v804_v19  ;;  %v765_v53 = vmul.f32 %v8303_v56, %v7726_v15  ;;  %v8312_v41 = vld [vmem:[%s8932_s14 + $0xd0] sm:$0xff]  ;;  %v8317_v55 = vld [vmem:[#allocation2 + $0x1e8] sm:$0xff] }
 0x1d3   : > { %v7736_v31 = vpop.eup %7735  ;;  %v767_v4 = vmul.f32 %v8304_v59, %v9155_v26  ;;  %v1279_v7 = vpack.c.bf16 %v811_v21, %v809_v36  ;;  %v770_v58 = vmul.f32 %v8305_v12, %v7734_v62  ;;  %v772_v11 = vmul.f32 %v8306_v10, %v7732_v60  ;;  %v8316_v3 = vld [vmem:[#allocation2 + $0x1d0] sm:$0xff] }
 0x1d4   : > { %1892 = vmatmul.mubr.bf16.gmra.mrb[44].mxu1 %v1579_v45  ;;  %v7738_v6 = vpop.eup %7737  ;;  %v1581_v50 = vpack.c.bf16 %v1190_v61, %v1188_v49  ;;  %v1128_v18 = vmul.f32 %v8307_v13, %v7730_v30  ;;  %v1130_v47 = vmul.f32 %v8308_v20, %v9163_v27  ;;  %v1133_v28 = vmul.f32 %v8309_v25, %v7736_v31  ;;  %v8318_v49 = vld [vmem:[#allocation2 + $0x1f8] sm:$0xff]  ;;  %v8322_v13 = vld [vmem:[#allocation2 + $0x1f0] sm:$0xff] }
 0x1d5   : > { %1901 = vmatprep.mubr.bf16.mxu1 %v1582_v14  ;;  %v1584_v42 = vpack.c.bf16 %v1195_v48, %v1193_v1  ;;  %v1135_v15 = vmul.f32 %v8310_v29, %v7738_v6  ;;  %v808_v26 = vmul.f32 %v8980_v22, %v765_v53  ;;  %v810_v63 = vmul.f32 %v8980_v22, %v767_v4  ;;  %v8319_v4 = vld [vmem:[%s8932_s14 + $0xe0] sm:$0xff] }
 0x1d6   : > { %v813_v54 = vmul.f32 %v8976_v16, %v770_v58  ;;  %v815_v30 = vmul.f32 %v8976_v16, %v772_v11  ;;  %v1192_v34 = vmul.f32 %v1128_v18, %v8980_v22  ;;  %v1194_v8 = vmul.f32 %v1130_v47, %v8980_v22  ;;  %v8321_v11 = vld [vmem:[#allocation2 + $0x1e0] sm:$0xff] }
 0x1d7   : > { %v1197_v37 = vmul.f32 %v1133_v28, %v8976_v16  ;;  %v1199_v39 = vmul.f32 %v1135_v15, %v8976_v16  ;;  %v1278_v23 = vpack.c.bf16 %v810_v63, %v808_v26  ;;  %v769_v44 = vmul.f32 %v8311_v40, %v7734_v62 }
 0x1d8   : > { %v771_v43 = vmul.f32 %v8312_v41, %v7732_v60  ;;  %v1281_v46 = vpack.c.bf16 %v815_v30, %v813_v54  ;;  %v1583_v51 = vpack.c.bf16 %v1194_v8, %v1192_v34  ;;  %v1132_v17 = vmul.f32 %v8315_v52, %v7736_v31 }
 0x1d9   : > { %1517 = vmatmul.mubr.bf16.gmra.mrb[16].mxu0 %v1276_v2  ;;  %v7740_v32 = vpop.eup %7739  ;;  %v1134_v19 = vmul.f32 %v8316_v3, %v7738_v6  ;;  %v1586_v21 = vpack.c.bf16 %v1199_v39, %v1197_v37  ;;  %v812_v60 = vmul.f32 %v8980_v22, %v769_v44 }
 0x1da   : > { %1526 = vmatprep.mubr.bf16.mxu0 %v1279_v7  ;;  %v7742_v27 = vpop.eup %7741  ;;  %v776_v38 = vmul.f32 %v8314_v33, %v7740_v32  ;;  %v814_v62 = vmul.f32 %v8980_v22, %v771_v43  ;;  %v1196_v31 = vmul.f32 %v1132_v17, %v8980_v22  ;;  %v8320_v7 = vld [vmem:[%s8932_s14 + $0xf0] sm:$0xff] }
 0x1db   : > { %v7744_v24 = vpop.eup %7743  ;;  %v774_v14 = vmul.f32 %v8313_v35, %v7742_v27  ;;  %v1198_v2 = vmul.f32 %v1134_v19, %v8980_v22  ;;  %v773_v6 = vmul.f32 %v8319_v4, %v7742_v27  ;;  %v775_v12 = vmul.f32 %v8320_v7, %v7740_v32 }
 0x1dc   : > { %1902 = vmatmul.mubr.bf16.gmra.mrb[48].mxu1 %v1581_v50  ;;  %v7746_v45 = vpop.eup %7745  ;;  %v1137_v36 = vmul.f32 %v8317_v55, %v7744_v24  ;;  %v819_v48 = vmul.f32 %v8976_v16, %v776_v38  ;;  %v1280_v59 = vpack.c.bf16 %v814_v62, %v812_v60  ;;  %v1136_v50 = vmul.f32 %v8321_v11, %v7744_v24 }
 0x1dd   : > { %1911 = vmatprep.mubr.bf16.mxu1 %v1584_v42  ;;  %v1139_v61 = vmul.f32 %v8318_v49, %v7746_v45  ;;  %v817_v1 = vmul.f32 %v8976_v16, %v774_v14  ;;  %v1585_v10 = vpack.c.bf16 %v1198_v2, %v1196_v31  ;;  %v1138_v18 = vmul.f32 %v8322_v13, %v7746_v45 }
 0x1de   : > { %v1201_v56 = vmul.f32 %v1137_v36, %v8976_v16  ;;  %v816_v47 = vmul.f32 %v8980_v22, %v773_v6  ;;  %v818_v25 = vmul.f32 %v8980_v22, %v775_v12 }
 0x1df   : > { %v1203_v53 = vmul.f32 %v1139_v61, %v8976_v16  ;;  %v1283_v58 = vpack.c.bf16 %v819_v48, %v817_v1  ;;  %v1200_v16 = vmul.f32 %v1136_v50, %v8980_v22  ;;  %v1202_v28 = vmul.f32 %v1138_v18, %v8980_v22 }
 0x1e0   : > { %v1282_v42 = vpack.c.bf16 %v818_v25, %v816_v47 }
 0x1e1   : > { %1527 = vmatmul.mubr.bf16.gmra.mrb[20].mxu0 %v1278_v23  ;;  %v1588_v20 = vpack.c.bf16 %v1203_v53, %v1201_v56  ;;  %v1587_v29 = vpack.c.bf16 %v1202_v28, %v1200_v16 }
 0x1e2   : > { %1536 = vmatprep.mubr.bf16.mxu0 %v1281_v46 }
 0x1e4   : > { %1912 = vmatmul.mubr.bf16.gmra.mrb[52].mxu1 %v1583_v51 }
 0x1e5   : > { %1921 = vmatprep.mubr.bf16.mxu1 %v1586_v21 }
 0x1e9   : > { %1537 = vmatmul.mubr.bf16.gmra.mrb[24].mxu0 %v1280_v59 }
 0x1ea   : > { %1546 = vmatprep.mubr.bf16.mxu0 %v1283_v58 }
 0x1ec   : > { %1922 = vmatmul.mubr.bf16.gmra.mrb[56].mxu1 %v1585_v10 }
 0x1ed   : > { %1931 = vmatprep.mubr.bf16.mxu1 %v1588_v20 }
 0x1f1   : > { %1547 = vmatmul.mubr.bf16.gmra.mrb[28].mxu0 %v1282_v42  ;;  %v9310_v42 = vld [vmem:[%s9307_s16 + $0x20] sm:$0xff] }
 0x1f2   : > { %11698 = vst [vmem:[#allocation45_spill] sm:$0xff] %v9310_v42 }
 0x1f4   : > { %1932 = vmatmul.mubr.bf16.gmra.mrb[60].mxu1 %v1587_v29 }
 0x24f   : > { %v9216_v15 = vpop.f32.mrb[0].mxu1 }
 0x250   : > { %2171 = vrot.lane.b32.xlu1 %v9216_v15, %s8644_s25  ;;  %v1785_v26 = vpop.f32.mrb[1].mxu1 }
 0x251   : > { %v9220_v63 = vpop.f32.mrb[2].mxu1 }
 0x252   : > { %v1789_v32 = vpop.f32.mrb[3].mxu1 }
 0x253   : > { %v9222_v54 = vpack.c.bf16 %v1789_v32, %v1785_v26  ;;  %v9320_v32 = vld [vmem:[%s9307_s16 + $0x28] sm:$0xff] }
 0x254   : > { %11699 = vst [vmem:[#allocation46_spill] sm:$0xff] %v9320_v32 }
 0x255   : > { %11680 = vst [vmem:[#allocation27_spill] sm:$0xff] %v9222_v54 }
 0x257   : > { %v9224_v30 = vpop.f32.mrb[4].mxu1 }
 0x258   : > { %v1795_v22 = vpop.f32.mrb[5].mxu1 }
 0x259   : > { %v9226_v27 = vpop.f32.mrb[6].mxu1 }
 0x25a   : > { %v1799_v34 = vpop.f32.mrb[7].mxu1 }
 0x25b   : > { %v9228_v8 = vpack.c.bf16 %v1799_v34, %v1795_v22 }
 0x25d   : > { %11681 = vst [vmem:[#allocation28_spill] sm:$0xff] %v9228_v8 }
 0x25f   : > { %v9230_v37 = vpop.f32.mrb[8].mxu1 }
 0x260   : > { %v1805_v24 = vpop.f32.mrb[9].mxu1 }
 0x261   : > { %v9232_v39 = vpop.f32.mrb[10].mxu1 }
 0x262   : > { %v1809_v23 = vpop.f32.mrb[11].mxu1 }
 0x263   : > { %v9234_v40 = vpack.c.bf16 %v1809_v23, %v1805_v24 }
 0x265   : > { %11682 = vst [vmem:[#allocation29_spill] sm:$0xff] %v9234_v40 }
 0x267   : > { %v9236_v44 = vpop.f32.mrb[12].mxu1 }
 0x268   : > { %v1815_v41 = vpop.f32.mrb[13].mxu1 }
 0x269   : > { %v9238_v43 = vpop.f32.mrb[14].mxu1 }
 0x26a   : > { %v1819_v45 = vpop.f32.mrb[15].mxu1 }
 0x26b   : > { %v9240_v46 = vpack.c.bf16 %v1819_v45, %v1815_v41 }
 0x26d   : > { %11683 = vst [vmem:[#allocation30_spill] sm:$0xff] %v9240_v46 }
 0x26f   : > { %v9242_v35 = vpop.f32.mrb[16].mxu1 }
 0x270   : > { %v1825_v14 = vpop.f32.mrb[17].mxu1 }
 0x271   : > { %v9244_v33 = vpop.f32.mrb[18].mxu1 }
 0x272   : > { %v1829_v38 = vpop.f32.mrb[19].mxu1 }
 0x273   : > { %v9246_v51 = vpack.c.bf16 %v1829_v38, %v1825_v14 }
 0x275   : > { %11684 = vst [vmem:[#allocation31_spill] sm:$0xff] %v9246_v51 }
 0x277   : > { %v9248_v52 = vpop.f32.mrb[20].mxu1 }
 0x278   : > { %11685 = vst [vmem:[#allocation32_spill] sm:$0xff] %v9248_v52  ;;  %v1835_v17 = vpop.f32.mrb[21].mxu1 }
 0x279   : > { %v9250_v3 = vpop.f32.mrb[22].mxu1 }
 0x27a   : > { %11686 = vst [vmem:[#allocation33_spill] sm:$0xff] %v9250_v3  ;;  %v1839_v19 = vpop.f32.mrb[23].mxu1 }
 0x27b   : > { %v9252_v55 = vpack.c.bf16 %v1839_v19, %v1835_v17  ;;  %v9348_v19 = vld [vmem:[%s9307_s16 + $0x30] sm:$0xff] }
 0x27c   : > { %11703 = vst [vmem:[#allocation50_spill] sm:$0xff] %v9348_v19 }
 0x27d   : > { %11687 = vst [vmem:[#allocation34_spill] sm:$0xff] %v9252_v55 }
 0x27f   : > { %v9254_v36 = vpop.f32.mrb[24].mxu1 }
 0x280   : > { %11688 = vst [vmem:[#allocation35_spill] sm:$0xff] %v9254_v36  ;;  %v1845_v21 = vpop.f32.mrb[25].mxu1 }
 0x281   : > { %v9256_v49 = vpop.f32.mrb[26].mxu1 }
 0x282   : > { %11689 = vst [vmem:[#allocation36_spill] sm:$0xff] %v9256_v49  ;;  %v1849_v61 = vpop.f32.mrb[27].mxu1 }
 0x283   : > { %v9258_v60 = vpack.c.bf16 %v1849_v61, %v1845_v21 }
 0x285   : > { %11690 = vst [vmem:[#allocation37_spill] sm:$0xff] %v9258_v60 }
 0x287   : > { %v9260_v62 = vpop.f32.mrb[28].mxu1 }
 0x288   : > { %v1855_v1 = vpop.f32.mrb[29].mxu1 }
 0x289   : > { %v9262_v48 = vpop.f32.mrb[30].mxu1 }
 0x28a   : > { %v1859_v31 = vpop.f32.mrb[31].mxu1 }
 0x28b   : > { %v9264_v2 = vpack.c.bf16 %v1859_v31, %v1855_v1  ;;  %v9358_v1 = vld [vmem:[%s9307_s16 + $0x38] sm:$0xff] }
 0x28c   : > { %v9266_v56 = vpop.f32.mrb[0].mxu0  ;;  %11704 = vst [vmem:[#allocation51_spill] sm:$0xff] %v9358_v1 }
 0x28d   : > { %11691 = vst [vmem:[#allocation38_spill] sm:$0xff] %v9264_v2  ;;  %v9268_v53 = vpop.f32.mrb[1].mxu0 }
 0x28e   : > { %11692 = vst [vmem:[#allocation39_spill] sm:$0xff] %v9268_v53  ;;  %v9270_v59 = vpop.f32.mrb[2].mxu0 }
 0x28f   : > { %v9272_v4 = vpop.f32.mrb[32].mxu1  ;;  %v9274_v6 = vpop.f32.mrb[3].mxu0 }
 0x290   : > { %11693 = vst [vmem:[#allocation40_spill] sm:$0xff] %v9274_v6  ;;  %2203 = vrot.lane.b32.xlu0 %v9272_v4, %s8644_s25  ;;  %v1865_v7 = vpop.f32.mrb[33].mxu1 }
 0x291   : > { %v9278_v12 = vpop.f32.mrb[34].mxu1 }
 0x292   : > { %2205 = vrot.lane.b32.xlu1 %v9278_v12, %s8644_s25  ;;  %v1869_v58 = vpop.f32.mrb[35].mxu1 }
 0x293   : > { %v9282_v10 = vpack.c.bf16 %v1869_v58, %v1865_v7 }
 0x294   : > { %v9284_v11 = vpop.f32.mrb[4].mxu0 }
 0x295   : > { %11694 = vst [vmem:[#allocation41_spill] sm:$0xff] %v9282_v10  ;;  %7211 = vmatprep.subr.bf16.mxu1 %v9282_v10  ;;  %v9287_v50 = vpop.f32.mrb[5].mxu0 }
 0x296   : > { %11695 = vst [vmem:[#allocation42_spill] sm:$0xff] %v9287_v50  ;;  %2173 = vrot.lane.b32.xlu1 %v9220_v63, %s8644_s25  ;;  %7219 = vmatpush3.bf16.msra.mxu1 %v9222_v54  ;;  %v9292_v13 = vpop.f32.mrb[6].mxu0 }
 0x297   : > { %v9294_v18 = vpop.f32.mrb[36].mxu1  ;;  %v9296_v20 = vpop.f32.mrb[7].mxu0 }
 0x298   : > { %11696 = vst [vmem:[#allocation43_spill] sm:$0xff] %v9296_v20  ;;  %2207 = vrot.lane.b32.xlu0 %v9294_v18, %s8644_s25  ;;  %v1875_v47 = vpop.f32.mrb[37].mxu1 }
 0x299   : > { %v9300_v25 = vpop.f32.mrb[38].mxu1 }
 0x29a   : > { %2209 = vrot.lane.b32.xlu1 %v9300_v25, %s8644_s25  ;;  %v1879_v16 = vpop.f32.mrb[39].mxu1 }
 0x29b   : > { %v9304_v28 = vpack.c.bf16 %v1879_v16, %v1875_v47 }
 0x29c   : > { %2175 = vrot.lane.b32.xlu0 %v9224_v30, %s8644_s25  ;;  %v9314_v29 = vpop.f32.mrb[8].mxu0 }
 0x29d   : > { %11697 = vst [vmem:[#allocation44_spill] sm:$0xff] %v9304_v28  ;;  %7212 = vmatprep.subr.bf16.mxu1 %v9304_v28  ;;  %v9317_v26 = vpop.f32.mrb[9].mxu0 }
 0x29e   : > { %2177 = vrot.lane.b32.xlu1 %v9226_v27, %s8644_s25  ;;  %7220 = vmatpush3.bf16.msra.mxu1 %v9228_v8  ;;  %v9327_v22 = vmul.f32 %v9317_v26, %v9310_v42  ;;  %v9329_v34 = vpop.f32.mrb[10].mxu0  ;;  %v9424_v8 = vld [vmem:[%s9307_s16 + $0x50] sm:$0xff] }
 0x29f   : > { %v9331_v24 = vpop.f32.mrb[40].mxu1  ;;  %v9333_v23 = vpop.f32.mrb[11].mxu0  ;;  %11713 = vst [vmem:[#allocation60_spill] sm:$0xff] %v9424_v8 }
 0x2a0   : > { %11700 = vst [vmem:[#allocation47_spill] sm:$0xff] %v9327_v22  ;;  %2211 = vrot.lane.b32.xlu0 %v9331_v24, %s8644_s25  ;;  %v1885_v41 = vpop.f32.mrb[41].mxu1  ;;  %v9339_v45 = vmul.f32 %v9333_v23, %v9320_v32 }
 0x2a1   : > { %v9341_v14 = vpop.f32.mrb[42].mxu1 }
 0x2a2   : > { %11701 = vst [vmem:[#allocation48_spill] sm:$0xff] %v9339_v45  ;;  %2213 = vrot.lane.b32.xlu1 %v9341_v14, %s8644_s25  ;;  %v1889_v38 = vpop.f32.mrb[43].mxu1 }
 0x2a3   : > { %v9345_v17 = vpack.c.bf16 %v1889_v38, %v1885_v41 }
 0x2a4   : > { %2179 = vrot.lane.b32.xlu0 %v9230_v37, %s8644_s25  ;;  %v9352_v21 = vpop.f32.mrb[12].mxu0 }
 0x2a5   : > { %11702 = vst [vmem:[#allocation49_spill] sm:$0xff] %v9345_v17  ;;  %7213 = vmatprep.subr.bf16.mxu1 %v9345_v17  ;;  %v9355_v61 = vpop.f32.mrb[13].mxu0 }
 0x2a6   : > { %2181 = vrot.lane.b32.xlu1 %v9232_v39, %s8644_s25  ;;  %7221 = vmatpush3.bf16.msra.mxu1 %v9234_v40  ;;  %v9365_v31 = vmul.f32 %v9355_v61, %v9348_v19  ;;  %v9367_v7 = vpop.f32.mrb[14].mxu0  ;;  %v9462_v19 = vld [vmem:[%s9307_s16 + $0x60] sm:$0xff] }
 0x2a7   : > { %v9369_v58 = vpop.f32.mrb[44].mxu1  ;;  %v9371_v47 = vpop.f32.mrb[15].mxu0  ;;  %11719 = vst [vmem:[#allocation66_spill] sm:$0xff] %v9462_v19 }
 0x2a8   : > { %11705 = vst [vmem:[#allocation52_spill] sm:$0xff] %v9365_v31  ;;  %2215 = vrot.lane.b32.xlu0 %v9369_v58, %s8644_s25  ;;  %v1895_v16 = vpop.f32.mrb[45].mxu1  ;;  %v9377_v41 = vmul.f32 %v9371_v47, %v9358_v1 }
 0x2a9   : > { %v9379_v38 = vpop.f32.mrb[46].mxu1 }
 0x2aa   : > { %11706 = vst [vmem:[#allocation53_spill] sm:$0xff] %v9377_v41  ;;  %2217 = vrot.lane.b32.xlu1 %v9379_v38, %s8644_s25  ;;  %v1899_v5 = vpop.f32.mrb[47].mxu1  ;;  %v9396_v41 = vld [vmem:[%s9307_s16 + $0x48] sm:$0xff] }
 0x2ab   : > { %v9383_v9 = vpack.c.bf16 %v1899_v5, %v1895_v16  ;;  %11709 = vst [vmem:[#allocation56_spill] sm:$0xff] %v9396_v41 }
 0x2ac   : > { %2183 = vrot.lane.b32.xlu0 %v9236_v44, %s8644_s25  ;;  %v9390_v0 = vpop.f32.mrb[16].mxu0 }
 0x2ad   : > { %11707 = vst [vmem:[#allocation54_spill] sm:$0xff] %v9383_v9  ;;  %7214 = vmatprep.subr.bf16.mxu1 %v9383_v9  ;;  %v9393_v31 = vpop.f32.mrb[17].mxu0 }
 0x2ae   : > { %2185 = vrot.lane.b32.xlu1 %v9238_v43, %s8644_s25  ;;  %7222 = vmatpush3.bf16.msra.mxu1 %v9240_v46  ;;  %v9403_v5 = vmul.f32 %v9393_v31, %v9386_v57  ;;  %v9405_v16 = vpop.f32.mrb[18].mxu0 }
 0x2af   : > { %v9407_v45 = vpop.f32.mrb[48].mxu1  ;;  %v9409_v22 = vpop.f32.mrb[19].mxu0 }
 0x2b0   : > { %11710 = vst [vmem:[#allocation57_spill] sm:$0xff] %v9403_v5  ;;  %2219 = vrot.lane.b32.xlu0 %v9407_v45, %s8644_s25  ;;  %v1905_v9 = vpop.f32.mrb[49].mxu1  ;;  %v9415_v40 = vmul.f32 %v9409_v22, %v9396_v41 }
 0x2b1   : > { %v9417_v46 = vpop.f32.mrb[50].mxu1 }
 0x2b2   : > { %11711 = vst [vmem:[#allocation58_spill] sm:$0xff] %v9415_v40  ;;  %2221 = vrot.lane.b32.xlu1 %v9417_v46, %s8644_s25  ;;  %v1909_v5 = vpop.f32.mrb[51].mxu1  ;;  %v9434_v40 = vld [vmem:[%s9307_s16 + $0x58] sm:$0xff] }
 0x2b3   : > { %v9421_v17 = vpack.c.bf16 %v1909_v5, %v1905_v9  ;;  %11714 = vst [vmem:[#allocation61_spill] sm:$0xff] %v9434_v40 }
 0x2b4   : > { %2187 = vrot.lane.b32.xlu0 %v9242_v35, %s8644_s25  ;;  %v9428_v57 = vpop.f32.mrb[20].mxu0 }
 0x2b5   : > { %11712 = vst [vmem:[#allocation59_spill] sm:$0xff] %v9421_v17  ;;  %7215 = vmatprep.subr.bf16.mxu1 %v9421_v17  ;;  %v9431_v41 = vpop.f32.mrb[21].mxu0 }
 0x2b6   : > { %2189 = vrot.lane.b32.xlu1 %v9244_v33, %s8644_s25  ;;  %7223 = vmatpush3.bf16.msra.mxu1 %v9246_v51  ;;  %v9441_v9 = vmul.f32 %v9431_v41, %v9424_v8  ;;  %v9443_v5 = vpop.f32.mrb[22].mxu0 }
 0x2b7   : > { %v9445_v28 = vpop.f32.mrb[52].mxu1  ;;  %v9447_v17 = vpop.f32.mrb[23].mxu0 }
 0x2b8   : > { %11715 = vst [vmem:[#allocation62_spill] sm:$0xff] %v9441_v9  ;;  %2223 = vrot.lane.b32.xlu0 %v9445_v28, %s8644_s25  ;;  %v1915_v1 = vpop.f32.mrb[53].mxu1  ;;  %v9453_v54 = vmul.f32 %v9447_v17, %v9434_v40 }
 0x2b9   : > { %v9455_v51 = vpop.f32.mrb[54].mxu1 }
 0x2ba   : > { %11716 = vst [vmem:[#allocation63_spill] sm:$0xff] %v9453_v54  ;;  %11717 = vst [vmem:[#allocation64_spill] sm:$0xff] %v9455_v51  ;;  %2225 = vrot.lane.b32.xlu1 %v9455_v51, %s8644_s25  ;;  %v1919_v9 = vpop.f32.mrb[55].mxu1  ;;  %v9472_v54 = vld [vmem:[%s9307_s16 + $0x68] sm:$0xff] }
 0x2bb   : > { %v9459_v8 = vpack.c.bf16 %v1919_v9, %v1915_v1  ;;  %11720 = vst [vmem:[#allocation67_spill] sm:$0xff] %v9472_v54 }
 0x2bc   : > { %2191 = vrot.lane.b32.xlu0 %v9248_v52, %s8644_s25  ;;  %v9466_v32 = vpop.f32.mrb[24].mxu0  ;;  %v9500_v52 = vld [vmem:[%s9307_s16 + $0x70] sm:$0xff] }
 0x2bd   : > { %11718 = vst [vmem:[#allocation65_spill] sm:$0xff] %v9459_v8  ;;  %7216 = vmatprep.subr.bf16.mxu1 %v9459_v8  ;;  %v9469_v40 = vpop.f32.mrb[25].mxu0 }
 0x2be   : > { %2193 = vrot.lane.b32.xlu1 %v9250_v3, %s8644_s25  ;;  %7224 = vmatpush3.bf16.msra.mxu1 %v9252_v55  ;;  %v9479_v1 = vmul.f32 %v9469_v40, %v9462_v19  ;;  %v9481_v9 = vpop.f32.mrb[26].mxu0 }
 0x2bf   : > { %v9483_v42 = vpop.f32.mrb[56].mxu1  ;;  %v9485_v8 = vpop.f32.mrb[27].mxu0 }
 0x2c0   : > { %11721 = vst [vmem:[#allocation68_spill] sm:$0xff] %v9479_v1  ;;  %11722 = vst [vmem:[#allocation69_spill] sm:$0xff] %v9483_v42  ;;  %2227 = vrot.lane.b32.xlu0 %v9483_v42, %s8644_s25  ;;  %v1925_v10 = vpop.f32.mrb[57].mxu1  ;;  %v9491_v3 = vmul.f32 %v9485_v8, %v9472_v54 }
 0x2c1   : > { %v9493_v55 = vpop.f32.mrb[58].mxu1 }
 0x2c2   : > { %11723 = vst [vmem:[#allocation70_spill] sm:$0xff] %v9491_v3  ;;  %11724 = vst [vmem:[#allocation71_spill] sm:$0xff] %v9493_v55  ;;  %2229 = vrot.lane.b32.xlu1 %v9493_v55, %s8644_s25  ;;  %v1929_v1 = vpop.f32.mrb[59].mxu1  ;;  %v9510_v3 = vld [vmem:[%s9307_s16 + $0x78] sm:$0xff] }
 0x2c3   : > { %v9497_v19 = vpack.c.bf16 %v1929_v1, %v1925_v10  ;;  %11727 = vst [vmem:[#allocation74_spill] sm:$0xff] %v9510_v3 }
 0x2c4   : > { %2195 = vrot.lane.b32.xlu0 %v9254_v36, %s8644_s25  ;;  %v9504_v51 = vpop.f32.mrb[28].mxu0 }
 0x2c5   : > { %11725 = vst [vmem:[#allocation72_spill] sm:$0xff] %v9497_v19  ;;  %11726 = vst [vmem:[#allocation73_spill] sm:$0xff] %v9504_v51  ;;  %7217 = vmatprep.subr.bf16.mxu1 %v9497_v19  ;;  %v9507_v42 = vpop.f32.mrb[29].mxu0 }
 0x2c6   : > { %2197 = vrot.lane.b32.xlu1 %v9256_v49, %s8644_s25  ;;  %7225 = vmatpush3.bf16.msra.mxu1 %v9258_v60  ;;  %v9517_v10 = vmul.f32 %v9507_v42, %v9500_v52  ;;  %v9519_v1 = vpop.f32.mrb[30].mxu0 }
 0x2c7   : > { %11729 = vst [vmem:[#allocation76_spill] sm:$0xff] %v9519_v1  ;;  %v9521_v54 = vpop.f32.mrb[60].mxu1  ;;  %v9523_v36 = vpop.f32.mrb[31].mxu0 }
 0x2c8   : > { %11728 = vst [vmem:[#allocation75_spill] sm:$0xff] %v9517_v10  ;;  %2231 = vrot.lane.b32.xlu0 %v9521_v54, %s8644_s25  ;;  %v1935_v19 = vpop.f32.mrb[61].mxu1  ;;  %v9529_v55 = vmul.f32 %v9523_v36, %v9510_v3 }
 0x2c9   : > { %v9531_v49 = vpop.f32.mrb[62].mxu1 }
 0x2ca   : > { %11730 = vst [vmem:[#allocation77_spill] sm:$0xff] %v9529_v55  ;;  %2233 = vrot.lane.b32.xlu1 %v9531_v49, %s8644_s25  ;;  %v1939_v10 = vpop.f32.mrb[63].mxu1  ;;  %v533_v55 = vld [vmem:[#allocation5 + $0x80] sm:$0xff] }
 0x2cb   : > { %v9535_v60 = vpack.c.bf16 %v1939_v10, %v1935_v19  ;;  %v2172_v19 = vpop.permute.xlu1 %2171  ;;  %v565_v10 = vld [vmem:[#allocation7 + $0x80] sm:$0xff] }
 0x2cc   : > { %2199 = vrot.lane.b32.xlu0 %v9260_v62, %s8644_s25 }
 0x2cd   : > { %11731 = vst [vmem:[#allocation78_spill] sm:$0xff] %v9535_v60  ;;  %7218 = vmatprep.subr.bf16.mxu1 %v9535_v60  ;;  %v566_v60 = vld [vmem:[#allocation7 + $0x88] sm:$0xff] }
 0x2ce   : > { %2201 = vrot.lane.b32.xlu1 %v9262_v48, %s8644_s25  ;;  %7226 = vmatpush3.bf16.msra.mxu1 %v9264_v2  ;;  %v534_v2 = vld [vmem:[#allocation5 + $0x88] sm:$0xff] }
 0x2d0   : > { %2315 = vrot.lane.b32.xlu0 %v9266_v56, %s8644_s25 }
 0x2d2   : > { %2317 = vrot.lane.b32.xlu1 %v9270_v59, %s8644_s25 }
 0x2d4   : > { %2319 = vrot.lane.b32.xlu0 %v9284_v11, %s8644_s25 }
 0x2d6   : > { %2321 = vrot.lane.b32.xlu1 %v9292_v13, %s8644_s25 }
 0x2d8   : > { %2323 = vrot.lane.b32.xlu0 %v9314_v29, %s8644_s25 }
 0x2da   : > { %2325 = vrot.lane.b32.xlu1 %v9329_v34, %s8644_s25 }
 0x2dc   : > { %2327 = vrot.lane.b32.xlu0 %v9352_v21, %s8644_s25 }
 0x2de   : > { %2329 = vrot.lane.b32.xlu1 %v9367_v7, %s8644_s25 }
 0x2e0   : > { %2331 = vrot.lane.b32.xlu0 %v9390_v0, %s8644_s25 }
 0x2e2   : > { %2333 = vrot.lane.b32.xlu1 %v9405_v16, %s8644_s25 }
 0x2e4   : > { %2335 = vrot.lane.b32.xlu0 %v9428_v57, %s8644_s25 }
 0x2e6   : > { %2337 = vrot.lane.b32.xlu1 %v9443_v5, %s8644_s25 }
 0x2e8   : > { %2339 = vrot.lane.b32.xlu0 %v9466_v32, %s8644_s25 }
 0x2ea   : > { %2341 = vrot.lane.b32.xlu1 %v9481_v9, %s8644_s25 }
 0x2ec   : > { %2343 = vrot.lane.b32.xlu0 %v9504_v51, %s8644_s25 }
 0x2ee   : > { %2345 = vrot.lane.b32.xlu1 %v9519_v1, %s8644_s25  ;;  %v550_v1 = vld [vmem:[#allocation7 + $0x8] sm:$0xff] }
 0x2f0   : > { %2395 = vrot.lane.b32.xlu0 %v9268_v53, %s8644_s25  ;;  %v518_v53 = vld [vmem:[#allocation5 + $0x8] sm:$0xff] }
 0x2f2   : > { %2397 = vrot.lane.b32.xlu1 %v9274_v6, %s8644_s25 }
 0x2f4   : > { %2399 = vrot.lane.b32.xlu0 %v9287_v50, %s8644_s25 }
 0x2f6   : > { %2401 = vrot.lane.b32.xlu1 %v9296_v20, %s8644_s25 }
 0x2f8   : > { %2403 = vrot.lane.b32.xlu0 %v9317_v26, %s8644_s25 }
 0x2fa   : > { %2405 = vrot.lane.b32.xlu1 %v9333_v23, %s8644_s25  ;;  %v549_v23 = vld [vmem:[#allocation7] sm:$0xff] }
 0x2fc   : > { %2407 = vrot.lane.b32.xlu0 %v9355_v61, %s8644_s25  ;;  %v2155_v61 = vmul.f32 %v9272_v4, %v533_v55  ;;  %v2140_v55 = vmul.f32 %v9220_v63, %v518_v53  ;;  %v535_v4 = vld [vmem:[#allocation5 + $0x90] sm:$0xff] }
 0x2fd   : > { %v2157_v63 = vmul.f32 %v9294_v18, %v535_v4  ;;  %v519_v53 = vld [vmem:[#allocation5 + $0x10] sm:$0xff]  ;;  %v570_v4 = vld [vmem:[#allocation7 + $0xa8] sm:$0xff] }
 0x2fe   : > { %2409 = vrot.lane.b32.xlu1 %v9371_v47, %s8644_s25  ;;  %v2156_v47 = vmul.f32 %v9278_v12, %v534_v2  ;;  %v536_v12 = vld [vmem:[#allocation5 + $0x98] sm:$0xff] }
 0x300   : > { %2411 = vrot.lane.b32.xlu0 %v9393_v31, %s8644_s25  ;;  %v517_v31 = vld [vmem:[#allocation5] sm:$0xff] }
 0x302   : > { %2413 = vrot.lane.b32.xlu1 %v9409_v22, %s8644_s25  ;;  %v2204_v26 = vpop.permute.xlu0 %2203  ;;  %v2235_v22 = vmul.f32 %v2172_v19, %v549_v23 }
 0x303   : > { %v2251_v20 = vmul.f32 %v2204_v26, %v565_v10  ;;  %v567_v26 = vld [vmem:[#allocation7 + $0x90] sm:$0xff] }
 0x304   : > { %v2206_v50 = vpop.permute.xlu1 %2205  ;;  %2415 = vrot.lane.b32.xlu0 %v9431_v41, %s8644_s25  ;;  %v2139_v41 = vmul.f32 %v9216_v15, %v517_v31  ;;  %v551_v15 = vld [vmem:[#allocation7 + $0x10] sm:$0xff] }
 0x305   : > { %v2252_v6 = vmul.f32 %v2206_v50, %v566_v60  ;;  %v2283_v3 = vadd.f32 %v2251_v20, %v2155_v61  ;;  %v552_v61 = vld [vmem:[#allocation7 + $0x18] sm:$0xff] }
 0x306   : > { %2417 = vrot.lane.b32.xlu1 %v9447_v17, %s8644_s25  ;;  %v568_v17 = vld [vmem:[#allocation7 + $0x98] sm:$0xff]  ;;  %v2267_v20 = vadd.f32 %v2235_v22, %v2139_v41 }
 0x307   : > { %v2284_v51 = vadd.f32 %v2252_v6, %v2156_v47 }
 0x308   : > { %v2174_v10 = vpop.permute.xlu1 %2173  ;;  %2419 = vrot.lane.b32.xlu0 %v9469_v40, %s8644_s25  ;;  %v2158_v40 = vmul.f32 %v9300_v25, %v536_v12 }
 0x309   : > { %v2236_v2 = vmul.f32 %v2174_v10, %v550_v1  ;;  %v2515_v60 = vpack.c.bf16 %v2284_v51, %v2283_v3  ;;  %v520_v1 = vld [vmem:[#allocation5 + $0x18] sm:$0xff] }
 0x30a   : > { %2421 = vrot.lane.b32.xlu1 %v9485_v8, %s8644_s25  ;;  %v2208_v50 = vpop.permute.xlu0 %2207  ;;  %v2142_v18 = vmul.f32 %v9226_v27, %v520_v1  ;;  %v522_v27 = vld [vmem:[#allocation5 + $0x28] sm:$0xff] }
 0x30b   : > { %v2268_v6 = vadd.f32 %v2236_v2, %v2140_v55  ;;  %v2253_v19 = vmul.f32 %v2208_v50, %v567_v26  ;;  %7051 = vmatprep.subr.bf16.mxu0 %v2515_v60  ;;  %v2141_v26 = vmul.f32 %v9224_v30, %v519_v53  ;;  %v537_v55 = vld [vmem:[#allocation5 + $0xa0] sm:$0xff]  ;;  %v538_v2 = vld [vmem:[#allocation5 + $0xa8] sm:$0xff] }
 0x30c   : > { %v2210_v23 = vpop.permute.xlu1 %2209  ;;  %2423 = vrot.lane.b32.xlu0 %v9507_v42, %s8644_s25  ;;  %v569_v42 = vld [vmem:[#allocation7 + $0xa0] sm:$0xff] }
 0x30d   : > { %v2507_v51 = vpack.c.bf16 %v2268_v6, %v2267_v20  ;;  %v2254_v3 = vmul.f32 %v2210_v23, %v568_v17  ;;  %v2285_v47 = vadd.f32 %v2253_v19, %v2157_v63  ;;  %v553_v20 = vld [vmem:[#allocation7 + $0x20] sm:$0xff]  ;;  %v2159_v6 = vmul.f32 %v9331_v24, %v537_v55  ;;  %v555_v55 = vld [vmem:[#allocation7 + $0x30] sm:$0xff] }
 0x30e   : > { %2425 = vrot.lane.b32.xlu1 %v9523_v36, %s8644_s25  ;;  %v2176_v8 = vpop.permute.xlu0 %2175  ;;  %v2160_v19 = vmul.f32 %v9341_v14, %v538_v2  ;;  %v540_v14 = vld [vmem:[#allocation5 + $0xb8] sm:$0xff] }
 0x30f   : > { %v2286_v31 = vadd.f32 %v2254_v3, %v2158_v40  ;;  %v2237_v22 = vmul.f32 %v2176_v8, %v551_v15  ;;  %7052 = vmatpush3.bf16.xpose.msra.mxu0 %v2507_v51  ;;  %v521_v15 = vld [vmem:[#allocation5 + $0x20] sm:$0xff]  ;;  %v554_v40 = vld [vmem:[#allocation7 + $0x28] sm:$0xff]  ;;  %v571_v8 = vld [vmem:[#allocation7 + $0xb0] sm:$0xff] }
 0x310   : > { %v2178_v10 = vpop.permute.xlu1 %2177 }
 0x311   : > { %v2238_v25 = vmul.f32 %v2178_v10, %v552_v61  ;;  %v2516_v41 = vpack.c.bf16 %v2286_v31, %v2285_v47  ;;  %v2269_v12 = vadd.f32 %v2237_v22, %v2141_v26  ;;  %v2143_v61 = vmul.f32 %v9230_v37, %v521_v15  ;;  %v539_v22 = vld [vmem:[#allocation5 + $0xb0] sm:$0xff] }
 0x312   : > { %v2212_v60 = vpop.permute.xlu0 %2211  ;;  %v2144_v47 = vmul.f32 %v9232_v39, %v522_v27  ;;  %v2161_v2 = vmul.f32 %v9369_v58, %v539_v22  ;;  %v524_v39 = vld [vmem:[#allocation5 + $0x38] sm:$0xff]  ;;  %v525_v22 = vld [vmem:[#allocation5 + $0x40] sm:$0xff] }
 0x313   : > { %v2270_v36 = vadd.f32 %v2238_v25, %v2142_v18  ;;  %v2255_v50 = vmul.f32 %v2212_v60, %v569_v42  ;;  %7053 = vmatprep.subr.bf16.mxu0 %v2516_v41  ;;  %v572_v42 = vld [vmem:[#allocation7 + $0xb8] sm:$0xff]  ;;  %v2162_v60 = vmul.f32 %v9379_v38, %v540_v14  ;;  %v2146_v15 = vmul.f32 %v9238_v43, %v524_v39  ;;  %v542_v38 = vld [vmem:[#allocation5 + $0xc8] sm:$0xff] }
 0x314   : > { %v2214_v17 = vpop.permute.xlu1 %2213  ;;  %v526_v43 = vld [vmem:[#allocation5 + $0x48] sm:$0xff] }
 0x315   : > { %v2508_v23 = vpack.c.bf16 %v2270_v36, %v2269_v12  ;;  %v2256_v30 = vmul.f32 %v2214_v17, %v570_v4  ;;  %v2287_v51 = vadd.f32 %v2255_v50, %v2159_v6  ;;  %v523_v12 = vld [vmem:[#allocation5 + $0x30] sm:$0xff]  ;;  %v556_v50 = vld [vmem:[#allocation7 + $0x38] sm:$0xff] }
 0x316   : > { %v2180_v63 = vpop.permute.xlu0 %2179 }
 0x317   : > { %v2288_v3 = vadd.f32 %v2256_v30, %v2160_v19  ;;  %v2239_v53 = vmul.f32 %v2180_v63, %v553_v20  ;;  %7054 = vmatpush3.bf16.xpose.msra.mxu0 %v2508_v23  ;;  %v573_v23 = vld [vmem:[#allocation7 + $0xc0] sm:$0xff]  ;;  %v2145_v30 = vmul.f32 %v9236_v44, %v523_v12  ;;  %v576_v12 = vld [vmem:[#allocation7 + $0xd8] sm:$0xff] }
 0x318   : > { %v2182_v1 = vpop.permute.xlu1 %2181  ;;  %v541_v63 = vld [vmem:[#allocation5 + $0xc0] sm:$0xff] }
 0x319   : > { %v2240_v31 = vmul.f32 %v2182_v1, %v554_v40  ;;  %v2517_v24 = vpack.c.bf16 %v2288_v3, %v2287_v51  ;;  %v2271_v26 = vadd.f32 %v2239_v53, %v2143_v61  ;;  %v574_v51 = vld [vmem:[#allocation7 + $0xc8] sm:$0xff]  ;;  %v557_v61 = vld [vmem:[#allocation7 + $0x40] sm:$0xff] }
 0x31a   : > { %v2216_v10 = vpop.permute.xlu0 %2215 }
 0x31b   : > { %v2272_v18 = vadd.f32 %v2240_v31, %v2144_v47  ;;  %v2257_v25 = vmul.f32 %v2216_v10, %v571_v8  ;;  %7055 = vmatprep.subr.bf16.mxu0 %v2517_v24  ;;  %v2163_v47 = vmul.f32 %v9407_v45, %v541_v63  ;;  %v2164_v31 = vmul.f32 %v9417_v46, %v542_v38  ;;  %v558_v10 = vld [vmem:[#allocation7 + $0x48] sm:$0xff]  ;;  %v544_v46 = vld [vmem:[#allocation5 + $0xd8] sm:$0xff] }
 0x31c   : > { %v2218_v41 = vpop.permute.xlu1 %2217 }
 0x31d   : > { %v2509_v4 = vpack.c.bf16 %v2272_v18, %v2271_v26  ;;  %v2258_v37 = vmul.f32 %v2218_v41, %v572_v42  ;;  %v2289_v17 = vadd.f32 %v2257_v25, %v2161_v2  ;;  %v575_v41 = vld [vmem:[#allocation7 + $0xd0] sm:$0xff]  ;;  %v2148_v2 = vmul.f32 %v9244_v33, %v526_v43  ;;  %v528_v33 = vld [vmem:[#allocation5 + $0x58] sm:$0xff] }
 0x31e   : > { %v2184_v36 = vpop.permute.xlu0 %2183 }
 0x31f   : > { %v2290_v20 = vadd.f32 %v2258_v37, %v2162_v60  ;;  %v2241_v6 = vmul.f32 %v2184_v36, %v555_v55  ;;  %7056 = vmatpush3.bf16.xpose.msra.mxu0 %v2509_v4  ;;  %v2147_v55 = vmul.f32 %v9242_v35, %v525_v22  ;;  %v543_v4 = vld [vmem:[#allocation5 + $0xd0] sm:$0xff]  ;;  %v578_v22 = vld [vmem:[#allocation7 + $0xe8] sm:$0xff] }
 0x320   : > { %v2186_v19 = vpop.permute.xlu1 %2185 }
 0x321   : > { %v2242_v27 = vmul.f32 %v2186_v19, %v556_v50  ;;  %v2518_v58 = vpack.c.bf16 %v2290_v20, %v2289_v17  ;;  %v2273_v3 = vadd.f32 %v2241_v6, %v2145_v30  ;;  %v559_v20 = vld [vmem:[#allocation7 + $0x50] sm:$0xff]  ;;  %v2165_v6 = vmul.f32 %v9445_v28, %v543_v4  ;;  %v530_v4 = vld [vmem:[#allocation5 + $0x68] sm:$0xff] }
 0x322   : > { %v2220_v40 = vpop.permute.xlu0 %2219  ;;  %v11732_v19 = vld [vmem:[#allocation64_spill] sm:$0xff] }
 0x323   : > { %v2274_v53 = vadd.f32 %v2242_v27, %v2146_v15  ;;  %v2259_v1 = vmul.f32 %v2220_v40, %v573_v23  ;;  %7057 = vmatprep.subr.bf16.mxu0 %v2518_v58  ;;  %v2166_v23 = vmul.f32 %v11732_v19, %v544_v46  ;;  %v527_v15 = vld [vmem:[#allocation5 + $0x50] sm:$0xff]  ;;  %v560_v58 = vld [vmem:[#allocation7 + $0x58] sm:$0xff] }
 0x324   : > { %v2222_v8 = vpop.permute.xlu1 %2221  ;;  %v11738_v19 = vld [vmem:[#allocation36_spill] sm:$0xff] }
 0x325   : > { %v2510_v24 = vpack.c.bf16 %v2274_v53, %v2273_v3  ;;  %v2260_v44 = vmul.f32 %v2222_v8, %v574_v51  ;;  %v2291_v42 = vadd.f32 %v2259_v1, %v2163_v47  ;;  %v577_v3 = vld [vmem:[#allocation7 + $0xe0] sm:$0xff]  ;;  %v11733_v53 = vld [vmem:[#allocation32_spill] sm:$0xff]  ;;  %v11734_v8 = vld [vmem:[#allocation33_spill] sm:$0xff] }
 0x326   : > { %v2188_v14 = vpop.permute.xlu0 %2187  ;;  %v2149_v1 = vmul.f32 %v11733_v53, %v527_v15  ;;  %v547_v15 = vld [vmem:[#allocation5 + $0xf0] sm:$0xff] }
 0x327   : > { %v2292_v26 = vadd.f32 %v2260_v44, %v2164_v31  ;;  %v2243_v18 = vmul.f32 %v2188_v14, %v557_v61  ;;  %7058 = vmatpush3.bf16.xpose.msra.mxu0 %v2510_v24  ;;  %v2150_v61 = vmul.f32 %v11734_v8, %v528_v33  ;;  %v545_v31 = vld [vmem:[#allocation5 + $0xe0] sm:$0xff]  ;;  %v546_v24 = vld [vmem:[#allocation5 + $0xe8] sm:$0xff]  ;;  %v548_v33 = vld [vmem:[#allocation5 + $0xf8] sm:$0xff]  ;;  %v2169_v53 = vmul.f32 %v9521_v54, %v547_v15 }
 0x328   : > { %v2190_v25 = vpop.permute.xlu1 %2189  ;;  %v9644_v54 = vld [vmem:[%s9641_s27] sm:$0xff] }
 0x329   : > { %v2244_v60 = vmul.f32 %v2190_v25, %v558_v10  ;;  %v2519_v45 = vpack.c.bf16 %v2292_v26, %v2291_v42  ;;  %v2275_v39 = vadd.f32 %v2243_v18, %v2147_v55  ;;  %v561_v26 = vld [vmem:[#allocation7 + $0x60] sm:$0xff]  ;;  %v11735_v18 = vld [vmem:[#allocation69_spill] sm:$0xff] }
 0x32a   : > { %v2224_v37 = vpop.permute.xlu0 %2223  ;;  %v2167_v25 = vmul.f32 %v11735_v18, %v545_v31 }
 0x32b   : > { %v2276_v36 = vadd.f32 %v2244_v60, %v2148_v2  ;;  %v2261_v50 = vmul.f32 %v2224_v37, %v575_v41  ;;  %7059 = vmatprep.subr.bf16.mxu0 %v2519_v45  ;;  %v11736_v41 = vld [vmem:[#allocation71_spill] sm:$0xff]  ;;  %v529_v45 = vld [vmem:[#allocation5 + $0x60] sm:$0xff] }
 0x32c   : > { %v2226_v17 = vpop.permute.xlu1 %2225  ;;  %v2168_v55 = vmul.f32 %v11736_v41, %v546_v24  ;;  %v562_v37 = vld [vmem:[#allocation7 + $0x68] sm:$0xff]  ;;  %v564_v24 = vld [vmem:[#allocation7 + $0x78] sm:$0xff] }
 0x32d   : > { %v2511_v30 = vpack.c.bf16 %v2276_v36, %v2275_v39  ;;  %v2262_v35 = vmul.f32 %v2226_v17, %v576_v12  ;;  %v2293_v63 = vadd.f32 %v2261_v50, %v2165_v6  ;;  %v579_v17 = vld [vmem:[#allocation7 + $0xf0] sm:$0xff] }
 0x32e   : > { %v2192_v27 = vpop.permute.xlu0 %2191 }
 0x32f   : > { %v2294_v38 = vadd.f32 %v2262_v35, %v2166_v23  ;;  %v2245_v40 = vmul.f32 %v2192_v27, %v559_v20  ;;  %7060 = vmatpush3.bf16.xpose.msra.mxu0 %v2511_v30  ;;  %v11737_v20 = vld [vmem:[#allocation35_spill] sm:$0xff]  ;;  %v2152_v23 = vmul.f32 %v11738_v19, %v530_v4 }
 0x330   : > { %v2194_v51 = vpop.permute.xlu1 %2193  ;;  %v2151_v6 = vmul.f32 %v11737_v20, %v529_v45 }
 0x331   : > { %v2246_v47 = vmul.f32 %v2194_v51, %v560_v58  ;;  %v2520_v28 = vpack.c.bf16 %v2294_v38, %v2293_v63  ;;  %v2277_v43 = vadd.f32 %v2245_v40, %v2149_v1  ;;  %v580_v58 = vld [vmem:[#allocation7 + $0xf8] sm:$0xff]  ;;  %v2170_v1 = vmul.f32 %v9531_v49, %v548_v33 }
 0x332   : > { %v2228_v44 = vpop.permute.xlu0 %2227 }
 0x333   : > { %v2278_v14 = vadd.f32 %v2246_v47, %v2150_v61  ;;  %v2263_v10 = vmul.f32 %v2228_v44, %v577_v3  ;;  %7061 = vmatprep.subr.bf16.mxu0 %v2520_v28  ;;  %v563_v3 = vld [vmem:[#allocation7 + $0x70] sm:$0xff]  ;;  %v532_v28 = vld [vmem:[#allocation5 + $0x78] sm:$0xff] }
 0x334   : > { %v2230_v42 = vpop.permute.xlu1 %2229  ;;  %v531_v47 = vld [vmem:[#allocation5 + $0x70] sm:$0xff] }
 0x335   : > { %v2512_v2 = vpack.c.bf16 %v2278_v14, %v2277_v43  ;;  %v2264_v60 = vmul.f32 %v2230_v42, %v578_v22  ;;  %v2295_v12 = vadd.f32 %v2263_v10, %v2167_v25  ;;  %v9638_v14 = vld [vmem:[%s9307_s16] sm:$0xff]  ;;  %v2153_v49 = vmul.f32 %v9260_v62, %v531_v47  ;;  %v9649_v25 = vld [vmem:[%s9307_s16 + $0x8] sm:$0xff]  ;;  %v9658_v62 = vld [vmem:[%s9307_s16 + $0x10] sm:$0xff] }
 0x336   : > { %v2196_v46 = vpop.permute.xlu0 %2195  ;;  %v2154_v42 = vmul.f32 %v9262_v48, %v532_v28  ;;  %v9661_v48 = vld [vmem:[%s9641_s27 + $0x10] sm:$0xff]  ;;  %v2301_v20 = vmul.f32 %v9284_v11, %v9658_v62  ;;  %v9683_v11 = vld [vmem:[%s9641_s27 + $0x28] sm:$0xff] }
 0x337   : > { %v2296_v39 = vadd.f32 %v2264_v60, %v2168_v55  ;;  %v2247_v36 = vmul.f32 %v2196_v46, %v561_v26  ;;  %7062 = vmatpush3.bf16.xpose.msra.mxu0 %v2512_v2  ;;  %v9652_v55 = vld [vmem:[%s9641_s27 + $0x8] sm:$0xff]  ;;  %v2299_v2 = vmul.f32 %v9266_v56, %v9638_v14 }
 0x338   : > { %v2198_v50 = vpop.permute.xlu1 %2197 }
 0x339   : > { %v2248_v30 = vmul.f32 %v2198_v50, %v562_v37  ;;  %v2521_v35 = vpack.c.bf16 %v2296_v39, %v2295_v12  ;;  %v2279_v63 = vadd.f32 %v2247_v36, %v2151_v6  ;;  %v2300_v37 = vmul.f32 %v9270_v59, %v9649_v25  ;;  %v9666_v12 = vld [vmem:[%s9307_s16 + $0x18] sm:$0xff] }
 0x33a   : > { %v2232_v27 = vpop.permute.xlu0 %2231  ;;  %v2302_v59 = vmul.f32 %v9292_v13, %v9666_v12 }
 0x33b   : > { %v2280_v38 = vadd.f32 %v2248_v30, %v2152_v23  ;;  %v2265_v40 = vmul.f32 %v2232_v27, %v579_v17  ;;  %7063 = vmatprep.subr.bf16.mxu0 %v2521_v35  ;;  %v9670_v17 = vld [vmem:[%s9641_s27 + $0x18] sm:$0xff]  ;;  %v9679_v35 = vld [vmem:[%s9641_s27 + $0x20] sm:$0xff] }
 0x33c   : > { %v2234_v51 = vpop.permute.xlu1 %2233  ;;  %v11739_v30 = vld [vmem:[#allocation41_spill] sm:$0xff] }
 0x33d   : > { %v2513_v8 = vpack.c.bf16 %v2280_v38, %v2279_v63  ;;  %v2266_v61 = vmul.f32 %v2234_v51, %v580_v58  ;;  %v2297_v44 = vadd.f32 %v2265_v40, %v2169_v53  ;;  %v11740_v38 = vld [vmem:[#allocation45_spill] sm:$0xff]  ;;  %v11741_v53 = vld [vmem:[#allocation46_spill] sm:$0xff] }
 0x33e   : > { %v2200_v31 = vpop.permute.xlu0 %2199  ;;  %v2303_v40 = vmul.f32 %v9314_v29, %v11740_v38  ;;  %v9695_v29 = vld [vmem:[%s9641_s27 + $0x38] sm:$0xff] }
 0x33f   : > { %v2298_v22 = vadd.f32 %v2266_v61, %v2170_v1  ;;  %v2249_v43 = vmul.f32 %v2200_v31, %v563_v3  ;;  %7064 = vmatpush3.bf16.xpose.msra.mxu0 %v2513_v8  ;;  %v2304_v1 = vmul.f32 %v9329_v34, %v11741_v53  ;;  %v9691_v61 = vld [vmem:[%s9641_s27 + $0x30] sm:$0xff] }
 0x340   : > { %v2202_v10 = vpop.permute.xlu1 %2201 }
 0x341   : > { %v2250_v26 = vmul.f32 %v2202_v10, %v564_v24  ;;  %v2522_v18 = vpack.c.bf16 %v2298_v22, %v2297_v44  ;;  %v2281_v60 = vadd.f32 %v2249_v43, %v2153_v49  ;;  %v11742_v22 = vld [vmem:[#allocation50_spill] sm:$0xff]  ;;  %v11743_v49 = vld [vmem:[#allocation27_spill] sm:$0xff] }
 0x342   : > { %v2316_v41 = vpop.permute.xlu0 %2315  ;;  %v2305_v43 = vmul.f32 %v9352_v21, %v11742_v22 }
 0x343   : > { %v2282_v45 = vadd.f32 %v2250_v26, %v2154_v42  ;;  %v2347_v4 = vmul.f32 %v2316_v41, %v9644_v54  ;;  %7065 = vmatprep.subr.bf16.mxu0 %v2522_v18  ;;  %v11744_v26 = vld [vmem:[#allocation51_spill] sm:$0xff] }
 0x344   : > { %v2318_v46 = vpop.permute.xlu1 %2317  ;;  %v2306_v18 = vmul.f32 %v9367_v7, %v11744_v26  ;;  %v11755_v26 = vld [vmem:[#allocation30_spill] sm:$0xff] }
 0x345   : > { %v2514_v39 = vpack.c.bf16 %v2282_v45, %v2281_v60  ;;  %v2363_v36 = vadd.f32 %v2347_v4, %v2299_v2  ;;  %v2348_v56 = vmul.f32 %v2318_v46, %v9652_v55  ;;  %v11745_v2 = vld [vmem:[#allocation44_spill] sm:$0xff]  ;;  %v9705_v60 = vld [vmem:[%s9641_s27 + $0x40] sm:$0xff] }
 0x346   : > { %v2320_v50 = vpop.permute.xlu0 %2319 }
 0x347   : > { %v2364_v6 = vadd.f32 %v2348_v56, %v2300_v37  ;;  %v2349_v19 = vmul.f32 %v2320_v50, %v9661_v48  ;;  %7066 = vmatpush3.bf16.xpose.msra.mxu0 %v2514_v39  ;;  %v2459_v15 = vmul.f32 0.088388346, %v2363_v36  ;;  %v9709_v39 = vld [vmem:[%s9641_s27 + $0x48] sm:$0xff] }
 0x348   : > { %v2322_v23 = vpop.permute.xlu1 %2321  ;;  %7099 = vmatprep.subr.bf16.mxu0 %v11739_v30  ;;  %v11746_v36 = vld [vmem:[#allocation55_spill] sm:$0xff]  ;;  %v11749_v30 = vld [vmem:[#allocation49_spill] sm:$0xff] }
 0x349   : > { %v2460_v33 = vmul.f32 0.088388346, %v2364_v6  ;;  %v2365_v27 = vadd.f32 %v2349_v19, %v2301_v20  ;;  %v2350_v58 = vmul.f32 %v2322_v23, %v9670_v17  ;;  %v2307_v56 = vmul.f32 %v9390_v0, %v11746_v36  ;;  %v11747_v20 = vld [vmem:[#allocation28_spill] sm:$0xff] }
 0x34a   : > { %v2324_v63 = vpop.permute.xlu0 %2323  ;;  %v11748_v19 = vld [vmem:[#allocation56_spill] sm:$0xff] }
 0x34b   : > { %v2366_v51 = vadd.f32 %v2350_v58, %v2302_v59  ;;  %v2351_v13 = vmul.f32 %v2324_v63, %v9679_v35  ;;  %v2491_v3 = vpack.c.bf16 %v2460_v33, %v2459_v15  ;;  %v2461_v47 = vmul.f32 0.088388346, %v2365_v27  ;;  %v9719_v15 = vld [vmem:[%s9641_s27 + $0x50] sm:$0xff] }
 0x34c   : > { %v2326_v8 = vpop.permute.xlu1 %2325  ;;  %v2308_v59 = vmul.f32 %v9405_v16, %v11748_v19  ;;  %v11750_v63 = vld [vmem:[#allocation60_spill] sm:$0xff] }
 0x34d   : > { %v2462_v28 = vmul.f32 0.088388346, %v2366_v51  ;;  %v2367_v31 = vadd.f32 %v2351_v13, %v2303_v40  ;;  %v2352_v24 = vmul.f32 %v2326_v8, %v9683_v11  ;;  %7067 = vmatprep.mubr.bf16.mxu0 %v2491_v3  ;;  %v2309_v38 = vmul.f32 %v9428_v57, %v11750_v63  ;;  %v9725_v51 = vld [vmem:[%s9641_s27 + $0x58] sm:$0xff]  ;;  %v9733_v57 = vld [vmem:[%s9641_s27 + $0x60] sm:$0xff] }
 0x34e   : > { %7068 = vmatmul.mubr.bf16.vlgmr.msra.gmra.mrb[32].mxu0 %v2491_v3  ;;  %v2328_v44 = vpop.permute.xlu0 %2327  ;;  %v11751_v3 = vld [vmem:[#allocation29_spill] sm:$0xff] }
 0x34f   : > { %v2368_v10 = vadd.f32 %v2352_v24, %v2304_v1  ;;  %v2353_v34 = vmul.f32 %v2328_v44, %v9691_v61  ;;  %7100 = vmatpush3.bf16.msra.mxu0 %v11743_v49  ;;  %v2492_v42 = vpack.c.bf16 %v2462_v28, %v2461_v47  ;;  %v2463_v45 = vmul.f32 0.088388346, %v2367_v31  ;;  %v11752_v1 = vld [vmem:[#allocation61_spill] sm:$0xff]  ;;  %v11753_v28 = vld [vmem:[#allocation54_spill] sm:$0xff] }
 0x350   : > { %v2330_v41 = vpop.permute.xlu1 %2329  ;;  %7101 = vmatprep.subr.bf16.mxu0 %v11745_v2  ;;  %v2310_v8 = vmul.f32 %v9443_v5, %v11752_v1 }
 0x351   : > { %v2464_v4 = vmul.f32 0.088388346, %v2368_v10  ;;  %v2369_v46 = vadd.f32 %v2353_v34, %v2305_v43  ;;  %v2354_v21 = vmul.f32 %v2330_v41, %v9695_v29  ;;  %7069 = vmatprep.mubr.bf16.mxu0 %v2492_v42  ;;  %v9737_v10 = vld [vmem:[%s9641_s27 + $0x68] sm:$0xff]  ;;  %v11754_v34 = vld [vmem:[#allocation66_spill] sm:$0xff] }
 0x352   : > { %v2332_v37 = vpop.permute.xlu0 %2331  ;;  %v2311_v49 = vmul.f32 %v9466_v32, %v11754_v34  ;;  %v11756_v41 = vld [vmem:[#allocation67_spill] sm:$0xff] }
 0x353   : > { %v2370_v7 = vadd.f32 %v2354_v21, %v2306_v18  ;;  %v2355_v50 = vmul.f32 %v2332_v37, %v9705_v60  ;;  %7102 = vmatpush3.bf16.msra.mxu0 %v11747_v20  ;;  %v2493_v6 = vpack.c.bf16 %v2464_v4, %v2463_v45  ;;  %v2465_v33 = vmul.f32 0.088388346, %v2369_v46  ;;  %v11757_v4 = vld [vmem:[#allocation59_spill] sm:$0xff]  ;;  %v9749_v46 = vld [vmem:[%s9641_s27 + $0x70] sm:$0xff]  ;;  %v9755_v20 = vld [vmem:[%s9641_s27 + $0x78] sm:$0xff] }
 0x354   : > { %v2334_v23 = vpop.permute.xlu1 %2333  ;;  %7103 = vmatprep.subr.bf16.mxu0 %v11749_v30  ;;  %v2312_v2 = vmul.f32 %v9481_v9, %v11756_v41  ;;  %v11759_v9 = vld [vmem:[#allocation31_spill] sm:$0xff]  ;;  %v11760_v30 = vld [vmem:[#allocation74_spill] sm:$0xff]  ;;  %v11768_v41 = vld [vmem:[#allocation37_spill] sm:$0xff] }
 0x355   : > { %v2466_v27 = vmul.f32 0.088388346, %v2370_v7  ;;  %v2371_v58 = vadd.f32 %v2355_v50, %v2307_v56  ;;  %v2356_v0 = vmul.f32 %v2334_v23, %v9709_v39  ;;  %v11758_v56 = vld [vmem:[#allocation73_spill] sm:$0xff] }
 0x356   : > { %7070 = vmatmul.mubr.bf16.gmra.mrb[36].mxu0 %v2492_v42  ;;  %v2336_v40 = vpop.permute.xlu0 %2335  ;;  %v2313_v7 = vmul.f32 %v11758_v56, %v9500_v52  ;;  %v11771_v56 = vld [vmem:[#allocation38_spill] sm:$0xff] }
 0x357   : > { %v2372_v16 = vadd.f32 %v2356_v0, %v2308_v59  ;;  %v2357_v13 = vmul.f32 %v2336_v40, %v9719_v15  ;;  %7071 = vmatprep.mubr.bf16.mxu0 %v2493_v6  ;;  %7104 = vmatpush3.bf16.msra.mxu0 %v11751_v3  ;;  %v2494_v53 = vpack.c.bf16 %v2466_v27, %v2465_v33  ;;  %v2467_v31 = vmul.f32 0.088388346, %v2371_v58  ;;  %v11761_v33 = vld [vmem:[#allocation76_spill] sm:$0xff]  ;;  %v11762_v0 = vld [vmem:[#allocation65_spill] sm:$0xff] }
 0x358   : > { %v2338_v47 = vpop.permute.xlu1 %2337  ;;  %7105 = vmatprep.subr.bf16.mxu0 %v11753_v28  ;;  %v2314_v27 = vmul.f32 %v11761_v33, %v11760_v30  ;;  %v11765_v28 = vld [vmem:[#allocation40_spill] sm:$0xff] }
 0x359   : > { %v2468_v24 = vmul.f32 0.088388346, %v2372_v16  ;;  %v2373_v44 = vadd.f32 %v2357_v13, %v2309_v38  ;;  %v2358_v22 = vmul.f32 %v2338_v47, %v9725_v51  ;;  %v11763_v16 = vld [vmem:[#allocation39_spill] sm:$0xff] }
 0x35a   : > { %v2340_v43 = vpop.permute.xlu0 %2339  ;;  %v2379_v13 = vmul.f32 %v11763_v16, %v9638_v14  ;;  %v11767_v14 = vld [vmem:[#allocation42_spill] sm:$0xff] }
 0x35b   : > { %v2374_v42 = vadd.f32 %v2358_v22, %v2310_v8  ;;  %v2359_v5 = vmul.f32 %v2340_v43, %v9733_v57  ;;  %7106 = vmatpush3.bf16.msra.mxu0 %v11755_v26  ;;  %v9743_v18 = vpack.c.bf16 %v2468_v24, %v2467_v31  ;;  %v2469_v21 = vmul.f32 0.088388346, %v2373_v44  ;;  %v11764_v8 = vld [vmem:[#allocation34_spill] sm:$0xff]  ;;  %v11766_v44 = vld [vmem:[#allocation72_spill] sm:$0xff] }
 0x35c   : > { %v2342_v45 = vpop.permute.xlu1 %2341  ;;  %7107 = vmatprep.subr.bf16.mxu0 %v11757_v4  ;;  %v2380_v31 = vmul.f32 %v11765_v28, %v9649_v25 }
 0x35d   : > { %v2470_v37 = vmul.f32 0.088388346, %v2374_v42  ;;  %v2375_v36 = vadd.f32 %v2359_v5, %v2311_v49  ;;  %v2360_v32 = vmul.f32 %v2342_v45, %v9737_v10  ;;  %v2381_v42 = vmul.f32 %v11767_v14, %v9658_v62 }
 0x35e   : > { %7072 = vmatmul.mubr.bf16.gmra.mrb[40].mxu0 %v2493_v6  ;;  %v2344_v50 = vpop.permute.xlu0 %2343 }
 0x35f   : > { %v2376_v19 = vadd.f32 %v2360_v32, %v2312_v2  ;;  %7073 = vmatprep.mubr.bf16.mxu0 %v2494_v53  ;;  %7108 = vmatpush3.bf16.msra.mxu0 %v11759_v9  ;;  %v9758_v59 = vpack.c.bf16 %v2470_v37, %v2469_v21  ;;  %v2361_v23 = vmul.f32 %v2344_v50, %v9749_v46  ;;  %v2471_v63 = vmul.f32 0.088388346, %v2375_v36  ;;  %v11769_v2 = vld [vmem:[#allocation43_spill] sm:$0xff] }
 0x360   : > { %v2346_v58 = vpop.permute.xlu1 %2345  ;;  %7109 = vmatprep.subr.bf16.mxu0 %v11762_v0  ;;  %v2382_v45 = vmul.f32 %v11769_v2, %v9666_v12  ;;  %v11772_v12 = vld [vmem:[#allocation47_spill] sm:$0xff] }
 0x361   : > { %v2472_v52 = vmul.f32 0.088388346, %v2376_v19  ;;  %v2362_v6 = vmul.f32 %v2346_v58, %v9755_v20  ;;  %v2377_v38 = vadd.f32 %v2361_v23, %v2313_v7 }
 0x362   : > { %v2396_v40 = vpop.permute.xlu0 %2395 }
 0x363   : > { %v2378_v3 = vadd.f32 %v2362_v6, %v2314_v27  ;;  %v2427_v1 = vmul.f32 %v2396_v40, %v9644_v54  ;;  %7110 = vmatpush3.bf16.msra.mxu0 %v11764_v8  ;;  %v9769_v47 = vpack.c.bf16 %v2472_v52, %v2471_v63  ;;  %v2473_v49 = vmul.f32 0.088388346, %v2377_v38  ;;  %v11773_v27 = vld [vmem:[#allocation48_spill] sm:$0xff] }
 0x364   : > { %v2398_v24 = vpop.permute.xlu1 %2397  ;;  %7111 = vmatprep.subr.bf16.mxu0 %v11766_v44  ;;  %v11774_v6 = vld [vmem:[#allocation52_spill] sm:$0xff] }
 0x365   : > { %v2474_v22 = vmul.f32 0.088388346, %v2378_v3  ;;  %v2443_v43 = vadd.f32 %v2427_v1, %v2379_v13  ;;  %v2428_v34 = vmul.f32 %v2398_v24, %v9652_v55  ;;  %v11770_v55 = vld [vmem:[#allocation78_spill] sm:$0xff]  ;;  %v11775_v13 = vld [vmem:[#allocation53_spill] sm:$0xff] }
 0x366   : > { %7074 = vmatmul.mubr.bf16.gmra.mrb[44].mxu0 %v2494_v53  ;;  %v2400_v54 = vpop.permute.xlu0 %2399 }
 0x367   : > { %v2444_v5 = vadd.f32 %v2428_v34, %v2380_v31  ;;  %v2429_v26 = vmul.f32 %v2400_v54, %v9661_v48  ;;  %7075 = vmatprep.mubr.bf16.mxu0 %v9743_v18  ;;  %7112 = vmatpush3.bf16.msra.mxu0 %v11768_v41  ;;  %v9780_v25 = vpack.c.bf16 %v2474_v22, %v2473_v49  ;;  %v2475_v21 = vmul.f32 0.088388346, %v2443_v43  ;;  %v11777_v22 = vld [vmem:[#allocation58_spill] sm:$0xff]  ;;  %v11779_v41 = vld [vmem:[#allocation63_spill] sm:$0xff] }
 0x368   : > { %v2402_v4 = vpop.permute.xlu1 %2401  ;;  %7113 = vmatprep.subr.bf16.mxu0 %v11770_v55 }
 0x369   : > { %v2476_v37 = vmul.f32 0.088388346, %v2444_v5  ;;  %v2445_v62 = vadd.f32 %v2429_v26, %v2381_v42  ;;  %v2430_v53 = vmul.f32 %v2402_v4, %v9670_v17  ;;  %v11778_v42 = vld [vmem:[#allocation62_spill] sm:$0xff] }
 0x36a   : > { %v2404_v36 = vpop.permute.xlu0 %2403 }
 0x36b   : > { %v2446_v32 = vadd.f32 %v2430_v53, %v2382_v45  ;;  %v2431_v48 = vmul.f32 %v2404_v36, %v9679_v35  ;;  %7114 = vmatpush3.bf16.msra.mxu0 %v11771_v56  ;;  %v9788_v7 = vpack.c.bf16 %v2476_v37, %v2475_v21  ;;  %v2477_v19 = vmul.f32 0.088388346, %v2445_v62  ;;  %v11781_v53 = vld [vmem:[#allocation70_spill] sm:$0xff] }
 0x36c   : > { %v2406_v50 = vpop.permute.xlu1 %2405 }
 0x36d   : > { %v2478_v9 = vmul.f32 0.088388346, %v2446_v32  ;;  %v2447_v23 = vadd.f32 %v2431_v48, %v11772_v12  ;;  %v2432_v30 = vmul.f32 %v2406_v50, %v9683_v11  ;;  %v11782_v50 = vld [vmem:[#allocation75_spill] sm:$0xff]  ;;  %v11783_v12 = vld [vmem:[#allocation77_spill] sm:$0xff] }
 0x36e   : > { %7076 = vmatmul.mubr.bf16.gmra.mrb[48].mxu0 %v9743_v18  ;;  %v2408_v33 = vpop.permute.xlu0 %2407 }
 0x36f   : > { %v2448_v17 = vadd.f32 %v2432_v30, %v11773_v27  ;;  %v2433_v58 = vmul.f32 %v2408_v33, %v9691_v61  ;;  %7077 = vmatprep.mubr.bf16.mxu0 %v9758_v59  ;;  %v2500_v35 = vpack.c.bf16 %v2478_v9, %v2477_v19  ;;  %v2479_v63 = vmul.f32 0.088388346, %v2447_v23  ;;  %v11776_v61 = vld [vmem:[#allocation57_spill] sm:$0xff] }
 0x370   : > { %v2410_v0 = vpop.permute.xlu1 %2409 }
 0x371   : > { %v2480_v52 = vmul.f32 0.088388346, %v2448_v17  ;;  %v2449_v38 = vadd.f32 %v2433_v58, %v11774_v6  ;;  %v2434_v40 = vmul.f32 %v2410_v0, %v9695_v29  ;;  %v11784_v6 = vld [vmem:[#allocation26_spill] sm:$0xff] }
 0x372   : > { %v2412_v16 = vpop.permute.xlu0 %2411 }
 0x373   : > { %v2450_v11 = vadd.f32 %v2434_v40, %v11775_v13  ;;  %v2435_v18 = vmul.f32 %v2412_v16, %v9705_v60  ;;  %v2501_v3 = vpack.c.bf16 %v2480_v52, %v2479_v63  ;;  %v2481_v8 = vmul.f32 0.088388346, %v2449_v38 }
 0x374   : > { %v2414_v1 = vpop.permute.xlu1 %2413  ;;  %v1951_v38 = vadd.s32 64, %v11784_v6  ;;  %v1952_v16 = vadd.s32 72, %v11784_v6 }
 0x375   : > { %v2482_v28 = vmul.f32 0.088388346, %v2450_v11  ;;  %v2451_v31 = vadd.f32 %v2435_v18, %v11776_v61  ;;  %v2436_v24 = vmul.f32 %v2414_v1, %v9709_v39 }
 0x376   : > { %7078 = vmatmul.mubr.bf16.gmra.mrb[52].mxu0 %v9758_v59  ;;  %v2416_v44 = vpop.permute.xlu0 %2415  ;;  %v1986_v13 = vand.u32 127, %v1951_v38  ;;  %v1987_v18 = vand.u32 127, %v1952_v16 }
 0x377   : > { %v2452_v43 = vadd.f32 %v2436_v24, %v11777_v22  ;;  %v2437_v29 = vmul.f32 %v2416_v44, %v9719_v15  ;;  %7079 = vmatprep.mubr.bf16.mxu0 %v9769_v47  ;;  %v2502_v34 = vpack.c.bf16 %v2482_v28, %v2481_v8  ;;  %v2483_v60 = vmul.f32 0.088388346, %v2451_v31  ;;  %v11780_v15 = vld [vmem:[#allocation68_spill] sm:$0xff] }
 0x378   : > { %v2418_v49 = vpop.permute.xlu1 %2417  ;;  %v9854_v8 = vstv %s8929_s21  ;;  %v1953_v24 = vadd.s32 80, %v11784_v6  ;;  %s8551_s21 = scalar_lea.vmem %s11437_s29, 4096 }
 0x379   : > { %v2484_v14 = vmul.f32 0.088388346, %v2452_v43  ;;  %v2453_v54 = vadd.f32 %v2437_v29, %v11778_v42  ;;  %v2438_v5 = vmul.f32 %v2418_v49, %v9725_v51  ;;  %v2019_v31 = vadd.s32 %v9854_v8, %v1986_v13  ;;  %p8552_p3 = scmp.ne.s32.totalorder %s11437_s29, %s8551_s21 }
 0x37a   : > { %v2420_v26 = vpop.permute.xlu0 %2419  ;;  %v2020_v22 = vadd.s32 %v9854_v8, %v1987_v18  ;;  %v1954_v29 = vadd.s32 88, %v11784_v6 }
 0x37b   : > { %v2454_v39 = vadd.f32 %v2438_v5, %v11779_v41  ;;  %v2439_v59 = vmul.f32 %v2420_v26, %v9733_v57  ;;  %v2503_v2 = vpack.c.bf16 %v2484_v14, %v2483_v60  ;;  %v2485_v4 = vmul.f32 0.088388346, %v2453_v54  ;;  %p8553_p7 = pnand %p8552_p3, %p11993_p4 }
 0x37c   : > { %v2422_v45 = vpop.permute.xlu1 %2421  ;;  %v1989_v42 = vand.u32 127, %v1954_v29  ;;  %v1955_v41 = vadd.s32 96, %v11784_v6 }
 0x37d   : > { %v2486_v55 = vmul.f32 0.088388346, %v2454_v39  ;;  %v2455_v21 = vadd.f32 %v2439_v59, %v11780_v15  ;;  %v2440_v37 = vmul.f32 %v2422_v45, %v9737_v10  ;;  %p8554_p8 = pneg %p8553_p7 }
 0x37e   : > { %7080 = vmatmul.mubr.bf16.gmra.mrb[56].mxu0 %v9769_v47  ;;  %v2424_v62 = vpop.permute.xlu0 %2423  ;;  %v2022_v15 = vadd.s32 %v9854_v8, %v1989_v42 }
 0x37f   : > { %v2456_v36 = vadd.f32 %v2440_v37, %v11781_v53  ;;  %v2441_v51 = vmul.f32 %v2424_v62, %v9749_v46  ;;  %7081 = vmatprep.mubr.bf16.mxu0 %v9780_v25  ;;  %v2504_v32 = vpack.c.bf16 %v2486_v55, %v2485_v4  ;;  %v2487_v57 = vmul.f32 0.088388346, %v2455_v21 }
 0x380   : > { %v2426_v48 = vpop.permute.xlu1 %2425  ;;  %v1956_v4 = vadd.s32 104, %v11784_v6  ;;  %v1990_v21 = vand.u32 127, %v1955_v41 }
 0x381   : > { %v2488_v56 = vmul.f32 0.088388346, %v2456_v36  ;;  %v2457_v19 = vadd.f32 %v2441_v51, %v11782_v50  ;;  %v2442_v9 = vmul.f32 %v2426_v48, %v9755_v20 }
 0x382   : > { %v1991_v62 = vand.u32 127, %v1956_v4  ;;  %v2023_v48 = vadd.s32 %v9854_v8, %v1990_v21  ;;  %v1961_v21 = vadd.s32 144, %v11784_v6 }
 0x383   : > { %v2458_v23 = vadd.f32 %v2442_v9, %v11783_v12  ;;  %v2505_v10 = vpack.c.bf16 %v2488_v56, %v2487_v57  ;;  %v2489_v30 = vmul.f32 0.088388346, %v2457_v19  ;;  %v1957_v57 = vadd.s32 112, %v11784_v6 }
 0x384   : > { %v2024_v12 = vadd.s32 %v9854_v8, %v1991_v62 }
 0x385   : > { %v2490_v47 = vmul.f32 0.088388346, %v2458_v23  ;;  %v1958_v23 = vadd.s32 120, %v11784_v6 }
 0x386   : > { %7082 = vmatmul.mubr.bf16.gmra.mrb[60].mxu0 %v9780_v25 }
 0x387   : > { %7083 = vmatprep.mubr.bf16.mxu0 %v9788_v7  ;;  %v2506_v46 = vpack.c.bf16 %v2490_v47, %v2489_v30 }
 0x38e   : > { %7084 = vmatmul.mubr.bf16.gmra.mrb[64].mxu0 %v9788_v7 }
 0x38f   : > { %7085 = vmatprep.mubr.bf16.mxu0 %v2500_v35 }
 0x396   : > { %7086 = vmatmul.mubr.bf16.gmra.mrb[68].mxu0 %v2500_v35 }
 0x397   : > { %7087 = vmatprep.mubr.bf16.mxu0 %v2501_v3 }
 0x39e   : > { %7088 = vmatmul.mubr.bf16.gmra.mrb[72].mxu0 %v2501_v3  ;;  %v11785_v3 = vlaneseq }
 0x39f   : > { %7089 = vmatprep.mubr.bf16.mxu0 %v2502_v34 }
 0x3a0   : > { %v9851_v1 = vand.u32 127, %v11785_v3 }
 0x3a2   : > { %v9866_v43 = vadd.s32 128, %v9851_v1  ;;  %vm2059_vm0 = vcmp.ge.s32.totalorder %v2019_v31, %v9851_v1  ;;  %vm2061_vm2 = vcmp.ge.s32.totalorder %v2020_v22, %v9851_v1  ;;  %vm2065_vm6 = vcmp.ge.s32.totalorder %v2022_v15, %v9851_v1 }
 0x3a3   : > { %vm2067_vm8 = vcmp.ge.s32.totalorder %v2023_v48, %v9851_v1  ;;  %vm2069_vm10 = vcmp.ge.s32.totalorder %v2024_v12, %v9851_v1 }
 0x3a4   : > { %vm2060_vm1 = vcmp.ge.s32.totalorder %v2019_v31, %v9866_v43  ;;  %vm2062_vm3 = vcmp.ge.s32.totalorder %v2020_v22, %v9866_v43  ;;  %vm2066_vm7 = vcmp.ge.s32.totalorder %v2022_v15, %v9866_v43  ;;  %vm2068_vm9 = vcmp.ge.s32.totalorder %v2023_v48, %v9866_v43 }
 0x3a5   : > { %vm2070_vm11 = vcmp.ge.s32.totalorder %v2024_v12, %v9866_v43  ;;  %v1959_v31 = vadd.s32 128, %v11784_v6 }
 0x3a6   : > { %7090 = vmatmul.mubr.bf16.gmra.mrb[76].mxu0 %v2502_v34  ;;  %v1988_v34 = vand.u32 127, %v1953_v24 }
 0x3a7   : > { %7091 = vmatprep.mubr.bf16.mxu0 %v2503_v2 }
 0x3a8   : > { %v2021_v26 = vadd.s32 %v9854_v8, %v1988_v34 }
 0x3aa   : > { %vm2063_vm4 = vcmp.ge.s32.totalorder %v2021_v26, %v9851_v1  ;;  %vm2064_vm5 = vcmp.ge.s32.totalorder %v2021_v26, %v9866_v43 }
 0x3ae   : > { %7092 = vmatmul.mubr.bf16.gmra.mrb[80].mxu0 %v2503_v2 }
 0x3af   : > { %7093 = vmatprep.mubr.bf16.mxu0 %v2504_v32 }
 0x3b6   : > { %7094 = vmatmul.mubr.bf16.gmra.mrb[84].mxu0 %v2504_v32 }
 0x3b7   : > { %7095 = vmatprep.mubr.bf16.mxu0 %v2505_v10 }
 0x3be   : > { %7096 = vmatmul.mubr.bf16.gmra.mrb[88].mxu0 %v2505_v10  ;;  %v1992_v10 = vand.u32 127, %v1957_v57  ;;  %v1962_v57 = vadd.s32 152, %v11784_v6 }
 0x3bf   : > { %7097 = vmatprep.mubr.bf16.mxu0 %v2506_v46 }
 0x3c0   : > { %v2025_v3 = vadd.s32 %v9854_v8, %v1992_v10 }
 0x3c2   : > { %vm2071_vm12 = vcmp.ge.s32.totalorder %v2025_v3, %v9851_v1  ;;  %vm2072_vm13 = vcmp.ge.s32.totalorder %v2025_v3, %v9866_v43 }
 0x3c6   : > { %7098 = vmatmul.mubr.bf16.gmra.mrb[92].mxu0 %v2506_v46  ;;  %v1993_v46 = vand.u32 127, %v1958_v23  ;;  %v1997_v23 = vand.u32 127, %v1962_v57 }
 0x421   : > { %v9822_v20 = vpop.f32.mrb[32].mxu0 }
 0x422   : > { %v9824_v25 = vpop.f32.mrb[33].mxu0 }
 0x423   : > { %v9826_v33 = vpop.f32.mrb[34].mxu0 }
 0x424   : > { %v9828_v7 = vpop.f32.mrb[35].mxu0 }
 0x429   : > { %v9830_v27 = vpop.f32.mrb[36].mxu0 }
 0x42a   : > { %v9832_v17 = vpop.f32.mrb[37].mxu0 }
 0x42b   : > { %v9834_v58 = vpop.f32.mrb[38].mxu0 }
 0x42c   : > { %v9836_v35 = vpop.f32.mrb[39].mxu0 }
 0x431   : > { %v9838_v0 = vpop.f32.mrb[40].mxu0 }
 0x432   : > { %v9840_v63 = vpop.f32.mrb[41].mxu0 }
 0x433   : > { %v9842_v52 = vpop.f32.mrb[42].mxu0 }
 0x434   : > { %v9845_v40 = vpop.f32.mrb[43].mxu0 }
 0x439   : > { %v9848_v11 = vpop.f32.mrb[44].mxu0 }
 0x43a   : > { %v9856_v28 = vpop.f32.mrb[45].mxu0 }
 0x43b   : > { %v9858_v61 = vpop.f32.mrb[46].mxu0 }
 0x43c   : > { %v9862_v44 = vpop.f32.mrb[47].mxu0 }
 0x441   : > { %v2597_v49 = vpop.f32.mrb[48].mxu0 }
 0x442   : > { %v9872_v60 = vsel %vm2059_vm0, %v2597_v49, -1e+30  ;;  %v2599_v14 = vpop.f32.mrb[49].mxu0  ;;  %v2026_v49 = vadd.s32 %v9854_v8, %v1993_v46 }
 0x443   : > { %v9875_v54 = vsel %vm2060_vm1, %v2599_v14, -1e+30  ;;  %v2601_v5 = vpop.f32.mrb[50].mxu0  ;;  %v1960_v14 = vadd.s32 136, %v11784_v6 }
 0x444   : > { %v2804_v39 = vmax.f32 %v9872_v60, %v9875_v54  ;;  %v9881_v59 = vsel %vm2061_vm2, %v2601_v5, -1e+30  ;;  %v2603_v2 = vpop.f32.mrb[51].mxu0  ;;  %v1994_v5 = vand.u32 127, %v1959_v31  ;;  %vm2073_vm14 = vcmp.ge.s32.totalorder %v2026_v49, %v9851_v1 }
 0x445   : > { %v9883_v45 = vsel %vm2062_vm3, %v2603_v2, -1e+30  ;;  %v1995_v41 = vand.u32 127, %v1960_v14  ;;  %vm2074_vm15 = vcmp.ge.s32.totalorder %v2026_v49, %v9866_v43  ;;  %v2030_v49 = vadd.s32 %v9854_v8, %v1997_v23 }
 0x446   : > { %v2807_v55 = vmax.f32 %v9881_v59, %v9883_v45  ;;  %2805 = vmax.xlane.f32.xlu0 %v2804_v39  ;;  %v2027_v15 = vadd.s32 %v9854_v8, %v1994_v5  ;;  %v1964_v14 = vadd.s32 168, %v11784_v6  ;;  %v1966_v23 = vadd.s32 184, %v11784_v6 }
 0x447   : > { %v2028_v48 = vadd.s32 %v9854_v8, %v1995_v41 }
 0x448   : > { %2808 = vmax.xlane.f32.xlu1 %v2807_v55  ;;  %vm2075_vm0 = vcmp.ge.s32.totalorder %v2027_v15, %v9851_v1  ;;  %vm2076_vm1 = vcmp.ge.s32.totalorder %v2027_v15, %v9866_v43  ;;  %v1999_v41 = vand.u32 127, %v1964_v14 }
 0x449   : > { %v2607_v37 = vpop.f32.mrb[52].mxu0  ;;  %vm2077_vm2 = vcmp.ge.s32.totalorder %v2028_v48, %v9851_v1  ;;  %vm2078_vm3 = vcmp.ge.s32.totalorder %v2028_v48, %v9866_v43 }
 0x44a   : > { %v9891_v53 = vsel %vm2063_vm4, %v2607_v37, -1e+30  ;;  %v2609_v36 = vpop.f32.mrb[53].mxu0 }
 0x44b   : > { %v9895_v51 = vsel %vm2064_vm5, %v2609_v36, -1e+30  ;;  %v2611_v32 = vpop.f32.mrb[54].mxu0 }
 0x44c   : > { %v2810_v56 = vmax.f32 %v9891_v53, %v9895_v51  ;;  %v2613_v50 = vpop.f32.mrb[55].mxu0  ;;  %v9901_v19 = vsel %vm2065_vm6, %v2611_v32, -1e+30  ;;  %vm2081_vm6 = vcmp.ge.s32.totalorder %v2030_v49, %v9851_v1 }
 0x44d   : > { %v9903_v9 = vsel %vm2066_vm7, %v2613_v50, -1e+30  ;;  %v1996_v50 = vand.u32 127, %v1961_v21  ;;  %vm2082_vm7 = vcmp.ge.s32.totalorder %v2030_v49, %v9866_v43 }
 0x44e   : > { %2811 = vmax.xlane.f32.xlu0 %v2810_v56  ;;  %v2813_v30 = vmax.f32 %v9901_v19, %v9903_v9 }
 0x451   : > { %v2617_v47 = vpop.f32.mrb[56].mxu0 }
 0x452   : > { %v9912_v38 = vsel %vm2067_vm8, %v2617_v47, -1e+30  ;;  %2814 = vmax.xlane.f32.xlu0 %v2813_v30  ;;  %v2619_v16 = vpop.f32.mrb[57].mxu0 }
 0x453   : > { %v9915_v13 = vsel %vm2068_vm9, %v2619_v16, -1e+30  ;;  %v2621_v18 = vpop.f32.mrb[58].mxu0  ;;  %v2029_v16 = vadd.s32 %v9854_v8, %v1996_v50 }
 0x454   : > { %v2816_v24 = vmax.f32 %v9912_v38, %v9915_v13  ;;  %v9921_v22 = vsel %vm2069_vm10, %v2621_v18, -1e+30  ;;  %v2623_v29 = vpop.f32.mrb[59].mxu0  ;;  %v1963_v18 = vadd.s32 160, %v11784_v6 }
 0x455   : > { %v9923_v34 = vsel %vm2070_vm11, %v2623_v29, -1e+30  ;;  %vm2079_vm4 = vcmp.ge.s32.totalorder %v2029_v16, %v9851_v1  ;;  %vm2080_vm5 = vcmp.ge.s32.totalorder %v2029_v16, %v9866_v43 }
 0x456   : > { %v2819_v42 = vmax.f32 %v9921_v22, %v9923_v34  ;;  %2817 = vmax.xlane.f32.xlu0 %v2816_v24  ;;  %v1998_v5 = vand.u32 127, %v1963_v18  ;;  %v2001_v18 = vand.u32 127, %v1966_v23 }
 0x458   : > { %2820 = vmax.xlane.f32.xlu1 %v2819_v42 }
 0x459   : > { %v2627_v26 = vpop.f32.mrb[60].mxu0 }
 0x45a   : > { %v9932_v39 = vsel %vm2071_vm12, %v2627_v26, -1e+30  ;;  %v2629_v2 = vpop.f32.mrb[61].mxu0 }
 0x45b   : > { %v9935_v4 = vsel %vm2072_vm13, %v2629_v2, -1e+30  ;;  %v2631_v55 = vpop.f32.mrb[62].mxu0 }
 0x45c   : > { %v2822_v37 = vmax.f32 %v9932_v39, %v9935_v4  ;;  %v9941_v62 = vsel %vm2073_vm14, %v2631_v55, -1e+30  ;;  %v2633_v36 = vpop.f32.mrb[63].mxu0 }
 0x45d   : > { %v9943_v32 = vsel %vm2074_vm15, %v2633_v36, -1e+30  ;;  %v1965_v36 = vadd.s32 176, %v11784_v6 }
 0x45e   : > { %v2825_v56 = vmax.f32 %v9941_v62, %v9943_v32  ;;  %2823 = vmax.xlane.f32.xlu0 %v2822_v37  ;;  %v2031_v37 = vadd.s32 %v9854_v8, %v1998_v5  ;;  %v1967_v5 = vadd.s32 192, %v11784_v6 }
 0x460   : > { %2826 = vmax.xlane.f32.xlu1 %v2825_v56  ;;  %vm2083_vm8 = vcmp.ge.s32.totalorder %v2031_v37, %v9851_v1  ;;  %vm2084_vm9 = vcmp.ge.s32.totalorder %v2031_v37, %v9866_v43  ;;  %v2034_v37 = vadd.s32 %v9854_v8, %v2001_v18 }
 0x461   : > { %v2637_v12 = vpop.f32.mrb[64].mxu0 }
 0x462   : > { %v9952_v10 = vsel %vm2075_vm0, %v2637_v12, -1e+30  ;;  %v2639_v30 = vpop.f32.mrb[65].mxu0  ;;  %v2032_v12 = vadd.s32 %v9854_v8, %v1999_v41  ;;  %vm2089_vm14 = vcmp.ge.s32.totalorder %v2034_v37, %v9851_v1  ;;  %vm2090_vm15 = vcmp.ge.s32.totalorder %v2034_v37, %v9866_v43 }
 0x463   : > { %v9955_v47 = vsel %vm2076_vm1, %v2639_v30, -1e+30  ;;  %v2641_v46 = vpop.f32.mrb[66].mxu0 }
 0x464   : > { %v2828_v3 = vmax.f32 %v9952_v10, %v9955_v47  ;;  %v9961_v31 = vsel %vm2077_vm2, %v2641_v46, -1e+30  ;;  %v2643_v24 = vpop.f32.mrb[67].mxu0  ;;  %v2000_v46 = vand.u32 127, %v1965_v36  ;;  %vm2085_vm10 = vcmp.ge.s32.totalorder %v2032_v12, %v9851_v1 }
 0x465   : > { %v9963_v29 = vsel %vm2078_vm3, %v2643_v24, -1e+30  ;;  %vm2086_vm11 = vcmp.ge.s32.totalorder %v2032_v12, %v9866_v43  ;;  %v1968_v36 = vadd.s32 200, %v11784_v6 }
 0x466   : > { %v2831_v42 = vmax.f32 %v9961_v31, %v9963_v29  ;;  %2829 = vmax.xlane.f32.xlu0 %v2828_v3 }
 0x467   : > { %v2003_v23 = vand.u32 127, %v1968_v36 }
 0x468   : > { %2832 = vmax.xlane.f32.xlu1 %v2831_v42  ;;  %v2033_v42 = vadd.s32 %v9854_v8, %v2000_v46 }
 0x469   : > { %v2647_v26 = vpop.f32.mrb[68].mxu0  ;;  %v2036_v36 = vadd.s32 %v9854_v8, %v2003_v23 }
 0x46a   : > { %v9972_v2 = vsel %vm2079_vm4, %v2647_v26, -1e+30  ;;  %v2649_v55 = vpop.f32.mrb[69].mxu0  ;;  %vm2087_vm12 = vcmp.ge.s32.totalorder %v2033_v42, %v9851_v1  ;;  %vm2088_vm13 = vcmp.ge.s32.totalorder %v2033_v42, %v9866_v43 }
 0x46b   : > { %v9975_v15 = vsel %vm2080_vm5, %v2649_v55, -1e+30  ;;  %v2651_v21 = vpop.f32.mrb[70].mxu0  ;;  %vm2093_vm2 = vcmp.ge.s32.totalorder %v2036_v36, %v9851_v1  ;;  %vm2094_vm3 = vcmp.ge.s32.totalorder %v2036_v36, %v9866_v43 }
 0x46c   : > { %v2834_v48 = vmax.f32 %v9972_v2, %v9975_v15  ;;  %v9981_v57 = vsel %vm2081_vm6, %v2651_v21, -1e+30  ;;  %v2653_v56 = vpop.f32.mrb[71].mxu0 }
 0x46d   : > { %v9983_v50 = vsel %vm2082_vm7, %v2653_v56, -1e+30  ;;  %v2002_v56 = vand.u32 127, %v1967_v5 }
 0x46e   : > { %v2837_v30 = vmax.f32 %v9981_v57, %v9983_v50  ;;  %2835 = vmax.xlane.f32.xlu0 %v2834_v48 }
 0x470   : > { %2838 = vmax.xlane.f32.xlu1 %v2837_v30 }
 0x471   : > { %v2657_v16 = vpop.f32.mrb[72].mxu0 }
 0x472   : > { %v9992_v3 = vsel %vm2083_vm8, %v2657_v16, -1e+30  ;;  %v2659_v24 = vpop.f32.mrb[73].mxu0 }
 0x473   : > { %11786 = vst [vmem:[#allocation64_spill] sm:$0xff] %v9992_v3  ;;  %v9995_v49 = vsel %vm2084_vm9, %v2659_v24, -1e+30  ;;  %v2661_v14 = vpop.f32.mrb[74].mxu0  ;;  %v2035_v24 = vadd.s32 %v9854_v8, %v2002_v56 }
 0x474   : > { %11787 = vst [vmem:[#allocation32_spill] sm:$0xff] %v9995_v49  ;;  %v2840_v26 = vmax.f32 %v9992_v3, %v9995_v49  ;;  %v10001_v41 = vsel %vm2085_vm10, %v2661_v14, -1e+30  ;;  %v2663_v55 = vpop.f32.mrb[75].mxu0  ;;  %v1969_v14 = vadd.s32 208, %v11784_v6 }
 0x475   : > { %11788 = vst [vmem:[#allocation33_spill] sm:$0xff] %v10001_v41  ;;  %v10003_v21 = vsel %vm2086_vm11, %v2663_v55, -1e+30  ;;  %vm2091_vm0 = vcmp.ge.s32.totalorder %v2035_v24, %v9851_v1  ;;  %vm2092_vm1 = vcmp.ge.s32.totalorder %v2035_v24, %v9866_v43 }
 0x476   : > { %11789 = vst [vmem:[#allocation69_spill] sm:$0xff] %v10003_v21  ;;  %v2843_v48 = vmax.f32 %v10001_v41, %v10003_v21  ;;  %2841 = vmax.xlane.f32.xlu0 %v2840_v26  ;;  %v2004_v56 = vand.u32 127, %v1969_v14 }
 0x478   : > { %2844 = vmax.xlane.f32.xlu1 %v2843_v48  ;;  %v1970_v48 = vadd.s32 216, %v11784_v6 }
 0x479   : > { %v2667_v12 = vpop.f32.mrb[76].mxu0 }
 0x47a   : > { %v10012_v30 = vsel %vm2087_vm12, %v2667_v12, -1e+30  ;;  %v2669_v46 = vpop.f32.mrb[77].mxu0 }
 0x47b   : > { %11790 = vst [vmem:[#allocation71_spill] sm:$0xff] %v10012_v30  ;;  %v10015_v16 = vsel %vm2088_vm13, %v2669_v46, -1e+30  ;;  %v2671_v18 = vpop.f32.mrb[78].mxu0  ;;  %v2005_v46 = vand.u32 127, %v1970_v48 }
 0x47c   : > { %11791 = vst [vmem:[#allocation35_spill] sm:$0xff] %v10015_v16  ;;  %v2846_v5 = vmax.f32 %v10012_v30, %v10015_v16  ;;  %v10021_v42 = vsel %vm2089_vm14, %v2671_v18, -1e+30  ;;  %v2673_v26 = vpop.f32.mrb[79].mxu0 }
 0x47d   : > { %11792 = vst [vmem:[#allocation36_spill] sm:$0xff] %v10021_v42  ;;  %v10023_v55 = vsel %vm2090_vm15, %v2673_v26, -1e+30  ;;  %v2038_v48 = vadd.s32 %v9854_v8, %v2005_v46 }
 0x47e   : > { %11793 = vst [vmem:[#allocation41_spill] sm:$0xff] %v10023_v55  ;;  %v2849_v37 = vmax.f32 %v10021_v42, %v10023_v55  ;;  %2847 = vmax.xlane.f32.xlu0 %v2846_v5  ;;  %v2037_v5 = vadd.s32 %v9854_v8, %v2004_v56  ;;  %v1971_v55 = vadd.s32 224, %v11784_v6 }
 0x47f   : > { %vm2097_vm6 = vcmp.ge.s32.totalorder %v2038_v48, %v9851_v1  ;;  %vm2098_vm7 = vcmp.ge.s32.totalorder %v2038_v48, %v9866_v43  ;;  %v1944_v48 = vadd.s32 8, %v11784_v6 }
 0x480   : > { %2850 = vmax.xlane.f32.xlu1 %v2849_v37  ;;  %vm2095_vm4 = vcmp.ge.s32.totalorder %v2037_v5, %v9851_v1  ;;  %v2006_v56 = vand.u32 127, %v1971_v55  ;;  %vm2096_vm5 = vcmp.ge.s32.totalorder %v2037_v5, %v9866_v43 }
 0x481   : > { %v2677_v12 = vpop.f32.mrb[80].mxu0 }
 0x482   : > { %v10032_v18 = vsel %vm2091_vm0, %v2677_v12, -1e+30  ;;  %v2679_v26 = vpop.f32.mrb[81].mxu0  ;;  %v1972_v12 = vadd.s32 232, %v11784_v6 }
 0x483   : > { %11794 = vst [vmem:[#allocation45_spill] sm:$0xff] %v10032_v18  ;;  %v10035_v23 = vsel %vm2092_vm1, %v2679_v26, -1e+30  ;;  %v2681_v16 = vpop.f32.mrb[82].mxu0 }
 0x484   : > { %11795 = vst [vmem:[#allocation46_spill] sm:$0xff] %v10035_v23  ;;  %v2852_v14 = vmax.f32 %v10032_v18, %v10035_v23  ;;  %v10041_v24 = vsel %vm2093_vm2, %v2681_v16, -1e+30  ;;  %v2683_v37 = vpop.f32.mrb[83].mxu0  ;;  %v2007_v16 = vand.u32 127, %v1972_v12 }
 0x485   : > { %11796 = vst [vmem:[#allocation50_spill] sm:$0xff] %v10041_v24  ;;  %v10043_v42 = vsel %vm2094_vm3, %v2683_v37, -1e+30 }
 0x486   : > { %11797 = vst [vmem:[#allocation27_spill] sm:$0xff] %v10043_v42  ;;  %v2855_v36 = vmax.f32 %v10041_v24, %v10043_v42  ;;  %2853 = vmax.xlane.f32.xlu0 %v2852_v14  ;;  %v2039_v14 = vadd.s32 %v9854_v8, %v2006_v56  ;;  %v1973_v42 = vadd.s32 240, %v11784_v6  ;;  %v2040_v12 = vadd.s32 %v9854_v8, %v2007_v16 }
 0x488   : > { %2856 = vmax.xlane.f32.xlu1 %v2855_v36  ;;  %vm2099_vm8 = vcmp.ge.s32.totalorder %v2039_v14, %v9851_v1  ;;  %v2008_v56 = vand.u32 127, %v1973_v42  ;;  %vm2100_vm9 = vcmp.ge.s32.totalorder %v2039_v14, %v9866_v43  ;;  %vm2101_vm10 = vcmp.ge.s32.totalorder %v2040_v12, %v9851_v1 }
 0x489   : > { %v2687_v26 = vpop.f32.mrb[84].mxu0  ;;  %vm2102_vm11 = vcmp.ge.s32.totalorder %v2040_v12, %v9866_v43 }
 0x48a   : > { %v10052_v37 = vsel %vm2095_vm4, %v2687_v26, -1e+30  ;;  %v2689_v23 = vpop.f32.mrb[85].mxu0  ;;  %v1974_v26 = vadd.s32 248, %v11784_v6  ;;  %v2041_v14 = vadd.s32 %v9854_v8, %v2008_v56 }
 0x48b   : > { %11798 = vst [vmem:[#allocation51_spill] sm:$0xff] %v10052_v37  ;;  %v10055_v46 = vsel %vm2096_vm5, %v2689_v23, -1e+30  ;;  %v2691_v18 = vpop.f32.mrb[86].mxu0 }
 0x48c   : > { %11799 = vst [vmem:[#allocation44_spill] sm:$0xff] %v10055_v46  ;;  %v2858_v55 = vmax.f32 %v10052_v37, %v10055_v46  ;;  %v10061_v5 = vsel %vm2097_vm6, %v2691_v18, -1e+30  ;;  %v2693_v36 = vpop.f32.mrb[87].mxu0  ;;  %v1978_v18 = vand.u32 127, %v11784_v6  ;;  %v2009_v16 = vand.u32 127, %v1974_v26 }
 0x48d   : > { %11800 = vst [vmem:[#allocation55_spill] sm:$0xff] %v10061_v5  ;;  %v10063_v24 = vsel %vm2098_vm7, %v2693_v36, -1e+30  ;;  %v1945_v36 = vadd.s32 16, %v11784_v6  ;;  %vm2103_vm12 = vcmp.ge.s32.totalorder %v2041_v14, %v9851_v1  ;;  %vm2104_vm13 = vcmp.ge.s32.totalorder %v2041_v14, %v9866_v43 }
 0x48e   : > { %11801 = vst [vmem:[#allocation28_spill] sm:$0xff] %v10063_v24  ;;  %v2861_v23 = vmax.f32 %v10061_v5, %v10063_v24  ;;  %2859 = vmax.xlane.f32.xlu0 %v2858_v55  ;;  %v1979_v55 = vand.u32 127, %v1944_v48  ;;  %v1946_v5 = vadd.s32 24, %v11784_v6  ;;  %v2042_v12 = vadd.s32 %v9854_v8, %v2009_v16 }
 0x48f   : > { %v1980_v26 = vand.u32 127, %v1945_v36  ;;  %v1947_v48 = vadd.s32 32, %v11784_v6  ;;  %v1949_v36 = vadd.s32 48, %v11784_v6 }
 0x490   : > { %2862 = vmax.xlane.f32.xlu1 %v2861_v23  ;;  %v2012_v56 = vadd.s32 %v9854_v8, %v1979_v55  ;;  %v1981_v3 = vand.u32 127, %v1946_v5  ;;  %vm2105_vm0 = vcmp.ge.s32.totalorder %v2042_v12, %v9851_v1  ;;  %vm2106_vm1 = vcmp.ge.s32.totalorder %v2042_v12, %v9866_v43 }
 0x491   : > { %v2697_v46 = vpop.f32.mrb[88].mxu0 }
 0x492   : > { %v10075_v37 = vsel %vm2099_vm8, %v2697_v46, -1e+30  ;;  %v2699_v24 = vpop.f32.mrb[89].mxu0  ;;  %v2011_v46 = vadd.s32 %v9854_v8, %v1978_v18  ;;  %vm2045_vm2 = vcmp.ge.s32.totalorder %v2012_v56, %v9851_v1  ;;  %vm2046_vm3 = vcmp.ge.s32.totalorder %v2012_v56, %v9866_v43 }
 0x493   : > { %v10079_v42 = vsel %vm2100_vm9, %v2699_v24, -1e+30  ;;  %v2701_v23 = vpop.f32.mrb[90].mxu0  ;;  %v2014_v55 = vadd.s32 %v9854_v8, %v1981_v3 }
 0x494   : > { %v2864_v30 = vmax.f32 %v10075_v37, %v10079_v42  ;;  %v10084_v21 = vsel %vm2101_vm10, %v2701_v23, -1e+30  ;;  %v2703_v41 = vpop.f32.mrb[91].mxu0  ;;  %v1948_v23 = vadd.s32 40, %v11784_v6  ;;  %vm2043_vm14 = vcmp.ge.s32.totalorder %v2011_v46, %v9851_v1 }
 0x495   : > { %11802 = vst [vmem:[#allocation56_spill] sm:$0xff] %v10084_v21  ;;  %v10087_v49 = vsel %vm2102_vm11, %v2703_v41, -1e+30  ;;  %vm2044_vm15 = vcmp.ge.s32.totalorder %v2011_v46, %v9866_v43  ;;  %v2013_v41 = vadd.s32 %v9854_v8, %v1980_v26  ;;  %v10118_v12 = vsel %vm2043_vm14, %v9822_v20, -1e+30 }
 0x496   : > { %11803 = vst [vmem:[#allocation49_spill] sm:$0xff] %v10087_v49  ;;  %v2867_v24 = vmax.f32 %v10084_v21, %v10087_v49  ;;  %2865 = vmax.xlane.f32.xlu0 %v2864_v30  ;;  %v1982_v30 = vand.u32 127, %v1947_v48  ;;  %v1950_v49 = vadd.s32 56, %v11784_v6  ;;  %v10123_v3 = vsel %vm2044_vm15, %v9824_v25, -1e+30 }
 0x497   : > { %vm2047_vm4 = vcmp.ge.s32.totalorder %v2013_v41, %v9851_v1  ;;  %vm2048_vm5 = vcmp.ge.s32.totalorder %v2013_v41, %v9866_v43  ;;  %v10135_v20 = vsel %vm2045_vm2, %v9826_v33, -1e+30  ;;  %v10140_v25 = vsel %vm2046_vm3, %v9828_v7, -1e+30 }
 0x498   : > { %2868 = vmax.xlane.f32.xlu1 %v2867_v24  ;;  %v1983_v24 = vand.u32 127, %v1948_v23  ;;  %vm2049_vm6 = vcmp.ge.s32.totalorder %v2014_v55, %v9851_v1  ;;  %vm2050_vm7 = vcmp.ge.s32.totalorder %v2014_v55, %v9866_v43  ;;  %v1985_v41 = vand.u32 127, %v1950_v49 }
 0x499   : > { %v2707_v18 = vpop.f32.mrb[92].mxu0  ;;  %v10151_v33 = vsel %vm2048_vm5, %v9832_v17, -1e+30  ;;  %v2783_v7 = vmax.f32 %v10135_v20, %v10140_v25 }
 0x49a   : > { %v10102_v5 = vsel %vm2103_vm12, %v2707_v18, -1e+30  ;;  %v2709_v16 = vpop.f32.mrb[93].mxu0  ;;  %v2016_v46 = vadd.s32 %v9854_v8, %v1983_v24  ;;  %v2018_v17 = vadd.s32 %v9854_v8, %v1985_v41 }
 0x49b   : > { %v10108_v14 = vsel %vm2104_vm13, %v2709_v16, -1e+30  ;;  %v2711_v26 = vpop.f32.mrb[94].mxu0  ;;  %v2015_v16 = vadd.s32 %v9854_v8, %v1982_v30  ;;  %v10148_v30 = vsel %vm2047_vm4, %v9830_v27, -1e+30 }
 0x49c   : > { %v2870_v48 = vmax.f32 %v10102_v5, %v10108_v14  ;;  %v10113_v18 = vsel %vm2105_vm0, %v2711_v26, -1e+30  ;;  %v2713_v21 = vpop.f32.mrb[95].mxu0  ;;  %v1984_v26 = vand.u32 127, %v1949_v36  ;;  %v10159_v36 = vsel %vm2049_vm6, %v9834_v58, -1e+30 }
 0x49d   : > { %v10126_v23 = vsel %vm2106_vm1, %v2713_v21, -1e+30  ;;  %v2780_v21 = vmax.f32 %v10118_v12, %v10123_v3  ;;  %vm2051_vm8 = vcmp.ge.s32.totalorder %v2015_v16, %v9851_v1  ;;  %vm2052_vm9 = vcmp.ge.s32.totalorder %v2015_v16, %v9866_v43 }
 0x49e   : > { %v2873_v6 = vmax.f32 %v10113_v18, %v10126_v23  ;;  %2871 = vmax.xlane.f32.xlu0 %v2870_v48  ;;  %v2017_v56 = vadd.s32 %v9854_v8, %v1984_v26  ;;  %v2786_v27 = vmax.f32 %v10148_v30, %v10151_v33  ;;  %vm2053_vm10 = vcmp.ge.s32.totalorder %v2016_v46, %v9851_v1 }
 0x49f   : > { %vm2054_vm11 = vcmp.ge.s32.totalorder %v2016_v46, %v9866_v43  ;;  %v10170_v49 = vsel %vm2051_vm8, %v9838_v0, -1e+30  ;;  %v10173_v55 = vsel %vm2052_vm9, %v9840_v63, -1e+30  ;;  %vm2057_vm14 = vcmp.ge.s32.totalorder %v2018_v17, %v9851_v1 }
 0x4a0   : > { %2874 = vmax.xlane.f32.xlu1 %v2873_v6  ;;  %v10162_v6 = vsel %vm2050_vm7, %v9836_v35, -1e+30  ;;  %vm2055_vm12 = vcmp.ge.s32.totalorder %v2017_v56, %v9851_v1  ;;  %vm2056_vm13 = vcmp.ge.s32.totalorder %v2017_v56, %v9866_v43  ;;  %v10180_v35 = vsel %vm2053_vm10, %v9842_v52, -1e+30 }
 0x4a1   : > { %v2789_v58 = vmax.f32 %v10159_v36, %v10162_v6  ;;  %v10183_v8 = vsel %vm2054_vm11, %v9845_v40, -1e+30  ;;  %v2792_v0 = vmax.f32 %v10170_v49, %v10173_v55  ;;  %vm2058_vm15 = vcmp.ge.s32.totalorder %v2018_v17, %v9866_v43 }
 0x4a2   : > { %2781 = vmax.xlane.f32.xlu0 %v2780_v21  ;;  %v10190_v63 = vsel %vm2055_vm12, %v9848_v11, -1e+30  ;;  %v10193_v24 = vsel %vm2056_vm13, %v9856_v28, -1e+30  ;;  %v2795_v52 = vmax.f32 %v10180_v35, %v10183_v8  ;;  %v10198_v40 = vsel %vm2057_vm14, %v9858_v61, -1e+30 }
 0x4a3   : > { %v10201_v48 = vsel %vm2058_vm15, %v9862_v44, -1e+30  ;;  %v2798_v1 = vmax.f32 %v10190_v63, %v10193_v24 }
 0x4a4   : > { %2784 = vmax.xlane.f32.xlu1 %v2783_v7  ;;  %v2801_v11 = vmax.f32 %v10198_v40, %v10201_v48 }
 0x4a6   : > { %2787 = vmax.xlane.f32.xlu0 %v2786_v27 }
 0x4a8   : > { %2790 = vmax.xlane.f32.xlu1 %v2789_v58 }
 0x4aa   : > { %2793 = vmax.xlane.f32.xlu0 %v2792_v0 }
 0x4ac   : > { %2796 = vmax.xlane.f32.xlu1 %v2795_v52 }
 0x4ae   : > { %2799 = vmax.xlane.f32.xlu0 %v2798_v1 }
 0x4b0   : > { %2802 = vmax.xlane.f32.xlu1 %v2801_v11 }
 0x4d3   : > { %v2806_v28 = vpop.xlane.xlu0 %2805 }
 0x4d4   : > { %v2892_v43 = vsub.f32 %v9872_v60, %v2806_v28  ;;  %v2893_v16 = vsub.f32 %v9875_v54, %v2806_v28 }
 0x4d5   : > { %v2809_v26 = vpop.xlane.xlu1 %2808 }
 0x4d6   : > { %v2972_v61 = vmul.f32 1.442695, %v2892_v43  ;;  %v2974_v21 = vmul.f32 1.442695, %v2893_v16  ;;  %v2894_v44 = vsub.f32 %v9881_v59, %v2809_v26  ;;  %v2895_v46 = vsub.f32 %v9883_v45, %v2809_v26 }
 0x4d8   : > { %7747 = vpow2.f32 %v2972_v61  ;;  %v2976_v41 = vmul.f32 1.442695, %v2894_v44  ;;  %v2978_v7 = vmul.f32 1.442695, %v2895_v46 }
 0x4d9   : > { %7749 = vpow2.f32 %v2974_v21 }
 0x4da   : > { %7751 = vpow2.f32 %v2976_v41 }
 0x4db   : > { %7753 = vpow2.f32 %v2978_v7  ;;  %v2812_v56 = vpop.xlane.xlu0 %2811 }
 0x4dc   : > { %v2896_v27 = vsub.f32 %v9891_v53, %v2812_v56  ;;  %v2897_v60 = vsub.f32 %v9895_v51, %v2812_v56 }
 0x4de   : > { %v2980_v17 = vmul.f32 1.442695, %v2896_v27  ;;  %v2982_v54 = vmul.f32 1.442695, %v2897_v60 }
 0x4df   : > { %v2815_v58 = vpop.xlane.xlu0 %2814 }
 0x4e0   : > { %7755 = vpow2.f32 %v2980_v17  ;;  %v2898_v0 = vsub.f32 %v9901_v19, %v2815_v58  ;;  %v2899_v59 = vsub.f32 %v9903_v9, %v2815_v58 }
 0x4e1   : > { %7757 = vpow2.f32 %v2982_v54 }
 0x4e2   : > { %v7748_v45 = vpop.eup %7747  ;;  %v2984_v52 = vmul.f32 1.442695, %v2898_v0  ;;  %v2986_v1 = vmul.f32 1.442695, %v2899_v59 }
 0x4e3   : > { %v7750_v11 = vpop.eup %7749  ;;  %v2818_v28 = vpop.xlane.xlu0 %2817 }
 0x4e4   : > { %v7752_v43 = vpop.eup %7751  ;;  %7759 = vpow2.f32 %v2984_v52  ;;  %v2900_v53 = vsub.f32 %v9912_v38, %v2818_v28  ;;  %v2901_v51 = vsub.f32 %v9915_v13, %v2818_v28  ;;  %v10217_v16 = vadd.f32 %v7750_v11, %v7748_v45 }
 0x4e5   : > { %v7754_v26 = vpop.eup %7753  ;;  %7761 = vpow2.f32 %v2986_v1  ;;  %v2821_v61 = vpop.xlane.xlu1 %2820  ;;  %v3172_v19 = vpack.c.bf16 %v7752_v43, %v7748_v45 }
 0x4e6   : > { %v2988_v21 = vmul.f32 1.442695, %v2900_v53  ;;  %v2990_v9 = vmul.f32 1.442695, %v2901_v51  ;;  %v2902_v44 = vsub.f32 %v9921_v22, %v2821_v61  ;;  %v2903_v46 = vsub.f32 %v9923_v34, %v2821_v61 }
 0x4e7   : > { %v3173_v41 = vpack.c.bf16 %v7754_v26, %v7750_v11  ;;  %v10221_v7 = vadd.f32 %v7754_v26, %v7752_v43 }
 0x4e8   : > { %7763 = vpow2.f32 %v2988_v21  ;;  %v2992_v56 = vmul.f32 1.442695, %v2902_v44  ;;  %v2994_v38 = vmul.f32 1.442695, %v2903_v46 }
 0x4e9   : > { %7765 = vpow2.f32 %v2990_v9  ;;  %3276 = vmatprep.mubr.bf16.mxu1 %v3173_v41 }
 0x4ea   : > { %v7756_v13 = vpop.eup %7755  ;;  %7767 = vpow2.f32 %v2992_v56  ;;  %3277 = vmatmul.mubr.bf16.vlgmr.msra.gmra.mrb[64].mxu1 %v3172_v19 }
 0x4eb   : > { %v7758_v27 = vpop.eup %7757  ;;  %7769 = vpow2.f32 %v2994_v38  ;;  %v2824_v60 = vpop.xlane.xlu0 %2823 }
 0x4ec   : > { %v2904_v17 = vsub.f32 %v9932_v39, %v2824_v60  ;;  %v2905_v22 = vsub.f32 %v9935_v4, %v2824_v60  ;;  %v10225_v54 = vadd.f32 %v7758_v27, %v7756_v13 }
 0x4ed   : > { %v2827_v34 = vpop.xlane.xlu1 %2826 }
 0x4ee   : > { %v7760_v58 = vpop.eup %7759  ;;  %v2996_v0 = vmul.f32 1.442695, %v2904_v17  ;;  %v2998_v59 = vmul.f32 1.442695, %v2905_v22  ;;  %v2906_v45 = vsub.f32 %v9941_v62, %v2827_v34  ;;  %v2907_v52 = vsub.f32 %v9943_v32, %v2827_v34 }
 0x4ef   : > { %v7762_v1 = vpop.eup %7761  ;;  %v3174_v11 = vpack.c.bf16 %v7760_v58, %v7756_v13 }
 0x4f0   : > { %7771 = vpow2.f32 %v2996_v0  ;;  %v3000_v28 = vmul.f32 1.442695, %v2906_v45  ;;  %v3002_v43 = vmul.f32 1.442695, %v2907_v52  ;;  %v3175_v53 = vpack.c.bf16 %v7762_v1, %v7758_v27 }
 0x4f1   : > { %7773 = vpow2.f32 %v2998_v59  ;;  %v10229_v39 = vadd.f32 %v7762_v1, %v7760_v58 }
 0x4f2   : > { %v7764_v4 = vpop.eup %7763  ;;  %7775 = vpow2.f32 %v3000_v28  ;;  %3284 = vmatprep.mubr.bf16.mxu1 %v3175_v53 }
 0x4f3   : > { %v7766_v51 = vpop.eup %7765  ;;  %7777 = vpow2.f32 %v3002_v43  ;;  %3285 = vmatmul.mubr.bf16.gmra.mrb[68].mxu1 %v3174_v11  ;;  %v2830_v26 = vpop.xlane.xlu0 %2829 }
 0x4f4   : > { %v7768_v61 = vpop.eup %7767  ;;  %v2908_v62 = vsub.f32 %v9952_v10, %v2830_v26  ;;  %v2909_v32 = vsub.f32 %v9955_v47, %v2830_v26  ;;  %v10233_v19 = vadd.f32 %v7766_v51, %v7764_v4 }
 0x4f5   : > { %v7770_v21 = vpop.eup %7769  ;;  %v2833_v9 = vpop.xlane.xlu1 %2832  ;;  %v3176_v10 = vpack.c.bf16 %v7768_v61, %v7764_v4 }
 0x4f6   : > { %v3004_v44 = vmul.f32 1.442695, %v2908_v62  ;;  %v3006_v46 = vmul.f32 1.442695, %v2909_v32  ;;  %v2910_v41 = vsub.f32 %v9961_v31, %v2833_v9  ;;  %v2911_v56 = vsub.f32 %v9963_v29, %v2833_v9  ;;  %v11804_v62 = vld [vmem:[#allocation64_spill] sm:$0xff] }
 0x4f7   : > { %v3177_v38 = vpack.c.bf16 %v7770_v21, %v7766_v51  ;;  %v10237_v13 = vadd.f32 %v7770_v21, %v7768_v61  ;;  %v11805_v32 = vld [vmem:[#allocation32_spill] sm:$0xff] }
 0x4f8   : > { %7779 = vpow2.f32 %v3004_v44  ;;  %v3008_v27 = vmul.f32 1.442695, %v2910_v41  ;;  %v3010_v60 = vmul.f32 1.442695, %v2911_v56  ;;  %v11806_v56 = vld [vmem:[#allocation33_spill] sm:$0xff] }
 0x4f9   : > { %7781 = vpow2.f32 %v3006_v46  ;;  %3292 = vmatprep.mubr.bf16.mxu1 %v3177_v38 }
 0x4fa   : > { %v7772_v47 = vpop.eup %7771  ;;  %7783 = vpow2.f32 %v3008_v27  ;;  %v11807_v27 = vld [vmem:[#allocation69_spill] sm:$0xff] }
 0x4fb   : > { %v7774_v17 = vpop.eup %7773  ;;  %7785 = vpow2.f32 %v3010_v60  ;;  %3293 = vmatmul.mubr.bf16.gmra.mrb[72].mxu1 %v3176_v10  ;;  %v2836_v22 = vpop.xlane.xlu0 %2835 }
 0x4fc   : > { %v7776_v34 = vpop.eup %7775  ;;  %v2912_v31 = vsub.f32 %v9972_v2, %v2836_v22  ;;  %v2913_v29 = vsub.f32 %v9975_v15, %v2836_v22  ;;  %v10241_v58 = vadd.f32 %v7774_v17, %v7772_v47 }
 0x4fd   : > { %v7778_v0 = vpop.eup %7777  ;;  %v2839_v59 = vpop.xlane.xlu1 %2838  ;;  %v3178_v2 = vpack.c.bf16 %v7776_v34, %v7772_v47 }
 0x4fe   : > { %v3012_v45 = vmul.f32 1.442695, %v2912_v31  ;;  %v3014_v52 = vmul.f32 1.442695, %v2913_v29  ;;  %v2914_v1 = vsub.f32 %v9981_v57, %v2839_v59  ;;  %v2915_v11 = vsub.f32 %v9983_v50, %v2839_v59 }
 0x4ff   : > { %v3179_v28 = vpack.c.bf16 %v7778_v0, %v7774_v17  ;;  %v10245_v43 = vadd.f32 %v7778_v0, %v7776_v34 }
 0x500   : > { %7787 = vpow2.f32 %v3012_v45  ;;  %v3016_v53 = vmul.f32 1.442695, %v2914_v1  ;;  %v3018_v4 = vmul.f32 1.442695, %v2915_v11  ;;  %v11808_v45 = vld [vmem:[#allocation71_spill] sm:$0xff] }
 0x501   : > { %7789 = vpow2.f32 %v3014_v52  ;;  %3300 = vmatprep.mubr.bf16.mxu1 %v3179_v28  ;;  %v11809_v1 = vld [vmem:[#allocation35_spill] sm:$0xff] }
 0x502   : > { %v7780_v15 = vpop.eup %7779  ;;  %7791 = vpow2.f32 %v3016_v53 }
 0x503   : > { %v7782_v51 = vpop.eup %7781  ;;  %7793 = vpow2.f32 %v3018_v4  ;;  %3301 = vmatmul.mubr.bf16.gmra.mrb[76].mxu1 %v3178_v2  ;;  %v2842_v26 = vpop.xlane.xlu0 %2841 }
 0x504   : > { %v7784_v61 = vpop.eup %7783  ;;  %v2916_v57 = vsub.f32 %v11804_v62, %v2842_v26  ;;  %v2917_v50 = vsub.f32 %v11805_v32, %v2842_v26  ;;  %v3116_v21 = vadd.f32 %v7782_v51, %v7780_v15  ;;  %v11810_v26 = vld [vmem:[#allocation36_spill] sm:$0xff] }
 0x505   : > { %v7786_v9 = vpop.eup %7785  ;;  %v2845_v44 = vpop.xlane.xlu1 %2844  ;;  %v3180_v34 = vpack.c.bf16 %v7784_v61, %v7780_v15 }
 0x506   : > { %v3020_v46 = vmul.f32 1.442695, %v2916_v57  ;;  %v3022_v41 = vmul.f32 1.442695, %v2917_v50  ;;  %v2918_v38 = vsub.f32 %v11806_v56, %v2845_v44  ;;  %v2919_v60 = vsub.f32 %v11807_v27, %v2845_v44  ;;  %3117 = vadd.xlane.f32.xlu0 %v3116_v21  ;;  %v11811_v57 = vld [vmem:[#allocation41_spill] sm:$0xff] }
 0x507   : > { %v3119_v10 = vadd.f32 %v7786_v9, %v7784_v61  ;;  %v3181_v47 = vpack.c.bf16 %v7786_v9, %v7782_v51 }
 0x508   : > { %7795 = vpow2.f32 %v3020_v46  ;;  %v3024_v17 = vmul.f32 1.442695, %v2918_v38  ;;  %v3026_v22 = vmul.f32 1.442695, %v2919_v60  ;;  %v11812_v38 = vld [vmem:[#allocation45_spill] sm:$0xff]  ;;  %v11813_v60 = vld [vmem:[#allocation46_spill] sm:$0xff] }
 0x509   : > { %7797 = vpow2.f32 %v3022_v41  ;;  %3120 = vadd.xlane.f32.xlu1 %v3119_v10  ;;  %3308 = vmatprep.mubr.bf16.mxu1 %v3181_v47 }
 0x50a   : > { %v7788_v31 = vpop.eup %7787  ;;  %7799 = vpow2.f32 %v3024_v17 }
 0x50b   : > { %v7790_v29 = vpop.eup %7789  ;;  %7801 = vpow2.f32 %v3026_v22  ;;  %3309 = vmatmul.mubr.bf16.gmra.mrb[80].mxu1 %v3180_v34  ;;  %v2848_v0 = vpop.xlane.xlu0 %2847 }
 0x50c   : > { %v7792_v59 = vpop.eup %7791  ;;  %v2920_v52 = vsub.f32 %v11808_v45, %v2848_v0  ;;  %v2921_v11 = vsub.f32 %v11809_v1, %v2848_v0  ;;  %v3122_v28 = vadd.f32 %v7790_v29, %v7788_v31  ;;  %v11814_v0 = vld [vmem:[#allocation50_spill] sm:$0xff] }
 0x50d   : > { %v7794_v53 = vpop.eup %7793  ;;  %v2851_v4 = vpop.xlane.xlu1 %2850  ;;  %v3182_v9 = vpack.c.bf16 %v7792_v59, %v7788_v31 }
 0x50e   : > { %v3028_v2 = vmul.f32 1.442695, %v2920_v52  ;;  %v3030_v51 = vmul.f32 1.442695, %v2921_v11  ;;  %v2922_v62 = vsub.f32 %v11810_v26, %v2851_v4  ;;  %v2923_v15 = vsub.f32 %v11811_v57, %v2851_v4  ;;  %3123 = vadd.xlane.f32.xlu0 %v3122_v28  ;;  %v11815_v52 = vld [vmem:[#allocation27_spill] sm:$0xff] }
 0x50f   : > { %v3125_v61 = vadd.f32 %v7794_v53, %v7792_v59  ;;  %v3183_v32 = vpack.c.bf16 %v7794_v53, %v7790_v29 }
 0x510   : > { %7803 = vpow2.f32 %v3028_v2  ;;  %v3032_v50 = vmul.f32 1.442695, %v2922_v62  ;;  %v3034_v21 = vmul.f32 1.442695, %v2923_v15  ;;  %v11816_v62 = vld [vmem:[#allocation51_spill] sm:$0xff]  ;;  %v11817_v15 = vld [vmem:[#allocation44_spill] sm:$0xff] }
 0x511   : > { %7805 = vpow2.f32 %v3030_v51  ;;  %3126 = vadd.xlane.f32.xlu1 %v3125_v61  ;;  %3316 = vmatprep.mubr.bf16.mxu1 %v3183_v32 }
 0x512   : > { %v7796_v44 = vpop.eup %7795  ;;  %7807 = vpow2.f32 %v3032_v50 }
 0x513   : > { %v7798_v46 = vpop.eup %7797  ;;  %7809 = vpow2.f32 %v3034_v21  ;;  %3317 = vmatmul.mubr.bf16.gmra.mrb[84].mxu1 %v3182_v9  ;;  %v2854_v41 = vpop.xlane.xlu0 %2853 }
 0x514   : > { %v7800_v56 = vpop.eup %7799  ;;  %v2924_v27 = vsub.f32 %v11812_v38, %v2854_v41  ;;  %v2925_v10 = vsub.f32 %v11813_v60, %v2854_v41  ;;  %v3128_v47 = vadd.f32 %v7798_v46, %v7796_v44  ;;  %v11818_v41 = vld [vmem:[#allocation55_spill] sm:$0xff] }
 0x515   : > { %v7802_v17 = vpop.eup %7801  ;;  %v2857_v22 = vpop.xlane.xlu1 %2856  ;;  %v3184_v53 = vpack.c.bf16 %v7800_v56, %v7796_v44 }
 0x516   : > { %v3036_v34 = vmul.f32 1.442695, %v2924_v27  ;;  %v3038_v29 = vmul.f32 1.442695, %v2925_v10  ;;  %v2926_v45 = vsub.f32 %v11814_v0, %v2857_v22  ;;  %v2927_v31 = vsub.f32 %v11815_v52, %v2857_v22  ;;  %3129 = vadd.xlane.f32.xlu0 %v3128_v47  ;;  %v11819_v27 = vld [vmem:[#allocation28_spill] sm:$0xff] }
 0x517   : > { %v3131_v59 = vadd.f32 %v7802_v17, %v7800_v56  ;;  %v3185_v1 = vpack.c.bf16 %v7802_v17, %v7798_v46 }
 0x518   : > { %7811 = vpow2.f32 %v3036_v34  ;;  %v3040_v11 = vmul.f32 1.442695, %v2926_v45  ;;  %v3042_v28 = vmul.f32 1.442695, %v2927_v31 }
 0x519   : > { %7813 = vpow2.f32 %v3038_v29  ;;  %3132 = vadd.xlane.f32.xlu1 %v3131_v59  ;;  %3324 = vmatprep.mubr.bf16.mxu1 %v3185_v1 }
 0x51a   : > { %v7804_v4 = vpop.eup %7803  ;;  %7815 = vpow2.f32 %v3040_v11 }
 0x51b   : > { %v7806_v2 = vpop.eup %7805  ;;  %7817 = vpow2.f32 %v3042_v28  ;;  %3325 = vmatmul.mubr.bf16.gmra.mrb[88].mxu1 %v3184_v53  ;;  %v2860_v51 = vpop.xlane.xlu0 %2859  ;;  %v11820_v53 = vld [vmem:[#allocation56_spill] sm:$0xff] }
 0x51c   : > { %v7808_v26 = vpop.eup %7807  ;;  %v2928_v57 = vsub.f32 %v11816_v62, %v2860_v51  ;;  %v2929_v61 = vsub.f32 %v11817_v15, %v2860_v51  ;;  %v3134_v32 = vadd.f32 %v7806_v2, %v7804_v4  ;;  %v11821_v51 = vld [vmem:[#allocation49_spill] sm:$0xff] }
 0x51d   : > { %v7810_v50 = vpop.eup %7809  ;;  %v2863_v21 = vpop.xlane.xlu1 %2862  ;;  %v3186_v17 = vpack.c.bf16 %v7808_v26, %v7804_v4 }
 0x51e   : > { %v3044_v9 = vmul.f32 1.442695, %v2928_v57  ;;  %v3046_v46 = vmul.f32 1.442695, %v2929_v61  ;;  %v2930_v38 = vsub.f32 %v11818_v41, %v2863_v21  ;;  %v2931_v44 = vsub.f32 %v11819_v27, %v2863_v21  ;;  %3135 = vadd.xlane.f32.xlu0 %v3134_v32 }
 0x51f   : > { %v3137_v56 = vadd.f32 %v7810_v50, %v7808_v26  ;;  %v3187_v60 = vpack.c.bf16 %v7810_v50, %v7806_v2 }
 0x520   : > { %7819 = vpow2.f32 %v3044_v9  ;;  %v3048_v10 = vmul.f32 1.442695, %v2930_v38  ;;  %v3050_v47 = vmul.f32 1.442695, %v2931_v44 }
 0x521   : > { %7821 = vpow2.f32 %v3046_v46  ;;  %3138 = vadd.xlane.f32.xlu1 %v3137_v56  ;;  %3332 = vmatprep.mubr.bf16.mxu1 %v3187_v60 }
 0x522   : > { %v7812_v22 = vpop.eup %7811  ;;  %7823 = vpow2.f32 %v3048_v10 }
 0x523   : > { %v7814_v34 = vpop.eup %7813  ;;  %7825 = vpow2.f32 %v3050_v47  ;;  %3333 = vmatmul.mubr.bf16.gmra.mrb[92].mxu1 %v3186_v17  ;;  %v2866_v29 = vpop.xlane.xlu0 %2865 }
 0x524   : > { %v7816_v0 = vpop.eup %7815  ;;  %v2932_v45 = vsub.f32 %v10075_v37, %v2866_v29  ;;  %v2933_v52 = vsub.f32 %v10079_v42, %v2866_v29  ;;  %v3140_v31 = vadd.f32 %v7814_v34, %v7812_v22 }
 0x525   : > { %v7818_v59 = vpop.eup %7817  ;;  %v2869_v1 = vpop.xlane.xlu1 %2868  ;;  %v3188_v37 = vpack.c.bf16 %v7816_v0, %v7812_v22 }
 0x526   : > { %v3052_v11 = vmul.f32 1.442695, %v2932_v45  ;;  %v3054_v28 = vmul.f32 1.442695, %v2933_v52  ;;  %v2934_v2 = vsub.f32 %v11820_v53, %v2869_v1  ;;  %v2935_v4 = vsub.f32 %v11821_v51, %v2869_v1  ;;  %3141 = vadd.xlane.f32.xlu0 %v3140_v31 }
 0x527   : > { %v3143_v26 = vadd.f32 %v7818_v59, %v7816_v0  ;;  %v3189_v62 = vpack.c.bf16 %v7818_v59, %v7814_v34 }
 0x528   : > { %7827 = vpow2.f32 %v3052_v11  ;;  %v3056_v57 = vmul.f32 1.442695, %v2934_v2  ;;  %v3058_v15 = vmul.f32 1.442695, %v2935_v4 }
 0x529   : > { %7829 = vpow2.f32 %v3054_v28  ;;  %3144 = vadd.xlane.f32.xlu1 %v3143_v26  ;;  %3340 = vmatprep.mubr.bf16.mxu1 %v3189_v62 }
 0x52a   : > { %v7820_v42 = vpop.eup %7819  ;;  %7831 = vpow2.f32 %v3056_v57 }
 0x52b   : > { %v7822_v61 = vpop.eup %7821  ;;  %7833 = vpow2.f32 %v3058_v15  ;;  %3341 = vmatmul.mubr.bf16.gmra.mrb[96].mxu1 %v3188_v37  ;;  %v2872_v32 = vpop.xlane.xlu0 %2871 }
 0x52c   : > { %v7824_v50 = vpop.eup %7823  ;;  %v2936_v21 = vsub.f32 %v10102_v5, %v2872_v32  ;;  %v2937_v9 = vsub.f32 %v10108_v14, %v2872_v32  ;;  %v3146_v46 = vadd.f32 %v7822_v61, %v7820_v42 }
 0x52d   : > { %v7826_v41 = vpop.eup %7825  ;;  %v2875_v38 = vpop.xlane.xlu1 %2874  ;;  %v3190_v0 = vpack.c.bf16 %v7824_v50, %v7820_v42 }
 0x52e   : > { %v3060_v27 = vmul.f32 1.442695, %v2936_v21  ;;  %v3062_v44 = vmul.f32 1.442695, %v2937_v9  ;;  %v2938_v56 = vsub.f32 %v10113_v18, %v2875_v38  ;;  %v2939_v60 = vsub.f32 %v10126_v23, %v2875_v38  ;;  %3147 = vadd.xlane.f32.xlu0 %v3146_v46 }
 0x52f   : > { %v3149_v10 = vadd.f32 %v7826_v41, %v7824_v50  ;;  %v3191_v47 = vpack.c.bf16 %v7826_v41, %v7822_v61  ;;  %v2782_v17 = vpop.xlane.xlu0 %2781 }
 0x530   : > { %7835 = vpow2.f32 %v3060_v27  ;;  %v3064_v22 = vmul.f32 1.442695, %v2938_v56  ;;  %v3066_v34 = vmul.f32 1.442695, %v2939_v60  ;;  %v2876_v5 = vsub.f32 %v10118_v12, %v2782_v17 }
 0x531   : > { %7837 = vpow2.f32 %v3062_v44  ;;  %3150 = vadd.xlane.f32.xlu1 %v3149_v10  ;;  %3348 = vmatprep.mubr.bf16.mxu1 %v3191_v47  ;;  %v2877_v14 = vsub.f32 %v10123_v3, %v2782_v17  ;;  %v2785_v29 = vpop.xlane.xlu1 %2784 }
 0x532   : > { %v7828_v45 = vpop.eup %7827  ;;  %7839 = vpow2.f32 %v3064_v22  ;;  %v2940_v18 = vmul.f32 1.442695, %v2876_v5  ;;  %v2878_v23 = vsub.f32 %v10135_v20, %v2785_v29  ;;  %v2879_v52 = vsub.f32 %v10140_v25, %v2785_v29 }
 0x533   : > { %v7830_v31 = vpop.eup %7829  ;;  %7841 = vpow2.f32 %v3066_v34  ;;  %v2942_v59 = vmul.f32 1.442695, %v2877_v14  ;;  %3349 = vmatmul.mubr.bf16.gmra.mrb[100].mxu1 %v3190_v0  ;;  %v2788_v1 = vpop.xlane.xlu0 %2787 }
 0x534   : > { %v7832_v12 = vpop.eup %7831  ;;  %7843 = vpow2.f32 %v2940_v18  ;;  %v2944_v11 = vmul.f32 1.442695, %v2878_v23  ;;  %v2946_v28 = vmul.f32 1.442695, %v2879_v52  ;;  %v2880_v3 = vsub.f32 %v10148_v30, %v2788_v1 }
 0x535   : > { %v7834_v53 = vpop.eup %7833  ;;  %7845 = vpow2.f32 %v2942_v59  ;;  %v2881_v2 = vsub.f32 %v10151_v33, %v2788_v1  ;;  %v2791_v51 = vpop.xlane.xlu1 %2790  ;;  %v3152_v4 = vadd.f32 %v7830_v31, %v7828_v45 }
 0x536   : > { %7847 = vpow2.f32 %v2944_v11  ;;  %v2948_v20 = vmul.f32 1.442695, %v2880_v3  ;;  %v2882_v25 = vsub.f32 %v10159_v36, %v2791_v51  ;;  %v2883_v26 = vsub.f32 %v10162_v6, %v2791_v51  ;;  %v7509_v51 = vld [vmem:[#allocation10 + $0x84] ss:$8 sps:$4 sm:$0xff]  }
 0x537   : > { %7849 = vpow2.f32 %v2946_v28  ;;  %v2950_v62 = vmul.f32 1.442695, %v2881_v2  ;;  %3153 = vadd.xlane.f32.xlu0 %v3152_v4  ;;  %v3155_v57 = vadd.f32 %v7834_v53, %v7832_v12  ;;  %v3193_v15 = vpack.c.bf16 %v7834_v53, %v7830_v31  ;;  %v2794_v37 = vpop.xlane.xlu0 %2793  ;;  %3533 = vmatprep.subr.bf16.mxu0 %v7509_v51 }
 0x538   : > { %7851 = vpow2.f32 %v2948_v20  ;;  %v2952_v30 = vmul.f32 1.442695, %v2882_v25  ;;  %v2954_v42 = vmul.f32 1.442695, %v2883_v26  ;;  %v2884_v61 = vsub.f32 %v10170_v49, %v2794_v37  ;;  %v7507_v25 = vld [vmem:[#allocation10 + $0x80] ss:$8 sps:$4 sm:$0xff]  }
 0x539   : > { %7853 = vpow2.f32 %v2950_v62  ;;  %3156 = vadd.xlane.f32.xlu1 %v3155_v57  ;;  %3356 = vmatprep.mubr.bf16.mxu1 %v3193_v15  ;;  %v2885_v33 = vsub.f32 %v10173_v55, %v2794_v37  ;;  %v2797_v32 = vpop.xlane.xlu1 %2796  ;;  %v3192_v36 = vpack.c.bf16 %v7832_v12, %v7828_v45 }
 0x53a   : > { %v7836_v50 = vpop.eup %7835  ;;  %7855 = vpow2.f32 %v2952_v30  ;;  %v2956_v6 = vmul.f32 1.442695, %v2884_v61  ;;  %v2886_v21 = vsub.f32 %v10180_v35, %v2797_v32  ;;  %v2887_v9 = vsub.f32 %v10183_v8, %v2797_v32  ;;  %v7512_v30 = vld [vmem:[#allocation10 + $0x94] ss:$8 sps:$4 sm:$0xff]   ;;  %v7510_v32 = vld [vmem:[#allocation10 + $0x90] ss:$8 sps:$4 sm:$0xff]  }
 0x53b   : > { %v7838_v46 = vpop.eup %7837  ;;  %7857 = vpow2.f32 %v2954_v42  ;;  %v2958_v41 = vmul.f32 1.442695, %v2885_v33  ;;  %3357 = vmatmul.mubr.bf16.gmra.mrb[104].mxu1 %v3192_v36  ;;  %v2800_v38 = vpop.xlane.xlu0 %2799 }
 0x53c   : > { %v7840_v49 = vpop.eup %7839  ;;  %7859 = vpow2.f32 %v2956_v6  ;;  %v2960_v27 = vmul.f32 1.442695, %v2886_v21  ;;  %v2962_v44 = vmul.f32 1.442695, %v2887_v9  ;;  %v2888_v55 = vsub.f32 %v10190_v63, %v2800_v38  ;;  %v7515_v6 = vld [vmem:[#allocation10 + $0xa4] ss:$8 sps:$4 sm:$0xff]  }
 0x53d   : > { %v7842_v56 = vpop.eup %7841  ;;  %7861 = vpow2.f32 %v2958_v41  ;;  %v2889_v60 = vsub.f32 %v10193_v24, %v2800_v38  ;;  %v2803_v10 = vpop.xlane.xlu1 %2802  ;;  %v3158_v47 = vadd.f32 %v7838_v46, %v7836_v50  ;;  %v3194_v23 = vpack.c.bf16 %v7840_v49, %v7836_v50  ;;  %v7513_v21 = vld [vmem:[#allocation10 + $0xa0] ss:$8 sps:$4 sm:$0xff]   ;;  %v7516_v38 = vld [vmem:[#allocation10 + $0xb0] ss:$8 sps:$4 sm:$0xff]  }
 0x53e   : > { %v7844_v35 = vpop.eup %7843  ;;  %7863 = vpow2.f32 %v2960_v27  ;;  %v2964_v8 = vmul.f32 1.442695, %v2888_v55  ;;  %v2890_v17 = vsub.f32 %v10198_v40, %v2803_v10  ;;  %v2891_v22 = vsub.f32 %v10201_v48, %v2803_v10  ;;  %v7519_v27 = vld [vmem:[#allocation10 + $0xc0] ss:$8 sps:$4 sm:$0xff]   ;;  %v7522_v55 = vld [vmem:[#allocation10 + $0xd0] ss:$8 sps:$4 sm:$0xff]  }
 0x53f   : > { %v7846_v34 = vpop.eup %7845  ;;  %7865 = vpow2.f32 %v2962_v44  ;;  %v2966_v5 = vmul.f32 1.442695, %v2889_v60  ;;  %3159 = vadd.xlane.f32.xlu0 %v3158_v47  ;;  %v3161_v14 = vadd.f32 %v7842_v56, %v7840_v49  ;;  %v3195_v29 = vpack.c.bf16 %v7842_v56, %v7838_v46  ;;  %v7518_v46 = vld [vmem:[#allocation10 + $0xb4] ss:$8 sps:$4 sm:$0xff]   ;;  %v7521_v49 = vld [vmem:[#allocation10 + $0xc4] ss:$8 sps:$4 sm:$0xff]  }
 0x540   : > { %v7848_v63 = vpop.eup %7847  ;;  %7867 = vpow2.f32 %v2964_v8  ;;  %v2968_v0 = vmul.f32 1.442695, %v2890_v17  ;;  %v2970_v45 = vmul.f32 1.442695, %v2891_v22  ;;  %v3068_v24 = vadd.f32 %v7846_v34, %v7844_v35  ;;  %v7524_v44 = vld [vmem:[#allocation10 + $0xd4] ss:$8 sps:$4 sm:$0xff]  }
 0x541   : > { %v7850_v18 = vpop.eup %7849  ;;  %7869 = vpow2.f32 %v2966_v5  ;;  %3162 = vadd.xlane.f32.xlu1 %v3161_v14  ;;  %3364 = vmatprep.mubr.bf16.mxu1 %v3195_v29  ;;  %v3164_v52 = vpack.c.bf16 %v7848_v63, %v7844_v35  ;;  %v7528_v56 = vld [vmem:[#allocation10 + $0xf0] ss:$8 sps:$4 sm:$0xff]   ;;  %v7533_v60 = vld [vmem:[#allocation10 + $0x4] ss:$8 sps:$4 sm:$0xff]  }
 0x542   : > { %v7852_v40 = vpop.eup %7851  ;;  %7871 = vpow2.f32 %v2968_v0  ;;  %v3071_v48 = vadd.f32 %v7850_v18, %v7848_v63  ;;  %v3165_v31 = vpack.c.bf16 %v7850_v18, %v7846_v34 }
 0x543   : > { %v7854_v59 = vpop.eup %7853  ;;  %7873 = vpow2.f32 %v2970_v45  ;;  %3069 = vadd.xlane.f32.xlu0 %v3068_v24  ;;  %3365 = vmatmul.mubr.bf16.gmra.mrb[108].mxu1 %v3194_v23 }
 0x544   : > { %v7856_v1 = vpop.eup %7855  ;;  %3244 = vmatprep.mubr.bf16.mxu0 %v3165_v31  ;;  %v3074_v12 = vadd.f32 %v7854_v59, %v7852_v40 }
 0x545   : > { %v7858_v11 = vpop.eup %7857  ;;  %3072 = vadd.xlane.f32.xlu1 %v3071_v48  ;;  %3245 = vmatmul.mubr.bf16.vlgmr.msra.gmra.mrb[96].mxu0 %v3164_v52  ;;  %v3166_v37 = vpack.c.bf16 %v7856_v1, %v7852_v40 }
 0x546   : > { %v7860_v28 = vpop.eup %7859  ;;  %v3077_v3 = vadd.f32 %v7858_v11, %v7856_v1  ;;  %v3167_v53 = vpack.c.bf16 %v7858_v11, %v7854_v59  ;;  %3534 = vmatpush1.bf16.msra.mxu0 %v7507_v25 }
 0x547   : > { %v7862_v2 = vpop.eup %7861  ;;  %3075 = vadd.xlane.f32.xlu0 %v3074_v12  ;;  %3535 = vmatprep.subr.bf16.mxu0 %v7512_v30 }
 0x548   : > { %v7864_v4 = vpop.eup %7863  ;;  %3252 = vmatprep.mubr.bf16.mxu0 %v3167_v53  ;;  %v3080_v20 = vadd.f32 %v7862_v2, %v7860_v28 }
 0x549   : > { %v7866_v26 = vpop.eup %7865  ;;  %3078 = vadd.xlane.f32.xlu1 %v3077_v3  ;;  %v3168_v9 = vpack.c.bf16 %v7864_v4, %v7860_v28 }
 0x54a   : > { %v7868_v62 = vpop.eup %7867  ;;  %v3083_v57 = vadd.f32 %v7866_v26, %v7864_v4  ;;  %v3169_v61 = vpack.c.bf16 %v7866_v26, %v7862_v2  ;;  %3536 = vmatpush1.bf16.msra.mxu0 %v7510_v32 }
 0x54b   : > { %v7870_v15 = vpop.eup %7869  ;;  %3081 = vadd.xlane.f32.xlu0 %v3080_v20  ;;  %3537 = vmatprep.subr.bf16.mxu0 %v7515_v6 }
 0x54c   : > { %v7872_v42 = vpop.eup %7871  ;;  %v3086_v33 = vadd.f32 %v7870_v15, %v7868_v62 }
 0x54d   : > { %v7874_v36 = vpop.eup %7873  ;;  %3084 = vadd.xlane.f32.xlu1 %v3083_v57  ;;  %3253 = vmatmul.mubr.bf16.gmra.mrb[100].mxu0 %v3166_v37 }
 0x54e   : > { %3260 = vmatprep.mubr.bf16.mxu0 %v3169_v61  ;;  %v3089_v50 = vadd.f32 %v7874_v36, %v7872_v42  ;;  %3538 = vmatpush1.bf16.msra.mxu0 %v7513_v21  ;;  %v3171_v41 = vpack.c.bf16 %v7874_v36, %v7870_v15 }
 0x54f   : > { %3087 = vadd.xlane.f32.xlu0 %v3086_v33  ;;  %3539 = vmatprep.subr.bf16.mxu0 %v7518_v46 }
 0x551   : > { %3090 = vadd.xlane.f32.xlu1 %v3089_v50 }
 0x552   : > { %3540 = vmatpush1.bf16.msra.mxu0 %v7516_v38 }
 0x553   : > { %3093 = vadd.xlane.f32.xlu0 %v10217_v16  ;;  %3541 = vmatprep.subr.bf16.mxu0 %v7521_v49  ;;  %v3170_v16 = vpack.c.bf16 %v7872_v42, %v7868_v62 }
 0x555   : > { %3096 = vadd.xlane.f32.xlu1 %v10221_v7  ;;  %3261 = vmatmul.mubr.bf16.gmra.mrb[104].mxu0 %v3168_v9  ;;  %v7527_v7 = vld [vmem:[#allocation10 + $0xe4] ss:$8 sps:$4 sm:$0xff]  }
 0x556   : > { %3268 = vmatprep.mubr.bf16.mxu0 %v3171_v41  ;;  %3542 = vmatpush1.bf16.msra.mxu0 %v7519_v27 }
 0x557   : > { %3099 = vadd.xlane.f32.xlu0 %v10225_v54  ;;  %3543 = vmatprep.subr.bf16.mxu0 %v7524_v44  ;;  %v7525_v54 = vld [vmem:[#allocation10 + $0xe0] ss:$8 sps:$4 sm:$0xff]  }
 0x559   : > { %3102 = vadd.xlane.f32.xlu1 %v10229_v39  ;;  %v7530_v39 = vld [vmem:[#allocation10 + $0xf4] ss:$8 sps:$4 sm:$0xff]  }
 0x55a   : > { %3544 = vmatpush1.bf16.msra.mxu0 %v7522_v55 }
 0x55b   : > { %3105 = vadd.xlane.f32.xlu0 %v10233_v19  ;;  %3545 = vmatprep.subr.bf16.mxu0 %v7527_v7  ;;  %v8645_v19 = vmov 0  }
 0x55d   : > { %3108 = vadd.xlane.f32.xlu1 %v10237_v13  ;;  %3269 = vmatmul.mubr.bf16.gmra.mrb[108].mxu0 %v3170_v16 }
 0x55e   : > { %3546 = vmatpush1.bf16.msra.mxu0 %v7525_v54  ;;  %3565 = vmatprep.mubr.bf16.mxu0 %v8645_v19 }
 0x55f   : > { %3111 = vadd.xlane.f32.xlu0 %v10241_v58  ;;  %3547 = vmatprep.subr.bf16.mxu0 %v7530_v39 }
 0x561   : > { %3114 = vadd.xlane.f32.xlu1 %v10245_v43 }
 0x562   : > { %3548 = vmatpush1.bf16.msra.mxu0 %v7528_v56  ;;  %v7531_v56 = vld [vmem:[#allocation10] ss:$8 sps:$4 sm:$0xff]  }
 0x563   : > { %3726 = vmatprep.subr.bf16.mxu0 %v7533_v60 }
 0x593   : > { %v3118_v13 = vpop.xlane.xlu0 %3117 }
 0x594   : > { %7875 = vrcp.f32 %v3118_v13 }
 0x596   : > { %v3121_v10 = vpop.xlane.xlu1 %3120 }
 0x597   : > { %7877 = vrcp.f32 %v3121_v10 }
 0x59b   : > { %v3124_v47 = vpop.xlane.xlu0 %3123 }
 0x59c   : > { %7879 = vrcp.f32 %v3124_v47  ;;  %v7536_v47 = vld [vmem:[#allocation10 + $0x14] ss:$8 sps:$4 sm:$0xff]  }
 0x59e   : > { %v3127_v58 = vpop.xlane.xlu1 %3126  ;;  %v7876_v27 = vpop.eup %7875 }
 0x59f   : > { %7881 = vrcp.f32 %v3127_v58 }
 0x5a1   : > { %v7878_v55 = vpop.eup %7877 }
 0x5a3   : > { %v10296_v35 = vpop.xlane.xlu0 %3129 }
 0x5a6   : > { %v10298_v8 = vpop.xlane.xlu1 %3132 }
 0x5ab   : > { %v10300_v43 = vpop.xlane.xlu0 %3135 }
 0x5ae   : > { %v10302_v22 = vpop.xlane.xlu1 %3138 }
 0x5b3   : > { %v10306_v29 = vpop.xlane.xlu0 %3141 }
 0x5b6   : > { %v10310_v45 = vpop.xlane.xlu1 %3144 }
 0x5bb   : > { %v10312_v24 = vpop.xlane.xlu0 %3147 }
 0x5bd   : > { %v7139_v17 = vpop.f32.mrb[64].mxu1 }
 0x5be   : > { %v7140_v34 = vpop.f32.mrb[65].mxu1  ;;  %v10314_v18 = vpop.xlane.xlu1 %3150 }
 0x5bf   : > { %v10304_v5 = vadd.f32 %v7140_v34, %v7139_v17  ;;  %v7142_v14 = vpop.f32.mrb[66].mxu1 }
 0x5c0   : > { %v7143_v63 = vpop.f32.mrb[67].mxu1 }
 0x5c1   : > { %v10308_v0 = vadd.f32 %v7143_v63, %v7142_v14  ;;  %v7880_v63 = vpop.eup %7879 }
 0x5c4   : > { %v10316_v40 = vpop.xlane.xlu0 %3153 }
 0x5c6   : > { %v7145_v23 = vpop.f32.mrb[68].mxu1  ;;  %v10320_v1 = vpop.xlane.xlu1 %3156 }
 0x5c7   : > { %v7146_v52 = vpop.f32.mrb[69].mxu1 }
 0x5c8   : > { %v10318_v48 = vadd.f32 %v7146_v52, %v7145_v23  ;;  %v7148_v31 = vpop.f32.mrb[70].mxu1  ;;  %v7534_v52 = vld [vmem:[#allocation10 + $0x10] ss:$8 sps:$4 sm:$0xff]  }
 0x5c9   : > { %v7149_v59 = vpop.f32.mrb[71].mxu1 }
 0x5ca   : > { %v10322_v12 = vadd.f32 %v7149_v59, %v7148_v31 }
 0x5cc   : > { %v10324_v11 = vpop.xlane.xlu0 %3159 }
 0x5ce   : > { %v10326_v28 = vpop.xlane.xlu1 %3162  ;;  %v7151_v3 = vpop.f32.mrb[72].mxu1 }
 0x5cf   : > { %v7152_v53 = vpop.f32.mrb[73].mxu1 }
 0x5d0   : > { %v10328_v2 = vadd.f32 %v7152_v53, %v7151_v3  ;;  %v10330_v51 = vpop.xlane.xlu0 %3069  ;;  %v7154_v4 = vpop.f32.mrb[74].mxu1  ;;  %v7539_v3 = vld [vmem:[#allocation10 + $0x24] ss:$8 sps:$4 sm:$0xff]  }
 0x5d1   : > { %v7155_v20 = vpop.f32.mrb[75].mxu1 }
 0x5d2   : > { %v10332_v25 = vpop.xlane.xlu1 %3072  ;;  %v10334_v26 = vadd.f32 %v7155_v20, %v7154_v4 }
 0x5d4   : > { %v10336_v62 = vpop.xlane.xlu0 %3075 }
 0x5d6   : > { %v10338_v57 = vpop.xlane.xlu1 %3078  ;;  %v7157_v15 = vpop.f32.mrb[76].mxu1 }
 0x5d7   : > { %v7158_v37 = vpop.f32.mrb[77].mxu1 }
 0x5d8   : > { %v10340_v30 = vadd.f32 %v7158_v37, %v7157_v15  ;;  %v10342_v42 = vpop.xlane.xlu0 %3081  ;;  %v7160_v61 = vpop.f32.mrb[78].mxu1  ;;  %v7537_v37 = vld [vmem:[#allocation10 + $0x20] ss:$8 sps:$4 sm:$0xff]  }
 0x5d9   : > { %v7161_v33 = vpop.f32.mrb[79].mxu1 }
 0x5da   : > { %v10344_v32 = vpop.xlane.xlu1 %3084  ;;  %v10346_v36 = vadd.f32 %v7161_v33, %v7160_v61 }
 0x5dc   : > { %v10348_v50 = vpop.xlane.xlu0 %3087 }
 0x5de   : > { %v10350_v6 = vpop.xlane.xlu1 %3090  ;;  %v7163_v21 = vpop.f32.mrb[80].mxu1 }
 0x5df   : > { %v7164_v9 = vpop.f32.mrb[81].mxu1 }
 0x5e0   : > { %v7165_v46 = vadd.f32 %v7164_v9, %v7163_v21  ;;  %v3094_v41 = vpop.xlane.xlu0 %3093  ;;  %v7166_v38 = vpop.f32.mrb[82].mxu1  ;;  %v7542_v9 = vld [vmem:[#allocation10 + $0x34] ss:$8 sps:$4 sm:$0xff]  }
 0x5e1   : > { %7883 = vrcp.f32 %v3094_v41  ;;  %v7167_v49 = vpop.f32.mrb[83].mxu1 }
 0x5e2   : > { %v3097_v16 = vpop.xlane.xlu1 %3096  ;;  %v7168_v44 = vadd.f32 %v7167_v49, %v7166_v38  ;;  %v3421_v7 = vmul.f32 %v7876_v27, %v7165_v46 }
 0x5e3   : > { %7885 = vrcp.f32 %v3097_v16 }
 0x5e4   : > { %v3422_v54 = vmul.f32 %v7878_v55, %v7168_v44  ;;  %v3100_v39 = vpop.xlane.xlu0 %3099 }
 0x5e5   : > { %7887 = vrcp.f32 %v3100_v39 }
 0x5e6   : > { %7889 = vrcp.f32 %v10296_v35  ;;  %v3445_v60 = vpack.c.bf16 %v3422_v54, %v3421_v7  ;;  %v3103_v13 = vpop.xlane.xlu1 %3102  ;;  %v7169_v10 = vpop.f32.mrb[84].mxu1 }
 0x5e7   : > { %7891 = vrcp.f32 %v3103_v13  ;;  %v7170_v58 = vpop.f32.mrb[85].mxu1  ;;  %v7882_v35 = vpop.eup %7881 }
 0x5e8   : > { %7893 = vrcp.f32 %v10298_v8  ;;  %v7171_v17 = vadd.f32 %v7170_v58, %v7169_v10  ;;  %v3106_v34 = vpop.xlane.xlu0 %3105  ;;  %v7172_v14 = vpop.f32.mrb[86].mxu1  ;;  %3566 = vmatmul.mubr.bf16.vlgmr.msra.gmra.mrb[112].mxu0 %v3445_v60 }
 0x5e9   : > { %7895 = vrcp.f32 %v3106_v34  ;;  %v7173_v23 = vpop.f32.mrb[87].mxu1  ;;  %3727 = vmatpush1.bf16.msra.mxu0 %v7531_v56  ;;  %3575 = vmatprep.mubr.bf16.mxu0 %v8645_v19  ;;  %v7545_v56 = vld [vmem:[#allocation10 + $0x44] ss:$8 sps:$4 sm:$0xff]  }
 0x5ea   : > { %v3109_v31 = vpop.xlane.xlu1 %3108  ;;  %v7174_v59 = vadd.f32 %v7173_v23, %v7172_v14  ;;  %3728 = vmatprep.subr.bf16.mxu0 %v7536_v47  ;;  %v3423_v4 = vmul.f32 %v7880_v63, %v7171_v17  ;;  %v7543_v17 = vld [vmem:[#allocation10 + $0x40] ss:$8 sps:$4 sm:$0xff]   ;;  %v7548_v63 = vld [vmem:[#allocation10 + $0x54] ss:$8 sps:$4 sm:$0xff]  }
 0x5eb   : > { %v7884_v53 = vpop.eup %7883  ;;  %7897 = vrcp.f32 %v3109_v31 }
 0x5ec   : > { %v3424_v8 = vmul.f32 %v7882_v35, %v7174_v59  ;;  %v3112_v20 = vpop.xlane.xlu0 %3111  ;;  %v10356_v46 = vmul.f32 %v7884_v53, %v10304_v5 }
 0x5ed   : > { %v7886_v15 = vpop.eup %7885  ;;  %7899 = vrcp.f32 %v3112_v20  ;;  %3729 = vmatpush1.bf16.msra.mxu0 %v7534_v52 }
 0x5ee   : > { %v3115_v61 = vpop.xlane.xlu1 %3114  ;;  %v7175_v33 = vpop.f32.mrb[88].mxu1  ;;  %v3446_v21 = vpack.c.bf16 %v3424_v8, %v3423_v4  ;;  %3730 = vmatprep.subr.bf16.mxu0 %v7539_v3  ;;  %v10359_v41 = vmul.f32 %v7886_v15, %v10308_v0  ;;  %v7540_v0 = vld [vmem:[#allocation10 + $0x30] ss:$8 sps:$4 sm:$0xff]   ;;  %v7551_v8 = vld [vmem:[#allocation10 + $0x64] ss:$8 sps:$4 sm:$0xff]  }
 0x5ef   : > { %v7888_v38 = vpop.eup %7887  ;;  %7901 = vrcp.f32 %v3115_v61  ;;  %v7176_v49 = vpop.f32.mrb[89].mxu1 }
 0x5f0   : > { %v7890_v27 = vpop.eup %7889  ;;  %7903 = vrcp.f32 %v10300_v43  ;;  %v7177_v16 = vadd.f32 %v7176_v49, %v7175_v33  ;;  %v7178_v44 = vpop.f32.mrb[90].mxu1  ;;  %3576 = vmatmul.mubr.bf16.gmra.mrb[116].mxu0 %v3446_v21  ;;  %v3441_v55 = vpack.c.bf16 %v10359_v41, %v10356_v46  ;;  %v10367_v43 = vmul.f32 %v7888_v38, %v10318_v48  ;;  %v7549_v33 = vld [vmem:[#allocation10 + $0x60] ss:$8 sps:$4 sm:$0xff]   ;;  %v7554_v38 = vld [vmem:[#allocation10 + $0x74] ss:$8 sps:$4 sm:$0xff]  }
 0x5f1   : > { %v7892_v7 = vpop.eup %7891  ;;  %7905 = vrcp.f32 %v10302_v22  ;;  %v7179_v5 = vpop.f32.mrb[91].mxu1  ;;  %3585 = vmatprep.mubr.bf16.mxu0 %v8645_v19  ;;  %3731 = vmatpush1.bf16.msra.mxu0 %v7537_v37  ;;  %v4091_v46 = vld [vmem:[#allocation11] sm:$0xff] }
 0x5f2   : > { %v7894_v54 = vpop.eup %7893  ;;  %v7180_v39 = vadd.f32 %v7179_v5, %v7178_v44  ;;  %3732 = vmatprep.subr.bf16.mxu0 %v7542_v9  ;;  %v10370_v60 = vmul.f32 %v7892_v7, %v10322_v12  ;;  %v3425_v10 = vmul.f32 %v7890_v27, %v7177_v16  ;;  %7907 = vrcp.f32 %v10306_v29  ;;  %v7552_v16 = vld [vmem:[#allocation10 + $0x70] ss:$8 sps:$4 sm:$0xff]   ;;  %v4095_v41 = vld [vmem:[#allocation11 + $0x20] sm:$0xff] }
 0x5f3   : > { %v7896_v13 = vpop.eup %7895  ;;  %7909 = vrcp.f32 %v10310_v45 }
 0x5f4   : > { %v3426_v47 = vmul.f32 %v7894_v54, %v7180_v39  ;;  %v3442_v22 = vpack.c.bf16 %v10370_v60, %v10367_v43  ;;  %v10375_v23 = vmul.f32 %v7896_v13, %v10328_v2  ;;  %v7546_v2 = vld [vmem:[#allocation10 + $0x50] ss:$8 sps:$4 sm:$0xff]   ;;  %7911 = vrcp.f32 %v10312_v24  ;;  %v4107_v60 = vld [vmem:[#allocation11 + $0x80] sm:$0xff] }
 0x5f5   : > { %v7898_v58 = vpop.eup %7897  ;;  %3733 = vmatpush1.bf16.msra.mxu0 %v7540_v0  ;;  %7913 = vrcp.f32 %v10314_v18 }
 0x5f6   : > { %v7181_v34 = vpop.f32.mrb[92].mxu1  ;;  %v3447_v14 = vpack.c.bf16 %v3426_v47, %v3425_v10  ;;  %3734 = vmatprep.subr.bf16.mxu0 %v7545_v56  ;;  %v10378_v48 = vmul.f32 %v7898_v58, %v10334_v26  ;;  %7915 = vrcp.f32 %v10316_v40 }
 0x5f7   : > { %v7900_v12 = vpop.eup %7899  ;;  %v7182_v52 = vpop.f32.mrb[93].mxu1  ;;  %7917 = vrcp.f32 %v10320_v1 }
 0x5f8   : > { %v7183_v35 = vadd.f32 %v7182_v52, %v7181_v34  ;;  %v7184_v31 = vpop.f32.mrb[94].mxu1  ;;  %3586 = vmatmul.mubr.bf16.gmra.mrb[120].mxu0 %v3447_v14  ;;  %v3443_v59 = vpack.c.bf16 %v10378_v48, %v10375_v23  ;;  %v10386_v29 = vmul.f32 %v7900_v12, %v10340_v30  ;;  %7919 = vrcp.f32 %v10324_v11  ;;  %v4092_v23 = vld [vmem:[#allocation11 + $0x8] sm:$0xff] }
 0x5f9   : > { %v7902_v3 = vpop.eup %7901  ;;  %v7185_v53 = vpop.f32.mrb[95].mxu1  ;;  %3595 = vmatprep.mubr.bf16.mxu0 %v8645_v19  ;;  %3735 = vmatpush1.bf16.msra.mxu0 %v7543_v17  ;;  %7921 = vrcp.f32 %v10326_v28  ;;  %v4096_v48 = vld [vmem:[#allocation11 + $0x28] sm:$0xff] }
 0x5fa   : > { %v7904_v26 = vpop.eup %7903  ;;  %v7186_v4 = vadd.f32 %v7185_v53, %v7184_v31  ;;  %3736 = vmatprep.subr.bf16.mxu0 %v7548_v63  ;;  %v10389_v20 = vmul.f32 %v7902_v3, %v10346_v36  ;;  %7923 = vrcp.f32 %v10330_v51 }
 0x5fb   : > { %v7906_v15 = vpop.eup %7905  ;;  %v3427_v37 = vmul.f32 %v7904_v26, %v7183_v35  ;;  %7925 = vrcp.f32 %v10332_v25 }
 0x5fc   : > { %v3428_v61 = vmul.f32 %v7906_v15, %v7186_v4  ;;  %v3444_v45 = vpack.c.bf16 %v10389_v20, %v10386_v29  ;;  %v7908_v44 = vpop.eup %7907  ;;  %7927 = vrcp.f32 %v10336_v62  ;;  %v6789_v29 = vcombine.high %v4092_v23, %v4096_v48  ;;  %v4100_v20 = vld [vmem:[#allocation11 + $0x48] sm:$0xff] }
 0x5fd   : > { %3737 = vmatpush1.bf16.msra.mxu0 %v7546_v2  ;;  %v7910_v5 = vpop.eup %7909  ;;  %7929 = vrcp.f32 %v10338_v57 }
 0x5fe   : > { %v7187_v21 = vpop.f32.mrb[96].mxu1  ;;  %v3448_v9 = vpack.c.bf16 %v3428_v61, %v3427_v37  ;;  %3738 = vmatprep.subr.bf16.mxu0 %v7551_v8  ;;  %v7912_v47 = vpop.eup %7911  ;;  %7931 = vrcp.f32 %v10342_v42 }
 0x5ff   : > { %v7188_v49 = vpop.f32.mrb[97].mxu1  ;;  %v7914_v17 = vpop.eup %7913  ;;  %7933 = vrcp.f32 %v10344_v32 }
 0x600   : > { %v7189_v30 = vadd.f32 %v7188_v49, %v7187_v21  ;;  %v7190_v27 = vpop.f32.mrb[98].mxu1  ;;  %3596 = vmatmul.mubr.bf16.gmra.mrb[124].mxu0 %v3448_v9  ;;  %v7916_v1 = vpop.eup %7915  ;;  %7935 = vrcp.f32 %v10348_v50 }
 0x601   : > { %v7191_v36 = vpop.f32.mrb[99].mxu1  ;;  %3605 = vmatprep.mubr.bf16.mxu0 %v8645_v19  ;;  %3739 = vmatpush1.bf16.msra.mxu0 %v7549_v33  ;;  %v7918_v53 = vpop.eup %7917  ;;  %7937 = vrcp.f32 %v10350_v6 }
 0x602   : > { %v7192_v7 = vadd.f32 %v7191_v36, %v7190_v27  ;;  %3740 = vmatprep.subr.bf16.mxu0 %v7554_v38  ;;  %v3429_v0 = vmul.f32 %v7908_v44, %v7189_v30  ;;  %v7920_v21 = vpop.eup %7919 }
 0x603   : > { %v7922_v25 = vpop.eup %7921 }
 0x604   : > { %v3430_v54 = vmul.f32 %v7910_v5, %v7192_v7  ;;  %v7924_v30 = vpop.eup %7923 }
 0x605   : > { %3741 = vmatpush1.bf16.msra.mxu0 %v7552_v16  ;;  %v7926_v44 = vpop.eup %7925 }
 0x606   : > { %v7193_v39 = vpop.f32.mrb[100].mxu1  ;;  %v3449_v56 = vpack.c.bf16 %v3430_v54, %v3429_v0  ;;  %4972 = vmatprep.subr.bf16.mxu0 %v6789_v29 }
 0x607   : > { %v7194_v24 = vpop.f32.mrb[101].mxu1 }
 0x608   : > { %v7195_v13 = vadd.f32 %v7194_v24, %v7193_v39  ;;  %v7196_v10 = vpop.f32.mrb[102].mxu1  ;;  %3606 = vmatmul.mubr.bf16.gmra.mrb[128].mxu0 %v3449_v56 }
 0x609   : > { %v7197_v18 = vpop.f32.mrb[103].mxu1  ;;  %3615 = vmatprep.mubr.bf16.mxu0 %v8645_v19 }
 0x60a   : > { %v7198_v58 = vadd.f32 %v7197_v18, %v7196_v10  ;;  %v3431_v34 = vmul.f32 %v7912_v47, %v7195_v13  ;;  %v7928_v13 = vpop.eup %7927 }
 0x60b   : > { %v7930_v18 = vpop.eup %7929 }
 0x60c   : > { %v3432_v14 = vmul.f32 %v7914_v17, %v7198_v58  ;;  %v7932_v32 = vpop.eup %7931 }
 0x60e   : > { %v7199_v63 = vpop.f32.mrb[104].mxu1  ;;  %v3450_v12 = vpack.c.bf16 %v3432_v14, %v3431_v34 }
 0x60f   : > { %v7200_v52 = vpop.f32.mrb[105].mxu1 }
 0x610   : > { %v7201_v35 = vadd.f32 %v7200_v52, %v7199_v63  ;;  %v7202_v40 = vpop.f32.mrb[106].mxu1  ;;  %3616 = vmatmul.mubr.bf16.gmra.mrb[132].mxu0 %v3450_v12 }
 0x611   : > { %v7203_v31 = vpop.f32.mrb[107].mxu1  ;;  %3625 = vmatprep.mubr.bf16.mxu0 %v8645_v19 }
 0x612   : > { %v7204_v3 = vadd.f32 %v7203_v31, %v7202_v40  ;;  %v3433_v2 = vmul.f32 %v7916_v1, %v7201_v35  ;;  %v7934_v35 = vpop.eup %7933 }
 0x613   : > { %v7936_v50 = vpop.eup %7935 }
 0x614   : > { %v3434_v26 = vmul.f32 %v7918_v53, %v7204_v3 }
 0x616   : > { %v7205_v4 = vpop.f32.mrb[108].mxu1  ;;  %v3451_v8 = vpack.c.bf16 %v3434_v26, %v3433_v2 }
 0x617   : > { %v7206_v11 = vpop.f32.mrb[109].mxu1 }
 0x618   : > { %v7207_v15 = vadd.f32 %v7206_v11, %v7205_v4  ;;  %v7115_v37 = vpop.f32.mrb[96].mxu0  ;;  %v7208_v61 = vpop.f32.mrb[110].mxu1  ;;  %3626 = vmatmul.mubr.bf16.gmra.mrb[136].mxu0 %v3451_v8 }
 0x619   : > { %v7116_v28 = vpop.f32.mrb[97].mxu0  ;;  %v7209_v33 = vpop.f32.mrb[111].mxu1  ;;  %3635 = vmatprep.mubr.bf16.mxu0 %v8645_v19 }
 0x61a   : > { %v7117_v51 = vadd.f32 %v7116_v28, %v7115_v37  ;;  %v7210_v9 = vadd.f32 %v7209_v33, %v7208_v61  ;;  %v7118_v38 = vpop.f32.mrb[98].mxu0  ;;  %v3435_v27 = vmul.f32 %v7920_v21, %v7207_v15  ;;  %v7938_v11 = vpop.eup %7937  ;;  %v6786_v61 = vcombine.low %v4091_v46, %v4095_v41  ;;  %v4103_v33 = vld [vmem:[#allocation11 + $0x60] sm:$0xff] }
 0x61b   : > { %v7119_v49 = vpop.f32.mrb[99].mxu0  ;;  %v6787_v28 = vcombine.high %v4091_v46, %v4095_v41  ;;  %v4163_v41 = vld [vmem:[#allocation11 + $0x240] sm:$0xff] }
 0x61c   : > { %v3436_v36 = vmul.f32 %v7922_v25, %v7210_v9  ;;  %v7120_v16 = vadd.f32 %v7119_v49, %v7118_v38  ;;  %v3405_v7 = vmul.f32 %v7924_v30, %v7117_v51  ;;  %v6788_v51 = vcombine.low %v4092_v23, %v4096_v48  ;;  %v4119_v9 = vld [vmem:[#allocation11 + $0xe0] sm:$0xff]  ;;  %v4108_v25 = vld [vmem:[#allocation11 + $0x88] sm:$0xff] }
 0x61d   : > { %4859 = vmatprep.subr.bf16.mxu1 %v6787_v28  ;;  %v4112_v49 = vld [vmem:[#allocation11 + $0xa8] sm:$0xff]  ;;  %v4175_v48 = vld [vmem:[#allocation11 + $0x2a0] sm:$0xff] }
 0x61e   : > { %v3406_v5 = vmul.f32 %v7926_v44, %v7120_v16  ;;  %v3452_v0 = vpack.c.bf16 %v3436_v36, %v3435_v27  ;;  %4860 = vmatpush1.bf16.msra.mxu1 %v6786_v61  ;;  %v4123_v16 = vld [vmem:[#allocation11 + $0x100] sm:$0xff]  ;;  %v6805_v44 = vcombine.high %v4108_v25, %v4112_v49  ;;  %v4156_v28 = vld [vmem:[#allocation11 + $0x208] sm:$0xff] }
 0x61f   : > { %v4167_v61 = vld [vmem:[#allocation11 + $0x260] sm:$0xff] }
 0x620   : > { %v3437_v54 = vpack.c.bf16 %v3406_v5, %v3405_v7  ;;  %v7121_v39 = vpop.f32.mrb[100].mxu0  ;;  %3636 = vmatmul.mubr.bf16.gmra.mrb[140].mxu0 %v3452_v0  ;;  %v4127_v7 = vld [vmem:[#allocation11 + $0x120] sm:$0xff]  ;;  %v4116_v5 = vld [vmem:[#allocation11 + $0xc8] sm:$0xff] }
 0x621   : > { %v7122_v56 = vpop.f32.mrb[101].mxu0  ;;  %3758 = vmatprep.mubr.bf16.mxu0 %v8645_v19  ;;  %v4120_v0 = vld [vmem:[#allocation11 + $0xe8] sm:$0xff] }
 0x622   : > { %v7123_v62 = vadd.f32 %v7122_v56, %v7121_v39  ;;  %v7124_v24 = vpop.f32.mrb[102].mxu0  ;;  %v6804_v39 = vcombine.low %v4108_v25, %v4112_v49  ;;  %v6819_v56 = vcombine.high %v4123_v16, %v4127_v7 }
 0x623   : > { %v7125_v57 = vpop.f32.mrb[103].mxu0 }
 0x624   : > { %v7126_v10 = vadd.f32 %v7125_v57, %v7124_v24  ;;  %v3407_v47 = vmul.f32 %v7928_v13, %v7123_v62  ;;  %v4131_v62 = vld [vmem:[#allocation11 + $0x140] sm:$0xff]  ;;  %v6813_v24 = vcombine.high %v4116_v5, %v4120_v0  ;;  %v4124_v13 = vld [vmem:[#allocation11 + $0x108] sm:$0xff] }
 0x625   : > { %v4135_v57 = vld [vmem:[#allocation11 + $0x160] sm:$0xff] }
 0x626   : > { %v3408_v58 = vmul.f32 %v7930_v18, %v7126_v10  ;;  %v4128_v10 = vld [vmem:[#allocation11 + $0x128] sm:$0xff]  ;;  %v6818_v18 = vcombine.low %v4123_v16, %v4127_v7  ;;  %v8323_v16 = vld [vmem:[%s8932_s14] sm:$0xff] }
 0x628   : > { %v7127_v17 = vpop.f32.mrb[104].mxu0  ;;  %3759 = vmatmul.mubr.bf16.vlgmr.msra.gmra.mrb[112].mxu0 %v3437_v54  ;;  %v3438_v34 = vpack.c.bf16 %v3408_v58, %v3407_v47  ;;  %v6812_v47 = vcombine.low %v4116_v5, %v4120_v0  ;;  %v6827_v58 = vcombine.high %v4131_v62, %v4135_v57  ;;  %v8324_v5 = vld [vmem:[%s8932_s14 + $0x8] sm:$0xff] }
 0x629   : > { %v7128_v14 = vpop.f32.mrb[105].mxu0  ;;  %3768 = vmatprep.mubr.bf16.mxu0 %v8645_v19  ;;  %4973 = vmatpush1.bf16.msra.mxu0 %v6788_v51  ;;  %v6858_v51 = vcombine.low %v4163_v41, %v4167_v61 }
 0x62a   : > { %v7129_v63 = vadd.f32 %v7128_v14, %v7127_v17  ;;  %v7130_v42 = vpop.f32.mrb[106].mxu0  ;;  %v4139_v17 = vld [vmem:[#allocation11 + $0x180] sm:$0xff] }
 0x62b   : > { %v7131_v12 = vpop.f32.mrb[107].mxu0  ;;  %v4143_v14 = vld [vmem:[#allocation11 + $0x1a0] sm:$0xff] }
 0x62c   : > { %v7132_v52 = vadd.f32 %v7131_v12, %v7130_v42  ;;  %v3409_v40 = vmul.f32 %v7932_v32, %v7129_v63  ;;  %v4132_v63 = vld [vmem:[#allocation11 + $0x148] sm:$0xff]  ;;  %v6826_v12 = vcombine.low %v4131_v62, %v4135_v57  ;;  %v6820_v32 = vcombine.low %v4124_v13, %v4128_v10 }
 0x62d   : > { %v4136_v42 = vld [vmem:[#allocation11 + $0x168] sm:$0xff] }
 0x62e   : > { %v3410_v31 = vmul.f32 %v7934_v35, %v7132_v52  ;;  %v6835_v52 = vcombine.high %v4139_v17, %v4143_v14  ;;  %v4147_v35 = vld [vmem:[#allocation11 + $0x1c0] sm:$0xff] }
 0x630   : > { %v7133_v1 = vpop.f32.mrb[108].mxu0  ;;  %3769 = vmatmul.mubr.bf16.gmra.mrb[116].mxu0 %v3438_v34  ;;  %v3439_v3 = vpack.c.bf16 %v3410_v31, %v3409_v40  ;;  %v6821_v34 = vcombine.high %v4124_v13, %v4128_v10  ;;  %v6829_v40 = vcombine.high %v4132_v63, %v4136_v42  ;;  %v4151_v31 = vld [vmem:[#allocation11 + $0x1e0] sm:$0xff]  ;;  %v8326_v13 = vld [vmem:[%s8932_s14 + $0x18] sm:$0xff] }
 0x631   : > { %v7134_v53 = vpop.f32.mrb[109].mxu0  ;;  %3778 = vmatprep.mubr.bf16.mxu0 %v8645_v19 }
 0x632   : > { %v7135_v2 = vadd.f32 %v7134_v53, %v7133_v1  ;;  %v7136_v26 = vpop.f32.mrb[110].mxu0  ;;  %v4140_v1 = vld [vmem:[#allocation11 + $0x188] sm:$0xff]  ;;  %v6834_v53 = vcombine.low %v4139_v17, %v4143_v14  ;;  %v8327_v14 = vld [vmem:[%s8932_s14 + $0x20] sm:$0xff] }
 0x633   : > { %v7137_v4 = vpop.f32.mrb[111].mxu0 }
 0x634   : > { %v7138_v8 = vadd.f32 %v7137_v4, %v7136_v26  ;;  %v3411_v15 = vmul.f32 %v7936_v50, %v7135_v2  ;;  %v6828_v2 = vcombine.low %v4132_v63, %v4136_v42  ;;  %v6843_v26 = vcombine.high %v4147_v35, %v4151_v31  ;;  %v4155_v4 = vld [vmem:[#allocation11 + $0x200] sm:$0xff] }
 0x636   : > { %v3412_v6 = vmul.f32 %v7938_v11, %v7138_v8  ;;  %v4159_v8 = vld [vmem:[#allocation11 + $0x220] sm:$0xff]  ;;  %v4148_v11 = vld [vmem:[#allocation11 + $0x1c8] sm:$0xff] }
 0x637   : > { %v6851_v46 = vcombine.high %v4155_v4, %v4159_v8 }
 0x638   : > { %3779 = vmatmul.mubr.bf16.gmra.mrb[120].mxu0 %v3439_v3  ;;  %v3440_v37 = vpack.c.bf16 %v3412_v6, %v3411_v15  ;;  %v4144_v3 = vld [vmem:[#allocation11 + $0x1a8] sm:$0xff]  ;;  %v6842_v6 = vcombine.low %v4147_v35, %v4151_v31 }
 0x639   : > { %3788 = vmatprep.mubr.bf16.mxu0 %v8645_v19  ;;  %v6837_v50 = vcombine.high %v4140_v1, %v4144_v3  ;;  %v4152_v15 = vld [vmem:[#allocation11 + $0x1e8] sm:$0xff] }
 0x640   : > { %3789 = vmatmul.mubr.bf16.gmra.mrb[124].mxu0 %v3440_v37  ;;  %v6836_v37 = vcombine.low %v4140_v1, %v4144_v3 }
 0x641   : > { %3798 = vmatprep.mubr.bf16.mxu0 %v8645_v19 }
 0x648   : > { %3799 = vmatmul.mubr.bf16.gmra.mrb[128].mxu0 %v3441_v55  ;;  %v4099_v55 = vld [vmem:[#allocation11 + $0x40] sm:$0xff] }
 0x649   : > { %3808 = vmatprep.mubr.bf16.mxu0 %v8645_v19  ;;  %v6795_v43 = vcombine.high %v4099_v55, %v4103_v33  ;;  %v6794_v21 = vcombine.low %v4099_v55, %v4103_v33  ;;  %v6845_v55 = vcombine.high %v4148_v11, %v4152_v15  ;;  %v4160_v33 = vld [vmem:[#allocation11 + $0x228] sm:$0xff] }
 0x64a   : > { %v6853_v23 = vcombine.high %v4156_v28, %v4160_v33  ;;  %v6852_v29 = vcombine.low %v4156_v28, %v4160_v33  ;;  %v8333_v28 = vld [vmem:[%s8932_s14 + $0x50] sm:$0xff] }
 0x64b   : > { %4861 = vmatprep.subr.bf16.mxu1 %v6795_v43  ;;  %v6850_v43 = vcombine.low %v4155_v4, %v4159_v8 }
 0x64c   : > { %4862 = vmatpush1.bf16.msra.mxu1 %v6794_v21  ;;  %v4171_v21 = vld [vmem:[#allocation11 + $0x280] sm:$0xff] }
 0x64d   : > { %v6866_v25 = vcombine.low %v4171_v21, %v4175_v48 }
 0x650   : > { %3809 = vmatmul.mubr.bf16.gmra.mrb[132].mxu0 %v3442_v22  ;;  %v4111_v22 = vld [vmem:[#allocation11 + $0xa0] sm:$0xff] }
 0x651   : > { %3818 = vmatprep.mubr.bf16.mxu0 %v8645_v19  ;;  %v6802_v30 = vcombine.low %v4107_v60, %v4111_v22 }
 0x658   : > { %3819 = vmatmul.mubr.bf16.gmra.mrb[136].mxu0 %v3443_v59  ;;  %v4115_v59 = vld [vmem:[#allocation11 + $0xc0] sm:$0xff] }
 0x659   : > { %3828 = vmatprep.mubr.bf16.mxu0 %v8645_v19  ;;  %v6803_v19 = vcombine.high %v4107_v60, %v4111_v22  ;;  %v6811_v36 = vcombine.high %v4115_v59, %v4119_v9  ;;  %v6810_v54 = vcombine.low %v4115_v59, %v4119_v9  ;;  %v6844_v60 = vcombine.low %v4148_v11, %v4152_v15  ;;  %v4168_v59 = vld [vmem:[#allocation11 + $0x268] sm:$0xff]  ;;  %v4179_v9 = vld [vmem:[#allocation11 + $0x2c0] sm:$0xff] }
 0x65a   : > { %v6859_v22 = vcombine.high %v4163_v41, %v4167_v61  ;;  %v8331_v15 = vld [vmem:[%s8932_s14 + $0x40] sm:$0xff] }
 0x65b   : > { %4863 = vmatprep.subr.bf16.mxu1 %v6803_v19  ;;  %v4164_v19 = vld [vmem:[#allocation11 + $0x248] sm:$0xff] }
 0x65c   : > { %4864 = vmatpush1.bf16.msra.mxu1 %v6802_v30  ;;  %v6860_v49 = vcombine.low %v4164_v19, %v4168_v59 }
 0x65d   : > { %4865 = vmatprep.subr.bf16.mxu1 %v6811_v36 }
 0x660   : > { %3829 = vmatmul.mubr.bf16.gmra.mrb[140].mxu0 %v3444_v45  ;;  %v4104_v45 = vld [vmem:[#allocation11 + $0x68] sm:$0xff]  ;;  %4866 = vmatpush1.bf16.msra.mxu1 %v6810_v54 }
 0x661   : > { %v6797_v38 = vcombine.high %v4100_v20, %v4104_v45  ;;  %v6796_v27 = vcombine.low %v4100_v20, %v4104_v45  ;;  %4867 = vmatprep.subr.bf16.mxu1 %v6819_v56  ;;  %v6867_v20 = vcombine.high %v4171_v21, %v4175_v48  ;;  %v6861_v45 = vcombine.high %v4164_v19, %v4168_v59  ;;  %v8325_v56 = vld [vmem:[%s8932_s14 + $0x10] sm:$0xff]  ;;  %v4176_v48 = vld [vmem:[#allocation11 + $0x2a8] sm:$0xff] }
 0x663   : > { %4974 = vmatprep.subr.bf16.mxu0 %v6797_v38  ;;  %v4183_v38 = vld [vmem:[#allocation11 + $0x2e0] sm:$0xff] }
 0x664   : > { %4975 = vmatpush1.bf16.msra.mxu0 %v6796_v27  ;;  %4868 = vmatpush1.bf16.msra.mxu1 %v6818_v18  ;;  %v6875_v30 = vcombine.high %v4179_v9, %v4183_v38  ;;  %v6874_v27 = vcombine.low %v4179_v9, %v4183_v38  ;;  %v4180_v38 = vld [vmem:[#allocation11 + $0x2c8] sm:$0xff] }
 0x665   : > { %4976 = vmatprep.subr.bf16.mxu0 %v6805_v44  ;;  %4869 = vmatprep.subr.bf16.mxu1 %v6827_v58 }
 0x668   : > { %4977 = vmatpush1.bf16.msra.mxu0 %v6804_v39  ;;  %4870 = vmatpush1.bf16.msra.mxu1 %v6826_v12  ;;  %v8328_v12 = vld [vmem:[%s8932_s14 + $0x28] sm:$0xff] }
 0x669   : > { %4978 = vmatprep.subr.bf16.mxu0 %v6813_v24  ;;  %4871 = vmatprep.subr.bf16.mxu1 %v6835_v52 }
 0x66c   : > { %4979 = vmatpush1.bf16.msra.mxu0 %v6812_v47  ;;  %4872 = vmatpush1.bf16.msra.mxu1 %v6834_v53  ;;  %v8330_v53 = vld [vmem:[%s8932_s14 + $0x38] sm:$0xff] }
 0x66d   : > { %4980 = vmatprep.subr.bf16.mxu0 %v6821_v34  ;;  %4873 = vmatprep.subr.bf16.mxu1 %v6843_v26 }
 0x670   : > { %4981 = vmatpush1.bf16.msra.mxu0 %v6820_v32  ;;  %4874 = vmatpush1.bf16.msra.mxu1 %v6842_v6 }
 0x671   : > { %4982 = vmatprep.subr.bf16.mxu0 %v6829_v40  ;;  %4875 = vmatprep.subr.bf16.mxu1 %v6851_v46  ;;  %v8329_v40 = vld [vmem:[%s8932_s14 + $0x30] sm:$0xff]  ;;  %v8332_v46 = vld [vmem:[%s8932_s14 + $0x48] sm:$0xff] }
 0x674   : > { %4983 = vmatpush1.bf16.msra.mxu0 %v6828_v2  ;;  %4876 = vmatpush1.bf16.msra.mxu1 %v6850_v43 }
 0x675   : > { %4984 = vmatprep.subr.bf16.mxu0 %v6837_v50  ;;  %4877 = vmatprep.subr.bf16.mxu1 %v6859_v22  ;;  %v8334_v22 = vld [vmem:[%s8932_s14 + $0x58] sm:$0xff] }
 0x678   : > { %4985 = vmatpush1.bf16.msra.mxu0 %v6836_v37  ;;  %4878 = vmatpush1.bf16.msra.mxu1 %v6858_v51 }
 0x679   : > { %4986 = vmatprep.subr.bf16.mxu0 %v6845_v55  ;;  %4879 = vmatprep.subr.bf16.mxu1 %v6867_v20 }
 0x67c   : > { %4987 = vmatpush1.bf16.msra.mxu0 %v6844_v60  ;;  %4880 = vmatpush1.bf16.msra.mxu1 %v6866_v25  ;;  %v4184_v25 = vld [vmem:[#allocation11 + $0x2e8] sm:$0xff] }
 0x67d   : > { %4988 = vmatprep.subr.bf16.mxu0 %v6853_v23  ;;  %4881 = vmatprep.subr.bf16.mxu1 %v6875_v30  ;;  %v4172_v23 = vld [vmem:[#allocation11 + $0x288] sm:$0xff] }
 0x67e   : > { %v6869_v59 = vcombine.high %v4172_v23, %v4176_v48  ;;  %v6868_v20 = vcombine.low %v4172_v23, %v4176_v48  ;;  %v8341_v48 = vld [vmem:[%s8932_s14 + $0x90] sm:$0xff] }
 0x680   : > { %4989 = vmatpush1.bf16.msra.mxu0 %v6852_v29  ;;  %4882 = vmatpush1.bf16.msra.mxu1 %v6874_v27 }
 0x681   : > { %4990 = vmatprep.subr.bf16.mxu0 %v6861_v45 }
 0x684   : > { %4991 = vmatpush1.bf16.msra.mxu0 %v6860_v49  ;;  %v8335_v49 = vld [vmem:[%s8932_s14 + $0x60] sm:$0xff] }
 0x685   : > { %4992 = vmatprep.subr.bf16.mxu0 %v6869_v59 }
 0x688   : > { %4993 = vmatpush1.bf16.msra.mxu0 %v6868_v20  ;;  %v8342_v20 = vld [vmem:[%s8932_s14 + $0x98] sm:$0xff] }
 0x6fb   : > { %v3760_v36 = vpop.f32.mrb[112].mxu0 }
 0x6fc   : > { %v10432_v44 = vadd.f32 %v8323_v16, %v3760_v36  ;;  %v3762_v7 = vpop.f32.mrb[113].mxu0  ;;  %v6877_v36 = vcombine.high %v4180_v38, %v4184_v25  ;;  %v8336_v16 = vld [vmem:[%s8932_s14 + $0x68] sm:$0xff] }
 0x6fd   : > { %v10435_v0 = vadd.f32 %v8324_v5, %v3762_v7  ;;  %v3764_v54 = vpop.f32.mrb[114].mxu0 }
 0x6fe   : > { %11822 = vst [vmem:[#allocation60_spill] sm:$0xff] %v10432_v44  ;;  %v3872_v39 = vmul.f32 %v10432_v44, %v10432_v44  ;;  %v10440_v62 = vadd.f32 %v8325_v56, %v3764_v54  ;;  %v3766_v24 = vpop.f32.mrb[115].mxu0  ;;  %v6876_v54 = vcombine.low %v4180_v38, %v4184_v25  ;;  %v8337_v56 = vld [vmem:[%s8932_s14 + $0x70] sm:$0xff]  ;;  %4994 = vmatprep.subr.bf16.mxu0 %v6877_v36  ;;  %v4207_v38 = vld [vmem:[#allocation11 + $0x3a0] sm:$0xff]  ;;  %v4204_v25 = vld [vmem:[#allocation11 + $0x388] sm:$0xff] }
 0x6ff   : > { %11823 = vst [vmem:[#allocation29_spill] sm:$0xff] %v10435_v0  ;;  %v3873_v57 = vmul.f32 %v10435_v0, %v10435_v0  ;;  %v10445_v10 = vadd.f32 %v8326_v13, %v3766_v24  ;;  %v4208_v36 = vld [vmem:[#allocation11 + $0x3a8] sm:$0xff] }
 0x700   : > { %11824 = vst [vmem:[#allocation61_spill] sm:$0xff] %v10440_v62  ;;  %v3874_v18 = vmul.f32 %v10440_v62, %v10440_v62  ;;  %4995 = vmatpush1.bf16.msra.mxu0 %v6876_v54 }
 0x701   : > { %11825 = vst [vmem:[#allocation54_spill] sm:$0xff] %v10445_v10  ;;  %v3875_v47 = vmul.f32 %v10445_v10, %v10445_v10  ;;  %v3904_v58 = vadd.f32 %v3873_v57, %v3872_v39 }
 0x703   : > { %3905 = vadd.xlane.f32.xlu0 %v3904_v58  ;;  %v3770_v17 = vpop.f32.mrb[116].mxu0  ;;  %v3907_v34 = vadd.f32 %v3875_v47, %v3874_v18  ;;  %v8338_v18 = vld [vmem:[%s8932_s14 + $0x78] sm:$0xff]  ;;  %v4187_v58 = vld [vmem:[#allocation11 + $0x300] sm:$0xff] }
 0x704   : > { %v10452_v63 = vadd.f32 %v8327_v14, %v3770_v17  ;;  %v3772_v42 = vpop.f32.mrb[117].mxu0  ;;  %v4191_v17 = vld [vmem:[#allocation11 + $0x320] sm:$0xff] }
 0x705   : > { %v10455_v32 = vadd.f32 %v8328_v12, %v3772_v42  ;;  %3908 = vadd.xlane.f32.xlu1 %v3907_v34  ;;  %v3774_v52 = vpop.f32.mrb[118].mxu0  ;;  %v4188_v34 = vld [vmem:[#allocation11 + $0x308] sm:$0xff]  ;;  %v6883_v42 = vcombine.high %v4187_v58, %v4191_v17 }
 0x706   : > { %11826 = vst [vmem:[#allocation66_spill] sm:$0xff] %v10452_v63  ;;  %v3876_v35 = vmul.f32 %v10452_v63, %v10452_v63  ;;  %v10460_v31 = vadd.f32 %v8329_v40, %v3774_v52  ;;  %v3776_v1 = vpop.f32.mrb[119].mxu0  ;;  %v4192_v12 = vld [vmem:[#allocation11 + $0x328] sm:$0xff]  ;;  %v6882_v40 = vcombine.low %v4187_v58, %v4191_v17  ;;  %v4215_v58 = vld [vmem:[#allocation11 + $0x3e0] sm:$0xff] }
 0x707   : > { %11827 = vst [vmem:[#allocation30_spill] sm:$0xff] %v10455_v32  ;;  %v3877_v3 = vmul.f32 %v10455_v32, %v10455_v32  ;;  %v10465_v2 = vadd.f32 %v8330_v53, %v3776_v1  ;;  %v6884_v1 = vcombine.low %v4188_v34, %v4192_v12  ;;  %4883 = vmatprep.subr.bf16.mxu1 %v6883_v42  ;;  %v4212_v17 = vld [vmem:[#allocation11 + $0x3c8] sm:$0xff] }
 0x708   : > { %11828 = vst [vmem:[#allocation67_spill] sm:$0xff] %v10460_v31  ;;  %v3878_v26 = vmul.f32 %v10460_v31, %v10460_v31  ;;  %4884 = vmatpush1.bf16.msra.mxu1 %v6882_v40 }
 0x709   : > { %11829 = vst [vmem:[#allocation59_spill] sm:$0xff] %v10465_v2  ;;  %v3879_v4 = vmul.f32 %v10465_v2, %v10465_v2  ;;  %v3910_v50 = vadd.f32 %v3877_v3, %v3876_v35  ;;  %v6885_v3 = vcombine.high %v4188_v34, %v4192_v12  ;;  %v8343_v34 = vld [vmem:[%s8932_s14 + $0xa0] sm:$0xff] }
 0x70b   : > { %3911 = vadd.xlane.f32.xlu0 %v3910_v50  ;;  %v3780_v8 = vpop.f32.mrb[120].mxu0  ;;  %v3913_v11 = vadd.f32 %v3879_v4, %v3878_v26  ;;  %v4195_v4 = vld [vmem:[#allocation11 + $0x340] sm:$0xff]  ;;  %4996 = vmatprep.subr.bf16.mxu0 %v6885_v3 }
 0x70c   : > { %v10472_v6 = vadd.f32 %v8331_v15, %v3780_v8  ;;  %v3782_v37 = vpop.f32.mrb[121].mxu0  ;;  %v4199_v50 = vld [vmem:[#allocation11 + $0x360] sm:$0xff]  ;;  %v4196_v8 = vld [vmem:[#allocation11 + $0x348] sm:$0xff]  ;;  %4997 = vmatpush1.bf16.msra.mxu0 %v6884_v1 }
 0x70d   : > { %v10475_v41 = vadd.f32 %v8332_v46, %v3782_v37  ;;  %3914 = vadd.xlane.f32.xlu1 %v3913_v11  ;;  %v3784_v55 = vpop.f32.mrb[122].mxu0  ;;  %v8339_v11 = vld [vmem:[%s8932_s14 + $0x80] sm:$0xff]  ;;  %v6891_v46 = vcombine.high %v4195_v4, %v4199_v50 }
 0x70e   : > { %11830 = vst [vmem:[#allocation73_spill] sm:$0xff] %v10472_v6  ;;  %v3880_v61 = vmul.f32 %v10472_v6, %v10472_v6  ;;  %v10480_v33 = vadd.f32 %v8333_v28, %v3784_v55  ;;  %v3786_v43 = vpop.f32.mrb[123].mxu0  ;;  %v4200_v55 = vld [vmem:[#allocation11 + $0x368] sm:$0xff] }
 0x70f   : > { %11831 = vst [vmem:[#allocation31_spill] sm:$0xff] %v10475_v41  ;;  %v3881_v60 = vmul.f32 %v10475_v41, %v10475_v41  ;;  %v10485_v21 = vadd.f32 %v8334_v22, %v3786_v43  ;;  %v6892_v22 = vcombine.low %v4196_v8, %v4200_v55  ;;  %4885 = vmatprep.subr.bf16.mxu1 %v6891_v46  ;;  %v8346_v46 = vld [vmem:[%s8932_s14 + $0xb8] sm:$0xff] }
 0x710   : > { %11832 = vst [vmem:[#allocation74_spill] sm:$0xff] %v10480_v33  ;;  %v3882_v19 = vmul.f32 %v10480_v33, %v10480_v33 }
 0x711   : > { %11833 = vst [vmem:[#allocation76_spill] sm:$0xff] %v10485_v21  ;;  %v3883_v51 = vmul.f32 %v10485_v21, %v10485_v21  ;;  %v3916_v29 = vadd.f32 %v3881_v60, %v3880_v61  ;;  %v8340_v61 = vld [vmem:[%s8932_s14 + $0x88] sm:$0xff]  ;;  %v6890_v60 = vcombine.low %v4195_v4, %v4199_v50  ;;  %v8345_v4 = vld [vmem:[%s8932_s14 + $0xb0] sm:$0xff] }
 0x713   : > { %3917 = vadd.xlane.f32.xlu0 %v3916_v29  ;;  %v3790_v45 = vpop.f32.mrb[124].mxu0  ;;  %v3919_v9 = vadd.f32 %v3883_v51, %v3882_v19  ;;  %v6893_v51 = vcombine.high %v4196_v8, %v4200_v55  ;;  %4886 = vmatpush1.bf16.msra.mxu1 %v6890_v60  ;;  %v10551_v60 = vld [vmem:[#allocation11 + $0x18] sm:$0xff] }
 0x714   : > { %v10492_v30 = vadd.f32 %v8335_v49, %v3790_v45  ;;  %v3792_v27 = vpop.f32.mrb[125].mxu0 }
 0x715   : > { %v10495_v7 = vadd.f32 %v8336_v16, %v3792_v27  ;;  %3920 = vadd.xlane.f32.xlu1 %v3919_v9  ;;  %v3794_v5 = vpop.f32.mrb[126].mxu0  ;;  %v4203_v9 = vld [vmem:[#allocation11 + $0x380] sm:$0xff]  ;;  %4998 = vmatprep.subr.bf16.mxu0 %v6893_v51 }
 0x716   : > { %11834 = vst [vmem:[#allocation65_spill] sm:$0xff] %v10492_v30  ;;  %v3884_v39 = vmul.f32 %v10492_v30, %v10492_v30  ;;  %v10500_v24 = vadd.f32 %v8337_v56, %v3794_v5  ;;  %v3796_v57 = vpop.f32.mrb[127].mxu0  ;;  %v6899_v27 = vcombine.high %v4203_v9, %v4207_v38  ;;  %v6898_v54 = vcombine.low %v4203_v9, %v4207_v38 }
 0x717   : > { %11835 = vst [vmem:[#allocation39_spill] sm:$0xff] %v10495_v7  ;;  %v3885_v13 = vmul.f32 %v10495_v7, %v10495_v7  ;;  %v10505_v47 = vadd.f32 %v8338_v18, %v3796_v57  ;;  %4999 = vmatpush1.bf16.msra.mxu0 %v6892_v22  ;;  %v6901_v56 = vcombine.high %v4204_v25, %v4208_v36  ;;  %v4211_v18 = vld [vmem:[#allocation11 + $0x3c0] sm:$0xff] }
 0x718   : > { %11836 = vst [vmem:[#allocation34_spill] sm:$0xff] %v10500_v24  ;;  %v3886_v14 = vmul.f32 %v10500_v24, %v10500_v24  ;;  %4887 = vmatprep.subr.bf16.mxu1 %v6899_v27  ;;  %v6907_v12 = vcombine.high %v4211_v18, %v4215_v58  ;;  %v6906_v3 = vcombine.low %v4211_v18, %v4215_v58  ;;  %v8350_v58 = vld [vmem:[%s8932_s14 + $0xd8] sm:$0xff] }
 0x719   : > { %11837 = vst [vmem:[#allocation40_spill] sm:$0xff] %v10505_v47  ;;  %v3887_v52 = vmul.f32 %v10505_v47, %v10505_v47  ;;  %v3922_v35 = vadd.f32 %v3885_v13, %v3884_v39  ;;  %v6900_v39 = vcombine.low %v4204_v25, %v4208_v36  ;;  %4888 = vmatpush1.bf16.msra.mxu1 %v6898_v54 }
 0x71a   : > { %5000 = vmatprep.subr.bf16.mxu0 %v6901_v56  ;;  %4889 = vmatprep.subr.bf16.mxu1 %v6907_v12  ;;  %v8349_v56 = vld [vmem:[%s8932_s14 + $0xd0] sm:$0xff] }
 0x71b   : > { %3923 = vadd.xlane.f32.xlu0 %v3922_v35  ;;  %v3800_v53 = vpop.f32.mrb[128].mxu0  ;;  %v3925_v26 = vadd.f32 %v3887_v52, %v3886_v14  ;;  %v4216_v52 = vld [vmem:[#allocation11 + $0x3e8] sm:$0xff]  ;;  %5001 = vmatpush1.bf16.msra.mxu0 %v6900_v39 }
 0x71c   : > { %v10512_v15 = vadd.f32 %v8339_v11, %v3800_v53  ;;  %v3802_v37 = vpop.f32.mrb[129].mxu0  ;;  %v8344_v35 = vld [vmem:[%s8932_s14 + $0xa8] sm:$0xff]  ;;  %v6908_v53 = vcombine.low %v4212_v17, %v4216_v52  ;;  %v6909_v11 = vcombine.high %v4212_v17, %v4216_v52 }
 0x71d   : > { %v10515_v28 = vadd.f32 %v8340_v61, %v3802_v37  ;;  %3926 = vadd.xlane.f32.xlu1 %v3925_v26  ;;  %v3804_v43 = vpop.f32.mrb[130].mxu0  ;;  %4890 = vmatpush1.bf16.msra.mxu1 %v6906_v3  ;;  %v10547_v61 = vld [vmem:[#allocation11 + $0x10] sm:$0xff] }
 0x71e   : > { %11838 = vst [vmem:[#allocation72_spill] sm:$0xff] %v10512_v15  ;;  %v3888_v23 = vmul.f32 %v10512_v15, %v10512_v15  ;;  %v10520_v19 = vadd.f32 %v8341_v48, %v3804_v43  ;;  %v3806_v59 = vpop.f32.mrb[131].mxu0  ;;  %v10549_v43 = vld [vmem:[#allocation11 + $0x30] sm:$0xff]  ;;  %5002 = vmatprep.subr.bf16.mxu0 %v6909_v11  ;;  %v10557_v48 = vld [vmem:[#allocation11 + $0x38] sm:$0xff] }
 0x71f   : > { %11839 = vst [vmem:[#allocation42_spill] sm:$0xff] %v10515_v28  ;;  %v3889_v29 = vmul.f32 %v10515_v28, %v10515_v28  ;;  %v10525_v45 = vadd.f32 %v8342_v20, %v3806_v59  ;;  %5003 = vmatpush1.bf16.msra.mxu0 %v6908_v53  ;;  %v6792_v20 = vcombine.low %v10551_v60, %v10557_v48 }
 0x720   : > { %11840 = vst [vmem:[#allocation37_spill] sm:$0xff] %v10520_v19  ;;  %v3890_v49 = vmul.f32 %v10520_v19, %v10520_v19  ;;  %v6793_v9 = vcombine.high %v10551_v60, %v10557_v48 }
 0x721   : > { %11841 = vst [vmem:[#allocation43_spill] sm:$0xff] %v10525_v45  ;;  %v3891_v16 = vmul.f32 %v10525_v45, %v10525_v45  ;;  %v3928_v5 = vadd.f32 %v3889_v29, %v3888_v23  ;;  %v6791_v23 = vcombine.high %v10547_v61, %v10549_v43  ;;  %v6790_v29 = vcombine.low %v10547_v61, %v10549_v43 }
 0x722   : > { %5198 = vmatprep.subr.bf16.mxu0 %v6793_v9 }
 0x723   : > { %3929 = vadd.xlane.f32.xlu0 %v3928_v5  ;;  %v3810_v57 = vpop.f32.mrb[132].mxu0  ;;  %v3931_v13 = vadd.f32 %v3891_v16, %v3890_v49  ;;  %5085 = vmatprep.subr.bf16.mxu1 %v6791_v23  ;;  %v8347_v49 = vld [vmem:[%s8932_s14 + $0xc0] sm:$0xff]  ;;  %v8348_v16 = vld [vmem:[%s8932_s14 + $0xc8] sm:$0xff] }
 0x724   : > { %v10532_v14 = vadd.f32 %v8343_v34, %v3810_v57  ;;  %v3812_v42 = vpop.f32.mrb[133].mxu0 }
 0x725   : > { %v10535_v40 = vadd.f32 %v8344_v35, %v3812_v42  ;;  %3932 = vadd.xlane.f32.xlu1 %v3931_v13  ;;  %v3814_v1 = vpop.f32.mrb[134].mxu0 }
 0x726   : > { %11842 = vst [vmem:[#allocation78_spill] sm:$0xff] %v10532_v14  ;;  %v3892_v26 = vmul.f32 %v10532_v14, %v10532_v14  ;;  %v10540_v50 = vadd.f32 %v8345_v4, %v3814_v1  ;;  %v3816_v8 = vpop.f32.mrb[135].mxu0  ;;  %v8351_v1 = vld [vmem:[%s8932_s14 + $0xe0] sm:$0xff] }
 0x727   : > { %11843 = vst [vmem:[#allocation38_spill] sm:$0xff] %v10535_v40  ;;  %v3893_v37 = vmul.f32 %v10535_v40, %v10535_v40  ;;  %v10545_v55 = vadd.f32 %v8346_v46, %v3816_v8 }
 0x728   : > { %11844 = vst [vmem:[#allocation47_spill] sm:$0xff] %v10540_v50  ;;  %v3894_v22 = vmul.f32 %v10540_v50, %v10540_v50 }
 0x729   : > { %11845 = vst [vmem:[#allocation48_spill] sm:$0xff] %v10545_v55  ;;  %v3895_v59 = vmul.f32 %v10545_v55, %v10545_v55  ;;  %v3934_v51 = vadd.f32 %v3893_v37, %v3892_v26  ;;  %v8352_v26 = vld [vmem:[%s8932_s14 + $0xe8] sm:$0xff]  ;;  %v8353_v37 = vld [vmem:[%s8932_s14 + $0xf0] sm:$0xff] }
 0x72b   : > { %3935 = vadd.xlane.f32.xlu0 %v3934_v51  ;;  %v3820_v38 = vpop.f32.mrb[136].mxu0  ;;  %v3937_v25 = vadd.f32 %v3895_v59, %v3894_v22  ;;  %v8354_v59 = vld [vmem:[%s8932_s14 + $0xf8] sm:$0xff]  ;;  %s8557_s14 = scalar_lea.vmem %s8556_s17, 8192 }
 0x72c   : > { %v10568_v27 = vadd.f32 %v8347_v49, %v3820_v38  ;;  %v3822_v36 = vpop.f32.mrb[137].mxu0  ;;  %p8559_p5 = scmp.lt.s32.totalorder %s8557_s14, %s8551_s21 }
 0x72d   : > { %v10571_v5 = vadd.f32 %v8348_v16, %v3822_v36  ;;  %3938 = vadd.xlane.f32.xlu1 %v3937_v25  ;;  %v3824_v54 = vpop.f32.mrb[138].mxu0 }
 0x72e   : > { %11846 = vst [vmem:[#allocation52_spill] sm:$0xff] %v10568_v27  ;;  %v3896_v39 = vmul.f32 %v10568_v27, %v10568_v27  ;;  %v10576_v57 = vadd.f32 %v8349_v56, %v3824_v54  ;;  %v3826_v13 = vpop.f32.mrb[139].mxu0  ;;  %p8560_p0 = por %p8559_p5, %p8558_p11 }
 0x72f   : > { %11847 = vst [vmem:[#allocation53_spill] sm:$0xff] %v10571_v5  ;;  %v3897_v18 = vmul.f32 %v10571_v5, %v10571_v5  ;;  %v10581_v17 = vadd.f32 %v8350_v58, %v3826_v13 }
 0x730   : > { %11848 = vst [vmem:[#allocation57_spill] sm:$0xff] %v10576_v57  ;;  %v3898_v34 = vmul.f32 %v10576_v57, %v10576_v57  ;;  %p8561_p6 = pnand %p8560_p0, %p8554_p8 }
 0x731   : > { %11849 = vst [vmem:[#allocation58_spill] sm:$0xff] %v10581_v17  ;;  %v3899_v42 = vmul.f32 %v10581_v17, %v10581_v17  ;;  %v3940_v12 = vadd.f32 %v3897_v18, %v3896_v39 }
 0x733   : > { %3941 = vadd.xlane.f32.xlu0 %v3940_v12  ;;  %v3830_v52 = vpop.f32.mrb[140].mxu0  ;;  %v3943_v35 = vadd.f32 %v3899_v42, %v3898_v34 }
 0x734   : > { %v10588_v3 = vadd.f32 %v8351_v1, %v3830_v52  ;;  %v3832_v53 = vpop.f32.mrb[141].mxu0 }
 0x735   : > { %v10591_v4 = vadd.f32 %v8352_v26, %v3832_v53  ;;  %3944 = vadd.xlane.f32.xlu1 %v3943_v35  ;;  %v3834_v8 = vpop.f32.mrb[142].mxu0  ;;  %v3871_v35 = vld [vmem:[%s11490_s4] sm:$0x3] }
 0x736   : > { %11850 = vst [vmem:[#allocation62_spill] sm:$0xff] %v10588_v3  ;;  %v3900_v11 = vmul.f32 %v10588_v3, %v10588_v3  ;;  %v10596_v46 = vadd.f32 %v8353_v37, %v3834_v8  ;;  %v3836_v22 = vpop.f32.mrb[143].mxu0 }
 0x737   : > { %11851 = vst [vmem:[#allocation63_spill] sm:$0xff] %v10591_v4  ;;  %v3901_v23 = vmul.f32 %v10591_v4, %v10591_v4  ;;  %v10601_v51 = vadd.f32 %v8354_v59, %v3836_v22 }
 0x738   : > { %11852 = vst [vmem:[#allocation68_spill] sm:$0xff] %v10596_v46  ;;  %v3902_v9 = vmul.f32 %v10596_v46, %v10596_v46 }
 0x739   : > { %11853 = vst [vmem:[#allocation70_spill] sm:$0xff] %v10601_v51  ;;  %v3903_v38 = vmul.f32 %v10601_v51, %v10601_v51  ;;  %v3946_v25 = vadd.f32 %v3901_v23, %v3900_v11  ;;  %v11854_v11 = vld [vmem:[#allocation26_spill] sm:$0xff] }
 0x73a   : > { %v11855_v37 = vsub.s32 0, %v11854_v11  ;;  %v11856_v23 = vsub.s32 1, %v11854_v11 }
 0x73b   : > { %3947 = vadd.xlane.f32.xlu0 %v3946_v25  ;;  %v3949_v49 = vadd.f32 %v3903_v38, %v3902_v9 }
 0x73c   : > { %v10614_v22 = vrot.slane %v3871_v35, %v11855_v37  ;;  %v10618_v59 = vrot.slane %v3871_v35, %v11856_v23 }
 0x73d   : > { %3950 = vadd.xlane.f32.xlu1 %v3949_v49 }
 0x790   : > { %v3906_v36 = vpop.xlane.xlu0 %3905 }
 0x791   : > { %v3952_v16 = vmul.f32 0.00390625, %v3906_v36 }
 0x792   : > { %v3909_v54 = vpop.xlane.xlu1 %3908 }
 0x793   : > { %v3968_v39 = vadd.f32 1e-06, %v3952_v16  ;;  %v3953_v56 = vmul.f32 0.00390625, %v3909_v54 }
 0x795   : > { %7939 = vrsqrt.f32 %v3968_v39  ;;  %v3969_v13 = vadd.f32 1e-06, %v3953_v56  ;;  %v4101_v39 = vld [vmem:[#allocation11 + $0x50] sm:$0xff] }
 0x797   : > { %7941 = vrsqrt.f32 %v3969_v13 }
 0x798   : > { %v3912_v18 = vpop.xlane.xlu0 %3911 }
 0x799   : > { %v3954_v58 = vmul.f32 0.00390625, %v3912_v18 }
 0x79a   : > { %v3915_v34 = vpop.xlane.xlu1 %3914 }
 0x79b   : > { %v3970_v42 = vadd.f32 1e-06, %v3954_v58  ;;  %v3955_v12 = vmul.f32 0.00390625, %v3915_v34  ;;  %v4105_v34 = vld [vmem:[#allocation11 + $0x70] sm:$0xff] }
 0x79c   : > { %v6799_v11 = vcombine.high %v4101_v39, %v4105_v34 }
 0x79d   : > { %7943 = vrsqrt.f32 %v3970_v42  ;;  %v3971_v52 = vadd.f32 1e-06, %v3955_v12  ;;  %v4102_v42 = vld [vmem:[#allocation11 + $0x58] sm:$0xff] }
 0x79e   : > { %v4106_v12 = vld [vmem:[#allocation11 + $0x78] sm:$0xff] }
 0x79f   : > { %v7940_v1 = vpop.eup %7939  ;;  %7945 = vrsqrt.f32 %v3971_v52  ;;  %v6801_v37 = vcombine.high %v4102_v42, %v4106_v12 }
 0x7a0   : > { %v4000_v53 = vmul.f32 %v7940_v1, %v10432_v44  ;;  %v3918_v26 = vpop.xlane.xlu0 %3917  ;;  %v4001_v8 = vmul.f32 %v7940_v1, %v10435_v0 }
 0x7a1   : > { %v7942_v9 = vpop.eup %7941  ;;  %v3956_v38 = vmul.f32 0.00390625, %v3918_v26 }
 0x7a2   : > { %v4002_v25 = vmul.f32 %v7942_v9, %v10440_v62  ;;  %v3921_v49 = vpop.xlane.xlu1 %3920  ;;  %v4003_v36 = vmul.f32 %v7942_v9, %v10445_v10  ;;  %v4044_v56 = vmul.f32 %v10618_v59, %v4001_v8  ;;  %v4043_v18 = vmul.f32 %v10614_v22, %v4000_v53  ;;  %v10630_v8 = vld [vmem:[#allocation11 + $0x90] sm:$0xff] }
 0x7a3   : > { %v3972_v16 = vadd.f32 1e-06, %v3956_v38  ;;  %v3957_v54 = vmul.f32 0.00390625, %v3921_v49  ;;  %v4113_v38 = vld [vmem:[#allocation11 + $0xb0] sm:$0xff]  ;;  %v4114_v49 = vld [vmem:[#allocation11 + $0xb8] sm:$0xff] }
 0x7a4   : > { %v4046_v13 = vmul.f32 %v10618_v59, %v4003_v36  ;;  %v4045_v58 = vmul.f32 %v10614_v22, %v4002_v25  ;;  %v4110_v25 = vld [vmem:[#allocation11 + $0x98] sm:$0xff] }
 0x7a5   : > { %7947 = vrsqrt.f32 %v3972_v16  ;;  %v3973_v52 = vadd.f32 1e-06, %v3957_v54  ;;  %v6798_v54 = vcombine.low %v4101_v39, %v4105_v34  ;;  %v6807_v39 = vcombine.high %v10630_v8, %v4113_v38 }
 0x7a6   : > { %v10626_v35 = vpack.c.bf16 %v4046_v13, %v4044_v56  ;;  %v10628_v1 = vpack.c.bf16 %v4045_v58, %v4043_v18  ;;  %v6800_v13 = vcombine.low %v4102_v42, %v4106_v12  ;;  %v6809_v34 = vcombine.high %v4110_v25, %v4114_v49  ;;  %v4122_v42 = vld [vmem:[#allocation11 + $0xf8] sm:$0xff] }
 0x7a7   : > { %v7944_v26 = vpop.eup %7943  ;;  %7949 = vrsqrt.f32 %v3973_v52 }
 0x7a8   : > { %4891 = vmatprep.mubr.bf16.mxu1 %v10626_v35  ;;  %5004 = vmatprep.mubr.bf16.mxu0 %v10626_v35  ;;  %v3924_v53 = vpop.xlane.xlu0 %3923  ;;  %v4005_v23 = vmul.f32 %v7944_v26, %v10455_v32  ;;  %v4004_v9 = vmul.f32 %v7944_v26, %v10452_v63 }
 0x7a9   : > { %v7946_v36 = vpop.eup %7945  ;;  %v3958_v16 = vmul.f32 0.00390625, %v3924_v53  ;;  %4892 = vmatmul.mubr.bf16.vlgmr.msra.gmra.mrb[112].mxu1 %v10628_v1  ;;  %5005 = vmatmul.mubr.bf16.vlgmr.msra.gmra.mrb[144].mxu0 %v10628_v1  ;;  %v4117_v53 = vld [vmem:[#allocation11 + $0xd0] sm:$0xff] }
 0x7aa   : > { %v3927_v56 = vpop.xlane.xlu1 %3926  ;;  %5086 = vmatpush1.bf16.msra.mxu1 %v6790_v29  ;;  %5199 = vmatpush1.bf16.msra.mxu0 %v6792_v20  ;;  %v4007_v18 = vmul.f32 %v7946_v36, %v10465_v2  ;;  %v4006_v58 = vmul.f32 %v7946_v36, %v10460_v31  ;;  %v4048_v61 = vmul.f32 %v10618_v59, %v4005_v23  ;;  %v4121_v29 = vld [vmem:[#allocation11 + $0xf0] sm:$0xff]  ;;  %v4118_v20 = vld [vmem:[#allocation11 + $0xd8] sm:$0xff] }
 0x7ab   : > { %v3974_v52 = vadd.f32 1e-06, %v3958_v16  ;;  %v3959_v26 = vmul.f32 0.00390625, %v3927_v56  ;;  %5087 = vmatprep.subr.bf16.mxu1 %v6799_v11  ;;  %5200 = vmatprep.subr.bf16.mxu0 %v6801_v37  ;;  %v4047_v60 = vmul.f32 %v10614_v22, %v4004_v9  ;;  %v6806_v11 = vcombine.low %v10630_v8, %v4113_v38 }
 0x7ac   : > { %v4050_v43 = vmul.f32 %v10618_v59, %v4007_v18  ;;  %v4049_v48 = vmul.f32 %v10614_v22, %v4006_v58  ;;  %v6808_v23 = vcombine.low %v4110_v25, %v4114_v49  ;;  %v6815_v9 = vcombine.high %v4117_v53, %v4121_v29  ;;  %v10656_v18 = vld [vmem:[#allocation11 + $0x110] sm:$0xff]  ;;  %v4126_v58 = vld [vmem:[#allocation11 + $0x118] sm:$0xff] }
 0x7ad   : > { %7951 = vrsqrt.f32 %v3974_v52  ;;  %v3975_v12 = vadd.f32 1e-06, %v3959_v26  ;;  %v6817_v56 = vcombine.high %v4118_v20, %v4122_v42  ;;  %v4130_v25 = vld [vmem:[#allocation11 + $0x138] sm:$0xff]  ;;  %v6814_v26 = vcombine.low %v4117_v53, %v4121_v29 }
 0x7ae   : > { %5088 = vmatpush1.bf16.msra.mxu1 %v6798_v54  ;;  %5201 = vmatpush1.bf16.msra.mxu0 %v6800_v13  ;;  %v10652_v37 = vpack.c.bf16 %v4050_v43, %v4048_v61  ;;  %v10654_v36 = vpack.c.bf16 %v4049_v48, %v4047_v60  ;;  %v4129_v13 = vld [vmem:[#allocation11 + $0x130] sm:$0xff] }
 0x7af   : > { %v7948_v16 = vpop.eup %7947  ;;  %7953 = vrsqrt.f32 %v3975_v12  ;;  %5089 = vmatprep.subr.bf16.mxu1 %v6807_v39  ;;  %5202 = vmatprep.subr.bf16.mxu0 %v6809_v34  ;;  %v6816_v34 = vcombine.low %v4118_v20, %v4122_v42  ;;  %v6823_v12 = vcombine.high %v10656_v18, %v4129_v13  ;;  %v4137_v42 = vld [vmem:[#allocation11 + $0x170] sm:$0xff] }
 0x7b0   : > { %4901 = vmatprep.mubr.bf16.mxu1 %v10652_v37  ;;  %5014 = vmatprep.mubr.bf16.mxu0 %v10652_v37  ;;  %v3930_v8 = vpop.xlane.xlu0 %3929  ;;  %v4009_v38 = vmul.f32 %v7948_v16, %v10475_v41  ;;  %v4008_v54 = vmul.f32 %v7948_v16, %v10472_v6  ;;  %v6825_v16 = vcombine.high %v4126_v58, %v4130_v25 }
 0x7b1   : > { %v7950_v49 = vpop.eup %7949  ;;  %v3960_v52 = vmul.f32 0.00390625, %v3930_v8  ;;  %4902 = vmatmul.mubr.bf16.gmra.mrb[116].mxu1 %v10654_v36  ;;  %5015 = vmatmul.mubr.bf16.gmra.mrb[148].mxu0 %v10654_v36  ;;  %v4133_v8 = vld [vmem:[#allocation11 + $0x150] sm:$0xff] }
 0x7b2   : > { %v3933_v39 = vpop.xlane.xlu1 %3932  ;;  %5090 = vmatpush1.bf16.msra.mxu1 %v6806_v11  ;;  %5203 = vmatpush1.bf16.msra.mxu0 %v6808_v23  ;;  %v4011_v61 = vmul.f32 %v7950_v49, %v10485_v21  ;;  %v4010_v43 = vmul.f32 %v7950_v49, %v10480_v33  ;;  %v4052_v41 = vmul.f32 %v10618_v59, %v4009_v38  ;;  %v4134_v11 = vld [vmem:[#allocation11 + $0x158] sm:$0xff] }
 0x7b3   : > { %v3976_v60 = vadd.f32 1e-06, %v3960_v52  ;;  %v3961_v48 = vmul.f32 0.00390625, %v3933_v39  ;;  %5091 = vmatprep.subr.bf16.mxu1 %v6815_v9  ;;  %5204 = vmatprep.subr.bf16.mxu0 %v6817_v56  ;;  %v4051_v29 = vmul.f32 %v10614_v22, %v4008_v54  ;;  %v4138_v23 = vld [vmem:[#allocation11 + $0x178] sm:$0xff]  ;;  %v6822_v9 = vcombine.low %v10656_v18, %v4129_v13 }
 0x7b4   : > { %v4054_v53 = vmul.f32 %v10618_v59, %v4011_v61  ;;  %v4053_v20 = vmul.f32 %v10614_v22, %v4010_v43  ;;  %v6824_v38 = vcombine.low %v4126_v58, %v4130_v25  ;;  %v6831_v54 = vcombine.high %v4133_v8, %v4137_v42  ;;  %v10676_v43 = vld [vmem:[#allocation11 + $0x190] sm:$0xff]  ;;  %v4146_v58 = vld [vmem:[#allocation11 + $0x1b8] sm:$0xff] }
 0x7b5   : > { %7955 = vrsqrt.f32 %v3976_v60  ;;  %v3977_v49 = vadd.f32 1e-06, %v3961_v48  ;;  %v6833_v61 = vcombine.high %v4134_v11, %v4138_v23  ;;  %v6830_v48 = vcombine.low %v4133_v8, %v4137_v42 }
 0x7b6   : > { %5092 = vmatpush1.bf16.msra.mxu1 %v6814_v26  ;;  %5205 = vmatpush1.bf16.msra.mxu0 %v6816_v34  ;;  %v10672_v56 = vpack.c.bf16 %v4054_v53, %v4052_v41  ;;  %v10674_v52 = vpack.c.bf16 %v4053_v20, %v4051_v29  ;;  %v4145_v26 = vld [vmem:[#allocation11 + $0x1b0] sm:$0xff]  ;;  %v4142_v34 = vld [vmem:[#allocation11 + $0x198] sm:$0xff] }
 0x7b7   : > { %v7952_v39 = vpop.eup %7951  ;;  %7957 = vrsqrt.f32 %v3977_v49  ;;  %5093 = vmatprep.subr.bf16.mxu1 %v6823_v12  ;;  %5206 = vmatprep.subr.bf16.mxu0 %v6825_v16  ;;  %v6832_v16 = vcombine.low %v4134_v11, %v4138_v23  ;;  %v4153_v23 = vld [vmem:[#allocation11 + $0x1f0] sm:$0xff] }
 0x7b8   : > { %4911 = vmatprep.mubr.bf16.mxu1 %v10672_v56  ;;  %5024 = vmatprep.mubr.bf16.mxu0 %v10672_v56  ;;  %v3936_v18 = vpop.xlane.xlu0 %3935  ;;  %v4013_v13 = vmul.f32 %v7952_v39, %v10495_v7  ;;  %v4012_v41 = vmul.f32 %v7952_v39, %v10492_v30  ;;  %v6839_v39 = vcombine.high %v10676_v43, %v4145_v26  ;;  %v4149_v7 = vld [vmem:[#allocation11 + $0x1d0] sm:$0xff] }
 0x7b9   : > { %v7954_v25 = vpop.eup %7953  ;;  %v3962_v60 = vmul.f32 0.00390625, %v3936_v18  ;;  %4912 = vmatmul.mubr.bf16.gmra.mrb[120].mxu1 %v10674_v52  ;;  %5025 = vmatmul.mubr.bf16.gmra.mrb[152].mxu0 %v10674_v52  ;;  %v6841_v18 = vcombine.high %v4142_v34, %v4146_v58 }
 0x7ba   : > { %v3939_v12 = vpop.xlane.xlu1 %3938  ;;  %5094 = vmatpush1.bf16.msra.mxu1 %v6822_v9  ;;  %5207 = vmatpush1.bf16.msra.mxu0 %v6824_v38  ;;  %v4015_v53 = vmul.f32 %v7954_v25, %v10505_v47  ;;  %v4014_v29 = vmul.f32 %v7954_v25, %v10500_v24  ;;  %v4056_v30 = vmul.f32 %v10618_v59, %v4013_v13  ;;  %v4150_v9 = vld [vmem:[#allocation11 + $0x1d8] sm:$0xff] }
 0x7bb   : > { %v3978_v20 = vadd.f32 1e-06, %v3962_v60  ;;  %v3963_v49 = vmul.f32 0.00390625, %v3939_v12  ;;  %5095 = vmatprep.subr.bf16.mxu1 %v6831_v54  ;;  %5208 = vmatprep.subr.bf16.mxu0 %v6833_v61  ;;  %v4055_v42 = vmul.f32 %v10614_v22, %v4012_v41  ;;  %v4154_v38 = vld [vmem:[#allocation11 + $0x1f8] sm:$0xff]  ;;  %v6838_v54 = vcombine.low %v10676_v43, %v4145_v26 }
 0x7bc   : > { %v4058_v8 = vmul.f32 %v10618_v59, %v4015_v53  ;;  %v4057_v11 = vmul.f32 %v10614_v22, %v4014_v29  ;;  %v6840_v13 = vcombine.low %v4142_v34, %v4146_v58  ;;  %v6847_v41 = vcombine.high %v4149_v7, %v4153_v23  ;;  %v10696_v29 = vld [vmem:[#allocation11 + $0x210] sm:$0xff]  ;;  %v4162_v34 = vld [vmem:[#allocation11 + $0x238] sm:$0xff] }
 0x7bd   : > { %7959 = vrsqrt.f32 %v3978_v20  ;;  %v3979_v25 = vadd.f32 1e-06, %v3963_v49  ;;  %v6849_v53 = vcombine.high %v4150_v9, %v4154_v38  ;;  %v6846_v49 = vcombine.low %v4149_v7, %v4153_v23 }
 0x7be   : > { %5096 = vmatpush1.bf16.msra.mxu1 %v6830_v48  ;;  %5209 = vmatpush1.bf16.msra.mxu0 %v6832_v16  ;;  %v10692_v61 = vpack.c.bf16 %v4058_v8, %v4056_v30  ;;  %v10694_v60 = vpack.c.bf16 %v4057_v11, %v4055_v42  ;;  %v4161_v48 = vld [vmem:[#allocation11 + $0x230] sm:$0xff]  ;;  %v4158_v16 = vld [vmem:[#allocation11 + $0x218] sm:$0xff] }
 0x7bf   : > { %v7956_v12 = vpop.eup %7955  ;;  %7961 = vrsqrt.f32 %v3979_v25  ;;  %5097 = vmatprep.subr.bf16.mxu1 %v6839_v39  ;;  %5210 = vmatprep.subr.bf16.mxu0 %v6841_v18  ;;  %v6848_v18 = vcombine.low %v4150_v9, %v4154_v38  ;;  %v4169_v38 = vld [vmem:[#allocation11 + $0x270] sm:$0xff] }
 0x7c0   : > { %4921 = vmatprep.mubr.bf16.mxu1 %v10692_v61  ;;  %5034 = vmatprep.mubr.bf16.mxu0 %v10692_v61  ;;  %v3942_v43 = vpop.xlane.xlu0 %3941  ;;  %v4017_v26 = vmul.f32 %v7956_v12, %v10515_v28  ;;  %v4016_v30 = vmul.f32 %v7956_v12, %v10512_v15  ;;  %v6855_v12 = vcombine.high %v10696_v29, %v4161_v48  ;;  %v4165_v28 = vld [vmem:[#allocation11 + $0x250] sm:$0xff] }
 0x7c1   : > { %v7958_v58 = vpop.eup %7957  ;;  %v3964_v20 = vmul.f32 0.00390625, %v3942_v43  ;;  %4922 = vmatmul.mubr.bf16.gmra.mrb[124].mxu1 %v10694_v60  ;;  %5035 = vmatmul.mubr.bf16.gmra.mrb[156].mxu0 %v10694_v60  ;;  %v6857_v43 = vcombine.high %v4158_v16, %v4162_v34 }
 0x7c2   : > { %v3945_v39 = vpop.xlane.xlu1 %3944  ;;  %5098 = vmatpush1.bf16.msra.mxu1 %v6838_v54  ;;  %5211 = vmatpush1.bf16.msra.mxu0 %v6840_v13  ;;  %v4019_v8 = vmul.f32 %v7958_v58, %v10525_v45  ;;  %v4018_v42 = vmul.f32 %v7958_v58, %v10520_v19  ;;  %v4060_v15 = vmul.f32 %v10618_v59, %v4017_v26  ;;  %v4166_v54 = vld [vmem:[#allocation11 + $0x258] sm:$0xff] }
 0x7c3   : > { %v3980_v11 = vadd.f32 1e-06, %v3964_v20  ;;  %v3965_v25 = vmul.f32 0.00390625, %v3945_v39  ;;  %5099 = vmatprep.subr.bf16.mxu1 %v6847_v41  ;;  %5212 = vmatprep.subr.bf16.mxu0 %v6849_v53  ;;  %v4059_v23 = vmul.f32 %v10614_v22, %v4016_v30  ;;  %v4170_v13 = vld [vmem:[#allocation11 + $0x278] sm:$0xff]  ;;  %v6854_v41 = vcombine.low %v10696_v29, %v4161_v48  ;;  %v4177_v48 = vld [vmem:[#allocation11 + $0x2b0] sm:$0xff] }
 0x7c4   : > { %v4062_v7 = vmul.f32 %v10618_v59, %v4019_v8  ;;  %v4061_v9 = vmul.f32 %v10614_v22, %v4018_v42  ;;  %v6856_v26 = vcombine.low %v4158_v16, %v4162_v34  ;;  %v6863_v30 = vcombine.high %v4165_v28, %v4169_v38  ;;  %v4173_v42 = vld [vmem:[#allocation11 + $0x290] sm:$0xff] }
 0x7c5   : > { %7963 = vrsqrt.f32 %v3980_v11  ;;  %v3981_v58 = vadd.f32 1e-06, %v3965_v25  ;;  %v6865_v8 = vcombine.high %v4166_v54, %v4170_v13  ;;  %v6862_v25 = vcombine.low %v4165_v28, %v4169_v38 }
 0x7c6   : > { %5100 = vmatpush1.bf16.msra.mxu1 %v6846_v49  ;;  %5213 = vmatpush1.bf16.msra.mxu0 %v6848_v18  ;;  %v10712_v53 = vpack.c.bf16 %v4062_v7, %v4060_v15  ;;  %v10714_v20 = vpack.c.bf16 %v4061_v9, %v4059_v23  ;;  %v4174_v49 = vld [vmem:[#allocation11 + $0x298] sm:$0xff] }
 0x7c7   : > { %v7960_v39 = vpop.eup %7959  ;;  %7965 = vrsqrt.f32 %v3981_v58  ;;  %5101 = vmatprep.subr.bf16.mxu1 %v6855_v12  ;;  %5214 = vmatprep.subr.bf16.mxu0 %v6857_v43  ;;  %v4178_v18 = vld [vmem:[#allocation11 + $0x2b8] sm:$0xff]  ;;  %v6864_v43 = vcombine.low %v4166_v54, %v4170_v13  ;;  %v4185_v54 = vld [vmem:[#allocation11 + $0x2f0] sm:$0xff] }
 0x7c8   : > { %4931 = vmatprep.mubr.bf16.mxu1 %v10712_v53  ;;  %5044 = vmatprep.mubr.bf16.mxu0 %v10712_v53  ;;  %v3948_v11 = vpop.xlane.xlu0 %3947  ;;  %v4021_v29 = vmul.f32 %v7960_v39, %v10535_v40  ;;  %v4020_v15 = vmul.f32 %v7960_v39, %v10532_v14  ;;  %v6871_v39 = vcombine.high %v4173_v42, %v4177_v48  ;;  %v4182_v13 = vld [vmem:[#allocation11 + $0x2d8] sm:$0xff] }
 0x7c9   : > { %v7962_v16 = vpop.eup %7961  ;;  %v3966_v34 = vmul.f32 0.00390625, %v3948_v11  ;;  %4932 = vmatmul.mubr.bf16.gmra.mrb[128].mxu1 %v10714_v20  ;;  %5045 = vmatmul.mubr.bf16.gmra.mrb[160].mxu0 %v10714_v20  ;;  %v6873_v40 = vcombine.high %v4174_v49, %v4178_v18  ;;  %v4181_v11 = vld [vmem:[#allocation11 + $0x2d0] sm:$0xff] }
 0x7ca   : > { %v3951_v12 = vpop.xlane.xlu1 %3950  ;;  %5102 = vmatpush1.bf16.msra.mxu1 %v6854_v41  ;;  %5215 = vmatpush1.bf16.msra.mxu0 %v6856_v26  ;;  %v4023_v7 = vmul.f32 %v7962_v16, %v10545_v55  ;;  %v4022_v23 = vmul.f32 %v7962_v16, %v10540_v50  ;;  %v4064_v14 = vmul.f32 %v10618_v59, %v4021_v29  ;;  %v4186_v41 = vld [vmem:[#allocation11 + $0x2f8] sm:$0xff] }
 0x7cb   : > { %v3982_v9 = vadd.f32 1e-06, %v3966_v34  ;;  %v3967_v58 = vmul.f32 0.00390625, %v3951_v12  ;;  %5103 = vmatprep.subr.bf16.mxu1 %v6863_v30  ;;  %5216 = vmatprep.subr.bf16.mxu0 %v6865_v8  ;;  %v4063_v28 = vmul.f32 %v10614_v22, %v4020_v15  ;;  %v6870_v16 = vcombine.low %v4173_v42, %v4177_v48 }
 0x7cc   : > { %v4066_v45 = vmul.f32 %v10618_v59, %v4023_v7  ;;  %v4065_v38 = vmul.f32 %v10614_v22, %v4022_v23  ;;  %v6872_v34 = vcombine.low %v4174_v49, %v4178_v18  ;;  %v6879_v15 = vcombine.high %v4181_v11, %v4185_v54  ;;  %v4189_v7 = vld [vmem:[#allocation11 + $0x310] sm:$0xff] }
 0x7cd   : > { %7967 = vrsqrt.f32 %v3982_v9  ;;  %v3983_v26 = vadd.f32 1e-06, %v3967_v58  ;;  %v6881_v12 = vcombine.high %v4182_v13, %v4186_v41  ;;  %v6880_v49 = vcombine.low %v4182_v13, %v4186_v41  ;;  %v4202_v13 = vld [vmem:[#allocation11 + $0x378] sm:$0xff] }
 0x7ce   : > { %5104 = vmatpush1.bf16.msra.mxu1 %v6862_v25  ;;  %5217 = vmatpush1.bf16.msra.mxu0 %v6864_v43  ;;  %v10728_v30 = vpack.c.bf16 %v4066_v45, %v4064_v14  ;;  %v10730_v8 = vpack.c.bf16 %v4065_v38, %v4063_v28  ;;  %v4193_v45 = vld [vmem:[#allocation11 + $0x330] sm:$0xff]  ;;  %v4190_v14 = vld [vmem:[#allocation11 + $0x318] sm:$0xff] }
 0x7cf   : > { %v7964_v29 = vpop.eup %7963  ;;  %7969 = vrsqrt.f32 %v3983_v26  ;;  %5105 = vmatprep.subr.bf16.mxu1 %v6871_v39  ;;  %5218 = vmatprep.subr.bf16.mxu0 %v6873_v40  ;;  %v4194_v25 = vld [vmem:[#allocation11 + $0x338] sm:$0xff]  ;;  %v6878_v40 = vcombine.low %v4181_v11, %v4185_v54  ;;  %v6887_v9 = vcombine.high %v4189_v7, %v4193_v45  ;;  %v4197_v39 = vld [vmem:[#allocation11 + $0x350] sm:$0xff]  ;;  %v6886_v41 = vcombine.low %v4189_v7, %v4193_v45 }
 0x7d0   : > { %4941 = vmatprep.mubr.bf16.mxu1 %v10728_v30  ;;  %5054 = vmatprep.mubr.bf16.mxu0 %v10728_v30  ;;  %v4025_v42 = vmul.f32 %v7964_v29, %v10571_v5  ;;  %v4024_v48 = vmul.f32 %v7964_v29, %v10568_v27  ;;  %v6889_v58 = vcombine.high %v4190_v14, %v4194_v25  ;;  %v4201_v54 = vld [vmem:[#allocation11 + $0x370] sm:$0xff] }
 0x7d1   : > { %v7966_v43 = vpop.eup %7965  ;;  %4942 = vmatmul.mubr.bf16.gmra.mrb[132].mxu1 %v10730_v8  ;;  %5055 = vmatmul.mubr.bf16.gmra.mrb[164].mxu0 %v10730_v8  ;;  %v4209_v45 = vld [vmem:[#allocation11 + $0x3b0] sm:$0xff] }
 0x7d2   : > { %5106 = vmatpush1.bf16.msra.mxu1 %v6870_v16  ;;  %5219 = vmatpush1.bf16.msra.mxu0 %v6872_v34  ;;  %v4027_v18 = vmul.f32 %v7966_v43, %v10581_v17  ;;  %v4026_v23 = vmul.f32 %v7966_v43, %v10576_v57  ;;  %v4068_v28 = vmul.f32 %v10618_v59, %v4025_v42  ;;  %v4198_v16 = vld [vmem:[#allocation11 + $0x358] sm:$0xff] }
 0x7d3   : > { %5107 = vmatprep.subr.bf16.mxu1 %v6879_v15  ;;  %5220 = vmatprep.subr.bf16.mxu0 %v6881_v12  ;;  %v4067_v26 = vmul.f32 %v10614_v22, %v4024_v48  ;;  %v6888_v15 = vcombine.low %v4190_v14, %v4194_v25  ;;  %v6895_v42 = vcombine.high %v4197_v39, %v4201_v54 }
 0x7d4   : > { %v4070_v38 = vmul.f32 %v10618_v59, %v4027_v18  ;;  %v4069_v11 = vmul.f32 %v10614_v22, %v4026_v23  ;;  %v6897_v43 = vcombine.high %v4198_v16, %v4202_v13  ;;  %v4205_v18 = vld [vmem:[#allocation11 + $0x390] sm:$0xff]  ;;  %v6894_v14 = vcombine.low %v4197_v39, %v4201_v54 }
 0x7d5   : > { %v6896_v25 = vcombine.low %v4198_v16, %v4202_v13  ;;  %v4213_v39 = vld [vmem:[#allocation11 + $0x3d0] sm:$0xff]  ;;  %v4218_v16 = vld [vmem:[#allocation11 + $0x3f8] sm:$0xff] }
 0x7d6   : > { %5108 = vmatpush1.bf16.msra.mxu1 %v6878_v40  ;;  %5221 = vmatpush1.bf16.msra.mxu0 %v6880_v49  ;;  %v10744_v34 = vpack.c.bf16 %v4070_v38, %v4068_v28  ;;  %v10746_v29 = vpack.c.bf16 %v4069_v11, %v4067_v26  ;;  %v4206_v40 = vld [vmem:[#allocation11 + $0x398] sm:$0xff]  ;;  %v6903_v28 = vcombine.high %v4205_v18, %v4209_v45  ;;  %v4217_v54 = vld [vmem:[#allocation11 + $0x3f0] sm:$0xff] }
 0x7d7   : > { %v7968_v12 = vpop.eup %7967  ;;  %5109 = vmatprep.subr.bf16.mxu1 %v6887_v9  ;;  %5222 = vmatprep.subr.bf16.mxu0 %v6889_v58  ;;  %v4210_v49 = vld [vmem:[#allocation11 + $0x3b8] sm:$0xff] }
 0x7d8   : > { %4951 = vmatprep.mubr.bf16.mxu1 %v10744_v34  ;;  %5064 = vmatprep.mubr.bf16.mxu0 %v10744_v34  ;;  %v4029_v48 = vmul.f32 %v7968_v12, %v10591_v4  ;;  %v4028_v7 = vmul.f32 %v7968_v12, %v10588_v3  ;;  %v6905_v38 = vcombine.high %v4206_v40, %v4210_v49 }
 0x7d9   : > { %v7970_v23 = vpop.eup %7969  ;;  %4952 = vmatmul.mubr.bf16.gmra.mrb[136].mxu1 %v10746_v29  ;;  %5065 = vmatmul.mubr.bf16.gmra.mrb[168].mxu0 %v10746_v29 }
 0x7da   : > { %5110 = vmatpush1.bf16.msra.mxu1 %v6886_v41  ;;  %5223 = vmatpush1.bf16.msra.mxu0 %v6888_v15  ;;  %v4031_v9 = vmul.f32 %v7970_v23, %v10601_v51  ;;  %v4030_v58 = vmul.f32 %v7970_v23, %v10596_v46  ;;  %v4072_v26 = vmul.f32 %v10618_v59, %v4029_v48  ;;  %v4214_v41 = vld [vmem:[#allocation11 + $0x3d8] sm:$0xff] }
 0x7db   : > { %5111 = vmatprep.subr.bf16.mxu1 %v6895_v42  ;;  %5224 = vmatprep.subr.bf16.mxu0 %v6897_v43  ;;  %v4071_v12 = vmul.f32 %v10614_v22, %v4028_v7  ;;  %v6902_v42 = vcombine.low %v4205_v18, %v4209_v45  ;;  %v6904_v43 = vcombine.low %v4206_v40, %v4210_v49  ;;  %v7578_v18 = vld [vmem:[#allocation13 + $0x74] ss:$8 sps:$4 sm:$0xff]   ;;  %v7576_v7 = vld [vmem:[#allocation13 + $0x70] ss:$8 sps:$4 sm:$0xff]   ;;  %v7581_v45 = vld [vmem:[#allocation13 + $0x84] ss:$8 sps:$4 sm:$0xff]  }
 0x7dc   : > { %v4074_v11 = vmul.f32 %v10618_v59, %v4031_v9  ;;  %v4073_v4 = vmul.f32 %v10614_v22, %v4030_v58  ;;  %v6911_v59 = vcombine.high %v4213_v39, %v4217_v54  ;;  %v6913_v48 = vcombine.high %v4214_v41, %v4218_v16  ;;  %v7579_v40 = vld [vmem:[#allocation13 + $0x80] ss:$8 sps:$4 sm:$0xff]   ;;  %v7584_v49 = vld [vmem:[#allocation13 + $0x94] ss:$8 sps:$4 sm:$0xff]   ;;  %v7582_v23 = vld [vmem:[#allocation13 + $0x90] ss:$8 sps:$4 sm:$0xff]  }
 0x7dd   : > { %v6910_v22 = vcombine.low %v4213_v39, %v4217_v54  ;;  %v7590_v9 = vld [vmem:[#allocation13 + $0xb4] ss:$8 sps:$4 sm:$0xff]   ;;  %v7588_v58 = vld [vmem:[#allocation13 + $0xb0] ss:$8 sps:$4 sm:$0xff]   ;;  %v7597_v39 = vld [vmem:[#allocation13 + $0xe0] ss:$8 sps:$4 sm:$0xff]  }
 0x7de   : > { %5112 = vmatpush1.bf16.msra.mxu1 %v6894_v14  ;;  %5225 = vmatpush1.bf16.msra.mxu0 %v6896_v25  ;;  %v4090_v13 = vpack.c.bf16 %v4074_v11, %v4072_v26  ;;  %v10760_v15 = vpack.c.bf16 %v4073_v4, %v4071_v12  ;;  %v6912_v4 = vcombine.low %v4214_v41, %v4218_v16  ;;  %v7587_v14 = vld [vmem:[#allocation13 + $0xa4] ss:$8 sps:$4 sm:$0xff]   ;;  %v7585_v25 = vld [vmem:[#allocation13 + $0xa0] ss:$8 sps:$4 sm:$0xff]   ;;  %v7596_v26 = vld [vmem:[#allocation13 + $0xd4] ss:$8 sps:$4 sm:$0xff]  }
 0x7df   : > { %5113 = vmatprep.subr.bf16.mxu1 %v6903_v28  ;;  %5226 = vmatprep.subr.bf16.mxu0 %v6905_v38  ;;  %v7593_v28 = vld [vmem:[#allocation13 + $0xc4] ss:$8 sps:$4 sm:$0xff]   ;;  %v7591_v38 = vld [vmem:[#allocation13 + $0xc0] ss:$8 sps:$4 sm:$0xff]   ;;  %v7594_v11 = vld [vmem:[#allocation13 + $0xd0] ss:$8 sps:$4 sm:$0xff]  }
 0x7e0   : > { %4961 = vmatprep.mubr.bf16.mxu1 %v4090_v13  ;;  %5074 = vmatprep.mubr.bf16.mxu0 %v4090_v13  ;;  %v7599_v12 = vld [vmem:[#allocation13 + $0xe4] ss:$8 sps:$4 sm:$0xff]   ;;  %v7602_v54 = vld [vmem:[#allocation13 + $0xf4] ss:$8 sps:$4 sm:$0xff]   ;;  %v7600_v41 = vld [vmem:[#allocation13 + $0xf0] ss:$8 sps:$4 sm:$0xff]  }
 0x7e1   : > { %4962 = vmatmul.mubr.bf16.gmra.mrb[140].mxu1 %v10760_v15  ;;  %5075 = vmatmul.mubr.bf16.gmra.mrb[172].mxu0 %v10760_v15  ;;  %v7605_v16 = vld [vmem:[#allocation13 + $0x104] ss:$8 sps:$4 sm:$0xff]  }
 0x7e2   : > { %5114 = vmatpush1.bf16.msra.mxu1 %v6902_v42  ;;  %5117 = vmatprep.mubr.bf16.mxu1 %v10626_v35 }
 0x7e3   : > { %5227 = vmatpush1.bf16.msra.mxu0 %v6904_v43  ;;  %5230 = vmatprep.mubr.bf16.mxu0 %v10626_v35  ;;  %v7557_v35 = vld [vmem:[#allocation13 + $0x4] ss:$8 sps:$4 sm:$0xff]  }
 0x7e4   : > { %5115 = vmatprep.subr.bf16.mxu1 %v6911_v59  ;;  %5228 = vmatprep.subr.bf16.mxu0 %v6913_v48 }
 0x7e6   : > { %5116 = vmatpush1.bf16.msra.mxu1 %v6910_v22 }
 0x7e7   : > { %5229 = vmatpush1.bf16.msra.mxu0 %v6912_v4  ;;  %6239 = vmatprep.subr.bf16.mxu1 %v7557_v35 }
 0x7e9   : > { %5118 = vmatmul.mubr.bf16.vlgmr.msra.gmra.mrb[144].mxu1 %v10628_v1 }
 0x7ea   : > { %5231 = vmatmul.mubr.bf16.vlgmr.msra.gmra.mrb[176].mxu0 %v10628_v1  ;;  %5127 = vmatprep.mubr.bf16.mxu1 %v10652_v37  ;;  %v7555_v1 = vld [vmem:[#allocation13] ss:$8 sps:$4 sm:$0xff]  }
 0x7eb   : > { %5240 = vmatprep.mubr.bf16.mxu0 %v10652_v37  ;;  %6240 = vmatpush1.bf16.msra.mxu1 %v7555_v1  ;;  %v7560_v37 = vld [vmem:[#allocation13 + $0x14] ss:$8 sps:$4 sm:$0xff]  }
 0x7ec   : > { %6241 = vmatprep.subr.bf16.mxu1 %v7560_v37 }
 0x7f1   : > { %5128 = vmatmul.mubr.bf16.gmra.mrb[148].mxu1 %v10654_v36 }
 0x7f2   : > { %5241 = vmatmul.mubr.bf16.gmra.mrb[180].mxu0 %v10654_v36  ;;  %5137 = vmatprep.mubr.bf16.mxu1 %v10672_v56  ;;  %v7558_v36 = vld [vmem:[#allocation13 + $0x10] ss:$8 sps:$4 sm:$0xff]  }
 0x7f3   : > { %5250 = vmatprep.mubr.bf16.mxu0 %v10672_v56  ;;  %6242 = vmatpush1.bf16.msra.mxu1 %v7558_v36  ;;  %v7563_v56 = vld [vmem:[#allocation13 + $0x24] ss:$8 sps:$4 sm:$0xff]  }
 0x7f4   : > { %6243 = vmatprep.subr.bf16.mxu1 %v7563_v56 }
 0x7f9   : > { %5138 = vmatmul.mubr.bf16.gmra.mrb[152].mxu1 %v10674_v52 }
 0x7fa   : > { %5251 = vmatmul.mubr.bf16.gmra.mrb[184].mxu0 %v10674_v52  ;;  %5147 = vmatprep.mubr.bf16.mxu1 %v10692_v61  ;;  %v7561_v52 = vld [vmem:[#allocation13 + $0x20] ss:$8 sps:$4 sm:$0xff]  }
 0x7fb   : > { %5260 = vmatprep.mubr.bf16.mxu0 %v10692_v61  ;;  %6244 = vmatpush1.bf16.msra.mxu1 %v7561_v52  ;;  %v7566_v61 = vld [vmem:[#allocation13 + $0x34] ss:$8 sps:$4 sm:$0xff]  }
 0x7fc   : > { %6245 = vmatprep.subr.bf16.mxu1 %v7566_v61 }
 0x801   : > { %5148 = vmatmul.mubr.bf16.gmra.mrb[156].mxu1 %v10694_v60 }
 0x802   : > { %5261 = vmatmul.mubr.bf16.gmra.mrb[188].mxu0 %v10694_v60  ;;  %5157 = vmatprep.mubr.bf16.mxu1 %v10712_v53  ;;  %v7564_v60 = vld [vmem:[#allocation13 + $0x30] ss:$8 sps:$4 sm:$0xff]  }
 0x803   : > { %5270 = vmatprep.mubr.bf16.mxu0 %v10712_v53  ;;  %6246 = vmatpush1.bf16.msra.mxu1 %v7564_v60  ;;  %v7569_v53 = vld [vmem:[#allocation13 + $0x44] ss:$8 sps:$4 sm:$0xff]  }
 0x804   : > { %6247 = vmatprep.subr.bf16.mxu1 %v7569_v53 }
 0x809   : > { %5158 = vmatmul.mubr.bf16.gmra.mrb[160].mxu1 %v10714_v20 }
 0x80a   : > { %5271 = vmatmul.mubr.bf16.gmra.mrb[192].mxu0 %v10714_v20  ;;  %5167 = vmatprep.mubr.bf16.mxu1 %v10728_v30  ;;  %v7567_v20 = vld [vmem:[#allocation13 + $0x40] ss:$8 sps:$4 sm:$0xff]  }
 0x80b   : > { %5280 = vmatprep.mubr.bf16.mxu0 %v10728_v30  ;;  %6248 = vmatpush1.bf16.msra.mxu1 %v7567_v20  ;;  %v7572_v30 = vld [vmem:[#allocation13 + $0x54] ss:$8 sps:$4 sm:$0xff]  }
 0x80c   : > { %6249 = vmatprep.subr.bf16.mxu1 %v7572_v30 }
 0x811   : > { %5168 = vmatmul.mubr.bf16.gmra.mrb[164].mxu1 %v10730_v8 }
 0x812   : > { %5281 = vmatmul.mubr.bf16.gmra.mrb[196].mxu0 %v10730_v8  ;;  %5177 = vmatprep.mubr.bf16.mxu1 %v10744_v34  ;;  %v7570_v8 = vld [vmem:[#allocation13 + $0x50] ss:$8 sps:$4 sm:$0xff]  }
 0x813   : > { %5290 = vmatprep.mubr.bf16.mxu0 %v10744_v34  ;;  %6250 = vmatpush1.bf16.msra.mxu1 %v7570_v8  ;;  %v7575_v34 = vld [vmem:[#allocation13 + $0x64] ss:$8 sps:$4 sm:$0xff]  }
 0x814   : > { %6251 = vmatprep.subr.bf16.mxu1 %v7575_v34 }
 0x819   : > { %5178 = vmatmul.mubr.bf16.gmra.mrb[168].mxu1 %v10746_v29 }
 0x81a   : > { %5291 = vmatmul.mubr.bf16.gmra.mrb[200].mxu0 %v10746_v29  ;;  %5187 = vmatprep.mubr.bf16.mxu1 %v4090_v13  ;;  %v7573_v29 = vld [vmem:[#allocation13 + $0x60] ss:$8 sps:$4 sm:$0xff]  }
 0x81b   : > { %5300 = vmatprep.mubr.bf16.mxu0 %v4090_v13  ;;  %6252 = vmatpush1.bf16.msra.mxu1 %v7573_v29 }
 0x81c   : > { %6253 = vmatprep.subr.bf16.mxu1 %v7578_v18 }
 0x81f   : > { %6254 = vmatpush1.bf16.msra.mxu1 %v7576_v7 }
 0x820   : > { %6255 = vmatprep.subr.bf16.mxu1 %v7581_v45 }
 0x821   : > { %5188 = vmatmul.mubr.bf16.gmra.mrb[172].mxu1 %v10760_v15 }
 0x822   : > { %5301 = vmatmul.mubr.bf16.gmra.mrb[204].mxu0 %v10760_v15 }
 0x823   : > { %6256 = vmatpush1.bf16.msra.mxu1 %v7579_v40 }
 0x824   : > { %6257 = vmatprep.subr.bf16.mxu1 %v7584_v49 }
 0x827   : > { %6258 = vmatpush1.bf16.msra.mxu1 %v7582_v23 }
 0x828   : > { %6259 = vmatprep.subr.bf16.mxu1 %v7587_v14 }
 0x82b   : > { %6260 = vmatpush1.bf16.msra.mxu1 %v7585_v25 }
 0x82c   : > { %6261 = vmatprep.subr.bf16.mxu1 %v7590_v9 }
 0x82f   : > { %6262 = vmatpush1.bf16.msra.mxu1 %v7588_v58 }
 0x830   : > { %6263 = vmatprep.subr.bf16.mxu1 %v7593_v28 }
 0x833   : > { %6264 = vmatpush1.bf16.msra.mxu1 %v7591_v38 }
 0x834   : > { %6265 = vmatprep.subr.bf16.mxu1 %v7596_v26 }
 0x837   : > { %6266 = vmatpush1.bf16.msra.mxu1 %v7594_v11 }
 0x838   : > { %6267 = vmatprep.subr.bf16.mxu1 %v7599_v12 }
 0x83b   : > { %6268 = vmatpush1.bf16.msra.mxu1 %v7597_v39 }
 0x83c   : > { %6269 = vmatprep.subr.bf16.mxu1 %v7602_v54 }
 0x83f   : > { %6270 = vmatpush1.bf16.msra.mxu1 %v7600_v41 }
 0x840   : > { %6352 = vmatprep.subr.bf16.mxu1 %v7605_v16 }
 0x87c   : > { %v10794_v13 = vpop.f32.mrb[112].mxu1  ;;  %v10796_v15 = vpop.f32.mrb[144].mxu0 }
 0x87d   : > { %v6914_v42 = vmul.f32 -1.442695, %v10794_v13  ;;  %v6916_v43 = vmul.f32 -1.442695, %v10796_v15  ;;  %v10800_v59 = vpop.f32.mrb[113].mxu1  ;;  %v10802_v48 = vpop.f32.mrb[145].mxu0 }
 0x87e   : > { %v6915_v22 = vmul.f32 -1.442695, %v10800_v59  ;;  %v6917_v4 = vmul.f32 -1.442695, %v10802_v48  ;;  %v10806_v35 = vpop.f32.mrb[114].mxu1  ;;  %v10808_v1 = vpop.f32.mrb[146].mxu0 }
 0x87f   : > { %7971 = vpow2.f32 %v6914_v42  ;;  %v6918_v37 = vmul.f32 -1.442695, %v10806_v35  ;;  %v10811_v36 = vpop.f32.mrb[115].mxu1  ;;  %v10813_v56 = vpop.f32.mrb[147].mxu0  ;;  %v6920_v52 = vmul.f32 -1.442695, %v10808_v1 }
 0x880   : > { %7973 = vpow2.f32 %v6916_v43  ;;  %v6919_v61 = vmul.f32 -1.442695, %v10811_v36  ;;  %v6921_v60 = vmul.f32 -1.442695, %v10813_v56 }
 0x881   : > { %7975 = vpow2.f32 %v6915_v22 }
 0x882   : > { %7977 = vpow2.f32 %v6917_v4 }
 0x883   : > { %7979 = vpow2.f32 %v6918_v37 }
 0x884   : > { %7981 = vpow2.f32 %v6920_v52  ;;  %v10818_v53 = vpop.f32.mrb[116].mxu1  ;;  %v10820_v20 = vpop.f32.mrb[148].mxu0 }
 0x885   : > { %7983 = vpow2.f32 %v6919_v61  ;;  %v6922_v30 = vmul.f32 -1.442695, %v10818_v53  ;;  %v6924_v8 = vmul.f32 -1.442695, %v10820_v20  ;;  %v10824_v34 = vpop.f32.mrb[117].mxu1  ;;  %v10826_v29 = vpop.f32.mrb[149].mxu0 }
 0x886   : > { %7985 = vpow2.f32 %v6921_v60  ;;  %v6923_v18 = vmul.f32 -1.442695, %v10824_v34  ;;  %v6925_v7 = vmul.f32 -1.442695, %v10826_v29  ;;  %v10830_v45 = vpop.f32.mrb[118].mxu1  ;;  %v10832_v40 = vpop.f32.mrb[150].mxu0 }
 0x887   : > { %11857 = vst [vmem:[#allocation75_spill] sm:$0xff] %v10832_v40  ;;  %7987 = vpow2.f32 %v6922_v30  ;;  %v6926_v49 = vmul.f32 -1.442695, %v10830_v45  ;;  %v10835_v23 = vpop.f32.mrb[119].mxu1  ;;  %v10837_v14 = vpop.f32.mrb[151].mxu0 }
 0x888   : > { %11858 = vst [vmem:[#allocation77_spill] sm:$0xff] %v10835_v23  ;;  %11859 = vst [vmem:[#allocation64_spill] sm:$0xff] %v10837_v14  ;;  %7989 = vpow2.f32 %v6924_v8 }
 0x889   : > { %v7972_v25 = vpop.eup %7971  ;;  %7991 = vpow2.f32 %v6923_v18 }
 0x88a   : > { %v7974_v9 = vpop.eup %7973  ;;  %v5503_v58 = vadd.f32 1.0, %v7972_v25  ;;  %7993 = vpow2.f32 %v6925_v7 }
 0x88b   : > { %v7976_v28 = vpop.eup %7975  ;;  %v5505_v38 = vadd.f32 1.0, %v7974_v9  ;;  %7995 = vpow2.f32 %v6926_v49 }
 0x88c   : > { %v7978_v26 = vpop.eup %7977  ;;  %7997 = vrcp.f32 %v5503_v58  ;;  %v5504_v11 = vadd.f32 1.0, %v7976_v28  ;;  %v10839_v12 = vpop.f32.mrb[120].mxu1 }
 0x88d   : > { %11860 = vst [vmem:[#allocation32_spill] sm:$0xff] %v10839_v12  ;;  %v10841_v39 = vpop.f32.mrb[152].mxu0  ;;  %v7980_v54 = vpop.eup %7979  ;;  %7999 = vrcp.f32 %v5505_v38  ;;  %v5506_v41 = vadd.f32 1.0, %v7978_v26 }
 0x88e   : > { %11861 = vst [vmem:[#allocation33_spill] sm:$0xff] %v10841_v39  ;;  %v10843_v16 = vpop.f32.mrb[121].mxu1  ;;  %v7982_v42 = vpop.eup %7981  ;;  %8001 = vrcp.f32 %v5504_v11  ;;  %v5507_v43 = vadd.f32 1.0, %v7980_v54  ;;  %v6932_v46 = vmul.f32 -1.442695, %v10841_v39 }
 0x88f   : > { %11862 = vst [vmem:[#allocation69_spill] sm:$0xff] %v10843_v16  ;;  %v10845_v22 = vpop.f32.mrb[153].mxu0  ;;  %v10847_v4 = vpop.f32.mrb[122].mxu1  ;;  %8003 = vrcp.f32 %v5506_v41  ;;  %v5509_v52 = vadd.f32 1.0, %v7982_v42 }
 0x890   : > { %11863 = vst [vmem:[#allocation71_spill] sm:$0xff] %v10845_v22  ;;  %11864 = vst [vmem:[#allocation35_spill] sm:$0xff] %v10847_v4  ;;  %v7984_v37 = vpop.eup %7983  ;;  %v10849_v61 = vpop.f32.mrb[154].mxu0  ;;  %8005 = vrcp.f32 %v5507_v43  ;;  %v6928_v43 = vmul.f32 -1.442695, %v10832_v40 }
 0x891   : > { %11865 = vst [vmem:[#allocation36_spill] sm:$0xff] %v10849_v61  ;;  %v7986_v60 = vpop.eup %7985  ;;  %v5508_v30 = vadd.f32 1.0, %v7984_v37  ;;  %v10851_v8 = vpop.f32.mrb[123].mxu1  ;;  %8007 = vrcp.f32 %v5509_v52  ;;  %v6933_v57 = vmul.f32 -1.442695, %v10845_v22 }
 0x892   : > { %11866 = vst [vmem:[#allocation41_spill] sm:$0xff] %v10851_v8  ;;  %v10853_v18 = vpop.f32.mrb[155].mxu0  ;;  %v7988_v7 = vpop.eup %7987  ;;  %v5510_v49 = vadd.f32 1.0, %v7986_v60  ;;  %v6934_v5 = vmul.f32 -1.442695, %v10847_v4 }
 0x893   : > { %11867 = vst [vmem:[#allocation45_spill] sm:$0xff] %v10853_v18  ;;  %v7990_v25 = vpop.eup %7989  ;;  %8009 = vrcp.f32 %v5508_v30  ;;  %v5511_v9 = vadd.f32 1.0, %v7988_v7  ;;  %v6927_v30 = vmul.f32 -1.442695, %v10835_v23 }
 0x894   : > { %v7992_v58 = vpop.eup %7991  ;;  %8011 = vrcp.f32 %v5510_v49  ;;  %v5513_v28 = vadd.f32 1.0, %v7990_v25  ;;  %v10855_v11 = vpop.f32.mrb[124].mxu1 }
 0x895   : > { %v7994_v38 = vpop.eup %7993  ;;  %8013 = vrcp.f32 %v5511_v9  ;;  %v5512_v26 = vadd.f32 1.0, %v7992_v58  ;;  %11868 = vst [vmem:[#allocation46_spill] sm:$0xff] %v10855_v11  ;;  %v10857_v54 = vpop.f32.mrb[156].mxu0  ;;  %v6929_v9 = vmul.f32 -1.442695, %v10837_v14 }
 0x896   : > { %11869 = vst [vmem:[#allocation50_spill] sm:$0xff] %v10857_v54  ;;  %v7996_v41 = vpop.eup %7995  ;;  %8015 = vrcp.f32 %v5513_v28  ;;  %v5514_v42 = vadd.f32 1.0, %v7994_v38  ;;  %v10860_v37 = vpop.f32.mrb[125].mxu1  ;;  %v6940_v32 = vmul.f32 -1.442695, %v10857_v54 }
 0x897   : > { %v10862_v52 = vpop.eup %7997  ;;  %8017 = vrcp.f32 %v5512_v26  ;;  %v5515_v60 = vadd.f32 1.0, %v7996_v41  ;;  %v10865_v7 = vpop.f32.mrb[157].mxu0  ;;  %v6930_v26 = vmul.f32 -1.442695, %v10839_v12 }
 0x898   : > { %v10867_v49 = vpop.f32.mrb[126].mxu1  ;;  %v10869_v25 = vpop.eup %7999  ;;  %8019 = vrcp.f32 %v5514_v42  ;;  %v6931_v42 = vmul.f32 -1.442695, %v10843_v16 }
 0x899   : > { %v10872_v58 = vpop.f32.mrb[158].mxu0  ;;  %v10874_v28 = vpop.f32.mrb[127].mxu1  ;;  %8021 = vrcp.f32 %v5515_v60 }
 0x89a   : > { %v10876_v38 = vpop.eup %8001  ;;  %v10879_v41 = vpop.f32.mrb[159].mxu0  ;;  %8023 = vpow2.f32 %v6928_v43 }
 0x89b   : > { %v10881_v51 = vpop.eup %8003  ;;  %8025 = vpow2.f32 %v6927_v30  ;;  %v6936_v30 = vmul.f32 -1.442695, %v10849_v61 }
 0x89c   : > { %v10884_v3 = vpop.eup %8005  ;;  %8027 = vpow2.f32 %v6929_v9  ;;  %v10893_v27 = vpop.f32.mrb[128].mxu1 }
 0x89d   : > { %v10887_v17 = vpop.eup %8007  ;;  %8029 = vpow2.f32 %v6930_v26  ;;  %v10895_v43 = vpop.f32.mrb[160].mxu0  ;;  %v6935_v26 = vmul.f32 -1.442695, %v10851_v8 }
 0x89e   : > { %v10890_v60 = vpop.eup %8009  ;;  %8031 = vpow2.f32 %v6932_v46  ;;  %v10900_v50 = vpop.f32.mrb[129].mxu1  ;;  %v6937_v46 = vmul.f32 -1.442695, %v10853_v18 }
 0x89f   : > { %v10897_v55 = vpop.eup %8011  ;;  %v10902_v19 = vpop.f32.mrb[161].mxu0  ;;  %8033 = vpow2.f32 %v6931_v42  ;;  %v6938_v42 = vmul.f32 -1.442695, %v10855_v11 }
 0x8a0   : > { %11870 = vst [vmem:[#allocation27_spill] sm:$0xff] %v10902_v19  ;;  %v10904_v9 = vpop.eup %8013  ;;  %v10907_v47 = vpop.f32.mrb[130].mxu1  ;;  %8035 = vpow2.f32 %v6933_v57 }
 0x8a1   : > { %11871 = vst [vmem:[#allocation51_spill] sm:$0xff] %v10907_v47  ;;  %v10909_v24 = vpop.f32.mrb[162].mxu0  ;;  %v10911_v21 = vpop.eup %8015  ;;  %8037 = vpow2.f32 %v6934_v5 }
 0x8a2   : > { %11872 = vst [vmem:[#allocation44_spill] sm:$0xff] %v10909_v24  ;;  %v10914_v33 = vpop.f32.mrb[131].mxu1  ;;  %v10916_v6 = vpop.f32.mrb[163].mxu0  ;;  %8039 = vpow2.f32 %v6936_v30 }
 0x8a3   : > { %11873 = vst [vmem:[#allocation55_spill] sm:$0xff] %v10914_v33  ;;  %11874 = vst [vmem:[#allocation28_spill] sm:$0xff] %v10916_v6  ;;  %v10918_v2 = vpop.eup %8017  ;;  %8041 = vpow2.f32 %v6935_v26 }
 0x8a4   : > { %v10921_v31 = vpop.eup %8019  ;;  %8043 = vpow2.f32 %v6937_v46  ;;  %v10926_v0 = vpop.f32.mrb[132].mxu1 }
 0x8a5   : > { %v10924_v63 = vpop.eup %8021  ;;  %8045 = vpow2.f32 %v6938_v42  ;;  %11875 = vst [vmem:[#allocation56_spill] sm:$0xff] %v10926_v0  ;;  %v10928_v44 = vpop.f32.mrb[164].mxu0 }
 0x8a6   : > { %v8024_v57 = vpop.eup %8023  ;;  %11876 = vst [vmem:[#allocation49_spill] sm:$0xff] %v10928_v44  ;;  %8047 = vpow2.f32 %v6940_v32  ;;  %v10930_v11 = vpop.f32.mrb[133].mxu1 }
 0x8a7   : > { %v8026_v10 = vpop.eup %8025  ;;  %v5517_v62 = vadd.f32 1.0, %v8024_v57  ;;  %11877 = vst [vmem:[#allocation26_spill] sm:$0xff] %v10930_v11  ;;  %v10932_v8 = vpop.f32.mrb[165].mxu0 }
 0x8a8   : > { %v8028_v5 = vpop.eup %8027  ;;  %v5516_v18 = vadd.f32 1.0, %v8026_v10  ;;  %11878 = vst [vmem:[#allocation79_spill] sm:$0xff] %v10932_v8  ;;  %v10934_v26 = vpop.f32.mrb[134].mxu1 }
 0x8a9   : > { %v8030_v30 = vpop.eup %8029  ;;  %8049 = vrcp.f32 %v5517_v62  ;;  %v5518_v54 = vadd.f32 1.0, %v8028_v5  ;;  %11879 = vst [vmem:[#allocation80_spill] sm:$0xff] %v10934_v26  ;;  %v10936_v42 = vpop.f32.mrb[166].mxu0 }
 0x8aa   : > { %v8032_v46 = vpop.eup %8031  ;;  %8051 = vrcp.f32 %v5516_v18  ;;  %v5519_v57 = vadd.f32 1.0, %v8030_v30  ;;  %11880 = vst [vmem:[#allocation81_spill] sm:$0xff] %v10936_v42  ;;  %v10938_v22 = vpop.f32.mrb[135].mxu1 }
 0x8ab   : > { %v8034_v61 = vpop.eup %8033  ;;  %8053 = vrcp.f32 %v5518_v54  ;;  %v5521_v4 = vadd.f32 1.0, %v8032_v46  ;;  %11881 = vst [vmem:[#allocation82_spill] sm:$0xff] %v10938_v22  ;;  %v10940_v10 = vpop.f32.mrb[167].mxu0 }
 0x8ac   : > { %11882 = vst [vmem:[#allocation83_spill] sm:$0xff] %v10940_v10  ;;  %v8036_v32 = vpop.eup %8035  ;;  %8055 = vrcp.f32 %v5519_v57  ;;  %v5520_v62 = vadd.f32 1.0, %v8034_v61  ;;  %v10942_v14 = vpop.f32.mrb[136].mxu1 }
 0x8ad   : > { %v8038_v5 = vpop.eup %8037  ;;  %8057 = vrcp.f32 %v5521_v4  ;;  %v5522_v16 = vadd.f32 1.0, %v8036_v32  ;;  %11883 = vst [vmem:[#allocation84_spill] sm:$0xff] %v10942_v14  ;;  %v10944_v54 = vpop.f32.mrb[168].mxu0 }
 0x8ae   : > { %v8040_v39 = vpop.eup %8039  ;;  %8059 = vrcp.f32 %v5520_v62  ;;  %v5523_v12 = vadd.f32 1.0, %v8038_v5  ;;  %11884 = vst [vmem:[#allocation85_spill] sm:$0xff] %v10944_v54  ;;  %v10946_v40 = vpop.f32.mrb[137].mxu1 }
 0x8af   : > { %v8042_v18 = vpop.eup %8041  ;;  %8061 = vrcp.f32 %v5522_v16  ;;  %v5525_v30 = vadd.f32 1.0, %v8040_v39  ;;  %11885 = vst [vmem:[#allocation86_spill] sm:$0xff] %v10946_v40  ;;  %v10948_v4 = vpop.f32.mrb[169].mxu0  ;;  %v6939_v39 = vmul.f32 -1.442695, %v10860_v37 }
 0x8b0   : > { %v8044_v46 = vpop.eup %8043  ;;  %8063 = vrcp.f32 %v5523_v12  ;;  %v5524_v23 = vadd.f32 1.0, %v8042_v18  ;;  %v10950_v32 = vpop.f32.mrb[138].mxu1  ;;  %v6941_v18 = vmul.f32 -1.442695, %v10865_v7 }
 0x8b1   : > { %v8046_v57 = vpop.eup %8045  ;;  %8065 = vrcp.f32 %v5525_v30  ;;  %v5526_v61 = vadd.f32 1.0, %v8044_v46  ;;  %11886 = vst [vmem:[#allocation87_spill] sm:$0xff] %v10950_v32  ;;  %v10953_v5 = vpop.f32.mrb[170].mxu0 }
 0x8b2   : > { %v8048_v62 = vpop.eup %8047  ;;  %8067 = vrcp.f32 %v5524_v23  ;;  %v5527_v16 = vadd.f32 1.0, %v8046_v57  ;;  %11887 = vst [vmem:[#allocation88_spill] sm:$0xff] %v10953_v5  ;;  %v10958_v40 = vpop.f32.mrb[139].mxu1  ;;  %v6942_v23 = vmul.f32 -1.442695, %v10867_v49 }
 0x8b3   : > { %v10955_v54 = vpop.eup %8049  ;;  %8069 = vrcp.f32 %v5526_v61  ;;  %v5529_v12 = vadd.f32 1.0, %v8048_v62  ;;  %11888 = vst [vmem:[#allocation89_spill] sm:$0xff] %v10958_v40  ;;  %v10960_v30 = vpop.f32.mrb[171].mxu0  ;;  %v6944_v5 = vmul.f32 -1.442695, %v10872_v58  ;;  %v5695_v61 = vmul.f32 %v10862_v52, %v10794_v13 }
 0x8b4   : > { %11889 = vst [vmem:[#allocation90_spill] sm:$0xff] %v10960_v30  ;;  %v10962_v46 = vpop.eup %8051  ;;  %8071 = vrcp.f32 %v5527_v16  ;;  %v10974_v62 = vmul.f32 %v10869_v25, %v10796_v15  ;;  %v6943_v30 = vmul.f32 -1.442695, %v10874_v28  ;;  %v10981_v40 = vmul.f32 %v10876_v38, %v10800_v59  ;;  %v10988_v52 = vpop.f32.mrb[140].mxu1 }
 0x8b5   : > { %v10965_v57 = vpop.eup %8053  ;;  %8073 = vrcp.f32 %v5529_v12  ;;  %v10985_v12 = vmul.f32 %v10881_v51, %v10802_v48  ;;  %v6945_v13 = vmul.f32 -1.442695, %v10879_v41  ;;  %11890 = vst [vmem:[#allocation91_spill] sm:$0xff] %v10988_v52  ;;  %v10990_v15 = vpop.f32.mrb[172].mxu0  ;;  %v11000_v59 = vmul.f32 %v10887_v17, %v10808_v1 }
 0x8b6   : > { %v10968_v32 = vpop.eup %8055  ;;  %8075 = vpow2.f32 %v6939_v39  ;;  %11891 = vst [vmem:[#allocation92_spill] sm:$0xff] %v10990_v15  ;;  %v10996_v39 = vmul.f32 %v10884_v3, %v10806_v35  ;;  %v6946_v51 = vmul.f32 -1.442695, %v10893_v27  ;;  %v11003_v48 = vpop.f32.mrb[141].mxu1  ;;  %v11011_v15 = vmul.f32 %v10890_v60, %v10811_v36 }
 0x8b7   : > { %v10977_v16 = vpop.eup %8057  ;;  %8077 = vpow2.f32 %v6941_v18  ;;  %11892 = vst [vmem:[#allocation93_spill] sm:$0xff] %v11003_v48  ;;  %v11005_v38 = vpop.f32.mrb[173].mxu0  ;;  %v11015_v3 = vmul.f32 %v10897_v55, %v10813_v56  ;;  %v6948_v17 = vmul.f32 -1.442695, %v10895_v43  ;;  %v6947_v36 = vmul.f32 -1.442695, %v10900_v50 }
 0x8b8   : > { %v10992_v25 = vpop.eup %8059  ;;  %8079 = vpow2.f32 %v6942_v23  ;;  %11893 = vst [vmem:[#allocation94_spill] sm:$0xff] %v11005_v38  ;;  %v11018_v35 = vpop.f32.mrb[142].mxu1  ;;  %v11026_v38 = vmul.f32 %v10904_v9, %v10818_v53  ;;  %v6949_v60 = vmul.f32 -1.442695, %v10902_v19  ;;  %v6952_v53 = vmul.f32 -1.442695, %v10909_v24 }
 0x8b9   : > { %v11007_v18 = vpop.eup %8061  ;;  %8081 = vpow2.f32 %v6944_v5  ;;  %11894 = vst [vmem:[#allocation95_spill] sm:$0xff] %v11018_v35  ;;  %v11020_v1 = vpop.f32.mrb[174].mxu0  ;;  %v6950_v35 = vmul.f32 -1.442695, %v10907_v47  ;;  %v11073_v52 = vmul.f32 -1.442695, %v10934_v26 }
 0x8ba   : > { %11895 = vst [vmem:[#allocation96_spill] sm:$0xff] %v11020_v1  ;;  %v11022_v23 = vpop.eup %8063  ;;  %8083 = vpow2.f32 %v6943_v30  ;;  %v11030_v55 = vpop.f32.mrb[143].mxu1  ;;  %v11038_v1 = vmul.f32 %v10911_v21, %v10820_v20  ;;  %v11046_v30 = vmul.f32 %v10918_v2, %v10824_v34  ;;  %v11056_v21 = vmul.f32 %v10921_v31, %v10826_v29 }
 0x8bb   : > { %11896 = vst [vmem:[#allocation97_spill] sm:$0xff] %v11030_v55  ;;  %v11032_v56 = vpop.f32.mrb[175].mxu0  ;;  %v11034_v5 = vpop.eup %8065  ;;  %8085 = vpow2.f32 %v6945_v13  ;;  %v11050_v55 = vmul.f32 -1.442695, %v10916_v6  ;;  %v11059_v20 = vmul.f32 -1.442695, %v10926_v0  ;;  %v11079_v29 = vmul.f32 %v10924_v63, %v10830_v45 }
 0x8bc   : > { %11897 = vst [vmem:[#allocation98_spill] sm:$0xff] %v11032_v56  ;;  %v11042_v9 = vpop.eup %8067  ;;  %8087 = vpow2.f32 %v6946_v51  ;;  %v6951_v56 = vmul.f32 -1.442695, %v10914_v33  ;;  %v11062_v13 = vmul.f32 -1.442695, %v10928_v44 }
 0x8bd   : > { %v11052_v48 = vpop.eup %8069  ;;  %8089 = vpow2.f32 %v6948_v17  ;;  %v11067_v34 = vmul.f32 -1.442695, %v10930_v11  ;;  %v11070_v51 = vmul.f32 -1.442695, %v10932_v8  ;;  %v11082_v17 = vmul.f32 -1.442695, %v10936_v42 }
 0x8be   : > { %v11064_v2 = vpop.eup %8071  ;;  %8091 = vpow2.f32 %v6947_v36  ;;  %v11085_v36 = vmul.f32 -1.442695, %v10938_v22  ;;  %v5119_v11 = vpop.f32.mrb[144].mxu1  ;;  %v11088_v8 = vmul.f32 -1.442695, %v10940_v10 }
 0x8bf   : > { %v11075_v31 = vpop.eup %8073  ;;  %8093 = vpow2.f32 %v6949_v60  ;;  %v11091_v26 = vmul.f32 -1.442695, %v10942_v14  ;;  %v5759_v0 = vmul.f32 %v5695_v61, %v5119_v11  ;;  %v5232_v6 = vpop.f32.mrb[176].mxu0 }
 0x8c0   : > { %v8076_v44 = vpop.eup %8075  ;;  %8095 = vpow2.f32 %v6950_v35  ;;  %v5121_v63 = vpop.f32.mrb[145].mxu1  ;;  %v11094_v42 = vmul.f32 %v10974_v62, %v5232_v6 }
 0x8c1   : > { %v8078_v45 = vpop.eup %8077  ;;  %v5528_v60 = vadd.f32 1.0, %v8076_v44  ;;  %8097 = vpow2.f32 %v6952_v53  ;;  %v5760_v22 = vmul.f32 %v10981_v40, %v5121_v63  ;;  %v5234_v33 = vpop.f32.mrb[177].mxu0 }
 0x8c2   : > { %11898 = vst [vmem:[#allocation99_spill] sm:$0xff] %v11094_v42  ;;  %v5123_v24 = vpop.f32.mrb[146].mxu1  ;;  %v8080_v35 = vpop.eup %8079  ;;  %v5530_v47 = vadd.f32 1.0, %v8078_v45  ;;  %8099 = vpow2.f32 %v6951_v56  ;;  %v11098_v10 = vmul.f32 %v10985_v12, %v5234_v33 }
 0x8c3   : > { %v5763_v11 = vmul.f32 %v10996_v39, %v5123_v24  ;;  %v5236_v61 = vpop.f32.mrb[178].mxu0  ;;  %v5125_v14 = vpop.f32.mrb[147].mxu1  ;;  %8101 = vrcp.f32 %v5528_v60  ;;  %v5531_v44 = vadd.f32 1.0, %v8080_v35  ;;  %v7603_v60 = vld [vmem:[#allocation13 + $0x100] ss:$8 sps:$4 sm:$0xff]  }
 0x8c4   : > { %v8082_v19 = vpop.eup %8081  ;;  %v11102_v6 = vmul.f32 %v11000_v59, %v5236_v61  ;;  %v5764_v40 = vmul.f32 %v11011_v15, %v5125_v14  ;;  %v5238_v62 = vpop.f32.mrb[179].mxu0  ;;  %8103 = vrcp.f32 %v5530_v47  ;;  %v11900_v14 = vld [vmem:[#allocation85_spill] sm:$0xff] }
 0x8c5   : > { %v8084_v53 = vpop.eup %8083  ;;  %v5533_v63 = vadd.f32 1.0, %v8082_v19  ;;  %v5823_v56 = vpack.c.bf16 %v5763_v11, %v5759_v0  ;;  %v11106_v33 = vmul.f32 %v11015_v3, %v5238_v62  ;;  %8105 = vrcp.f32 %v5531_v44  ;;  %v7608_v47 = vld [vmem:[#allocation13 + $0x114] ss:$8 sps:$4 sm:$0xff]   ;;  %v11901_v3 = vld [vmem:[#allocation75_spill] sm:$0xff]  ;;  %v5242_v0 = vpop.f32.mrb[180].mxu0 }
 0x8c6   : > { %11899 = vst [vmem:[#allocation100_spill] sm:$0xff] %v11102_v6  ;;  %v8086_v12 = vpop.eup %8085  ;;  %v5532_v24 = vadd.f32 1.0, %v8084_v53  ;;  %v5824_v45 = vpack.c.bf16 %v5764_v40, %v5760_v22  ;;  %v11111_v15 = vmul.f32 -1.442695, %v11900_v14  ;;  %v5709_v11 = vmul.f32 %v10955_v54, %v11901_v3  ;;  %v11902_v61 = vld [vmem:[#allocation77_spill] sm:$0xff]  ;;  %v5129_v40 = vpop.f32.mrb[148].mxu1 }
 0x8c7   : > { %v8088_v59 = vpop.eup %8087  ;;  %8107 = vrcp.f32 %v5533_v63  ;;  %v5534_v35 = vadd.f32 1.0, %v8086_v12  ;;  %v5708_v44 = vmul.f32 %v10962_v46, %v11902_v61  ;;  %v11903_v53 = vld [vmem:[#allocation64_spill] sm:$0xff]  ;;  %v5767_v39 = vmul.f32 %v11026_v38, %v5129_v40  ;;  %v5131_v42 = vpop.f32.mrb[149].mxu1 }
 0x8c8   : > { %v8090_v19 = vpop.eup %8089  ;;  %8109 = vrcp.f32 %v5532_v24  ;;  %v5535_v22 = vadd.f32 1.0, %v8088_v59  ;;  %6271 = vmatprep.mubr.bf16.mxu1 %v5824_v45  ;;  %v5710_v63 = vmul.f32 %v10965_v57, %v11903_v53  ;;  %v11123_v46 = vmul.f32 %v11038_v1, %v5242_v0  ;;  %v5244_v45 = vpop.f32.mrb[181].mxu0  ;;  %v7606_v3 = vld [vmem:[#allocation13 + $0x110] ss:$8 sps:$4 sm:$0xff]  }
 0x8c9   : > { %v8092_v62 = vpop.eup %8091  ;;  %8111 = vrcp.f32 %v5534_v35  ;;  %v5537_v12 = vadd.f32 1.0, %v8090_v19  ;;  %6272 = vmatmul.mubr.bf16.vlgmr.msra.gmra.mrb[176].mxu1 %v5823_v56  ;;  %v5768_v24 = vmul.f32 %v11046_v30, %v5131_v42  ;;  %v5133_v59 = vpop.f32.mrb[150].mxu1  ;;  %v11127_v38 = vmul.f32 %v11056_v21, %v5244_v45  ;;  %v11904_v45 = vld [vmem:[#allocation32_spill] sm:$0xff] }
 0x8ca   : > { %v8094_v6 = vpop.eup %8093  ;;  %8113 = vrcp.f32 %v5535_v22  ;;  %v5536_v54 = vadd.f32 1.0, %v8092_v62  ;;  %6353 = vmatpush1.bf16.msra.mxu1 %v7603_v60  ;;  %v5771_v56 = vmul.f32 %v11079_v29, %v5133_v59  ;;  %v5246_v19 = vpop.f32.mrb[182].mxu0  ;;  %v7611_v22 = vld [vmem:[#allocation13 + $0x124] ss:$8 sps:$4 sm:$0xff]  }
 0x8cb   : > { %v8096_v57 = vpop.eup %8095  ;;  %8115 = vrcp.f32 %v5537_v12  ;;  %v5538_v35 = vadd.f32 1.0, %v8094_v6  ;;  %v5135_v61 = vpop.f32.mrb[151].mxu1  ;;  %6354 = vmatprep.subr.bf16.mxu1 %v7608_v47  ;;  %v11130_v42 = vmul.f32 %v5709_v11, %v5246_v19  ;;  %v11905_v59 = vld [vmem:[#allocation86_spill] sm:$0xff] }
 0x8cc   : > { %v8098_v1 = vpop.eup %8097  ;;  %8117 = vrcp.f32 %v5536_v54  ;;  %v5539_v0 = vadd.f32 1.0, %v8096_v57  ;;  %v5772_v30 = vmul.f32 %v5708_v44, %v5135_v61  ;;  %v5248_v60 = vpop.f32.mrb[183].mxu0  ;;  %v5827_v6 = vpack.c.bf16 %v5771_v56, %v5767_v39  ;;  %v7609_v54 = vld [vmem:[#allocation13 + $0x120] ss:$8 sps:$4 sm:$0xff]   ;;  %v11906_v56 = vld [vmem:[#allocation33_spill] sm:$0xff] }
 0x8cd   : > { %v8100_v40 = vpop.eup %8099  ;;  %8119 = vrcp.f32 %v5538_v35  ;;  %v5541_v62 = vadd.f32 1.0, %v8098_v1  ;;  %v11132_v53 = vmul.f32 %v5710_v63, %v5248_v60  ;;  %v5711_v44 = vmul.f32 %v10968_v32, %v11904_v45  ;;  %v7614_v63 = vld [vmem:[#allocation13 + $0x134] ss:$8 sps:$4 sm:$0xff]   ;;  %v11908_v61 = vld [vmem:[#allocation71_spill] sm:$0xff]  ;;  %v5139_v32 = vpop.f32.mrb[152].mxu1 }
 0x8ce   : > { %v11134_v21 = vpop.eup %8101  ;;  %8121 = vrcp.f32 %v5539_v0  ;;  %v5540_v29 = vadd.f32 1.0, %v8100_v40  ;;  %v5828_v12 = vpack.c.bf16 %v5772_v30, %v5768_v24  ;;  %6355 = vmatpush1.bf16.msra.mxu1 %v7606_v3  ;;  %v11141_v57 = vmul.f32 -1.442695, %v11905_v59  ;;  %v11907_v24 = vld [vmem:[#allocation69_spill] sm:$0xff]  ;;  %v11909_v30 = vld [vmem:[#allocation35_spill] sm:$0xff]  ;;  %v11910_v40 = vld [vmem:[#allocation36_spill] sm:$0xff] }
 0x8cf   : > { %v8104_v11 = vpop.eup %8103  ;;  %8123 = vrcp.f32 %v5541_v62  ;;  %6356 = vmatprep.subr.bf16.mxu1 %v7611_v22  ;;  %v5713_v19 = vmul.f32 %v10977_v16, %v11906_v56  ;;  %v5712_v3 = vmul.f32 %v10992_v25, %v11907_v24  ;;  %v5714_v1 = vmul.f32 %v11007_v18, %v11908_v61  ;;  %v5252_v16 = vpop.f32.mrb[184].mxu0  ;;  %v11911_v56 = vld [vmem:[#allocation41_spill] sm:$0xff] }
 0x8d0   : > { %v8106_v35 = vpop.eup %8105  ;;  %8125 = vrcp.f32 %v5540_v29  ;;  %6281 = vmatprep.mubr.bf16.mxu1 %v5828_v12  ;;  %v5715_v60 = vmul.f32 %v11022_v23, %v11909_v30  ;;  %v5717_v22 = vmul.f32 %v11034_v5, %v11910_v40  ;;  %v5775_v62 = vmul.f32 %v5711_v44, %v5139_v32  ;;  %v5141_v45 = vpop.f32.mrb[153].mxu1  ;;  %v7612_v61 = vld [vmem:[#allocation13 + $0x130] ss:$8 sps:$4 sm:$0xff]  }
 0x8d1   : > { %v8108_v0 = vpop.eup %8107  ;;  %8127 = vpow2.f32 %v11050_v55  ;;  %6282 = vmatmul.mubr.bf16.gmra.mrb[180].mxu1 %v5827_v6  ;;  %v5716_v18 = vmul.f32 %v11042_v9, %v11911_v56  ;;  %v11159_v29 = vmul.f32 %v5713_v19, %v5252_v16  ;;  %v5776_v12 = vmul.f32 %v5712_v3, %v5141_v45  ;;  %v5254_v24 = vpop.f32.mrb[185].mxu0  ;;  %v11912_v30 = vld [vmem:[#allocation45_spill] sm:$0xff]  ;;  %v11913_v45 = vld [vmem:[#allocation46_spill] sm:$0xff] }
 0x8d2   : > { %v8110_v25 = vpop.eup %8109  ;;  %8129 = vpow2.f32 %v11059_v20  ;;  %v5143_v23 = vpop.f32.mrb[154].mxu1  ;;  %6357 = vmatpush1.bf16.msra.mxu1 %v7609_v54  ;;  %v5718_v55 = vmul.f32 %v11052_v48, %v11912_v30  ;;  %v11164_v6 = vmul.f32 %v5714_v1, %v5254_v24  ;;  %v7617_v20 = vld [vmem:[#allocation13 + $0x144] ss:$8 sps:$4 sm:$0xff]   ;;  %v11168_v3 = vmul.f32 -1.442695, %v10948_v4 }
 0x8d3   : > { %v8112_v5 = vpop.eup %8111  ;;  %8131 = vpow2.f32 %v11062_v13  ;;  %v5779_v44 = vmul.f32 %v5715_v60, %v5143_v23  ;;  %v5256_v32 = vpop.f32.mrb[186].mxu0  ;;  %6358 = vmatprep.subr.bf16.mxu1 %v7614_v63  ;;  %v5719_v13 = vmul.f32 %v11064_v2, %v11913_v45  ;;  %v11914_v56 = vld [vmem:[#allocation50_spill] sm:$0xff]  ;;  %v5720_v2 = vmul.f32 %v11134_v21, %v10860_v37 }
 0x8d4   : > { %v5145_v9 = vpop.f32.mrb[155].mxu1  ;;  %v8114_v19 = vpop.eup %8113  ;;  %8133 = vpow2.f32 %v11067_v34  ;;  %v11170_v54 = vmul.f32 %v5717_v22, %v5256_v32  ;;  %v5721_v34 = vmul.f32 %v11075_v31, %v11914_v56  ;;  %v7615_v24 = vld [vmem:[#allocation13 + $0x140] ss:$8 sps:$4 sm:$0xff]   ;;  %v7620_v31 = vld [vmem:[#allocation13 + $0x154] ss:$8 sps:$4 sm:$0xff]   ;;  %v5723_v30 = vmul.f32 %v8106_v35, %v10867_v49 }
 0x8d5   : > { %v5780_v40 = vmul.f32 %v5716_v18, %v5145_v9  ;;  %v5258_v16 = vpop.f32.mrb[187].mxu0  ;;  %v8116_v48 = vpop.eup %8115  ;;  %8135 = vpow2.f32 %v11070_v51  ;;  %v5831_v1 = vpack.c.bf16 %v5779_v44, %v5775_v62  ;;  %v5722_v51 = vmul.f32 %v8104_v11, %v10865_v7  ;;  %v11937_v62 = vld [vmem:[#allocation81_spill] sm:$0xff] }
 0x8d6   : > { %v11175_v60 = vmul.f32 %v5718_v55, %v5258_v16  ;;  %v8118_v63 = vpop.eup %8117  ;;  %8137 = vpow2.f32 %v11073_v52  ;;  %6359 = vmatpush1.bf16.msra.mxu1 %v7612_v61  ;;  %v5724_v61 = vmul.f32 %v8110_v25, %v10874_v28  ;;  %v5149_v55 = vpop.f32.mrb[156].mxu1  ;;  %v5726_v7 = vmul.f32 %v8112_v5, %v10879_v41  ;;  %v7618_v41 = vld [vmem:[#allocation13 + $0x150] ss:$8 sps:$4 sm:$0xff]  }
 0x8d7   : > { %v5832_v18 = vpack.c.bf16 %v5780_v40, %v5776_v12  ;;  %v8120_v23 = vpop.eup %8119  ;;  %8139 = vpow2.f32 %v11082_v17  ;;  %6360 = vmatprep.subr.bf16.mxu1 %v7617_v20  ;;  %v5725_v12 = vmul.f32 %v8108_v0, %v10872_v58  ;;  %v5727_v17 = vmul.f32 %v8114_v19, %v10893_v27  ;;  %v5262_v11 = vpop.f32.mrb[188].mxu0 }
 0x8d8   : > { %v8122_v52 = vpop.eup %8121  ;;  %8141 = vpow2.f32 %v11085_v36  ;;  %v5783_v21 = vmul.f32 %v5719_v13, %v5149_v55  ;;  %v5151_v44 = vpop.f32.mrb[157].mxu1  ;;  %v5729_v58 = vmul.f32 %v8116_v48, %v10895_v43  ;;  %v11197_v28 = vmul.f32 %v5721_v34, %v5262_v11  ;;  %v7623_v43 = vld [vmem:[#allocation13 + $0x164] ss:$8 sps:$4 sm:$0xff]  }
 0x8d9   : > { %6291 = vmatprep.mubr.bf16.mxu1 %v5832_v18  ;;  %v8124_v37 = vpop.eup %8123  ;;  %8143 = vpow2.f32 %v11088_v8  ;;  %v5784_v36 = vmul.f32 %v5720_v2, %v5151_v44  ;;  %v5264_v35 = vpop.f32.mrb[189].mxu0  ;;  %v5728_v27 = vmul.f32 %v8118_v63, %v10900_v50  ;;  %v11915_v18 = vld [vmem:[#allocation27_spill] sm:$0xff] }
 0x8da   : > { %6292 = vmatmul.mubr.bf16.gmra.mrb[184].mxu1 %v5831_v1  ;;  %v8126_v49 = vpop.eup %8125  ;;  %8145 = vpow2.f32 %v11091_v26  ;;  %v5153_v0 = vpop.f32.mrb[158].mxu1  ;;  %v11201_v8 = vmul.f32 %v5722_v51, %v5264_v35  ;;  %v7626_v51 = vld [vmem:[#allocation13 + $0x174] ss:$8 sps:$4 sm:$0xff]   ;;  %v11918_v44 = vld [vmem:[#allocation55_spill] sm:$0xff] }
 0x8db   : > { %6361 = vmatpush1.bf16.msra.mxu1 %v7615_v24  ;;  %v8128_v25 = vpop.eup %8127  ;;  %8147 = vpow2.f32 %v11111_v15  ;;  %v5787_v5 = vmul.f32 %v5723_v30, %v5153_v0  ;;  %v5266_v32 = vpop.f32.mrb[190].mxu0  ;;  %v5730_v24 = vmul.f32 %v8120_v23, %v11915_v18  ;;  %v11916_v30 = vld [vmem:[#allocation51_spill] sm:$0xff] }
 0x8dc   : > { %v5155_v9 = vpop.f32.mrb[159].mxu1  ;;  %6362 = vmatprep.subr.bf16.mxu1 %v7620_v31  ;;  %v8130_v26 = vpop.eup %8129  ;;  %v5542_v20 = vadd.f32 1.0, %v8128_v25  ;;  %8149 = vpow2.f32 %v11141_v57  ;;  %v11204_v19 = vmul.f32 %v5725_v12, %v5266_v32  ;;  %v7621_v57 = vld [vmem:[#allocation13 + $0x160] ss:$8 sps:$4 sm:$0xff]   ;;  %v5731_v12 = vmul.f32 %v8122_v52, %v11916_v30 }
 0x8dd   : > { %v5788_v40 = vmul.f32 %v5724_v61, %v5155_v9  ;;  %v5268_v16 = vpop.f32.mrb[191].mxu0  ;;  %v8132_v48 = vpop.eup %8131  ;;  %v5543_v45 = vadd.f32 1.0, %v8130_v26  ;;  %8151 = vpow2.f32 %v11168_v3  ;;  %v5835_v50 = vpack.c.bf16 %v5787_v5, %v5783_v21  ;;  %v11917_v61 = vld [vmem:[#allocation44_spill] sm:$0xff] }
 0x8de   : > { %v11207_v15 = vmul.f32 %v5726_v7, %v5268_v16  ;;  %v8134_v13 = vpop.eup %8133  ;;  %8153 = vrcp.f32 %v5542_v20  ;;  %v5545_v1 = vadd.f32 1.0, %v8132_v48  ;;  %v5733_v55 = vmul.f32 %v8124_v37, %v11917_v61  ;;  %v5159_v21 = vpop.f32.mrb[160].mxu1  ;;  %v7629_v48 = vld [vmem:[#allocation13 + $0x184] ss:$8 sps:$4 sm:$0xff]  }
 0x8df   : > { %v5836_v56 = vpack.c.bf16 %v5788_v40, %v5784_v36  ;;  %6363 = vmatpush1.bf16.msra.mxu1 %v7618_v41  ;;  %v8136_v34 = vpop.eup %8135  ;;  %8155 = vrcp.f32 %v5543_v45  ;;  %v5544_v2 = vadd.f32 1.0, %v8134_v13  ;;  %v5732_v36 = vmul.f32 %v8126_v49, %v11918_v44  ;;  %v5272_v0 = vpop.f32.mrb[192].mxu0 }
 0x8e0   : > { %6364 = vmatprep.subr.bf16.mxu1 %v7623_v43  ;;  %v8138_v31 = vpop.eup %8137  ;;  %8157 = vrcp.f32 %v5545_v1  ;;  %v5546_v7 = vadd.f32 1.0, %v8136_v34  ;;  %v5791_v35 = vmul.f32 %v5727_v17, %v5159_v21  ;;  %v5161_v41 = vpop.f32.mrb[161].mxu1  ;;  %v11217_v32 = vmul.f32 %v5729_v58, %v5272_v0  ;;  %v7624_v43 = vld [vmem:[#allocation13 + $0x170] ss:$8 sps:$4 sm:$0xff]  }
 0x8e1   : > { %6301 = vmatprep.mubr.bf16.mxu1 %v5836_v56  ;;  %v8140_v11 = vpop.eup %8139  ;;  %8159 = vrcp.f32 %v5544_v2  ;;  %v5547_v23 = vadd.f32 1.0, %v8138_v31  ;;  %v5792_v52 = vmul.f32 %v5728_v27, %v5161_v41  ;;  %v5274_v37 = vpop.f32.mrb[193].mxu0  ;;  %v11924_v0 = vld [vmem:[#allocation28_spill] sm:$0xff] }
 0x8e2   : > { %6302 = vmatmul.mubr.bf16.gmra.mrb[188].mxu1 %v5835_v50  ;;  %v8142_v25 = vpop.eup %8141  ;;  %8161 = vrcp.f32 %v5546_v7  ;;  %v5549_v5 = vadd.f32 1.0, %v8140_v11  ;;  %11919 = vst [vmem:[#allocation85_spill] sm:$0xff] %v11217_v32  ;;  %v5163_v9 = vpop.f32.mrb[162].mxu1  ;;  %v11219_v49 = vmul.f32 %v5730_v24, %v5274_v37  ;;  %v11923_v11 = vld [vmem:[#allocation88_spill] sm:$0xff] }
 0x8e3   : > { %6365 = vmatpush1.bf16.msra.mxu1 %v7621_v57  ;;  %v8144_v26 = vpop.eup %8143  ;;  %8163 = vrcp.f32 %v5547_v23  ;;  %v5548_v20 = vadd.f32 1.0, %v8142_v25  ;;  %v5795_v40 = vmul.f32 %v5731_v12, %v5163_v9  ;;  %v5276_v17 = vpop.f32.mrb[194].mxu0  ;;  %v11922_v12 = vld [vmem:[#allocation87_spill] sm:$0xff]  ;;  %v6968_v44 = vmul.f32 -1.442695, %v11923_v11  ;;  %v11925_v25 = vld [vmem:[#allocation89_spill] sm:$0xff] }
 0x8e4   : > { %11920 = vst [vmem:[#allocation75_spill] sm:$0xff] %v11219_v49  ;;  %v5165_v16 = vpop.f32.mrb[163].mxu1  ;;  %6366 = vmatprep.subr.bf16.mxu1 %v7626_v51  ;;  %v8146_v45 = vpop.eup %8145  ;;  %8165 = vrcp.f32 %v5549_v5  ;;  %v5550_v50 = vadd.f32 1.0, %v8144_v26  ;;  %v11221_v58 = vmul.f32 %v5733_v55, %v5276_v17  ;;  %v7627_v51 = vld [vmem:[#allocation13 + $0x180] ss:$8 sps:$4 sm:$0xff]  }
 0x8e5   : > { %v5796_v27 = vmul.f32 %v5732_v36, %v5165_v16  ;;  %v5278_v13 = vpop.f32.mrb[195].mxu0  ;;  %v8148_v1 = vpop.eup %8147  ;;  %8167 = vrcp.f32 %v5548_v20  ;;  %v5551_v56 = vadd.f32 1.0, %v8146_v45  ;;  %v5839_v57 = vpack.c.bf16 %v5795_v40, %v5791_v35  ;;  %v7632_v55 = vld [vmem:[#allocation13 + $0x194] ss:$8 sps:$4 sm:$0xff]   ;;  %v7630_v23 = vld [vmem:[#allocation13 + $0x190] ss:$8 sps:$4 sm:$0xff]  }
 0x8e6   : > { %11921 = vst [vmem:[#allocation77_spill] sm:$0xff] %v11221_v58  ;;  %v8150_v34 = vpop.eup %8149  ;;  %8169 = vrcp.f32 %v5550_v50  ;;  %v5553_v18 = vadd.f32 1.0, %v8148_v1  ;;  %v6966_v61 = vmul.f32 -1.442695, %v11922_v12  ;;  %v5169_v36 = vpop.f32.mrb[164].mxu1  ;;  %v11927_v20 = vld [vmem:[#allocation56_spill] sm:$0xff] }
 0x8e7   : > { %v5840_v2 = vpack.c.bf16 %v5796_v27, %v5792_v52  ;;  %6367 = vmatpush1.bf16.msra.mxu1 %v7624_v43  ;;  %v8152_v31 = vpop.eup %8151  ;;  %8171 = vrcp.f32 %v5551_v56  ;;  %v5552_v30 = vadd.f32 1.0, %v8150_v34  ;;  %v6967_v5 = vmul.f32 -1.442695, %v11925_v25  ;;  %v11926_v52 = vld [vmem:[#allocation90_spill] sm:$0xff]  ;;  %v5282_v9 = vpop.f32.mrb[196].mxu0  ;;  %v11928_v17 = vld [vmem:[#allocation91_spill] sm:$0xff] }
 0x8e8   : > { %6368 = vmatprep.subr.bf16.mxu1 %v7629_v48  ;;  %v8154_v7 = vpop.eup %8153  ;;  %8173 = vrcp.f32 %v5553_v18  ;;  %v5554_v21 = vadd.f32 1.0, %v8152_v31  ;;  %v6969_v37 = vmul.f32 -1.442695, %v11926_v52  ;;  %v5171_v43 = vpop.f32.mrb[165].mxu1  ;;  %v6970_v16 = vmul.f32 -1.442695, %v11928_v17 }
 0x8e9   : > { %6311 = vmatprep.mubr.bf16.mxu1 %v5840_v2  ;;  %v8156_v35 = vpop.eup %8155  ;;  %v5734_v41 = vmul.f32 %v8154_v7, %v11924_v0  ;;  %8175 = vrcp.f32 %v5552_v30  ;;  %v11929_v48 = vld [vmem:[#allocation92_spill] sm:$0xff]  ;;  %v5284_v50 = vpop.f32.mrb[197].mxu0  ;;  %v11930_v56 = vld [vmem:[#allocation49_spill] sm:$0xff]  ;;  %v7635_v7 = vld [vmem:[#allocation13 + $0x1a4] ss:$8 sps:$4 sm:$0xff]  }
 0x8ea   : > { %6312 = vmatmul.mubr.bf16.gmra.mrb[192].mxu1 %v5839_v57  ;;  %v8158_v26 = vpop.eup %8157  ;;  %v5735_v40 = vmul.f32 %v8156_v35, %v11927_v20  ;;  %8177 = vrcp.f32 %v5554_v21  ;;  %v6972_v45 = vmul.f32 -1.442695, %v11929_v48  ;;  %v5173_v27 = vpop.f32.mrb[166].mxu1  ;;  %v11931_v18 = vld [vmem:[#allocation93_spill] sm:$0xff]  ;;  %v11932_v35 = vld [vmem:[#allocation26_spill] sm:$0xff]  ;;  %v11943_v58 = vld [vmem:[#allocation84_spill] sm:$0xff] }
 0x8eb   : > { %6369 = vmatpush1.bf16.msra.mxu1 %v7627_v51  ;;  %v8160_v1 = vpop.eup %8159  ;;  %v5737_v34 = vmul.f32 %v8158_v26, %v11930_v56  ;;  %8179 = vpow2.f32 %v6966_v61  ;;  %v6971_v2 = vmul.f32 -1.442695, %v11931_v18  ;;  %v11235_v31 = vmul.f32 %v5734_v41, %v5278_v13  ;;  %v5286_v57 = vpop.f32.mrb[198].mxu0  ;;  %v11933_v20 = vld [vmem:[#allocation94_spill] sm:$0xff]  ;;  %v11934_v26 = vld [vmem:[#allocation79_spill] sm:$0xff]  ;;  %v11935_v56 = vld [vmem:[#allocation80_spill] sm:$0xff] }
 0x8ec   : > { %v5175_v30 = vpop.f32.mrb[167].mxu1  ;;  %6370 = vmatprep.subr.bf16.mxu1 %v7632_v55  ;;  %v8162_v21 = vpop.eup %8161  ;;  %v5736_v0 = vmul.f32 %v8160_v1, %v11932_v35  ;;  %8181 = vpow2.f32 %v6968_v44  ;;  %v6973_v24 = vmul.f32 -1.442695, %v11933_v20  ;;  %v11239_v63 = vmul.f32 %v5735_v40, %v5169_v36  ;;  %v11936_v1 = vld [vmem:[#allocation95_spill] sm:$0xff]  ;;  %v11939_v13 = vld [vmem:[#allocation82_spill] sm:$0xff] }
 0x8ed   : > { %v5288_v51 = vpop.f32.mrb[199].mxu0  ;;  %v8164_v3 = vpop.eup %8163  ;;  %v5738_v61 = vmul.f32 %v8162_v21, %v11934_v26  ;;  %8183 = vpow2.f32 %v6967_v5  ;;  %v11244_v41 = vmul.f32 %v5737_v34, %v5282_v9  ;;  %v6974_v44 = vmul.f32 -1.442695, %v11936_v1  ;;  %v7633_v36 = vld [vmem:[#allocation13 + $0x1a0] ss:$8 sps:$4 sm:$0xff]   ;;  %v11938_v21 = vld [vmem:[#allocation96_spill] sm:$0xff] }
 0x8ee   : > { %v8166_v55 = vpop.eup %8165  ;;  %v5739_v22 = vmul.f32 %v8164_v3, %v11935_v56  ;;  %8185 = vpow2.f32 %v6969_v37  ;;  %v5800_v35 = vmul.f32 %v5736_v0, %v5171_v43  ;;  %v6976_v5 = vmul.f32 -1.442695, %v11938_v21  ;;  %v7638_v9 = vld [vmem:[#allocation13 + $0x1b4] ss:$8 sps:$4 sm:$0xff]   ;;  %v5179_v43 = vpop.f32.mrb[168].mxu1  ;;  %v11941_v0 = vld [vmem:[#allocation83_spill] sm:$0xff] }
 0x8ef   : > { %6371 = vmatpush1.bf16.msra.mxu1 %v7630_v23  ;;  %v8168_v40 = vpop.eup %8167  ;;  %v5741_v47 = vmul.f32 %v8166_v55, %v11937_v62  ;;  %8187 = vpow2.f32 %v6970_v16  ;;  %v11250_v26 = vmul.f32 %v5738_v61, %v5284_v50  ;;  %v11940_v3 = vld [vmem:[#allocation97_spill] sm:$0xff]  ;;  %v11942_v62 = vld [vmem:[#allocation98_spill] sm:$0xff]  ;;  %v5292_v50 = vpop.f32.mrb[200].mxu0 }
 0x8f0   : > { %6372 = vmatprep.subr.bf16.mxu1 %v7635_v7  ;;  %v8170_v34 = vpop.eup %8169  ;;  %v5740_v39 = vmul.f32 %v8168_v40, %v11939_v13  ;;  %8189 = vpow2.f32 %v6972_v45  ;;  %v6975_v37 = vmul.f32 -1.442695, %v11940_v3  ;;  %v5803_v56 = vmul.f32 %v5739_v22, %v5173_v27  ;;  %v5181_v61 = vpop.f32.mrb[169].mxu1  ;;  %v7636_v27 = vld [vmem:[#allocation13 + $0x1b0] ss:$8 sps:$4 sm:$0xff]  }
 0x8f1   : > { %v8172_v23 = vpop.eup %8171  ;;  %v5742_v32 = vmul.f32 %v8170_v34, %v11941_v0  ;;  %8191 = vpow2.f32 %v6971_v2  ;;  %v6977_v16 = vmul.f32 -1.442695, %v11942_v62  ;;  %v11256_v55 = vmul.f32 %v5741_v47, %v5286_v57  ;;  %v5294_v40 = vpop.f32.mrb[201].mxu0  ;;  %v7650_v47 = vld [vmem:[#allocation13 + $0x1f4] ss:$8 sps:$4 sm:$0xff]  }
 0x8f2   : > { %v8174_v7 = vpop.eup %8173  ;;  %v5743_v49 = vmul.f32 %v8172_v23, %v11943_v58  ;;  %8193 = vpow2.f32 %v6973_v24  ;;  %v5843_v45 = vpack.c.bf16 %v5803_v56, %v11239_v63  ;;  %v5804_v13 = vmul.f32 %v5740_v39, %v5175_v30  ;;  %v11260_v22 = vpop.f32.mrb[170].mxu1  ;;  %v7641_v39 = vld [vmem:[#allocation13 + $0x1c4] ss:$8 sps:$4 sm:$0xff]  }
 0x8f3   : > { %6373 = vmatpush1.bf16.msra.mxu1 %v7633_v36  ;;  %v8176_v34 = vpop.eup %8175  ;;  %v5745_v2 = vmul.f32 %v8174_v7, %v11900_v14  ;;  %8195 = vpow2.f32 %v6974_v44  ;;  %v11265_v57 = vmul.f32 %v5742_v32, %v5288_v51  ;;  %v11267_v0 = vpop.f32.mrb[202].mxu0 }
 0x8f4   : > { %v11269_v58 = vpop.f32.mrb[171].mxu1  ;;  %6374 = vmatprep.subr.bf16.mxu1 %v7638_v9  ;;  %v8178_v63 = vpop.eup %8177  ;;  %v5744_v24 = vmul.f32 %v8176_v34, %v11905_v59  ;;  %8197 = vpow2.f32 %v6976_v5  ;;  %v5844_v30 = vpack.c.bf16 %v5804_v13, %v5800_v35  ;;  %v11272_v36 = vmul.f32 %v5743_v49, %v5179_v43  ;;  %v7639_v49 = vld [vmem:[#allocation13 + $0x1c0] ss:$8 sps:$4 sm:$0xff]  }
 0x8f5   : > { %v11274_v14 = vpop.f32.mrb[203].mxu0  ;;  %v8180_v44 = vpop.eup %8179  ;;  %v5746_v56 = vmul.f32 %v8178_v63, %v10948_v4  ;;  %8199 = vpow2.f32 %v6975_v37  ;;  %v11279_v51 = vmul.f32 %v5745_v2, %v5292_v50  ;;  %v7644_v4 = vld [vmem:[#allocation13 + $0x1d4] ss:$8 sps:$4 sm:$0xff]  }
 0x8f6   : > { %v8182_v9 = vpop.eup %8181  ;;  %v5555_v23 = vadd.f32 1.0, %v8180_v44  ;;  %8201 = vpow2.f32 %v6977_v16  ;;  %6321 = vmatprep.mubr.bf16.mxu1 %v5844_v30  ;;  %v11281_v59 = vmul.f32 %v5744_v24, %v5181_v61  ;;  %v11285_v50 = vpop.f32.mrb[172].mxu1 }
 0x8f7   : > { %6375 = vmatpush1.bf16.msra.mxu1 %v7636_v27  ;;  %v8184_v35 = vpop.eup %8183  ;;  %v5557_v5 = vadd.f32 1.0, %v8182_v9  ;;  %v11283_v43 = vmul.f32 %v5746_v56, %v5294_v40  ;;  %v11287_v34 = vpop.f32.mrb[204].mxu0  ;;  %v7647_v56 = vld [vmem:[#allocation13 + $0x1e4] ss:$8 sps:$4 sm:$0xff]  }
 0x8f8   : > { %6322 = vmatmul.mubr.bf16.gmra.mrb[196].mxu1 %v5843_v45  ;;  %6376 = vmatprep.subr.bf16.mxu1 %v7641_v39  ;;  %v8186_v37 = vpop.eup %8185  ;;  %8203 = vrcp.f32 %v5555_v23  ;;  %v5556_v7 = vadd.f32 1.0, %v8184_v35  ;;  %v11289_v61 = vpop.f32.mrb[173].mxu1  ;;  %v7642_v39 = vld [vmem:[#allocation13 + $0x1d0] ss:$8 sps:$4 sm:$0xff]  }
 0x8f9   : > { %v8188_v13 = vpop.eup %8187  ;;  %8205 = vrcp.f32 %v5557_v5  ;;  %v5558_v16 = vadd.f32 1.0, %v8186_v37  ;;  %v11291_v40 = vpop.f32.mrb[205].mxu0 }
 0x8fa   : > { %v8190_v27 = vpop.eup %8189  ;;  %8207 = vrcp.f32 %v5556_v7  ;;  %v5559_v2 = vadd.f32 1.0, %v8188_v13  ;;  %v11293_v45 = vpop.f32.mrb[174].mxu1  ;;  %v7645_v13 = vld [vmem:[#allocation13 + $0x1e0] ss:$8 sps:$4 sm:$0xff]  }
 0x8fb   : > { %6377 = vmatpush1.bf16.msra.mxu1 %v7639_v49  ;;  %v8192_v63 = vpop.eup %8191  ;;  %8209 = vrcp.f32 %v5558_v16  ;;  %v5561_v24 = vadd.f32 1.0, %v8190_v27  ;;  %v11295_v30 = vpop.f32.mrb[206].mxu0 }
 0x8fc   : > { %v11297_v44 = vpop.f32.mrb[175].mxu1  ;;  %6378 = vmatprep.subr.bf16.mxu1 %v7644_v4  ;;  %v8194_v9 = vpop.eup %8193  ;;  %8211 = vrcp.f32 %v5559_v2  ;;  %v5560_v23 = vadd.f32 1.0, %v8192_v63 }
 0x8fd   : > { %v11299_v35 = vpop.f32.mrb[207].mxu0  ;;  %v8196_v5 = vpop.eup %8195  ;;  %8213 = vrcp.f32 %v5561_v24  ;;  %v5562_v37 = vadd.f32 1.0, %v8194_v9  ;;  %v7648_v24 = vld [vmem:[#allocation13 + $0x1f0] ss:$8 sps:$4 sm:$0xff]  }
 0x8fe   : > { %v8198_v7 = vpop.eup %8197  ;;  %8215 = vrcp.f32 %v5560_v23  ;;  %v5563_v49 = vadd.f32 1.0, %v8196_v5 }
 0x8ff   : > { %6379 = vmatpush1.bf16.msra.mxu1 %v7642_v39  ;;  %v8200_v16 = vpop.eup %8199  ;;  %8217 = vrcp.f32 %v5562_v37  ;;  %v5565_v27 = vadd.f32 1.0, %v8198_v7 }
 0x900   : > { %6380 = vmatprep.subr.bf16.mxu1 %v7647_v56  ;;  %v8202_v4 = vpop.eup %8201  ;;  %8219 = vrcp.f32 %v5563_v49  ;;  %v5564_v32 = vadd.f32 1.0, %v8200_v16 }
 0x901   : > { %8221 = vrcp.f32 %v5565_v27  ;;  %v5566_v2 = vadd.f32 1.0, %v8202_v4 }
 0x902   : > { %v8204_v63 = vpop.eup %8203  ;;  %8223 = vrcp.f32 %v5564_v32 }
 0x903   : > { %6381 = vmatpush1.bf16.msra.mxu1 %v7645_v13  ;;  %v8206_v9 = vpop.eup %8205  ;;  %v5747_v23 = vmul.f32 %v8204_v63, %v11922_v12  ;;  %8225 = vrcp.f32 %v5566_v2 }
 0x904   : > { %6382 = vmatprep.subr.bf16.mxu1 %v7650_v47  ;;  %v8208_v39 = vpop.eup %8207  ;;  %v5749_v5 = vmul.f32 %v8206_v9, %v11923_v11 }
 0x905   : > { %v8210_v37 = vpop.eup %8209  ;;  %v5748_v56 = vmul.f32 %v8208_v39, %v11925_v25  ;;  %v5811_v7 = vmul.f32 %v5747_v23, %v11260_v22 }
 0x906   : > { %v8212_v49 = vpop.eup %8211  ;;  %v5750_v16 = vmul.f32 %v8210_v37, %v11926_v52  ;;  %v5813_v32 = vmul.f32 %v5749_v5, %v11267_v0 }
 0x907   : > { %6383 = vmatpush1.bf16.msra.mxu1 %v7648_v24  ;;  %v8214_v13 = vpop.eup %8213  ;;  %v5751_v27 = vmul.f32 %v8212_v49, %v11928_v17  ;;  %v5847_v12 = vpack.c.bf16 %v5811_v7, %v11272_v36  ;;  %v5812_v47 = vmul.f32 %v5748_v56, %v11269_v58 }
 0x908   : > { %v8216_v4 = vpop.eup %8215  ;;  %v5753_v11 = vmul.f32 %v8214_v13, %v11929_v48  ;;  %v5849_v25 = vpack.c.bf16 %v5813_v32, %v11279_v51  ;;  %v5814_v22 = vmul.f32 %v5750_v16, %v11274_v14  ;;  %v11965_v32 = vld [vmem:[#allocation66_spill] sm:$0xff] }
 0x909   : > { %v8218_v2 = vpop.eup %8217  ;;  %v5752_v52 = vmul.f32 %v8216_v4, %v11931_v18  ;;  %v5848_v0 = vpack.c.bf16 %v5812_v47, %v11281_v59  ;;  %v5815_v63 = vmul.f32 %v5751_v27, %v11285_v50 }
 0x90a   : > { %v8220_v24 = vpop.eup %8219  ;;  %v5754_v17 = vmul.f32 %v8218_v2, %v11933_v20  ;;  %v5850_v36 = vpack.c.bf16 %v5814_v22, %v11283_v43  ;;  %v5817_v58 = vmul.f32 %v5753_v11, %v11287_v34  ;;  %v11967_v11 = vld [vmem:[#allocation67_spill] sm:$0xff] }
 0x90b   : > { %v8222_v9 = vpop.eup %8221  ;;  %v5755_v48 = vmul.f32 %v8220_v24, %v11936_v1  ;;  %6331 = vmatprep.mubr.bf16.mxu1 %v5848_v0  ;;  %v5816_v14 = vmul.f32 %v5752_v52, %v11289_v61  ;;  %v11968_v2 = vld [vmem:[#allocation59_spill] sm:$0xff] }
 0x90c   : > { %v8224_v51 = vpop.eup %8223  ;;  %v5757_v18 = vmul.f32 %v8222_v9, %v11938_v21  ;;  %v5818_v59 = vmul.f32 %v5754_v17, %v11291_v40  ;;  %6332 = vmatmul.mubr.bf16.gmra.mrb[200].mxu1 %v5847_v12  ;;  %v11944_v40 = vpack.c.bf16 %v11106_v33, %v11098_v10  ;;  %v11951_v10 = vpack.c.bf16 %v11170_v54, %v11159_v29  ;;  %v11966_v12 = vld [vmem:[#allocation30_spill] sm:$0xff] }
 0x90d   : > { %v8226_v50 = vpop.eup %8225  ;;  %v5756_v23 = vmul.f32 %v8224_v51, %v11940_v3  ;;  %v5819_v20 = vmul.f32 %v5755_v48, %v11293_v45  ;;  %v11945_v3 = vld [vmem:[#allocation100_spill] sm:$0xff]  ;;  %v11946_v45 = vld [vmem:[#allocation99_spill] sm:$0xff]  ;;  %v11952_v33 = vpack.c.bf16 %v11207_v15, %v11201_v8  ;;  %v11959_v29 = vpack.c.bf16 %v11265_v57, %v11250_v26  ;;  %v11962_v15 = vld [vmem:[#allocation29_spill] sm:$0xff] }
 0x90e   : > { %v5758_v43 = vmul.f32 %v8226_v50, %v11942_v62  ;;  %v5821_v34 = vmul.f32 %v5757_v18, %v11295_v30  ;;  %v11947_v56 = vpack.c.bf16 %v11945_v3, %v11946_v45  ;;  %v11948_v62 = vpack.c.bf16 %v11132_v53, %v11127_v38  ;;  %v11954_v53 = vld [vmem:[#allocation75_spill] sm:$0xff]  ;;  %v11964_v57 = vld [vmem:[#allocation54_spill] sm:$0xff]  ;;  %v11972_v18 = vld [vmem:[#allocation76_spill] sm:$0xff] }
 0x90f   : > { %v5851_v39 = vpack.c.bf16 %v5819_v20, %v5815_v63  ;;  %v5820_v1 = vmul.f32 %v5756_v23, %v11297_v44  ;;  %v11949_v30 = vpack.c.bf16 %v11130_v42, %v11123_v46  ;;  %v11950_v44 = vpack.c.bf16 %v11175_v60, %v11164_v6  ;;  %v11956_v42 = vld [vmem:[#allocation77_spill] sm:$0xff]  ;;  %v11971_v48 = vld [vmem:[#allocation74_spill] sm:$0xff]  ;;  %v11977_v45 = vld [vmem:[#allocation72_spill] sm:$0xff] }
 0x910   : > { %v5853_v5 = vpack.c.bf16 %v5821_v34, %v5817_v58  ;;  %v5822_v61 = vmul.f32 %v5758_v43, %v11299_v35  ;;  %v11953_v38 = vpack.c.bf16 %v11204_v19, %v11197_v28  ;;  %v11955_v46 = vpack.c.bf16 %v11235_v31, %v11954_v53  ;;  %v11957_v35 = vld [vmem:[#allocation85_spill] sm:$0xff]  ;;  %v11961_v28 = vld [vmem:[#allocation60_spill] sm:$0xff]  ;;  %v11974_v34 = vld [vmem:[#allocation39_spill] sm:$0xff] }
 0x911   : > { %v5852_v37 = vpack.c.bf16 %v5820_v1, %v5816_v14  ;;  %v11958_v6 = vpack.c.bf16 %v11956_v42, %v11957_v35  ;;  %v11960_v54 = vpack.c.bf16 %v11256_v55, %v11244_v41  ;;  %v11963_v41 = vld [vmem:[#allocation61_spill] sm:$0xff] }
 0x912   : > { %v5854_v21 = vpack.c.bf16 %v5822_v61, %v5818_v59  ;;  %v11969_v63 = vld [vmem:[#allocation73_spill] sm:$0xff] }
 0x913   : > { %6341 = vmatprep.mubr.bf16.mxu1 %v5852_v37  ;;  %v11973_v23 = vld [vmem:[#allocation65_spill] sm:$0xff] }
 0x914   : > { %6342 = vmatmul.mubr.bf16.gmra.mrb[204].mxu1 %v5851_v39 }
 0x915   : > { %6384 = vmatprep.mubr.bf16.mxu1 %v11944_v40 }
 0x91c   : > { %6385 = vmatmul.mubr.bf16.vlgmr.msra.gmra.mrb[176].mxu1 %v11947_v56 }
 0x91d   : > { %6394 = vmatprep.mubr.bf16.mxu1 %v11948_v62 }
 0x924   : > { %6395 = vmatmul.mubr.bf16.gmra.mrb[180].mxu1 %v11949_v30  ;;  %v11978_v30 = vld [vmem:[#allocation42_spill] sm:$0xff] }
 0x925   : > { %6404 = vmatprep.mubr.bf16.mxu1 %v11950_v44 }
 0x92c   : > { %6405 = vmatmul.mubr.bf16.gmra.mrb[184].mxu1 %v11951_v10 }
 0x92d   : > { %6414 = vmatprep.mubr.bf16.mxu1 %v11952_v33  ;;  %v11979_v33 = vld [vmem:[#allocation37_spill] sm:$0xff] }
 0x934   : > { %6415 = vmatmul.mubr.bf16.gmra.mrb[188].mxu1 %v11953_v38 }
 0x935   : > { %6424 = vmatprep.mubr.bf16.mxu1 %v11955_v46  ;;  %v11980_v46 = vld [vmem:[#allocation43_spill] sm:$0xff] }
 0x93c   : > { %6425 = vmatmul.mubr.bf16.gmra.mrb[192].mxu1 %v11958_v6  ;;  %v11981_v6 = vld [vmem:[#allocation78_spill] sm:$0xff] }
 0x93d   : > { %6434 = vmatprep.mubr.bf16.mxu1 %v11959_v29 }
 0x944   : > { %6435 = vmatmul.mubr.bf16.gmra.mrb[196].mxu1 %v11960_v54 }
 0x945   : > { %6444 = vmatprep.mubr.bf16.mxu1 %v5850_v36  ;;  %v11970_v36 = vld [vmem:[#allocation31_spill] sm:$0xff] }
 0x94c   : > { %6445 = vmatmul.mubr.bf16.gmra.mrb[200].mxu1 %v5849_v25 }
 0x94d   : > { %6454 = vmatprep.mubr.bf16.mxu1 %v5854_v21  ;;  %v11976_v21 = vld [vmem:[#allocation40_spill] sm:$0xff] }
 0x954   : > { %6455 = vmatmul.mubr.bf16.gmra.mrb[204].mxu1 %v5853_v5  ;;  %v11975_v5 = vld [vmem:[#allocation34_spill] sm:$0xff] }
 0x9ef   : > { %v6386_v60 = vpop.f32.mrb[176].mxu1 }
 0x9f0   : > { %v6465_v8 = vadd.f32 %v6386_v60, %v11961_v28  ;;  %v6388_v19 = vpop.f32.mrb[177].mxu1  ;;  %v11982_v60 = vld [vmem:[#allocation38_spill] sm:$0xff] }
 0x9f1   : > { %v6466_v31 = vadd.f32 %v6388_v19, %v11962_v15  ;;  %v6390_v7 = vpop.f32.mrb[178].mxu1  ;;  %v11983_v19 = vld [vmem:[#allocation47_spill] sm:$0xff] }
 0x9f2   : > { %6497 = vst [vmem:[%s11370_s12] sm:$0xff] %v6465_v8  ;;  %v6467_v26 = vadd.f32 %v6390_v7, %v11963_v41  ;;  %v6392_v55 = vpop.f32.mrb[179].mxu1  ;;  %v11984_v7 = vld [vmem:[#allocation48_spill] sm:$0xff] }
 0x9f3   : > { %6498 = vst [vmem:[%s11370_s12 + $0x8] sm:$0xff] %v6466_v31  ;;  %v6468_v49 = vadd.f32 %v6392_v55, %v11964_v57  ;;  %v11985_v55 = vld [vmem:[#allocation52_spill] sm:$0xff] }
 0x9f4   : > { %6499 = vst [vmem:[%s11370_s12 + $0x10] sm:$0xff] %v6467_v26 }
 0x9f5   : > { %6500 = vst [vmem:[%s11370_s12 + $0x18] sm:$0xff] %v6468_v49 }
 0x9f7   : > { %v6396_v16 = vpop.f32.mrb[180].mxu1 }
 0x9f8   : > { %v6469_v13 = vadd.f32 %v6396_v16, %v11965_v32  ;;  %v6398_v27 = vpop.f32.mrb[181].mxu1  ;;  %v11986_v16 = vld [vmem:[#allocation53_spill] sm:$0xff] }
 0x9f9   : > { %v6470_v47 = vadd.f32 %v6398_v27, %v11966_v12  ;;  %v6400_v4 = vpop.f32.mrb[182].mxu1  ;;  %v11987_v27 = vld [vmem:[#allocation57_spill] sm:$0xff] }
 0x9fa   : > { %6501 = vst [vmem:[%s11370_s12 + $0x20] sm:$0xff] %v6469_v13  ;;  %v6471_v25 = vadd.f32 %v6400_v4, %v11967_v11  ;;  %v6402_v22 = vpop.f32.mrb[183].mxu1  ;;  %v11988_v4 = vld [vmem:[#allocation58_spill] sm:$0xff] }
 0x9fb   : > { %6502 = vst [vmem:[%s11370_s12 + $0x28] sm:$0xff] %v6470_v47  ;;  %v6472_v52 = vadd.f32 %v6402_v22, %v11968_v2  ;;  %v11989_v22 = vld [vmem:[#allocation62_spill] sm:$0xff] }
 0x9fc   : > { %6503 = vst [vmem:[%s11370_s12 + $0x30] sm:$0xff] %v6471_v25 }
 0x9fd   : > { %6504 = vst [vmem:[%s11370_s12 + $0x38] sm:$0xff] %v6472_v52 }
 0x9ff   : > { %v6406_v0 = vpop.f32.mrb[184].mxu1 }
 0xa00   : > { %v6473_v24 = vadd.f32 %v6406_v0, %v11969_v63  ;;  %v6408_v17 = vpop.f32.mrb[185].mxu1  ;;  %v11990_v0 = vld [vmem:[#allocation63_spill] sm:$0xff] }
 0xa01   : > { %v6474_v58 = vadd.f32 %v6408_v17, %v11970_v36  ;;  %v6410_v9 = vpop.f32.mrb[186].mxu1  ;;  %v11991_v17 = vld [vmem:[#allocation68_spill] sm:$0xff] }
 0xa02   : > { %6505 = vst [vmem:[%s11370_s12 + $0x40] sm:$0xff] %v6473_v24  ;;  %v6475_v14 = vadd.f32 %v6410_v9, %v11971_v48  ;;  %v6412_v51 = vpop.f32.mrb[187].mxu1  ;;  %v11992_v9 = vld [vmem:[#allocation70_spill] sm:$0xff] }
 0xa03   : > { %6506 = vst [vmem:[%s11370_s12 + $0x48] sm:$0xff] %v6474_v58  ;;  %v6476_v59 = vadd.f32 %v6412_v51, %v11972_v18 }
 0xa04   : > { %6507 = vst [vmem:[%s11370_s12 + $0x50] sm:$0xff] %v6475_v14 }
 0xa05   : > { %6508 = vst [vmem:[%s11370_s12 + $0x58] sm:$0xff] %v6476_v59 }
 0xa07   : > { %v6416_v50 = vpop.f32.mrb[188].mxu1 }
 0xa08   : > { %v6477_v20 = vadd.f32 %v6416_v50, %v11973_v23  ;;  %v6418_v43 = vpop.f32.mrb[189].mxu1 }
 0xa09   : > { %v6478_v39 = vadd.f32 %v6418_v43, %v11974_v34  ;;  %v6420_v1 = vpop.f32.mrb[190].mxu1 }
 0xa0a   : > { %6509 = vst [vmem:[%s11370_s12 + $0x60] sm:$0xff] %v6477_v20  ;;  %v6479_v61 = vadd.f32 %v6420_v1, %v11975_v5  ;;  %v6422_v37 = vpop.f32.mrb[191].mxu1 }
 0xa0b   : > { %6510 = vst [vmem:[%s11370_s12 + $0x68] sm:$0xff] %v6478_v39  ;;  %v6480_v40 = vadd.f32 %v6422_v37, %v11976_v21 }
 0xa0c   : > { %6511 = vst [vmem:[%s11370_s12 + $0x70] sm:$0xff] %v6479_v61 }
 0xa0d   : > { %6512 = vst [vmem:[%s11370_s12 + $0x78] sm:$0xff] %v6480_v40 }
 0xa0f   : > { %v6426_v3 = vpop.f32.mrb[192].mxu1 }
 0xa10   : > { %v6481_v56 = vadd.f32 %v6426_v3, %v11977_v45  ;;  %v6428_v62 = vpop.f32.mrb[193].mxu1 }
 0xa11   : > { %v6482_v44 = vadd.f32 %v6428_v62, %v11978_v30  ;;  %v6430_v10 = vpop.f32.mrb[194].mxu1 }
 0xa12   : > { %6513 = vst [vmem:[%s11370_s12 + $0x80] sm:$0xff] %v6481_v56  ;;  %v6483_v38 = vadd.f32 %v6430_v10, %v11979_v33  ;;  %v6432_v53 = vpop.f32.mrb[195].mxu1 }
 0xa13   : > { %6514 = vst [vmem:[%s11370_s12 + $0x88] sm:$0xff] %v6482_v44  ;;  %v6484_v42 = vadd.f32 %v6432_v53, %v11980_v46 }
 0xa14   : > { %6515 = vst [vmem:[%s11370_s12 + $0x90] sm:$0xff] %v6483_v38 }
 0xa15   : > { %6516 = vst [vmem:[%s11370_s12 + $0x98] sm:$0xff] %v6484_v42 }
 0xa17   : > { %v6436_v35 = vpop.f32.mrb[196].mxu1 }
 0xa18   : > { %v6485_v29 = vadd.f32 %v6436_v35, %v11981_v6  ;;  %v6438_v54 = vpop.f32.mrb[197].mxu1 }
 0xa19   : > { %v6486_v28 = vadd.f32 %v6438_v54, %v11982_v60  ;;  %v6440_v8 = vpop.f32.mrb[198].mxu1 }
 0xa1a   : > { %6517 = vst [vmem:[%s11370_s12 + $0xa0] sm:$0xff] %v6485_v29  ;;  %v6487_v15 = vadd.f32 %v6440_v8, %v11983_v19  ;;  %v6442_v31 = vpop.f32.mrb[199].mxu1 }
 0xa1b   : > { %6518 = vst [vmem:[%s11370_s12 + $0xa8] sm:$0xff] %v6486_v28  ;;  %v6488_v41 = vadd.f32 %v6442_v31, %v11984_v7 }
 0xa1c   : > { %6519 = vst [vmem:[%s11370_s12 + $0xb0] sm:$0xff] %v6487_v15 }
 0xa1d   : > { %6520 = vst [vmem:[%s11370_s12 + $0xb8] sm:$0xff] %v6488_v41 }
 0xa1f   : > { %v6446_v26 = vpop.f32.mrb[200].mxu1 }
 0xa20   : > { %v6489_v57 = vadd.f32 %v6446_v26, %v11985_v55  ;;  %v6448_v49 = vpop.f32.mrb[201].mxu1 }
 0xa21   : > { %v6490_v32 = vadd.f32 %v6448_v49, %v11986_v16  ;;  %v6450_v13 = vpop.f32.mrb[202].mxu1 }
 0xa22   : > { %6521 = vst [vmem:[%s11370_s12 + $0xc0] sm:$0xff] %v6489_v57  ;;  %v6491_v12 = vadd.f32 %v6450_v13, %v11987_v27  ;;  %v6452_v47 = vpop.f32.mrb[203].mxu1 }
 0xa23   : > { %6522 = vst [vmem:[%s11370_s12 + $0xc8] sm:$0xff] %v6490_v32  ;;  %v6492_v11 = vadd.f32 %v6452_v47, %v11988_v4 }
 0xa24   : > { %6523 = vst [vmem:[%s11370_s12 + $0xd0] sm:$0xff] %v6491_v12 }
 0xa25   : > { %6524 = vst [vmem:[%s11370_s12 + $0xd8] sm:$0xff] %v6492_v11 }
 0xa27   : > { %v6456_v25 = vpop.f32.mrb[204].mxu1 }
 0xa28   : > { %v6493_v2 = vadd.f32 %v6456_v25, %v11989_v22  ;;  %v6458_v52 = vpop.f32.mrb[205].mxu1 }
 0xa29   : > { %v6494_v63 = vadd.f32 %v6458_v52, %v11990_v0  ;;  %v6460_v24 = vpop.f32.mrb[206].mxu1 }
 0xa2a   : > { %6525 = vst [vmem:[%s11370_s12 + $0xe0] sm:$0xff] %v6493_v2  ;;  %v6495_v36 = vadd.f32 %v6460_v24, %v11991_v17  ;;  %v6462_v58 = vpop.f32.mrb[207].mxu1 }
 0xa2b   : > { %6526 = vst [vmem:[%s11370_s12 + $0xe8] sm:$0xff] %v6494_v63  ;;  %v6496_v48 = vadd.f32 %v6462_v58, %v11992_v9 }
 0xa2c   : > { %6527 = vst [vmem:[%s11370_s12 + $0xf0] sm:$0xff] %v6495_v36 }
 0xa2d   : > { %6528 = vst [vmem:[%s11370_s12 + $0xf8] sm:$0xff] %v6496_v48 }
 0xa2e   : > { %8564 = shalt.err (!%p8561_p6)
}
 0xa2f   : > { %s8565_s30 = scalar_lea.hbm %s11435_s23, 4096  ;;  %s8569_s16 = scalar_lea.hbm %s11495_s9, 8192 }
 0xa30   : > { %p8566_p9 = scmp.ne.s32.totalorder %s11435_s23, %s8565_s30  ;;  %p8570_p12 = scmp.lt.u32.totalorder %s11435_s23, %s11495_s9 }
 0xa31   : > { %p8571_p1 = scmp.lt.u32.totalorder %s8569_s16, %s8565_s30  ;;  %p8573_p3 = scmp.lt.u32.totalorder %s8565_s30, %s11435_s23 }
 0xa32   : > { %p8567_p10 = pnand %p8566_p9, %p11993_p4 }
 0xa33   : > { %p8572_p2 = por %p8571_p1, %p8570_p12 }
 0xa34   : > { %p8568_p13 = pneg %p8567_p10 }
 0xa35   : > { %p8574_p7 = por %p8573_p3, %p8572_p2 }
 0xa37   : > { %p8575_p8 = pnand %p8574_p7, %p8568_p13 }
 0xa39   : > { %8578 = shalt.err (!%p8575_p8)
}
 0xa3a   : > { %s8647_s15 = smov 256   ;;  %s8648_s26 = smov 16  }
 0xa3b   : > { %7319 = dma.vmem_to_hbm [thread:$0]  (%p11993_p4), %s11437_s29, 4096, %s11435_s23, %s11445_s13, %s8647_s15, %s8647_s15, %s8648_s26  }
 0xa3c PF: > { %s11994_s11 = sld [smem:[#allocation22_spill]]  ;;  %s11995_s12 = sld [smem:[#allocation20_spill]] }
 0xa3d   : > { %s11996_s18 = sld [smem:[#allocation25_spill]] }
 0xa42   : > { %p7361_p11 = scmp.ge.s32.totalorder %s11994_s11, 2  ;;  %s6559_s22 = sand.u32 1, %s11995_s12  }
 0xa43   : > { %p11997_p5 = scmp.ne.s32.totalorder %s11996_s18, 0  ;;  %s6560_s1 = scalar_lea.sflag [#allocation4], %s6559_s22 }
 0xa45   : > { %p7344_p0 = pnand %p7361_p11, %p11997_p5 }
 0xa47   : > { %8612 = dma.done.wait (!%p7344_p0), %s6560_s1, 4096  }
 0xa48   : > { %8614 = vsyncadd (!%p7344_p0), %s6560_s1, 4294963200  ;;  %s11998_s12 = sld [smem:[#allocation23_spill]]  ;;  %s11999_s21 = sld [smem:[#allocation21_spill]] }
 0xa49   : > { %s12000_s11 = sld [smem:[#allocation24_spill]]  ;;  %s12001_s30 = smov %s8621_s10 }
 0xa4e   : > { %p23_p6 = scmp.ge.s32.totalorder %s11998_s12, 4   ;;  %s12002_s10 = smov %s11999_s21 }
 0xa50   :  { %25 = sbr.rel (!%p23_p6) target bundleno = 9 (0x9), region = 120 }
 0xa57   :  { %6565 = vsyncpa [#allocation3], 1 }
 0xa58   :  { %6567 = vsyncpa [#allocation3 + $0x1], 1 }
 0xa59   :  { %6568 = vsyncpa [#allocation6], 1 }
 0xa5a   :  { %6569 = vsyncpa [#allocation9], 1 }
 0xa5b   :  { %6570 = vsyncpa [#allocation12], 1 }
 0xa5c   :  { %6571 = vsyncpa [#allocation4], 1 }
 0xa5d   :  { %6573 = vsyncpa [#allocation4 + $0x1], 1 }

</bundles_post_ra>
